<compile_context>
chip_gen: v6e
topology: v6e:2x2x1
jax: 0.10.0
libtpu: 0.0.40
codegen_flags: <defaults>
</compile_context>

<pallas_src>
import jax
import jax.numpy as jnp
from jax.experimental import pallas as pl
from jax.experimental.pallas import tpu as pltpu

CFG = [32, 'M', 64, 'M', 128, 'M', 512, 'M']   # small VGG features -> 512 feats
NUM_CLASSES = 10
IMG = 16          # spatial size so features end at 1x1x512 (flatten == 512)
CPAD = 128        # conv channels zero-padded to 128 lanes (lane-dense)
K1 = 32           # conv1 packed im2col depth (9*3 = 27 live rows, padded to 32)
KCOL = 9 * CPAD   # im2col contraction depth of convs 2..4


# ----------------------------------------------------------------------------
# In-kernel helpers (trace-time Python; all ops stay in VMEM)
# ----------------------------------------------------------------------------
def _pool2x2(y, n, H, W, C):
    """Split (n*H*W, C) f32 rows into per-image maps, 2x2/2 max-pool, cast bf16."""
    HW = H * W
    outs = []
    for i in range(n):
        yi = y[i * HW:(i + 1) * HW, :].reshape(H, W, C)
        yi = jnp.max(yi.reshape(H // 2, 2, W, C), axis=1)        # pool rows
        yi = jnp.max(yi.reshape(H // 2, W // 2, 2, C), axis=2)   # pool cols
        outs.append(yi.astype(jnp.bfloat16))   # single f32->bf16 cast per element
    return outs


def _conv3x3_pool(xs, w_ref, b_ref, pad_ref, col_ref):
    """3x3 conv (pad=1) + bias + ReLU + 2x2 maxpool for ALL images with ONE
    MXU matmul (M = n*H*W, K = 9*CPAD).

    xs:      list of n (H, W, CPAD) bf16 per-image activations
    w_ref:   (9*CPAD, Cout) bf16 weights, K ordered (kh, kw, cin)
    b_ref:   (1, Cout) f32
    pad_ref: (H+2, W+2, CPAD) bf16 scratch -- 1px halo, reused image-by-image
    col_ref: (n*H*W, 9*CPAD) bf16 scratch -- im2col matrix for the whole batch
    """
    Hp, Wp, _ = pad_ref.shape
    H, W = Hp - 2, Wp - 2
    HW = H * W
    n = len(xs)
    Cout = w_ref.shape[-1]

    # Zero the halo buffer ONCE per conv (scratch memory is uninitialized).
    # Correctness note: the interior is fully overwritten for every image and
    # the 1px border is never written afterwards.
    pad_ref[...] = jnp.zeros(pad_ref.shape, pad_ref.dtype)

    for i, x in enumerate(xs):
        pad_ref[1:H + 1, 1:W + 1, :] = x            # bf16, cast done upstream
        j = 0
        for dh in range(3):
            for dw in range(3):
                # lane-aligned 128-wide K chunk per (dh, dw) patch
                col_ref[i * HW:(i + 1) * HW, j * CPAD:(j + 1) * CPAD] = (
                    pad_ref[dh:dh + H, dw:dw + W, :].reshape(HW, CPAD))
                j += 1

    y = jnp.dot(col_ref[...], w_ref[...], preferred_element_type=jnp.float32)
    y = jnp.maximum(y + b_ref[...], 0.0)            # bias + ReLU in f32
    return _pool2x2(y, n, H, W, Cout)


# ----------------------------------------------------------------------------
# Fused whole-network kernel (whole batch per invocation, no grid)
# ----------------------------------------------------------------------------
def vgg_kernel(col1_ref,
               w1, b1, w2, b2, w3, b3, w4, b4,
               fw1, fb1, fw2, fb2, fw3, fb3,
               o_ref,
               pad2, col2, pad3, col3, pad4, col4):
    n = col1_ref.shape[0] // (IMG * IMG)

    # conv1: im2col was prepared (layout-only) in the wrapper -> one dense
    # K=32 matmul over M = n*16*16 rows instead of a 97%-zero K=1152 one.
    y = jnp.dot(col1_ref[...], w1[...], preferred_element_type=jnp.float32)
    y = jnp.maximum(y + b1[...], 0.0)
    xs = _pool2x2(y, n, IMG, IMG, CPAD)             # n x (8, 8, 128) bf16

    xs = _conv3x3_pool(xs, w2, b2, pad2, col2)      # n x (4, 4, 128)
    xs = _conv3x3_pool(xs, w3, b3, pad3, col3)      # n x (2, 2, 128)
    xs = _conv3x3_pool(xs, w4, b4, pad4, col4)      # n x (1, 1, 512)

    # torch.flatten(1): 1x1 spatial so NCHW / NHWC flatten agree exactly.
    h = jnp.concatenate([x.reshape(1, 512) for x in xs], axis=0)   # (n, 512)

    def fc(h, w_ref, b_ref, relu):
        z = jnp.dot(h, w_ref[...], preferred_element_type=jnp.float32) + b_ref[...]
        return jnp.maximum(z, 0.0) if relu else z

    # Dropout -> Linear+ReLU -> Dropout -> Linear+ReLU -> Linear
    # TODO(synk): Dropout is identity (eval-mode forward); training-mode random
    # mask is not implemented.
    h = fc(h, fw1, fb1, True).astype(jnp.bfloat16)
    h = fc(h, fw2, fb2, True).astype(jnp.bfloat16)
    o_ref[...] = fc(h, fw3, fb3, False)             # (n, 128) f32, lane-dense


# ----------------------------------------------------------------------------
# Wrapper: single pallas_call over the whole batch
# ----------------------------------------------------------------------------
def vgg_forward(params, x_nchw):
    (w1, b1), (w2, b2), (w3, b3), (w4, b4) = params['features']
    (fw1, fb1), (fw2, fb2), (fw3, fb3) = params['classifier']

    # Input-boundary layout plumbing (no arithmetic): NCHW -> NHWC and conv1's
    # im2col with a dense K = 9*Cin = 27 (padded to 32). Keeps the input DMA at
    # ~32 KiB total (bf16) instead of a 97%-zero 128-lane padded tensor.
    x = jnp.transpose(x_nchw, (0, 2, 3, 1)).astype(jnp.float32)
    N, H, W, Cin = x.shape
    assert H == IMG and W == IMG and 9 * Cin <= K1
    xp = jnp.pad(x, ((0, 0), (1, 1), (1, 1), (0, 0)))
    patches = [xp[:, dh:dh + H, dw:dw + W, :]
               for dh in range(3) for dw in range(3)]
    col1 = jnp.concatenate(patches, axis=-1)                   # (N, H, W, 27)
    col1 = jnp.pad(col1, ((0, 0), (0, 0), (0, 0), (0, K1 - 9 * Cin)))
    col1 = col1.reshape(N * H * W, K1).astype(jnp.bfloat16)

    # VMEM scratch for convs 2..4: bf16 halo buffer (reused image-by-image) and
    # bf16 im2col matrix holding ALL images (batch folded into matmul M).
    scratch = []
    s, first = IMG, True
    for v in CFG:
        if v == 'M':
            s //= 2
        elif first:
            first = False          # conv1 im2col comes from the wrapper
        else:
            scratch.append(pltpu.VMEM((s + 2, s + 2, CPAD), jnp.bfloat16))
            scratch.append(pltpu.VMEM((N * s * s, KCOL), jnp.bfloat16))

    # Single invocation, no grid: best for single-TensorCore v5e/v6e.
    # Total VMEM footprint (weights ~2.9 MiB bf16 + ~0.5 MiB scratch) fits the
    # default scoped-VMEM limit on every generation.
    # TODO(synk): on v7x a parallel batch grid axis would use both TensorCores.
    out = pl.pallas_call(
        vgg_kernel,
        out_shape=jax.ShapeDtypeStruct((N, CPAD), jnp.float32),
        scratch_shapes=scratch,
    )(col1, w1, b1, w2, b2, w3, b3, w4, b4, fw1, fb1, fw2, fb2, fw3, fb3)
    return out[:, :NUM_CLASSES]          # lane-dense kernel output, slice to 10


# ----------------------------------------------------------------------------
# Params: torch-equivalent init, then packing into the kernel's layout
# ----------------------------------------------------------------------------
def init_params(key):
    """Kaiming-normal(fan_out) conv weights, N(0, 0.01) linear, zero biases."""
    convs = []
    in_c = 3
    for v in CFG:
        if v == 'M':
            continue
        key, k = jax.random.split(key)
        fan_out = v * 3 * 3
        w = jax.random.normal(k, (3, 3, in_c, v), jnp.float32) * jnp.sqrt(
            2.0 / fan_out)
        b = jnp.zeros((v,), jnp.float32)
        convs.append((w, b))
        in_c = v
    fcs = []
    for din, dout in [(512, 512), (512, 512), (512, NUM_CLASSES)]:
        key, k = jax.random.split(key)
        w = jax.random.normal(k, (din, dout), jnp.float32) * 0.01
        b = jnp.zeros((dout,), jnp.float32)
        fcs.append((w, b))
    return {'features': convs, 'classifier': fcs}


def pack_params(params):
    """conv1 weight -> dense (K1, 128) bf16; convs 2..4 -> (9*CPAD, Cout_pad)
    bf16 (K ordered kh,kw,cin, channels zero-padded to CPAD); biases (1, C) f32;
    FC weights bf16 with the final Linear padded to 128 output lanes."""
    convs = params['features']
    packed_convs = []

    # conv1: dense K = 9*cin = 27 (pad to K1), Cout padded to 128 lanes.
    w, b = convs[0]
    _, _, cin1, cout1 = w.shape
    w1 = jnp.zeros((K1, CPAD), jnp.float32)
    w1 = w1.at[:9 * cin1, :cout1].set(w.reshape(9 * cin1, cout1))
    b1 = jnp.zeros((1, CPAD), jnp.float32).at[0, :cout1].set(b)
    packed_convs.append((w1.astype(jnp.bfloat16), b1))

    # convs 2..4: lane-aligned 128-wide K chunks per (kh, kw).
    for w, b in convs[1:]:
        _, _, cin, cout = w.shape
        cout_p = max(cout, CPAD)
        wp = jnp.zeros((3, 3, CPAD, cout_p), jnp.float32)
        wp = wp.at[:, :, :cin, :cout].set(w)
        bp = jnp.zeros((1, cout_p), jnp.float32).at[0, :cout].set(b)
        packed_convs.append((wp.reshape(KCOL, cout_p).astype(jnp.bfloat16), bp))

    (fw1, fb1), (fw2, fb2), (fw3, fb3) = params['classifier']
    packed_fcs = [(fw1.astype(jnp.bfloat16), fb1.reshape(1, -1)),
                  (fw2.astype(jnp.bfloat16), fb2.reshape(1, -1))]
    # final Linear: lane-dense output (pad 10 -> 128; wrapper slices [:, :10])
    fw3p = jnp.zeros((fw3.shape[0], CPAD), jnp.float32).at[:, :NUM_CLASSES].set(fw3)
    fb3p = jnp.zeros((1, CPAD), jnp.float32).at[0, :NUM_CLASSES].set(fb3)
    packed_fcs.append((fw3p.astype(jnp.bfloat16), fb3p))

    return {'features': packed_convs, 'classifier': packed_fcs}


if __name__ == "__main__":
    key = jax.random.PRNGKey(0)
    pkey, xkey = jax.random.split(key)
    params = pack_params(init_params(pkey))
    x = jax.random.normal(xkey, (2, 3, IMG, IMG), jnp.float32)   # NCHW like PyTorch
    out = jax.jit(vgg_forward)(params, x)
    out = jax.block_until_ready(out)
    assert out.shape == (2, NUM_CLASSES), out.shape
    assert bool(jnp.all(jnp.isfinite(out)))
    print("KERNEL_OK")
</pallas_src>

<mosaic_0001>
module attributes {stable_mosaic.version = 11 : i64} {
  func.func @vgg_kernel(%arg0: memref<512x32xbf16, #tpu.memory_space<vmem>>, %arg1: memref<32x128xbf16, #tpu.memory_space<vmem>>, %arg2: memref<1x128xf32, #tpu.memory_space<vmem>>, %arg3: memref<1152x128xbf16, #tpu.memory_space<vmem>>, %arg4: memref<1x128xf32, #tpu.memory_space<vmem>>, %arg5: memref<1152x128xbf16, #tpu.memory_space<vmem>>, %arg6: memref<1x128xf32, #tpu.memory_space<vmem>>, %arg7: memref<1152x512xbf16, #tpu.memory_space<vmem>>, %arg8: memref<1x512xf32, #tpu.memory_space<vmem>>, %arg9: memref<512x512xbf16, #tpu.memory_space<vmem>>, %arg10: memref<1x512xf32, #tpu.memory_space<vmem>>, %arg11: memref<512x512xbf16, #tpu.memory_space<vmem>>, %arg12: memref<1x512xf32, #tpu.memory_space<vmem>>, %arg13: memref<512x128xbf16, #tpu.memory_space<vmem>>, %arg14: memref<1x128xf32, #tpu.memory_space<vmem>>, %arg15: memref<2x128xf32, #tpu.memory_space<vmem>>, %arg16: memref<10x10x128xbf16, #tpu.memory_space<vmem>>, %arg17: memref<128x1152xbf16, #tpu.memory_space<vmem>>, %arg18: memref<6x6x128xbf16, #tpu.memory_space<vmem>>, %arg19: memref<32x1152xbf16, #tpu.memory_space<vmem>>, %arg20: memref<4x4x128xbf16, #tpu.memory_space<vmem>>, %arg21: memref<8x1152xbf16, #tpu.memory_space<vmem>>) attributes {dimension_semantics = [], scalar_prefetch = 0 : i64, scratch_operands = 6 : i64, tpu.core_type = #tpu.core_type<tc>} {
    %c0 = arith.constant 0 : index
    %c0_0 = arith.constant 0 : index
    %0 = vector.load %arg0[%c0, %c0_0] : memref<512x32xbf16, #tpu.memory_space<vmem>>, vector<512x32xbf16>
    %c0_1 = arith.constant 0 : index
    %c0_2 = arith.constant 0 : index
    %1 = vector.load %arg1[%c0_1, %c0_2] : memref<32x128xbf16, #tpu.memory_space<vmem>>, vector<32x128xbf16>
    %cst = arith.constant dense<0.000000e+00> : vector<512x128xf32>
    %2 = tpu.matmul %0, %1, %cst {dimension_numbers = #tpu.dot_dimension_numbers<[1], [0], [0], [1], [0, 0, 1, 1], [], []>} : vector<512x32xbf16>, vector<32x128xbf16>, vector<512x128xf32> -> vector<512x128xf32>
    %c0_3 = arith.constant 0 : index
    %c0_4 = arith.constant 0 : index
    %3 = vector.load %arg2[%c0_3, %c0_4] : memref<1x128xf32, #tpu.memory_space<vmem>>, vector<1x128xf32>
    %4 = vector.broadcast %3 : vector<1x128xf32> to vector<512x128xf32>
    %5 = arith.addf %2, %4 : vector<512x128xf32>
    %cst_5 = arith.constant 0.000000e+00 : f32
    %6 = vector.broadcast %cst_5 : f32 to vector<512x128xf32>
    %7 = arith.maximumf %5, %6 : vector<512x128xf32>
    %8 = vector.extract_strided_slice %7 {offsets = [0, 0], sizes = [256, 128], strides = [1, 1]} : vector<512x128xf32> to vector<256x128xf32>
    %9 = vector.shape_cast %8 : vector<256x128xf32> to vector<16x16x128xf32>
    %10 = vector.shape_cast %9 : vector<16x16x128xf32> to vector<8x2x16x128xf32>
    %cst_6 = arith.constant dense<0xFF800000> : vector<8x16x128xf32>
    %11 = vector.multi_reduction <maximumf>, %10, %cst_6 [1] : vector<8x2x16x128xf32> to vector<8x16x128xf32>
    %12 = vector.shape_cast %11 : vector<8x16x128xf32> to vector<8x8x2x128xf32>
    %cst_7 = arith.constant dense<0xFF800000> : vector<8x8x128xf32>
    %13 = vector.multi_reduction <maximumf>, %12, %cst_7 [2] : vector<8x8x2x128xf32> to vector<8x8x128xf32>
    %14 = arith.truncf %13 : vector<8x8x128xf32> to vector<8x8x128xbf16>
    %15 = vector.extract_strided_slice %7 {offsets = [256, 0], sizes = [256, 128], strides = [1, 1]} : vector<512x128xf32> to vector<256x128xf32>
    %16 = vector.shape_cast %15 : vector<256x128xf32> to vector<16x16x128xf32>
    %17 = vector.shape_cast %16 : vector<16x16x128xf32> to vector<8x2x16x128xf32>
    %cst_8 = arith.constant dense<0xFF800000> : vector<8x16x128xf32>
    %18 = vector.multi_reduction <maximumf>, %17, %cst_8 [1] : vector<8x2x16x128xf32> to vector<8x16x128xf32>
    %19 = vector.shape_cast %18 : vector<8x16x128xf32> to vector<8x8x2x128xf32>
    %cst_9 = arith.constant dense<0xFF800000> : vector<8x8x128xf32>
    %20 = vector.multi_reduction <maximumf>, %19, %cst_9 [2] : vector<8x8x2x128xf32> to vector<8x8x128xf32>
    %21 = arith.truncf %20 : vector<8x8x128xf32> to vector<8x8x128xbf16>
    %cst_10 = arith.constant 0.000000e+00 : bf16
    %22 = vector.broadcast %cst_10 : bf16 to vector<10x10x128xbf16>
    %c0_11 = arith.constant 0 : index
    %c0_12 = arith.constant 0 : index
    %c0_13 = arith.constant 0 : index
    %23 = vector.load %arg16[%c0_11, %c0_12, %c0_13] : memref<10x10x128xbf16, #tpu.memory_space<vmem>>, vector<10x10x128xbf16>
    tpu.vector_store %arg16[%c0_11, %c0_12, %c0_13], %22 {strides = array<i32>} : memref<10x10x128xbf16, #tpu.memory_space<vmem>>, vector<10x10x128xbf16>,
    %c1 = arith.constant 1 : index
    %c1_14 = arith.constant 1 : index
    %c0_15 = arith.constant 0 : index
    %24 = vector.load %arg16[%c1, %c1_14, %c0_15] : memref<10x10x128xbf16, #tpu.memory_space<vmem>>, vector<8x8x128xbf16>
    tpu.vector_store %arg16[%c1, %c1_14, %c0_15], %14 {strides = array<i32>} : memref<10x10x128xbf16, #tpu.memory_space<vmem>>, vector<8x8x128xbf16>,
    %c0_16 = arith.constant 0 : index
    %c0_17 = arith.constant 0 : index
    %c0_18 = arith.constant 0 : index
    %25 = vector.load %arg16[%c0_16, %c0_17, %c0_18] : memref<10x10x128xbf16, #tpu.memory_space<vmem>>, vector<8x8x128xbf16>
    %26 = vector.shape_cast %25 : vector<8x8x128xbf16> to vector<64x128xbf16>
    %c0_19 = arith.constant 0 : index
    %c0_20 = arith.constant 0 : index
    %27 = vector.load %arg17[%c0_19, %c0_20] : memref<128x1152xbf16, #tpu.memory_space<vmem>>, vector<64x128xbf16>
    tpu.vector_store %arg17[%c0_19, %c0_20], %26 {strides = array<i32>} : memref<128x1152xbf16, #tpu.memory_space<vmem>>, vector<64x128xbf16>,
    %c0_21 = arith.constant 0 : index
    %c1_22 = arith.constant 1 : index
    %c0_23 = arith.constant 0 : index
    %28 = vector.load %arg16[%c0_21, %c1_22, %c0_23] : memref<10x10x128xbf16, #tpu.memory_space<vmem>>, vector<8x8x128xbf16>
    %29 = vector.shape_cast %28 : vector<8x8x128xbf16> to vector<64x128xbf16>
    %c0_24 = arith.constant 0 : index
    %c128 = arith.constant 128 : index
    %30 = vector.load %arg17[%c0_24, %c128] : memref<128x1152xbf16, #tpu.memory_space<vmem>>, vector<64x128xbf16>
    tpu.vector_store %arg17[%c0_24, %c128], %29 {strides = array<i32>} : memref<128x1152xbf16, #tpu.memory_space<vmem>>, vector<64x128xbf16>,
    %c0_25 = arith.constant 0 : index
    %c2 = arith.constant 2 : index
    %c0_26 = arith.constant 0 : index
    %31 = vector.load %arg16[%c0_25, %c2, %c0_26] : memref<10x10x128xbf16, #tpu.memory_space<vmem>>, vector<8x8x128xbf16>
    %32 = vector.shape_cast %31 : vector<8x8x128xbf16> to vector<64x128xbf16>
    %c0_27 = arith.constant 0 : index
    %c256 = arith.constant 256 : index
    %33 = vector.load %arg17[%c0_27, %c256] : memref<128x1152xbf16, #tpu.memory_space<vmem>>, vector<64x128xbf16>
    tpu.vector_store %arg17[%c0_27, %c256], %32 {strides = array<i32>} : memref<128x1152xbf16, #tpu.memory_space<vmem>>, vector<64x128xbf16>,
    %c1_28 = arith.constant 1 : index
    %c0_29 = arith.constant 0 : index
    %c0_30 = arith.constant 0 : index
    %34 = vector.load %arg16[%c1_28, %c0_29, %c0_30] : memref<10x10x128xbf16, #tpu.memory_space<vmem>>, vector<8x8x128xbf16>
    %35 = vector.shape_cast %34 : vector<8x8x128xbf16> to vector<64x128xbf16>
    %c0_31 = arith.constant 0 : index
    %c384 = arith.constant 384 : index
    %36 = vector.load %arg17[%c0_31, %c384] : memref<128x1152xbf16, #tpu.memory_space<vmem>>, vector<64x128xbf16>
    tpu.vector_store %arg17[%c0_31, %c384], %35 {strides = array<i32>} : memref<128x1152xbf16, #tpu.memory_space<vmem>>, vector<64x128xbf16>,
    %c1_32 = arith.constant 1 : index
    %c1_33 = arith.constant 1 : index
    %c0_34 = arith.constant 0 : index
    %37 = vector.load %arg16[%c1_32, %c1_33, %c0_34] : memref<10x10x128xbf16, #tpu.memory_space<vmem>>, vector<8x8x128xbf16>
    %38 = vector.shape_cast %37 : vector<8x8x128xbf16> to vector<64x128xbf16>
    %c0_35 = arith.constant 0 : index
    %c512 = arith.constant 512 : index
    %39 = vector.load %arg17[%c0_35, %c512] : memref<128x1152xbf16, #tpu.memory_space<vmem>>, vector<64x128xbf16>
    tpu.vector_store %arg17[%c0_35, %c512], %38 {strides = array<i32>} : memref<128x1152xbf16, #tpu.memory_space<vmem>>, vector<64x128xbf16>,
    %c1_36 = arith.constant 1 : index
    %c2_37 = arith.constant 2 : index
    %c0_38 = arith.constant 0 : index
    %40 = vector.load %arg16[%c1_36, %c2_37, %c0_38] : memref<10x10x128xbf16, #tpu.memory_space<vmem>>, vector<8x8x128xbf16>
    %41 = vector.shape_cast %40 : vector<8x8x128xbf16> to vector<64x128xbf16>
    %c0_39 = arith.constant 0 : index
    %c640 = arith.constant 640 : index
    %42 = vector.load %arg17[%c0_39, %c640] : memref<128x1152xbf16, #tpu.memory_space<vmem>>, vector<64x128xbf16>
    tpu.vector_store %arg17[%c0_39, %c640], %41 {strides = array<i32>} : memref<128x1152xbf16, #tpu.memory_space<vmem>>, vector<64x128xbf16>,
    %c2_40 = arith.constant 2 : index
    %c0_41 = arith.constant 0 : index
    %c0_42 = arith.constant 0 : index
    %43 = vector.load %arg16[%c2_40, %c0_41, %c0_42] : memref<10x10x128xbf16, #tpu.memory_space<vmem>>, vector<8x8x128xbf16>
    %44 = vector.shape_cast %43 : vector<8x8x128xbf16> to vector<64x128xbf16>
    %c0_43 = arith.constant 0 : index
    %c768 = arith.constant 768 : index
    %45 = vector.load %arg17[%c0_43, %c768] : memref<128x1152xbf16, #tpu.memory_space<vmem>>, vector<64x128xbf16>
    tpu.vector_store %arg17[%c0_43, %c768], %44 {strides = array<i32>} : memref<128x1152xbf16, #tpu.memory_space<vmem>>, vector<64x128xbf16>,
    %c2_44 = arith.constant 2 : index
    %c1_45 = arith.constant 1 : index
    %c0_46 = arith.constant 0 : index
    %46 = vector.load %arg16[%c2_44, %c1_45, %c0_46] : memref<10x10x128xbf16, #tpu.memory_space<vmem>>, vector<8x8x128xbf16>
    %47 = vector.shape_cast %46 : vector<8x8x128xbf16> to vector<64x128xbf16>
    %c0_47 = arith.constant 0 : index
    %c896 = arith.constant 896 : index
    %48 = vector.load %arg17[%c0_47, %c896] : memref<128x1152xbf16, #tpu.memory_space<vmem>>, vector<64x128xbf16>
    tpu.vector_store %arg17[%c0_47, %c896], %47 {strides = array<i32>} : memref<128x1152xbf16, #tpu.memory_space<vmem>>, vector<64x128xbf16>,
    %c2_48 = arith.constant 2 : index
    %c2_49 = arith.constant 2 : index
    %c0_50 = arith.constant 0 : index
    %49 = vector.load %arg16[%c2_48, %c2_49, %c0_50] : memref<10x10x128xbf16, #tpu.memory_space<vmem>>, vector<8x8x128xbf16>
    %50 = vector.shape_cast %49 : vector<8x8x128xbf16> to vector<64x128xbf16>
    %c0_51 = arith.constant 0 : index
    %c1024 = arith.constant 1024 : index
    %51 = vector.load %arg17[%c0_51, %c1024] : memref<128x1152xbf16, #tpu.memory_space<vmem>>, vector<64x128xbf16>
    tpu.vector_store %arg17[%c0_51, %c1024], %50 {strides = array<i32>} : memref<128x1152xbf16, #tpu.memory_space<vmem>>, vector<64x128xbf16>,
    %c1_52 = arith.constant 1 : index
    %c1_53 = arith.constant 1 : index
    %c0_54 = arith.constant 0 : index
    %52 = vector.load %arg16[%c1_52, %c1_53, %c0_54] : memref<10x10x128xbf16, #tpu.memory_space<vmem>>, vector<8x8x128xbf16>
    tpu.vector_store %arg16[%c1_52, %c1_53, %c0_54], %21 {strides = array<i32>} : memref<10x10x128xbf16, #tpu.memory_space<vmem>>, vector<8x8x128xbf16>,
    %c0_55 = arith.constant 0 : index
    %c0_56 = arith.constant 0 : index
    %c0_57 = arith.constant 0 : index
    %53 = vector.load %arg16[%c0_55, %c0_56, %c0_57] : memref<10x10x128xbf16, #tpu.memory_space<vmem>>, vector<8x8x128xbf16>
    %54 = vector.shape_cast %53 : vector<8x8x128xbf16> to vector<64x128xbf16>
    %c64 = arith.constant 64 : index
    %c0_58 = arith.constant 0 : index
    %55 = vector.load %arg17[%c64, %c0_58] : memref<128x1152xbf16, #tpu.memory_space<vmem>>, vector<64x128xbf16>
    tpu.vector_store %arg17[%c64, %c0_58], %54 {strides = array<i32>} : memref<128x1152xbf16, #tpu.memory_space<vmem>>, vector<64x128xbf16>,
    %c0_59 = arith.constant 0 : index
    %c1_60 = arith.constant 1 : index
    %c0_61 = arith.constant 0 : index
    %56 = vector.load %arg16[%c0_59, %c1_60, %c0_61] : memref<10x10x128xbf16, #tpu.memory_space<vmem>>, vector<8x8x128xbf16>
    %57 = vector.shape_cast %56 : vector<8x8x128xbf16> to vector<64x128xbf16>
    %c64_62 = arith.constant 64 : index
    %c128_63 = arith.constant 128 : index
    %58 = vector.load %arg17[%c64_62, %c128_63] : memref<128x1152xbf16, #tpu.memory_space<vmem>>, vector<64x128xbf16>
    tpu.vector_store %arg17[%c64_62, %c128_63], %57 {strides = array<i32>} : memref<128x1152xbf16, #tpu.memory_space<vmem>>, vector<64x128xbf16>,
    %c0_64 = arith.constant 0 : index
    %c2_65 = arith.constant 2 : index
    %c0_66 = arith.constant 0 : index
    %59 = vector.load %arg16[%c0_64, %c2_65, %c0_66] : memref<10x10x128xbf16, #tpu.memory_space<vmem>>, vector<8x8x128xbf16>
    %60 = vector.shape_cast %59 : vector<8x8x128xbf16> to vector<64x128xbf16>
    %c64_67 = arith.constant 64 : index
    %c256_68 = arith.constant 256 : index
    %61 = vector.load %arg17[%c64_67, %c256_68] : memref<128x1152xbf16, #tpu.memory_space<vmem>>, vector<64x128xbf16>
    tpu.vector_store %arg17[%c64_67, %c256_68], %60 {strides = array<i32>} : memref<128x1152xbf16, #tpu.memory_space<vmem>>, vector<64x128xbf16>,
    %c1_69 = arith.constant 1 : index
    %c0_70 = arith.constant 0 : index
    %c0_71 = arith.constant 0 : index
    %62 = vector.load %arg16[%c1_69, %c0_70, %c0_71] : memref<10x10x128xbf16, #tpu.memory_space<vmem>>, vector<8x8x128xbf16>
    %63 = vector.shape_cast %62 : vector<8x8x128xbf16> to vector<64x128xbf16>
    %c64_72 = arith.constant 64 : index
    %c384_73 = arith.constant 384 : index
    %64 = vector.load %arg17[%c64_72, %c384_73] : memref<128x1152xbf16, #tpu.memory_space<vmem>>, vector<64x128xbf16>
    tpu.vector_store %arg17[%c64_72, %c384_73], %63 {strides = array<i32>} : memref<128x1152xbf16, #tpu.memory_space<vmem>>, vector<64x128xbf16>,
    %c1_74 = arith.constant 1 : index
    %c1_75 = arith.constant 1 : index
    %c0_76 = arith.constant 0 : index
    %65 = vector.load %arg16[%c1_74, %c1_75, %c0_76] : memref<10x10x128xbf16, #tpu.memory_space<vmem>>, vector<8x8x128xbf16>
    %66 = vector.shape_cast %65 : vector<8x8x128xbf16> to vector<64x128xbf16>
    %c64_77 = arith.constant 64 : index
    %c512_78 = arith.constant 512 : index
    %67 = vector.load %arg17[%c64_77, %c512_78] : memref<128x1152xbf16, #tpu.memory_space<vmem>>, vector<64x128xbf16>
    tpu.vector_store %arg17[%c64_77, %c512_78], %66 {strides = array<i32>} : memref<128x1152xbf16, #tpu.memory_space<vmem>>, vector<64x128xbf16>,
    %c1_79 = arith.constant 1 : index
    %c2_80 = arith.constant 2 : index
    %c0_81 = arith.constant 0 : index
    %68 = vector.load %arg16[%c1_79, %c2_80, %c0_81] : memref<10x10x128xbf16, #tpu.memory_space<vmem>>, vector<8x8x128xbf16>
    %69 = vector.shape_cast %68 : vector<8x8x128xbf16> to vector<64x128xbf16>
    %c64_82 = arith.constant 64 : index
    %c640_83 = arith.constant 640 : index
    %70 = vector.load %arg17[%c64_82, %c640_83] : memref<128x1152xbf16, #tpu.memory_space<vmem>>, vector<64x128xbf16>
    tpu.vector_store %arg17[%c64_82, %c640_83], %69 {strides = array<i32>} : memref<128x1152xbf16, #tpu.memory_space<vmem>>, vector<64x128xbf16>,
    %c2_84 = arith.constant 2 : index
    %c0_85 = arith.constant 0 : index
    %c0_86 = arith.constant 0 : index
    %71 = vector.load %arg16[%c2_84, %c0_85, %c0_86] : memref<10x10x128xbf16, #tpu.memory_space<vmem>>, vector<8x8x128xbf16>
    %72 = vector.shape_cast %71 : vector<8x8x128xbf16> to vector<64x128xbf16>
    %c64_87 = arith.constant 64 : index
    %c768_88 = arith.constant 768 : index
    %73 = vector.load %arg17[%c64_87, %c768_88] : memref<128x1152xbf16, #tpu.memory_space<vmem>>, vector<64x128xbf16>
    tpu.vector_store %arg17[%c64_87, %c768_88], %72 {strides = array<i32>} : memref<128x1152xbf16, #tpu.memory_space<vmem>>, vector<64x128xbf16>,
    %c2_89 = arith.constant 2 : index
    %c1_90 = arith.constant 1 : index
    %c0_91 = arith.constant 0 : index
    %74 = vector.load %arg16[%c2_89, %c1_90, %c0_91] : memref<10x10x128xbf16, #tpu.memory_space<vmem>>, vector<8x8x128xbf16>
    %75 = vector.shape_cast %74 : vector<8x8x128xbf16> to vector<64x128xbf16>
    %c64_92 = arith.constant 64 : index
    %c896_93 = arith.constant 896 : index
    %76 = vector.load %arg17[%c64_92, %c896_93] : memref<128x1152xbf16, #tpu.memory_space<vmem>>, vector<64x128xbf16>
    tpu.vector_store %arg17[%c64_92, %c896_93], %75 {strides = array<i32>} : memref<128x1152xbf16, #tpu.memory_space<vmem>>, vector<64x128xbf16>,
    %c2_94 = arith.constant 2 : index
    %c2_95 = arith.constant 2 : index
    %c0_96 = arith.constant 0 : index
    %77 = vector.load %arg16[%c2_94, %c2_95, %c0_96] : memref<10x10x128xbf16, #tpu.memory_space<vmem>>, vector<8x8x128xbf16>
    %78 = vector.shape_cast %77 : vector<8x8x128xbf16> to vector<64x128xbf16>
    %c64_97 = arith.constant 64 : index
    %c1024_98 = arith.constant 1024 : index
    %79 = vector.load %arg17[%c64_97, %c1024_98] : memref<128x1152xbf16, #tpu.memory_space<vmem>>, vector<64x128xbf16>
    tpu.vector_store %arg17[%c64_97, %c1024_98], %78 {strides = array<i32>} : memref<128x1152xbf16, #tpu.memory_space<vmem>>, vector<64x128xbf16>,
    %c0_99 = arith.constant 0 : index
    %c0_100 = arith.constant 0 : index
    %80 = vector.load %arg17[%c0_99, %c0_100] : memref<128x1152xbf16, #tpu.memory_space<vmem>>, vector<128x1152xbf16>
    %c0_101 = arith.constant 0 : index
    %c0_102 = arith.constant 0 : index
    %81 = vector.load %arg3[%c0_101, %c0_102] : memref<1152x128xbf16, #tpu.memory_space<vmem>>, vector<1152x128xbf16>
    %cst_103 = arith.constant dense<0.000000e+00> : vector<128x128xf32>
    %82 = tpu.matmul %80, %81, %cst_103 {dimension_numbers = #tpu.dot_dimension_numbers<[1], [0], [0], [1], [0, 0, 1, 1], [], []>} : vector<128x1152xbf16>, vector<1152x128xbf16>, vector<128x128xf32> -> vector<128x128xf32>
    %c0_104 = arith.constant 0 : index
    %c0_105 = arith.constant 0 : index
    %83 = vector.load %arg4[%c0_104, %c0_105] : memref<1x128xf32, #tpu.memory_space<vmem>>, vector<1x128xf32>
    %84 = vector.broadcast %83 : vector<1x128xf32> to vector<128x128xf32>
    %85 = arith.addf %82, %84 : vector<128x128xf32>
    %cst_106 = arith.constant 0.000000e+00 : f32
    %86 = vector.broadcast %cst_106 : f32 to vector<128x128xf32>
    %87 = arith.maximumf %85, %86 : vector<128x128xf32>
    %88 = vector.extract_strided_slice %87 {offsets = [0, 0], sizes = [64, 128], strides = [1, 1]} : vector<128x128xf32> to vector<64x128xf32>
    %89 = vector.shape_cast %88 : vector<64x128xf32> to vector<8x8x128xf32>
    %90 = vector.shape_cast %89 : vector<8x8x128xf32> to vector<4x2x8x128xf32>
    %cst_107 = arith.constant dense<0xFF800000> : vector<4x8x128xf32>
    %91 = vector.multi_reduction <maximumf>, %90, %cst_107 [1] : vector<4x2x8x128xf32> to vector<4x8x128xf32>
    %92 = vector.shape_cast %91 : vector<4x8x128xf32> to vector<4x4x2x128xf32>
    %cst_108 = arith.constant dense<0xFF800000> : vector<4x4x128xf32>
    %93 = vector.multi_reduction <maximumf>, %92, %cst_108 [2] : vector<4x4x2x128xf32> to vector<4x4x128xf32>
    %94 = arith.truncf %93 : vector<4x4x128xf32> to vector<4x4x128xbf16>
    %95 = vector.extract_strided_slice %87 {offsets = [64, 0], sizes = [64, 128], strides = [1, 1]} : vector<128x128xf32> to vector<64x128xf32>
    %96 = vector.shape_cast %95 : vector<64x128xf32> to vector<8x8x128xf32>
    %97 = vector.shape_cast %96 : vector<8x8x128xf32> to vector<4x2x8x128xf32>
    %cst_109 = arith.constant dense<0xFF800000> : vector<4x8x128xf32>
    %98 = vector.multi_reduction <maximumf>, %97, %cst_109 [1] : vector<4x2x8x128xf32> to vector<4x8x128xf32>
    %99 = vector.shape_cast %98 : vector<4x8x128xf32> to vector<4x4x2x128xf32>
    %cst_110 = arith.constant dense<0xFF800000> : vector<4x4x128xf32>
    %100 = vector.multi_reduction <maximumf>, %99, %cst_110 [2] : vector<4x4x2x128xf32> to vector<4x4x128xf32>
    %101 = arith.truncf %100 : vector<4x4x128xf32> to vector<4x4x128xbf16>
    %cst_111 = arith.constant 0.000000e+00 : bf16
    %102 = vector.broadcast %cst_111 : bf16 to vector<6x6x128xbf16>
    %c0_112 = arith.constant 0 : index
    %c0_113 = arith.constant 0 : index
    %c0_114 = arith.constant 0 : index
    %103 = vector.load %arg18[%c0_112, %c0_113, %c0_114] : memref<6x6x128xbf16, #tpu.memory_space<vmem>>, vector<6x6x128xbf16>
    tpu.vector_store %arg18[%c0_112, %c0_113, %c0_114], %102 {strides = array<i32>} : memref<6x6x128xbf16, #tpu.memory_space<vmem>>, vector<6x6x128xbf16>,
    %c1_115 = arith.constant 1 : index
    %c1_116 = arith.constant 1 : index
    %c0_117 = arith.constant 0 : index
    %104 = vector.load %arg18[%c1_115, %c1_116, %c0_117] : memref<6x6x128xbf16, #tpu.memory_space<vmem>>, vector<4x4x128xbf16>
    tpu.vector_store %arg18[%c1_115, %c1_116, %c0_117], %94 {strides = array<i32>} : memref<6x6x128xbf16, #tpu.memory_space<vmem>>, vector<4x4x128xbf16>,
    %c0_118 = arith.constant 0 : index
    %c0_119 = arith.constant 0 : index
    %c0_120 = arith.constant 0 : index
    %105 = vector.load %arg18[%c0_118, %c0_119, %c0_120] : memref<6x6x128xbf16, #tpu.memory_space<vmem>>, vector<4x4x128xbf16>
    %106 = vector.shape_cast %105 : vector<4x4x128xbf16> to vector<16x128xbf16>
    %c0_121 = arith.constant 0 : index
    %c0_122 = arith.constant 0 : index
    %107 = vector.load %arg19[%c0_121, %c0_122] : memref<32x1152xbf16, #tpu.memory_space<vmem>>, vector<16x128xbf16>
    tpu.vector_store %arg19[%c0_121, %c0_122], %106 {strides = array<i32>} : memref<32x1152xbf16, #tpu.memory_space<vmem>>, vector<16x128xbf16>,
    %c0_123 = arith.constant 0 : index
    %c1_124 = arith.constant 1 : index
    %c0_125 = arith.constant 0 : index
    %108 = vector.load %arg18[%c0_123, %c1_124, %c0_125] : memref<6x6x128xbf16, #tpu.memory_space<vmem>>, vector<4x4x128xbf16>
    %109 = vector.shape_cast %108 : vector<4x4x128xbf16> to vector<16x128xbf16>
    %c0_126 = arith.constant 0 : index
    %c128_127 = arith.constant 128 : index
    %110 = vector.load %arg19[%c0_126, %c128_127] : memref<32x1152xbf16, #tpu.memory_space<vmem>>, vector<16x128xbf16>
    tpu.vector_store %arg19[%c0_126, %c128_127], %109 {strides = array<i32>} : memref<32x1152xbf16, #tpu.memory_space<vmem>>, vector<16x128xbf16>,
    %c0_128 = arith.constant 0 : index
    %c2_129 = arith.constant 2 : index
    %c0_130 = arith.constant 0 : index
    %111 = vector.load %arg18[%c0_128, %c2_129, %c0_130] : memref<6x6x128xbf16, #tpu.memory_space<vmem>>, vector<4x4x128xbf16>
    %112 = vector.shape_cast %111 : vector<4x4x128xbf16> to vector<16x128xbf16>
    %c0_131 = arith.constant 0 : index
    %c256_132 = arith.constant 256 : index
    %113 = vector.load %arg19[%c0_131, %c256_132] : memref<32x1152xbf16, #tpu.memory_space<vmem>>, vector<16x128xbf16>
    tpu.vector_store %arg19[%c0_131, %c256_132], %112 {strides = array<i32>} : memref<32x1152xbf16, #tpu.memory_space<vmem>>, vector<16x128xbf16>,
    %c1_133 = arith.constant 1 : index
    %c0_134 = arith.constant 0 : index
    %c0_135 = arith.constant 0 : index
    %114 = vector.load %arg18[%c1_133, %c0_134, %c0_135] : memref<6x6x128xbf16, #tpu.memory_space<vmem>>, vector<4x4x128xbf16>
    %115 = vector.shape_cast %114 : vector<4x4x128xbf16> to vector<16x128xbf16>
    %c0_136 = arith.constant 0 : index
    %c384_137 = arith.constant 384 : index
    %116 = vector.load %arg19[%c0_136, %c384_137] : memref<32x1152xbf16, #tpu.memory_space<vmem>>, vector<16x128xbf16>
    tpu.vector_store %arg19[%c0_136, %c384_137], %115 {strides = array<i32>} : memref<32x1152xbf16, #tpu.memory_space<vmem>>, vector<16x128xbf16>,
    %c1_138 = arith.constant 1 : index
    %c1_139 = arith.constant 1 : index
    %c0_140 = arith.constant 0 : index
    %117 = vector.load %arg18[%c1_138, %c1_139, %c0_140] : memref<6x6x128xbf16, #tpu.memory_space<vmem>>, vector<4x4x128xbf16>
    %118 = vector.shape_cast %117 : vector<4x4x128xbf16> to vector<16x128xbf16>
    %c0_141 = arith.constant 0 : index
    %c512_142 = arith.constant 512 : index
    %119 = vector.load %arg19[%c0_141, %c512_142] : memref<32x1152xbf16, #tpu.memory_space<vmem>>, vector<16x128xbf16>
    tpu.vector_store %arg19[%c0_141, %c512_142], %118 {strides = array<i32>} : memref<32x1152xbf16, #tpu.memory_space<vmem>>, vector<16x128xbf16>,
    %c1_143 = arith.constant 1 : index
    %c2_144 = arith.constant 2 : index
    %c0_145 = arith.constant 0 : index
    %120 = vector.load %arg18[%c1_143, %c2_144, %c0_145] : memref<6x6x128xbf16, #tpu.memory_space<vmem>>, vector<4x4x128xbf16>
    %121 = vector.shape_cast %120 : vector<4x4x128xbf16> to vector<16x128xbf16>
    %c0_146 = arith.constant 0 : index
    %c640_147 = arith.constant 640 : index
    %122 = vector.load %arg19[%c0_146, %c640_147] : memref<32x1152xbf16, #tpu.memory_space<vmem>>, vector<16x128xbf16>
    tpu.vector_store %arg19[%c0_146, %c640_147], %121 {strides = array<i32>} : memref<32x1152xbf16, #tpu.memory_space<vmem>>, vector<16x128xbf16>,
    %c2_148 = arith.constant 2 : index
    %c0_149 = arith.constant 0 : index
    %c0_150 = arith.constant 0 : index
    %123 = vector.load %arg18[%c2_148, %c0_149, %c0_150] : memref<6x6x128xbf16, #tpu.memory_space<vmem>>, vector<4x4x128xbf16>
    %124 = vector.shape_cast %123 : vector<4x4x128xbf16> to vector<16x128xbf16>
    %c0_151 = arith.constant 0 : index
    %c768_152 = arith.constant 768 : index
    %125 = vector.load %arg19[%c0_151, %c768_152] : memref<32x1152xbf16, #tpu.memory_space<vmem>>, vector<16x128xbf16>
    tpu.vector_store %arg19[%c0_151, %c768_152], %124 {strides = array<i32>} : memref<32x1152xbf16, #tpu.memory_space<vmem>>, vector<16x128xbf16>,
    %c2_153 = arith.constant 2 : index
    %c1_154 = arith.constant 1 : index
    %c0_155 = arith.constant 0 : index
    %126 = vector.load %arg18[%c2_153, %c1_154, %c0_155] : memref<6x6x128xbf16, #tpu.memory_space<vmem>>, vector<4x4x128xbf16>
    %127 = vector.shape_cast %126 : vector<4x4x128xbf16> to vector<16x128xbf16>
    %c0_156 = arith.constant 0 : index
    %c896_157 = arith.constant 896 : index
    %128 = vector.load %arg19[%c0_156, %c896_157] : memref<32x1152xbf16, #tpu.memory_space<vmem>>, vector<16x128xbf16>
    tpu.vector_store %arg19[%c0_156, %c896_157], %127 {strides = array<i32>} : memref<32x1152xbf16, #tpu.memory_space<vmem>>, vector<16x128xbf16>,
    %c2_158 = arith.constant 2 : index
    %c2_159 = arith.constant 2 : index
    %c0_160 = arith.constant 0 : index
    %129 = vector.load %arg18[%c2_158, %c2_159, %c0_160] : memref<6x6x128xbf16, #tpu.memory_space<vmem>>, vector<4x4x128xbf16>
    %130 = vector.shape_cast %129 : vector<4x4x128xbf16> to vector<16x128xbf16>
    %c0_161 = arith.constant 0 : index
    %c1024_162 = arith.constant 1024 : index
    %131 = vector.load %arg19[%c0_161, %c1024_162] : memref<32x1152xbf16, #tpu.memory_space<vmem>>, vector<16x128xbf16>
    tpu.vector_store %arg19[%c0_161, %c1024_162], %130 {strides = array<i32>} : memref<32x1152xbf16, #tpu.memory_space<vmem>>, vector<16x128xbf16>,
    %c1_163 = arith.constant 1 : index
    %c1_164 = arith.constant 1 : index
    %c0_165 = arith.constant 0 : index
    %132 = vector.load %arg18[%c1_163, %c1_164, %c0_165] : memref<6x6x128xbf16, #tpu.memory_space<vmem>>, vector<4x4x128xbf16>
    tpu.vector_store %arg18[%c1_163, %c1_164, %c0_165], %101 {strides = array<i32>} : memref<6x6x128xbf16, #tpu.memory_space<vmem>>, vector<4x4x128xbf16>,
    %c0_166 = arith.constant 0 : index
    %c0_167 = arith.constant 0 : index
    %c0_168 = arith.constant 0 : index
    %133 = vector.load %arg18[%c0_166, %c0_167, %c0_168] : memref<6x6x128xbf16, #tpu.memory_space<vmem>>, vector<4x4x128xbf16>
    %134 = vector.shape_cast %133 : vector<4x4x128xbf16> to vector<16x128xbf16>
    %c16 = arith.constant 16 : index
    %c0_169 = arith.constant 0 : index
    %135 = vector.load %arg19[%c16, %c0_169] : memref<32x1152xbf16, #tpu.memory_space<vmem>>, vector<16x128xbf16>
    tpu.vector_store %arg19[%c16, %c0_169], %134 {strides = array<i32>} : memref<32x1152xbf16, #tpu.memory_space<vmem>>, vector<16x128xbf16>,
    %c0_170 = arith.constant 0 : index
    %c1_171 = arith.constant 1 : index
    %c0_172 = arith.constant 0 : index
    %136 = vector.load %arg18[%c0_170, %c1_171, %c0_172] : memref<6x6x128xbf16, #tpu.memory_space<vmem>>, vector<4x4x128xbf16>
    %137 = vector.shape_cast %136 : vector<4x4x128xbf16> to vector<16x128xbf16>
    %c16_173 = arith.constant 16 : index
    %c128_174 = arith.constant 128 : index
    %138 = vector.load %arg19[%c16_173, %c128_174] : memref<32x1152xbf16, #tpu.memory_space<vmem>>, vector<16x128xbf16>
    tpu.vector_store %arg19[%c16_173, %c128_174], %137 {strides = array<i32>} : memref<32x1152xbf16, #tpu.memory_space<vmem>>, vector<16x128xbf16>,
    %c0_175 = arith.constant 0 : index
    %c2_176 = arith.constant 2 : index
    %c0_177 = arith.constant 0 : index
    %139 = vector.load %arg18[%c0_175, %c2_176, %c0_177] : memref<6x6x128xbf16, #tpu.memory_space<vmem>>, vector<4x4x128xbf16>
    %140 = vector.shape_cast %139 : vector<4x4x128xbf16> to vector<16x128xbf16>
    %c16_178 = arith.constant 16 : index
    %c256_179 = arith.constant 256 : index
    %141 = vector.load %arg19[%c16_178, %c256_179] : memref<32x1152xbf16, #tpu.memory_space<vmem>>, vector<16x128xbf16>
    tpu.vector_store %arg19[%c16_178, %c256_179], %140 {strides = array<i32>} : memref<32x1152xbf16, #tpu.memory_space<vmem>>, vector<16x128xbf16>,
    %c1_180 = arith.constant 1 : index
    %c0_181 = arith.constant 0 : index
    %c0_182 = arith.constant 0 : index
    %142 = vector.load %arg18[%c1_180, %c0_181, %c0_182] : memref<6x6x128xbf16, #tpu.memory_space<vmem>>, vector<4x4x128xbf16>
    %143 = vector.shape_cast %142 : vector<4x4x128xbf16> to vector<16x128xbf16>
    %c16_183 = arith.constant 16 : index
    %c384_184 = arith.constant 384 : index
    %144 = vector.load %arg19[%c16_183, %c384_184] : memref<32x1152xbf16, #tpu.memory_space<vmem>>, vector<16x128xbf16>
    tpu.vector_store %arg19[%c16_183, %c384_184], %143 {strides = array<i32>} : memref<32x1152xbf16, #tpu.memory_space<vmem>>, vector<16x128xbf16>,
    %c1_185 = arith.constant 1 : index
    %c1_186 = arith.constant 1 : index
    %c0_187 = arith.constant 0 : index
    %145 = vector.load %arg18[%c1_185, %c1_186, %c0_187] : memref<6x6x128xbf16, #tpu.memory_space<vmem>>, vector<4x4x128xbf16>
    %146 = vector.shape_cast %145 : vector<4x4x128xbf16> to vector<16x128xbf16>
    %c16_188 = arith.constant 16 : index
    %c512_189 = arith.constant 512 : index
    %147 = vector.load %arg19[%c16_188, %c512_189] : memref<32x1152xbf16, #tpu.memory_space<vmem>>, vector<16x128xbf16>
    tpu.vector_store %arg19[%c16_188, %c512_189], %146 {strides = array<i32>} : memref<32x1152xbf16, #tpu.memory_space<vmem>>, vector<16x128xbf16>,
    %c1_190 = arith.constant 1 : index
    %c2_191 = arith.constant 2 : index
    %c0_192 = arith.constant 0 : index
    %148 = vector.load %arg18[%c1_190, %c2_191, %c0_192] : memref<6x6x128xbf16, #tpu.memory_space<vmem>>, vector<4x4x128xbf16>
    %149 = vector.shape_cast %148 : vector<4x4x128xbf16> to vector<16x128xbf16>
    %c16_193 = arith.constant 16 : index
    %c640_194 = arith.constant 640 : index
    %150 = vector.load %arg19[%c16_193, %c640_194] : memref<32x1152xbf16, #tpu.memory_space<vmem>>, vector<16x128xbf16>
    tpu.vector_store %arg19[%c16_193, %c640_194], %149 {strides = array<i32>} : memref<32x1152xbf16, #tpu.memory_space<vmem>>, vector<16x128xbf16>,
    %c2_195 = arith.constant 2 : index
    %c0_196 = arith.constant 0 : index
    %c0_197 = arith.constant 0 : index
    %151 = vector.load %arg18[%c2_195, %c0_196, %c0_197] : memref<6x6x128xbf16, #tpu.memory_space<vmem>>, vector<4x4x128xbf16>
    %152 = vector.shape_cast %151 : vector<4x4x128xbf16> to vector<16x128xbf16>
    %c16_198 = arith.constant 16 : index
    %c768_199 = arith.constant 768 : index
    %153 = vector.load %arg19[%c16_198, %c768_199] : memref<32x1152xbf16, #tpu.memory_space<vmem>>, vector<16x128xbf16>
    tpu.vector_store %arg19[%c16_198, %c768_199], %152 {strides = array<i32>} : memref<32x1152xbf16, #tpu.memory_space<vmem>>, vector<16x128xbf16>,
    %c2_200 = arith.constant 2 : index
    %c1_201 = arith.constant 1 : index
    %c0_202 = arith.constant 0 : index
    %154 = vector.load %arg18[%c2_200, %c1_201, %c0_202] : memref<6x6x128xbf16, #tpu.memory_space<vmem>>, vector<4x4x128xbf16>
    %155 = vector.shape_cast %154 : vector<4x4x128xbf16> to vector<16x128xbf16>
    %c16_203 = arith.constant 16 : index
    %c896_204 = arith.constant 896 : index
    %156 = vector.load %arg19[%c16_203, %c896_204] : memref<32x1152xbf16, #tpu.memory_space<vmem>>, vector<16x128xbf16>
    tpu.vector_store %arg19[%c16_203, %c896_204], %155 {strides = array<i32>} : memref<32x1152xbf16, #tpu.memory_space<vmem>>, vector<16x128xbf16>,
    %c2_205 = arith.constant 2 : index
    %c2_206 = arith.constant 2 : index
    %c0_207 = arith.constant 0 : index
    %157 = vector.load %arg18[%c2_205, %c2_206, %c0_207] : memref<6x6x128xbf16, #tpu.memory_space<vmem>>, vector<4x4x128xbf16>
    %158 = vector.shape_cast %157 : vector<4x4x128xbf16> to vector<16x128xbf16>
    %c16_208 = arith.constant 16 : index
    %c1024_209 = arith.constant 1024 : index
    %159 = vector.load %arg19[%c16_208, %c1024_209] : memref<32x1152xbf16, #tpu.memory_space<vmem>>, vector<16x128xbf16>
    tpu.vector_store %arg19[%c16_208, %c1024_209], %158 {strides = array<i32>} : memref<32x1152xbf16, #tpu.memory_space<vmem>>, vector<16x128xbf16>,
    %c0_210 = arith.constant 0 : index
    %c0_211 = arith.constant 0 : index
    %160 = vector.load %arg19[%c0_210, %c0_211] : memref<32x1152xbf16, #tpu.memory_space<vmem>>, vector<32x1152xbf16>
    %c0_212 = arith.constant 0 : index
    %c0_213 = arith.constant 0 : index
    %161 = vector.load %arg5[%c0_212, %c0_213] : memref<1152x128xbf16, #tpu.memory_space<vmem>>, vector<1152x128xbf16>
    %cst_214 = arith.constant dense<0.000000e+00> : vector<32x128xf32>
    %162 = tpu.matmul %160, %161, %cst_214 {dimension_numbers = #tpu.dot_dimension_numbers<[1], [0], [0], [1], [0, 0, 1, 1], [], []>} : vector<32x1152xbf16>, vector<1152x128xbf16>, vector<32x128xf32> -> vector<32x128xf32>
    %c0_215 = arith.constant 0 : index
    %c0_216 = arith.constant 0 : index
    %163 = vector.load %arg6[%c0_215, %c0_216] : memref<1x128xf32, #tpu.memory_space<vmem>>, vector<1x128xf32>
    %164 = vector.broadcast %163 : vector<1x128xf32> to vector<32x128xf32>
    %165 = arith.addf %162, %164 : vector<32x128xf32>
    %cst_217 = arith.constant 0.000000e+00 : f32
    %166 = vector.broadcast %cst_217 : f32 to vector<32x128xf32>
    %167 = arith.maximumf %165, %166 : vector<32x128xf32>
    %168 = vector.extract_strided_slice %167 {offsets = [0, 0], sizes = [16, 128], strides = [1, 1]} : vector<32x128xf32> to vector<16x128xf32>
    %169 = vector.shape_cast %168 : vector<16x128xf32> to vector<4x4x128xf32>
    %170 = vector.shape_cast %169 : vector<4x4x128xf32> to vector<2x2x4x128xf32>
    %cst_218 = arith.constant dense<0xFF800000> : vector<2x4x128xf32>
    %171 = vector.multi_reduction <maximumf>, %170, %cst_218 [1] : vector<2x2x4x128xf32> to vector<2x4x128xf32>
    %172 = vector.shape_cast %171 : vector<2x4x128xf32> to vector<2x2x2x128xf32>
    %cst_219 = arith.constant dense<0xFF800000> : vector<2x2x128xf32>
    %173 = vector.multi_reduction <maximumf>, %172, %cst_219 [2] : vector<2x2x2x128xf32> to vector<2x2x128xf32>
    %174 = arith.truncf %173 : vector<2x2x128xf32> to vector<2x2x128xbf16>
    %175 = vector.extract_strided_slice %167 {offsets = [16, 0], sizes = [16, 128], strides = [1, 1]} : vector<32x128xf32> to vector<16x128xf32>
    %176 = vector.shape_cast %175 : vector<16x128xf32> to vector<4x4x128xf32>
    %177 = vector.shape_cast %176 : vector<4x4x128xf32> to vector<2x2x4x128xf32>
    %cst_220 = arith.constant dense<0xFF800000> : vector<2x4x128xf32>
    %178 = vector.multi_reduction <maximumf>, %177, %cst_220 [1] : vector<2x2x4x128xf32> to vector<2x4x128xf32>
    %179 = vector.shape_cast %178 : vector<2x4x128xf32> to vector<2x2x2x128xf32>
    %cst_221 = arith.constant dense<0xFF800000> : vector<2x2x128xf32>
    %180 = vector.multi_reduction <maximumf>, %179, %cst_221 [2] : vector<2x2x2x128xf32> to vector<2x2x128xf32>
    %181 = arith.truncf %180 : vector<2x2x128xf32> to vector<2x2x128xbf16>
    %cst_222 = arith.constant 0.000000e+00 : bf16
    %182 = vector.broadcast %cst_222 : bf16 to vector<4x4x128xbf16>
    %c0_223 = arith.constant 0 : index
    %c0_224 = arith.constant 0 : index
    %c0_225 = arith.constant 0 : index
    %183 = vector.load %arg20[%c0_223, %c0_224, %c0_225] : memref<4x4x128xbf16, #tpu.memory_space<vmem>>, vector<4x4x128xbf16>
    tpu.vector_store %arg20[%c0_223, %c0_224, %c0_225], %182 {strides = array<i32>} : memref<4x4x128xbf16, #tpu.memory_space<vmem>>, vector<4x4x128xbf16>,
    %c1_226 = arith.constant 1 : index
    %c1_227 = arith.constant 1 : index
    %c0_228 = arith.constant 0 : index
    %184 = vector.load %arg20[%c1_226, %c1_227, %c0_228] : memref<4x4x128xbf16, #tpu.memory_space<vmem>>, vector<2x2x128xbf16>
    tpu.vector_store %arg20[%c1_226, %c1_227, %c0_228], %174 {strides = array<i32>} : memref<4x4x128xbf16, #tpu.memory_space<vmem>>, vector<2x2x128xbf16>,
    %c0_229 = arith.constant 0 : index
    %c0_230 = arith.constant 0 : index
    %c0_231 = arith.constant 0 : index
    %185 = vector.load %arg20[%c0_229, %c0_230, %c0_231] : memref<4x4x128xbf16, #tpu.memory_space<vmem>>, vector<2x2x128xbf16>
    %186 = vector.shape_cast %185 : vector<2x2x128xbf16> to vector<4x128xbf16>
    %c0_232 = arith.constant 0 : index
    %c0_233 = arith.constant 0 : index
    %187 = vector.load %arg21[%c0_232, %c0_233] : memref<8x1152xbf16, #tpu.memory_space<vmem>>, vector<4x128xbf16>
    tpu.vector_store %arg21[%c0_232, %c0_233], %186 {strides = array<i32>} : memref<8x1152xbf16, #tpu.memory_space<vmem>>, vector<4x128xbf16>,
    %c0_234 = arith.constant 0 : index
    %c1_235 = arith.constant 1 : index
    %c0_236 = arith.constant 0 : index
    %188 = vector.load %arg20[%c0_234, %c1_235, %c0_236] : memref<4x4x128xbf16, #tpu.memory_space<vmem>>, vector<2x2x128xbf16>
    %189 = vector.shape_cast %188 : vector<2x2x128xbf16> to vector<4x128xbf16>
    %c0_237 = arith.constant 0 : index
    %c128_238 = arith.constant 128 : index
    %190 = vector.load %arg21[%c0_237, %c128_238] : memref<8x1152xbf16, #tpu.memory_space<vmem>>, vector<4x128xbf16>
    tpu.vector_store %arg21[%c0_237, %c128_238], %189 {strides = array<i32>} : memref<8x1152xbf16, #tpu.memory_space<vmem>>, vector<4x128xbf16>,
    %c0_239 = arith.constant 0 : index
    %c2_240 = arith.constant 2 : index
    %c0_241 = arith.constant 0 : index
    %191 = vector.load %arg20[%c0_239, %c2_240, %c0_241] : memref<4x4x128xbf16, #tpu.memory_space<vmem>>, vector<2x2x128xbf16>
    %192 = vector.shape_cast %191 : vector<2x2x128xbf16> to vector<4x128xbf16>
    %c0_242 = arith.constant 0 : index
    %c256_243 = arith.constant 256 : index
    %193 = vector.load %arg21[%c0_242, %c256_243] : memref<8x1152xbf16, #tpu.memory_space<vmem>>, vector<4x128xbf16>
    tpu.vector_store %arg21[%c0_242, %c256_243], %192 {strides = array<i32>} : memref<8x1152xbf16, #tpu.memory_space<vmem>>, vector<4x128xbf16>,
    %c1_244 = arith.constant 1 : index
    %c0_245 = arith.constant 0 : index
    %c0_246 = arith.constant 0 : index
    %194 = vector.load %arg20[%c1_244, %c0_245, %c0_246] : memref<4x4x128xbf16, #tpu.memory_space<vmem>>, vector<2x2x128xbf16>
    %195 = vector.shape_cast %194 : vector<2x2x128xbf16> to vector<4x128xbf16>
    %c0_247 = arith.constant 0 : index
    %c384_248 = arith.constant 384 : index
    %196 = vector.load %arg21[%c0_247, %c384_248] : memref<8x1152xbf16, #tpu.memory_space<vmem>>, vector<4x128xbf16>
    tpu.vector_store %arg21[%c0_247, %c384_248], %195 {strides = array<i32>} : memref<8x1152xbf16, #tpu.memory_space<vmem>>, vector<4x128xbf16>,
    %c1_249 = arith.constant 1 : index
    %c1_250 = arith.constant 1 : index
    %c0_251 = arith.constant 0 : index
    %197 = vector.load %arg20[%c1_249, %c1_250, %c0_251] : memref<4x4x128xbf16, #tpu.memory_space<vmem>>, vector<2x2x128xbf16>
    %198 = vector.shape_cast %197 : vector<2x2x128xbf16> to vector<4x128xbf16>
    %c0_252 = arith.constant 0 : index
    %c512_253 = arith.constant 512 : index
    %199 = vector.load %arg21[%c0_252, %c512_253] : memref<8x1152xbf16, #tpu.memory_space<vmem>>, vector<4x128xbf16>
    tpu.vector_store %arg21[%c0_252, %c512_253], %198 {strides = array<i32>} : memref<8x1152xbf16, #tpu.memory_space<vmem>>, vector<4x128xbf16>,
    %c1_254 = arith.constant 1 : index
    %c2_255 = arith.constant 2 : index
    %c0_256 = arith.constant 0 : index
    %200 = vector.load %arg20[%c1_254, %c2_255, %c0_256] : memref<4x4x128xbf16, #tpu.memory_space<vmem>>, vector<2x2x128xbf16>
    %201 = vector.shape_cast %200 : vector<2x2x128xbf16> to vector<4x128xbf16>
    %c0_257 = arith.constant 0 : index
    %c640_258 = arith.constant 640 : index
    %202 = vector.load %arg21[%c0_257, %c640_258] : memref<8x1152xbf16, #tpu.memory_space<vmem>>, vector<4x128xbf16>
    tpu.vector_store %arg21[%c0_257, %c640_258], %201 {strides = array<i32>} : memref<8x1152xbf16, #tpu.memory_space<vmem>>, vector<4x128xbf16>,
    %c2_259 = arith.constant 2 : index
    %c0_260 = arith.constant 0 : index
    %c0_261 = arith.constant 0 : index
    %203 = vector.load %arg20[%c2_259, %c0_260, %c0_261] : memref<4x4x128xbf16, #tpu.memory_space<vmem>>, vector<2x2x128xbf16>
    %204 = vector.shape_cast %203 : vector<2x2x128xbf16> to vector<4x128xbf16>
    %c0_262 = arith.constant 0 : index
    %c768_263 = arith.constant 768 : index
    %205 = vector.load %arg21[%c0_262, %c768_263] : memref<8x1152xbf16, #tpu.memory_space<vmem>>, vector<4x128xbf16>
    tpu.vector_store %arg21[%c0_262, %c768_263], %204 {strides = array<i32>} : memref<8x1152xbf16, #tpu.memory_space<vmem>>, vector<4x128xbf16>,
    %c2_264 = arith.constant 2 : index
    %c1_265 = arith.constant 1 : index
    %c0_266 = arith.constant 0 : index
    %206 = vector.load %arg20[%c2_264, %c1_265, %c0_266] : memref<4x4x128xbf16, #tpu.memory_space<vmem>>, vector<2x2x128xbf16>
    %207 = vector.shape_cast %206 : vector<2x2x128xbf16> to vector<4x128xbf16>
    %c0_267 = arith.constant 0 : index
    %c896_268 = arith.constant 896 : index
    %208 = vector.load %arg21[%c0_267, %c896_268] : memref<8x1152xbf16, #tpu.memory_space<vmem>>, vector<4x128xbf16>
    tpu.vector_store %arg21[%c0_267, %c896_268], %207 {strides = array<i32>} : memref<8x1152xbf16, #tpu.memory_space<vmem>>, vector<4x128xbf16>,
    %c2_269 = arith.constant 2 : index
    %c2_270 = arith.constant 2 : index
    %c0_271 = arith.constant 0 : index
    %209 = vector.load %arg20[%c2_269, %c2_270, %c0_271] : memref<4x4x128xbf16, #tpu.memory_space<vmem>>, vector<2x2x128xbf16>
    %210 = vector.shape_cast %209 : vector<2x2x128xbf16> to vector<4x128xbf16>
    %c0_272 = arith.constant 0 : index
    %c1024_273 = arith.constant 1024 : index
    %211 = vector.load %arg21[%c0_272, %c1024_273] : memref<8x1152xbf16, #tpu.memory_space<vmem>>, vector<4x128xbf16>
    tpu.vector_store %arg21[%c0_272, %c1024_273], %210 {strides = array<i32>} : memref<8x1152xbf16, #tpu.memory_space<vmem>>, vector<4x128xbf16>,
    %c1_274 = arith.constant 1 : index
    %c1_275 = arith.constant 1 : index
    %c0_276 = arith.constant 0 : index
    %212 = vector.load %arg20[%c1_274, %c1_275, %c0_276] : memref<4x4x128xbf16, #tpu.memory_space<vmem>>, vector<2x2x128xbf16>
    tpu.vector_store %arg20[%c1_274, %c1_275, %c0_276], %181 {strides = array<i32>} : memref<4x4x128xbf16, #tpu.memory_space<vmem>>, vector<2x2x128xbf16>,
    %c0_277 = arith.constant 0 : index
    %c0_278 = arith.constant 0 : index
    %c0_279 = arith.constant 0 : index
    %213 = vector.load %arg20[%c0_277, %c0_278, %c0_279] : memref<4x4x128xbf16, #tpu.memory_space<vmem>>, vector<2x2x128xbf16>
    %214 = vector.shape_cast %213 : vector<2x2x128xbf16> to vector<4x128xbf16>
    %c4 = arith.constant 4 : index
    %c0_280 = arith.constant 0 : index
    %215 = vector.load %arg21[%c4, %c0_280] : memref<8x1152xbf16, #tpu.memory_space<vmem>>, vector<4x128xbf16>
    tpu.vector_store %arg21[%c4, %c0_280], %214 {strides = array<i32>} : memref<8x1152xbf16, #tpu.memory_space<vmem>>, vector<4x128xbf16>,
    %c0_281 = arith.constant 0 : index
    %c1_282 = arith.constant 1 : index
    %c0_283 = arith.constant 0 : index
    %216 = vector.load %arg20[%c0_281, %c1_282, %c0_283] : memref<4x4x128xbf16, #tpu.memory_space<vmem>>, vector<2x2x128xbf16>
    %217 = vector.shape_cast %216 : vector<2x2x128xbf16> to vector<4x128xbf16>
    %c4_284 = arith.constant 4 : index
    %c128_285 = arith.constant 128 : index
    %218 = vector.load %arg21[%c4_284, %c128_285] : memref<8x1152xbf16, #tpu.memory_space<vmem>>, vector<4x128xbf16>
    tpu.vector_store %arg21[%c4_284, %c128_285], %217 {strides = array<i32>} : memref<8x1152xbf16, #tpu.memory_space<vmem>>, vector<4x128xbf16>,
    %c0_286 = arith.constant 0 : index
    %c2_287 = arith.constant 2 : index
    %c0_288 = arith.constant 0 : index
    %219 = vector.load %arg20[%c0_286, %c2_287, %c0_288] : memref<4x4x128xbf16, #tpu.memory_space<vmem>>, vector<2x2x128xbf16>
    %220 = vector.shape_cast %219 : vector<2x2x128xbf16> to vector<4x128xbf16>
    %c4_289 = arith.constant 4 : index
    %c256_290 = arith.constant 256 : index
    %221 = vector.load %arg21[%c4_289, %c256_290] : memref<8x1152xbf16, #tpu.memory_space<vmem>>, vector<4x128xbf16>
    tpu.vector_store %arg21[%c4_289, %c256_290], %220 {strides = array<i32>} : memref<8x1152xbf16, #tpu.memory_space<vmem>>, vector<4x128xbf16>,
    %c1_291 = arith.constant 1 : index
    %c0_292 = arith.constant 0 : index
    %c0_293 = arith.constant 0 : index
    %222 = vector.load %arg20[%c1_291, %c0_292, %c0_293] : memref<4x4x128xbf16, #tpu.memory_space<vmem>>, vector<2x2x128xbf16>
    %223 = vector.shape_cast %222 : vector<2x2x128xbf16> to vector<4x128xbf16>
    %c4_294 = arith.constant 4 : index
    %c384_295 = arith.constant 384 : index
    %224 = vector.load %arg21[%c4_294, %c384_295] : memref<8x1152xbf16, #tpu.memory_space<vmem>>, vector<4x128xbf16>
    tpu.vector_store %arg21[%c4_294, %c384_295], %223 {strides = array<i32>} : memref<8x1152xbf16, #tpu.memory_space<vmem>>, vector<4x128xbf16>,
    %c1_296 = arith.constant 1 : index
    %c1_297 = arith.constant 1 : index
    %c0_298 = arith.constant 0 : index
    %225 = vector.load %arg20[%c1_296, %c1_297, %c0_298] : memref<4x4x128xbf16, #tpu.memory_space<vmem>>, vector<2x2x128xbf16>
    %226 = vector.shape_cast %225 : vector<2x2x128xbf16> to vector<4x128xbf16>
    %c4_299 = arith.constant 4 : index
    %c512_300 = arith.constant 512 : index
    %227 = vector.load %arg21[%c4_299, %c512_300] : memref<8x1152xbf16, #tpu.memory_space<vmem>>, vector<4x128xbf16>
    tpu.vector_store %arg21[%c4_299, %c512_300], %226 {strides = array<i32>} : memref<8x1152xbf16, #tpu.memory_space<vmem>>, vector<4x128xbf16>,
    %c1_301 = arith.constant 1 : index
    %c2_302 = arith.constant 2 : index
    %c0_303 = arith.constant 0 : index
    %228 = vector.load %arg20[%c1_301, %c2_302, %c0_303] : memref<4x4x128xbf16, #tpu.memory_space<vmem>>, vector<2x2x128xbf16>
    %229 = vector.shape_cast %228 : vector<2x2x128xbf16> to vector<4x128xbf16>
    %c4_304 = arith.constant 4 : index
    %c640_305 = arith.constant 640 : index
    %230 = vector.load %arg21[%c4_304, %c640_305] : memref<8x1152xbf16, #tpu.memory_space<vmem>>, vector<4x128xbf16>
    tpu.vector_store %arg21[%c4_304, %c640_305], %229 {strides = array<i32>} : memref<8x1152xbf16, #tpu.memory_space<vmem>>, vector<4x128xbf16>,
    %c2_306 = arith.constant 2 : index
    %c0_307 = arith.constant 0 : index
    %c0_308 = arith.constant 0 : index
    %231 = vector.load %arg20[%c2_306, %c0_307, %c0_308] : memref<4x4x128xbf16, #tpu.memory_space<vmem>>, vector<2x2x128xbf16>
    %232 = vector.shape_cast %231 : vector<2x2x128xbf16> to vector<4x128xbf16>
    %c4_309 = arith.constant 4 : index
    %c768_310 = arith.constant 768 : index
    %233 = vector.load %arg21[%c4_309, %c768_310] : memref<8x1152xbf16, #tpu.memory_space<vmem>>, vector<4x128xbf16>
    tpu.vector_store %arg21[%c4_309, %c768_310], %232 {strides = array<i32>} : memref<8x1152xbf16, #tpu.memory_space<vmem>>, vector<4x128xbf16>,
    %c2_311 = arith.constant 2 : index
    %c1_312 = arith.constant 1 : index
    %c0_313 = arith.constant 0 : index
    %234 = vector.load %arg20[%c2_311, %c1_312, %c0_313] : memref<4x4x128xbf16, #tpu.memory_space<vmem>>, vector<2x2x128xbf16>
    %235 = vector.shape_cast %234 : vector<2x2x128xbf16> to vector<4x128xbf16>
    %c4_314 = arith.constant 4 : index
    %c896_315 = arith.constant 896 : index
    %236 = vector.load %arg21[%c4_314, %c896_315] : memref<8x1152xbf16, #tpu.memory_space<vmem>>, vector<4x128xbf16>
    tpu.vector_store %arg21[%c4_314, %c896_315], %235 {strides = array<i32>} : memref<8x1152xbf16, #tpu.memory_space<vmem>>, vector<4x128xbf16>,
    %c2_316 = arith.constant 2 : index
    %c2_317 = arith.constant 2 : index
    %c0_318 = arith.constant 0 : index
    %237 = vector.load %arg20[%c2_316, %c2_317, %c0_318] : memref<4x4x128xbf16, #tpu.memory_space<vmem>>, vector<2x2x128xbf16>
    %238 = vector.shape_cast %237 : vector<2x2x128xbf16> to vector<4x128xbf16>
    %c4_319 = arith.constant 4 : index
    %c1024_320 = arith.constant 1024 : index
    %239 = vector.load %arg21[%c4_319, %c1024_320] : memref<8x1152xbf16, #tpu.memory_space<vmem>>, vector<4x128xbf16>
    tpu.vector_store %arg21[%c4_319, %c1024_320], %238 {strides = array<i32>} : memref<8x1152xbf16, #tpu.memory_space<vmem>>, vector<4x128xbf16>,
    %c0_321 = arith.constant 0 : index
    %c0_322 = arith.constant 0 : index
    %240 = vector.load %arg21[%c0_321, %c0_322] : memref<8x1152xbf16, #tpu.memory_space<vmem>>, vector<8x1152xbf16>
    %c0_323 = arith.constant 0 : index
    %c0_324 = arith.constant 0 : index
    %241 = vector.load %arg7[%c0_323, %c0_324] : memref<1152x512xbf16, #tpu.memory_space<vmem>>, vector<1152x512xbf16>
    %cst_325 = arith.constant dense<0.000000e+00> : vector<8x512xf32>
    %242 = tpu.matmul %240, %241, %cst_325 {dimension_numbers = #tpu.dot_dimension_numbers<[1], [0], [0], [1], [0, 0, 1, 1], [], []>} : vector<8x1152xbf16>, vector<1152x512xbf16>, vector<8x512xf32> -> vector<8x512xf32>
    %c0_326 = arith.constant 0 : index
    %c0_327 = arith.constant 0 : index
    %243 = vector.load %arg8[%c0_326, %c0_327] : memref<1x512xf32, #tpu.memory_space<vmem>>, vector<1x512xf32>
    %244 = vector.broadcast %243 : vector<1x512xf32> to vector<8x512xf32>
    %245 = arith.addf %242, %244 : vector<8x512xf32>
    %cst_328 = arith.constant 0.000000e+00 : f32
    %246 = vector.broadcast %cst_328 : f32 to vector<8x512xf32>
    %247 = arith.maximumf %245, %246 : vector<8x512xf32>
    %248 = vector.extract_strided_slice %247 {offsets = [0, 0], sizes = [4, 512], strides = [1, 1]} : vector<8x512xf32> to vector<4x512xf32>
    %249 = vector.shape_cast %248 : vector<4x512xf32> to vector<2x2x512xf32>
    %250 = vector.shape_cast %249 : vector<2x2x512xf32> to vector<1x2x2x512xf32>
    %cst_329 = arith.constant dense<0xFF800000> : vector<1x2x512xf32>
    %251 = vector.multi_reduction <maximumf>, %250, %cst_329 [1] : vector<1x2x2x512xf32> to vector<1x2x512xf32>
    %252 = vector.shape_cast %251 : vector<1x2x512xf32> to vector<1x1x2x512xf32>
    %cst_330 = arith.constant dense<0xFF800000> : vector<1x1x512xf32>
    %253 = vector.multi_reduction <maximumf>, %252, %cst_330 [2] : vector<1x1x2x512xf32> to vector<1x1x512xf32>
    %254 = arith.truncf %253 : vector<1x1x512xf32> to vector<1x1x512xbf16>
    %255 = vector.extract_strided_slice %247 {offsets = [4, 0], sizes = [4, 512], strides = [1, 1]} : vector<8x512xf32> to vector<4x512xf32>
    %256 = vector.shape_cast %255 : vector<4x512xf32> to vector<2x2x512xf32>
    %257 = vector.shape_cast %256 : vector<2x2x512xf32> to vector<1x2x2x512xf32>
    %cst_331 = arith.constant dense<0xFF800000> : vector<1x2x512xf32>
    %258 = vector.multi_reduction <maximumf>, %257, %cst_331 [1] : vector<1x2x2x512xf32> to vector<1x2x512xf32>
    %259 = vector.shape_cast %258 : vector<1x2x512xf32> to vector<1x1x2x512xf32>
    %cst_332 = arith.constant dense<0xFF800000> : vector<1x1x512xf32>
    %260 = vector.multi_reduction <maximumf>, %259, %cst_332 [2] : vector<1x1x2x512xf32> to vector<1x1x512xf32>
    %261 = arith.truncf %260 : vector<1x1x512xf32> to vector<1x1x512xbf16>
    %262 = vector.shape_cast %254 : vector<1x1x512xbf16> to vector<1x512xbf16>
    %263 = vector.shape_cast %261 : vector<1x1x512xbf16> to vector<1x512xbf16>
    %264 = tpu.concatenate %262, %263 in 0 : vector<1x512xbf16>, vector<1x512xbf16> -> vector<2x512xbf16>
    %c0_333 = arith.constant 0 : index
    %c0_334 = arith.constant 0 : index
    %265 = vector.load %arg9[%c0_333, %c0_334] : memref<512x512xbf16, #tpu.memory_space<vmem>>, vector<512x512xbf16>
    %cst_335 = arith.constant dense<0.000000e+00> : vector<2x512xf32>
    %266 = tpu.matmul %264, %265, %cst_335 {dimension_numbers = #tpu.dot_dimension_numbers<[1], [0], [0], [1], [0, 0, 1, 1], [], []>} : vector<2x512xbf16>, vector<512x512xbf16>, vector<2x512xf32> -> vector<2x512xf32>
    %c0_336 = arith.constant 0 : index
    %c0_337 = arith.constant 0 : index
    %267 = vector.load %arg10[%c0_336, %c0_337] : memref<1x512xf32, #tpu.memory_space<vmem>>, vector<1x512xf32>
    %268 = vector.broadcast %267 : vector<1x512xf32> to vector<2x512xf32>
    %269 = arith.addf %266, %268 : vector<2x512xf32>
    %cst_338 = arith.constant 0.000000e+00 : f32
    %270 = vector.broadcast %cst_338 : f32 to vector<2x512xf32>
    %271 = arith.maximumf %269, %270 : vector<2x512xf32>
    %272 = arith.truncf %271 : vector<2x512xf32> to vector<2x512xbf16>
    %c0_339 = arith.constant 0 : index
    %c0_340 = arith.constant 0 : index
    %273 = vector.load %arg11[%c0_339, %c0_340] : memref<512x512xbf16, #tpu.memory_space<vmem>>, vector<512x512xbf16>
    %cst_341 = arith.constant dense<0.000000e+00> : vector<2x512xf32>
    %274 = tpu.matmul %272, %273, %cst_341 {dimension_numbers = #tpu.dot_dimension_numbers<[1], [0], [0], [1], [0, 0, 1, 1], [], []>} : vector<2x512xbf16>, vector<512x512xbf16>, vector<2x512xf32> -> vector<2x512xf32>
    %c0_342 = arith.constant 0 : index
    %c0_343 = arith.constant 0 : index
    %275 = vector.load %arg12[%c0_342, %c0_343] : memref<1x512xf32, #tpu.memory_space<vmem>>, vector<1x512xf32>
    %276 = vector.broadcast %275 : vector<1x512xf32> to vector<2x512xf32>
    %277 = arith.addf %274, %276 : vector<2x512xf32>
    %cst_344 = arith.constant 0.000000e+00 : f32
    %278 = vector.broadcast %cst_344 : f32 to vector<2x512xf32>
    %279 = arith.maximumf %277, %278 : vector<2x512xf32>
    %280 = arith.truncf %279 : vector<2x512xf32> to vector<2x512xbf16>
    %c0_345 = arith.constant 0 : index
    %c0_346 = arith.constant 0 : index
    %281 = vector.load %arg13[%c0_345, %c0_346] : memref<512x128xbf16, #tpu.memory_space<vmem>>, vector<512x128xbf16>
    %cst_347 = arith.constant dense<0.000000e+00> : vector<2x128xf32>
    %282 = tpu.matmul %280, %281, %cst_347 {dimension_numbers = #tpu.dot_dimension_numbers<[1], [0], [0], [1], [0, 0, 1, 1], [], []>} : vector<2x512xbf16>, vector<512x128xbf16>, vector<2x128xf32> -> vector<2x128xf32>
    %c0_348 = arith.constant 0 : index
    %c0_349 = arith.constant 0 : index
    %283 = vector.load %arg14[%c0_348, %c0_349] : memref<1x128xf32, #tpu.memory_space<vmem>>, vector<1x128xf32>
    %284 = vector.broadcast %283 : vector<1x128xf32> to vector<2x128xf32>
    %285 = arith.addf %282, %284 : vector<2x128xf32>
    %c0_350 = arith.constant 0 : index
    %c0_351 = arith.constant 0 : index
    %286 = vector.load %arg15[%c0_350, %c0_351] : memref<2x128xf32, #tpu.memory_space<vmem>>, vector<2x128xf32>
    tpu.vector_store %arg15[%c0_350, %c0_351], %285 {strides = array<i32>} : memref<2x128xf32, #tpu.memory_space<vmem>>, vector<2x128xf32>,
    return
  }
}

</mosaic_0001>

<bundles_post_ra>
// kernel: vgg_forward.1
= control target key start
LH: loop header
LB: loop body
LE: loop exit
PB: predicated region body
PF: predicated region fallthrough
CT: control target
= control target key end

     0   :  { %20 = vsyncpa [#allocation9], 0  ;;  %s21941_s0 = inlined_call_operand.vmem [shape: bf16[512,32], index: 0, kind: input, shape index: {}]   ;;  %s21942_s1 = inlined_call_operand.hbm [shape: bf16[32,128], index: 1, kind: input, shape index: {}]   ;;  %s21943_s2 = inlined_call_operand.hbm [shape: f32[1,128], index: 2, kind: input, shape index: {}]   ;;  %s21944_s3 = inlined_call_operand.hbm [shape: bf16[1152,128], index: 3, kind: input, shape index: {}]   ;;  %s21945_s4 = inlined_call_operand.hbm [shape: f32[1,128], index: 4, kind: input, shape index: {}]   ;;  %s21946_s5 = inlined_call_operand.hbm [shape: bf16[1152,128], index: 5, kind: input, shape index: {}]   ;;  %s21947_s6 = inlined_call_operand.hbm [shape: f32[1,128], index: 6, kind: input, shape index: {}]   ;;  %s21948_s7 = inlined_call_operand.vmem [shape: bf16[1152,512], index: 7, kind: input, shape index: {}]   ;;  %s21949_s8 = inlined_call_operand.vmem [shape: f32[1,512], index: 8, kind: input, shape index: {}]   ;;  %s21950_s9 = inlined_call_operand.hbm [shape: bf16[512,512], index: 9, kind: input, shape index: {}]   ;;  %s21951_s10 = inlined_call_operand.hbm [shape: f32[1,512], index: 10, kind: input, shape index: {}]   ;;  %s21952_s11 = inlined_call_operand.hbm [shape: bf16[512,512], index: 11, kind: input, shape index: {}]   ;;  %s21953_s12 = inlined_call_operand.hbm [shape: f32[1,512], index: 12, kind: input, shape index: {}]   ;;  %s21954_s13 = inlined_call_operand.hbm [shape: bf16[512,128], index: 13, kind: input, shape index: {}]   ;;  %s21955_s14 = inlined_call_operand.hbm [shape: f32[1,128], index: 14, kind: input, shape index: {}]   ;;  %s21956_s15 = inlined_call_operand.hbm [shape: f32[2,128], index: 15, kind: output, shape index: {}]  }
   0x1   :  { %21 = vsyncpa [#allocation12], 0 }
   0x2   :  { %22 = vsyncpa [#allocation15], 0 }
   0x3   :  { %23 = vsyncpa [#allocation18], 0 }
   0x4   :  { %24 = vsyncpa [#allocation21], 0 }
   0x5   :  { %25 = vsyncpa [#allocation24], 0 }
   0x6   :  { %26 = vsyncpa [#allocation27], 0 }
   0x7   :  { %27 = vsyncpa [#allocation10], 0  ;;  %s18710_s18 = smov [#allocation11]   ;;  %s18711_s20 = smov [#allocation14]  }
   0x8   :  { %s48_s19 = sshll.u32 %s18710_s18, 4  ;;  %s70_s21 = sshll.u32 %s18711_s20, 4  ;;  %s49_s19 = int_to_ptr.vmem [resolvable:$true] %s48_s19  ;;  %s71_s21 = int_to_ptr.vmem [resolvable:$true] %s70_s21 }
   0x9   :  { %s18442_s22 = scalar_lea.vmem %s49_s19, 16  ;;  %s18446_s23 = scalar_lea.vmem %s49_s19, 32 }
   0xa   :  { %p18443_p0 = scmp.ne.s32.totalorder %s49_s19, %s18442_s22  ;;  %p18447_p1 = scmp.lt.s32.totalorder %s49_s19, %s49_s19 }
   0xb   :  { %p18448_p2 = scmp.lt.s32.totalorder %s18446_s23, %s18442_s22 }
   0xd   :  { %p18449_p3 = por %p18448_p2, %p18447_p1 }
   0xf   :  { %p18450_p4 = pnand %p18449_p3, %p18443_p0 }
  0x11   :  { %18453 = shalt.err (!%p18450_p4)
}
  0x12   :  { %51 = dma.hbm_to_vmem [thread:$0]  %s21943_s2, 16, %s49_s19, [#allocation12]  }
  0x13   :  { %s18462_s26 = scalar_lea.vmem %s71_s21, 16  ;;  %s18466_s27 = scalar_lea.vmem %s71_s21, 32 }
  0x14   :  { %p18463_p5 = scmp.ne.s32.totalorder %s71_s21, %s18462_s26  ;;  %p18467_p6 = scmp.lt.s32.totalorder %s71_s21, %s71_s21 }
  0x15   :  { %p18468_p7 = scmp.lt.s32.totalorder %s18466_s27, %s18462_s26 }
  0x17   :  { %p18469_p8 = por %p18468_p7, %p18467_p6 }
  0x19   :  { %p18470_p9 = pnand %p18469_p8, %p18463_p5 }
  0x1b   :  { %18473 = shalt.err (!%p18470_p9)
}
  0x1c   :  { %73 = dma.hbm_to_vmem [thread:$0]  %s21945_s4, 16, %s71_s21, [#allocation15]  }
  0x1d   :  { %s18712_s30 = smov [#allocation17]   ;;  %s18713_s17 = smov [#allocation20]  }
  0x1e   :  { %s92_s16 = sshll.u32 %s18712_s30, 4  ;;  %s118_s18 = sshll.u32 %s18713_s17, 4  ;;  %s93_s16 = int_to_ptr.vmem [resolvable:$true] %s92_s16  ;;  %s119_s18 = int_to_ptr.vmem [resolvable:$true] %s118_s18 }
  0x1f   :  { %s18482_s20 = scalar_lea.vmem %s93_s16, 16  ;;  %s18486_s2 = scalar_lea.vmem %s93_s16, 32 }
  0x20   :  { %p18483_p10 = scmp.ne.s32.totalorder %s93_s16, %s18482_s20  ;;  %p18487_p11 = scmp.lt.s32.totalorder %s93_s16, %s93_s16 }
  0x21   :  { %p18488_p12 = scmp.lt.s32.totalorder %s18486_s2, %s18482_s20 }
  0x23   :  { %p18489_p13 = por %p18488_p12, %p18487_p11 }
  0x25   :  { %p18490_p0 = pnand %p18489_p13, %p18483_p10 }
  0x27   :  { %18493 = shalt.err (!%p18490_p0)
}
  0x28   :  { %95 = dma.hbm_to_vmem [thread:$0]  %s21947_s6, 16, %s93_s16, [#allocation18]  }
  0x29   :  { %s18502_s23 = scalar_lea.vmem %s119_s18, 64  ;;  %p18507_p2 = scmp.lt.s32.totalorder %s119_s18, %s119_s18 }
  0x2a   :  { %p18503_p1 = scmp.ne.s32.totalorder %s119_s18, %s18502_s23  ;;  %p18508_p3 = scmp.lt.s32.totalorder %s18502_s23, %s18502_s23 }
  0x2c   :  { %p18509_p4 = por %p18508_p3, %p18507_p2 }
  0x2e   :  { %p18510_p5 = pnand %p18509_p4, %p18503_p1 }
  0x30   :  { %18513 = shalt.err (!%p18510_p5)
}
  0x31   :  { %121 = dma.hbm_to_vmem [thread:$0]  %s21951_s10, 64, %s119_s18, [#allocation21]  }
  0x32   :  { %s18714_s24 = smov [#allocation23]   ;;  %s18715_s26 = smov [#allocation8]  }
  0x33   :  { %s140_s25 = sshll.u32 %s18714_s24, 4  ;;  %s35_s27 = sshll.u32 %s18715_s26, 4  ;;  %s141_s25 = int_to_ptr.vmem [resolvable:$true] %s140_s25  ;;  %s36_s27 = int_to_ptr.vmem [resolvable:$true] %s35_s27 }
  0x34   :  { %s18522_s28 = scalar_lea.vmem %s141_s25, 64  ;;  %p18527_p7 = scmp.lt.s32.totalorder %s141_s25, %s141_s25 }
  0x35   :  { %p18523_p6 = scmp.ne.s32.totalorder %s141_s25, %s18522_s28  ;;  %p18528_p8 = scmp.lt.s32.totalorder %s18522_s28, %s18522_s28 }
  0x37   :  { %p18529_p9 = por %p18528_p8, %p18527_p7 }
  0x39   :  { %p18530_p10 = pnand %p18529_p9, %p18523_p6 }
  0x3b   :  { %18533 = shalt.err (!%p18530_p10)
}
  0x3c   :  { %143 = dma.hbm_to_vmem [thread:$0]  %s21953_s12, 64, %s141_s25, [#allocation24]  }
  0x3d   :  { %s18542_s30 = scalar_lea.vmem %s36_s27, 256  ;;  %p18547_p12 = scmp.lt.s32.totalorder %s36_s27, %s36_s27 }
  0x3e   :  { %p18543_p11 = scmp.ne.s32.totalorder %s36_s27, %s18542_s30  ;;  %p18548_p13 = scmp.lt.s32.totalorder %s18542_s30, %s18542_s30 }
  0x40   :  { %p18549_p0 = por %p18548_p13, %p18547_p12 }
  0x42   :  { %p18550_p1 = pnand %p18549_p0, %p18543_p11 }
  0x44   :  { %18553 = shalt.err (!%p18550_p1)
}
  0x45   :  { %s18716_s10 = smov 64   ;;  %s18717_s16 = smov 4  }
  0x46   :  { %41 = dma.hbm_to_vmem [thread:$0]  %s21942_s1, 256, %s36_s27, [#allocation9], %s18716_s10, %s18716_s10, %s18717_s16  }
  0x47   :  { %s18718_s20 = smov [#allocation13]   ;;  %s18719_s19 = smov [#allocation16]  }
  0x48   :  { %s57_s2 = sshll.u32 %s18718_s20, 4  ;;  %s79_s12 = sshll.u32 %s18719_s19, 4  ;;  %s58_s2 = int_to_ptr.vmem [resolvable:$true] %s57_s2  ;;  %s80_s12 = int_to_ptr.vmem [resolvable:$true] %s79_s12 }
  0x49   :  { %s18562_s22 = scalar_lea.vmem %s58_s2, 9216  ;;  %p18567_p3 = scmp.lt.s32.totalorder %s58_s2, %s58_s2 }
  0x4a   :  { %p18563_p2 = scmp.ne.s32.totalorder %s58_s2, %s18562_s22  ;;  %p18568_p4 = scmp.lt.s32.totalorder %s18562_s22, %s18562_s22 }
  0x4c   :  { %p18569_p5 = por %p18568_p4, %p18567_p3 }
  0x4e   :  { %p18570_p6 = pnand %p18569_p5, %p18563_p2 }
  0x50   :  { %18573 = shalt.err (!%p18570_p6)
}
  0x51   :  { %63 = dma.hbm_to_vmem [thread:$0]  %s21944_s3, 9216, %s58_s2, [#allocation12], %s18716_s10, %s18716_s10, %s18717_s16  }
  0x52   :  { %s18582_s1 = scalar_lea.vmem %s80_s12, 9216  ;;  %p18587_p8 = scmp.lt.s32.totalorder %s80_s12, %s80_s12 }
  0x53   :  { %p18583_p7 = scmp.ne.s32.totalorder %s80_s12, %s18582_s1  ;;  %p18588_p9 = scmp.lt.s32.totalorder %s18582_s1, %s18582_s1 }
  0x55   :  { %p18589_p10 = por %p18588_p9, %p18587_p8 }
  0x57   :  { %p18590_p11 = pnand %p18589_p10, %p18583_p7 }
  0x59   :  { %18593 = shalt.err (!%p18590_p11)
}
  0x5a   :  { %85 = dma.hbm_to_vmem [thread:$0]  %s21946_s5, 9216, %s80_s12, [#allocation15], %s18716_s10, %s18716_s10, %s18717_s16  }
  0x5b   :  { %s18720_s25 = smov [#allocation19]  }
  0x5c   :  { %s105_s26 = sshll.u32 %s18720_s25, 4  ;;  %s106_s26 = int_to_ptr.vmem [resolvable:$true] %s105_s26 }
  0x5d   :  { %s18602_s27 = scalar_lea.vmem %s106_s26, 16384  ;;  %p18607_p13 = scmp.lt.s32.totalorder %s106_s26, %s106_s26 }
  0x5e   :  { %p18603_p12 = scmp.ne.s32.totalorder %s106_s26, %s18602_s27  ;;  %p18608_p0 = scmp.lt.s32.totalorder %s18602_s27, %s18602_s27 }
  0x60   :  { %p18609_p1 = por %p18608_p0, %p18607_p13 }
  0x62   :  { %p18610_p2 = pnand %p18609_p1, %p18603_p12 }
  0x64   :  { %18613 = shalt.err (!%p18610_p2)
}
  0x65   :  { %s18721_s3 = smov 256   ;;  %s18722_s28 = smov 16  }
  0x66   :  { %111 = dma.hbm_to_vmem [thread:$0]  %s21950_s9, 16384, %s106_s26, [#allocation18], %s18721_s3, %s18721_s3, %s18722_s28  }
  0x67   :  { %s18723_s30 = smov [#allocation22]   ;;  %s18724_s5 = smov [#allocation25]  }
  0x68   :  { %s127_s17 = sshll.u32 %s18723_s30, 4  ;;  %s149_s18 = sshll.u32 %s18724_s5, 4  ;;  %s128_s17 = int_to_ptr.vmem [resolvable:$true] %s127_s17  ;;  %s150_s18 = int_to_ptr.vmem [resolvable:$true] %s149_s18 }
  0x69   :  { %s18622_s20 = scalar_lea.vmem %s128_s17, 16384  ;;  %p18627_p4 = scmp.lt.s32.totalorder %s128_s17, %s128_s17 }
  0x6a   :  { %p18623_p3 = scmp.ne.s32.totalorder %s128_s17, %s18622_s20  ;;  %p18628_p5 = scmp.lt.s32.totalorder %s18622_s20, %s18622_s20 }
  0x6c   :  { %p18629_p6 = por %p18628_p5, %p18627_p4 }
  0x6e   :  { %p18630_p7 = pnand %p18629_p6, %p18623_p3 }
  0x70   :  { %18633 = shalt.err (!%p18630_p7)
}
  0x71   :  { %133 = dma.hbm_to_vmem [thread:$0]  %s21952_s11, 16384, %s128_s17, [#allocation21], %s18721_s3, %s18721_s3, %s18722_s28  }
  0x72   :  { %s18642_s12 = scalar_lea.vmem %s150_s18, 4096  ;;  %p18647_p9 = scmp.lt.s32.totalorder %s150_s18, %s150_s18 }
  0x73   :  { %p18643_p8 = scmp.ne.s32.totalorder %s150_s18, %s18642_s12  ;;  %p18648_p10 = scmp.lt.s32.totalorder %s18642_s12, %s18642_s12 }
  0x75   :  { %p18649_p11 = por %p18648_p10, %p18647_p9 }
  0x77   :  { %p18650_p12 = pnand %p18649_p11, %p18643_p8 }
  0x79   :  { %18653 = shalt.err (!%p18650_p12)
}
  0x7a   :  { %155 = dma.hbm_to_vmem [thread:$0]  %s21954_s13, 4096, %s150_s18, [#allocation24], %s18716_s10, %s18716_s10, %s18717_s16  }
  0x7b   :  { %s18725_s23 = smov [#allocation26]  }
  0x7c   :  { %s162_s4 = sshll.u32 %s18725_s23, 4  ;;  %s163_s4 = int_to_ptr.vmem [resolvable:$true] %s162_s4 }
  0x7d   :  { %s18662_s1 = scalar_lea.vmem %s163_s4, 16  ;;  %s18666_s11 = scalar_lea.vmem %s163_s4, 32 }
  0x7e   :  { %p18663_p13 = scmp.ne.s32.totalorder %s163_s4, %s18662_s1  ;;  %p18667_p0 = scmp.lt.s32.totalorder %s163_s4, %s163_s4 }
  0x7f   :  { %p18668_p1 = scmp.lt.s32.totalorder %s18666_s11, %s18662_s1 }
  0x81   :  { %p18669_p2 = por %p18668_p1, %p18667_p0 }
  0x83   :  { %p18670_p3 = pnand %p18669_p2, %p18663_p13 }
  0x85   :  { %18673 = shalt.err (!%p18670_p3)
}
  0x86   :  { %165 = dma.hbm_to_vmem [thread:$0]  %s21955_s14, 16, %s163_s4, [#allocation27]  }
  0x87   :  { %18694 = dma.done.wait [#allocation9], 256  }
  0x88   :  { %18695 = vsyncadd [#allocation9], 4294967040 }
  0x89   :  { %18696 = dma.done.wait [#allocation12], 9232  }
  0x8a   :  { %18697 = vsyncadd [#allocation12], 4294958064 }
  0x8b   :  { %18698 = dma.done.wait [#allocation15], 9232  }
  0x8c   :  { %18699 = vsyncadd [#allocation15], 4294958064 }
  0x8d   :  { %18700 = dma.done.wait [#allocation18], 16400  }
  0x8e   :  { %18701 = vsyncadd [#allocation18], 4294950896 }
  0x8f   :  { %18702 = dma.done.wait [#allocation21], 16448  }
  0x90   :  { %18703 = vsyncadd [#allocation21], 4294950848 }
  0x91   :  { %18704 = dma.done.wait [#allocation24], 4160  }
  0x92   :  { %18705 = vsyncadd [#allocation24], 4294963136 }
  0x93   :  { %18706 = dma.done.wait [#allocation27], 16  }
  0x94   :  { %18707 = vsyncadd [#allocation27], 4294967280  ;;  %v17249_v0 = vld [vmem:[#allocation8 + $0x8] sm:$0xff]   ;;  %v17250_v1 = vld [vmem:[#allocation8] sm:$0xff]   ;;  %vm450_vm0 = vcmask 261120   ;;  %v21957_v29 = vmov 0   ;;  %v936_v46 = vlaneseq }
  0x95   :  { %17109 = vmatprep.subr.bf16.mxu0 %v17249_v0  ;;  %v17251_v2 = vld [vmem:[%s21941_s0] sm:$0xff]   ;;  %v17252_v3 = vld [vmem:[%s21941_s0 + $0x8] sm:$0xff]   ;;  %v17253_v4 = vld [vmem:[%s21941_s0 + $0x10] sm:$0xff]   ;;  %2663 = vst [vmem:[#allocation2 + $0x8] sm:$0xf] %v21957_v29  ;;  %vm1268_vm1 = vcmask 1041408  }
  0x96   :  { %17110 = vmatpush3.bf16.msra.mxu0 %v17249_v0  ;;  %17113 = vmatprep.mubr.msk.bf16.mxu0 %vm450_vm0, %v17251_v2  ;;  %v17254_v5 = vld [vmem:[%s21941_s0 + $0x18] sm:$0xff]   ;;  %v17255_v6 = vld [vmem:[%s21941_s0 + $0x20] sm:$0xff]   ;;  %v17256_v7 = vld [vmem:[%s21941_s0 + $0x28] sm:$0xff]   ;;  %2664 = vst [vmem:[#allocation2 + $0xc] sm:$0x1] %v21957_v29  ;;  %v19019_v50 = vshrl.u32 %v936_v46, 7 }
  0x97   :  { %17111 = vmatprep.subr.bf16.mxu0 %v17250_v1  ;;  %v17257_v8 = vld [vmem:[%s21941_s0 + $0x30] sm:$0xff]   ;;  %v17258_v9 = vld [vmem:[%s21941_s0 + $0x38] sm:$0xff]   ;;  %v17259_v10 = vld [vmem:[%s21941_s0 + $0x40] sm:$0xff]   ;;  %2661 = vst [vmem:[#allocation2] sm:$0xf] %v21957_v29  ;;  %vm2937_vm2 = vcmask 1042434  }
  0x98   :  { %v17260_v11 = vld [vmem:[%s21941_s0 + $0x48] sm:$0xff]   ;;  %v17261_v12 = vld [vmem:[%s21941_s0 + $0x50] sm:$0xff]   ;;  %v17262_v13 = vld [vmem:[%s21941_s0 + $0x58] sm:$0xff]   ;;  %2662 = vst [vmem:[#allocation2 + $0x4] sm:$0x1] %v21957_v29  ;;  %vm3030_vm3 = vcmask 1040384  }
  0x99   :  { %v17263_v14 = vld [vmem:[%s21941_s0 + $0x60] sm:$0xff]   ;;  %v17264_v15 = vld [vmem:[%s21941_s0 + $0x68] sm:$0xff]   ;;  %v17265_v16 = vld [vmem:[%s21941_s0 + $0x70] sm:$0xff]   ;;  %2665 = vst [vmem:[#allocation2 + $0x10] sm:$0xf] %v21957_v29  ;;  %vm2939_vm5 = vcmask 1043459  }
  0x9a   :  { %17112 = vmatpush3.bf16.msra.mxu0 %v17250_v1  ;;  %v17266_v17 = vld [vmem:[%s21941_s0 + $0x78] sm:$0xff]   ;;  %v17267_v18 = vld [vmem:[%s21941_s0 + $0x80] sm:$0xff]   ;;  %v17268_v19 = vld [vmem:[%s21941_s0 + $0x88] sm:$0xff]   ;;  %2666 = vst [vmem:[#allocation2 + $0x14] sm:$0x1] %v21957_v29  ;;  %vm2941_vm6 = vcmask 1044484  }
  0x9b   :  { %v17269_v20 = vld [vmem:[%s21941_s0 + $0x90] sm:$0xff]   ;;  %v17270_v21 = vld [vmem:[%s21941_s0 + $0x98] sm:$0xff]   ;;  %v17271_v22 = vld [vmem:[%s21941_s0 + $0xa0] sm:$0xff]   ;;  %2667 = vst [vmem:[#allocation2 + $0x18] sm:$0xf] %v21957_v29  ;;  %vm2943_vm7 = vcmask 1045509  }
  0x9c   :  { %v17272_v23 = vld [vmem:[%s21941_s0 + $0xa8] sm:$0xff]   ;;  %v17273_v24 = vld [vmem:[%s21941_s0 + $0xb0] sm:$0xff]   ;;  %v17274_v25 = vld [vmem:[%s21941_s0 + $0xb8] sm:$0xff]   ;;  %2668 = vst [vmem:[#allocation2 + $0x1c] sm:$0x1] %v21957_v29  ;;  %vm2945_vm8 = vcmask 1046534  }
  0x9d   :  { %17114 = vmatmul.mubr.msk.bf16.vlgmr.msra.gmra.mxu0 %vm450_vm0, %v17252_v3  ;;  %v17275_v26 = vld [vmem:[%s21941_s0 + $0xc0] sm:$0xff]   ;;  %v17276_v27 = vld [vmem:[%s21941_s0 + $0xc8] sm:$0xff]   ;;  %v17277_v28 = vld [vmem:[%s21941_s0 + $0xd0] sm:$0xff]   ;;  %2669 = vst [vmem:[#allocation2 + $0x20] sm:$0xf] %v21957_v29  ;;  %vm2947_vm9 = vcmask 1047559  }
  0x9e   :  { %17117 = vmatprep.mubr.msk.bf16.mxu0 %vm450_vm0, %v17253_v4  ;;  %2670 = vst [vmem:[#allocation2 + $0x24] sm:$0x1] %v21957_v29  ;;  %2671 = vst [vmem:[#allocation2 + $0x28] sm:$0xf] %v21957_v29  ;;  %v17278_v30 = vld [vmem:[%s21941_s0 + $0xd8] sm:$0xff]   ;;  %v17279_v31 = vld [vmem:[%s21941_s0 + $0xe0] sm:$0xff]  }
  0x9f   :  { %2672 = vst [vmem:[#allocation2 + $0x2c] sm:$0x1] %v21957_v29  ;;  %2673 = vst [vmem:[#allocation2 + $0x30] sm:$0xf] %v21957_v29  ;;  %v17280_v32 = vld [vmem:[%s21941_s0 + $0xe8] sm:$0xff]   ;;  %v17281_v33 = vld [vmem:[%s21941_s0 + $0xf0] sm:$0xff]  }
  0xa0   :  { %2674 = vst [vmem:[#allocation2 + $0x34] sm:$0x1] %v21957_v29  ;;  %2675 = vst [vmem:[#allocation2 + $0x38] sm:$0xf] %v21957_v29  ;;  %v17282_v34 = vld [vmem:[%s21941_s0 + $0xf8] sm:$0xff]   ;;  %v17283_v35 = vld [vmem:[#allocation13 + $0x78] sm:$0xff]  }
  0xa1   :  { %2676 = vst [vmem:[#allocation2 + $0x3c] sm:$0x1] %v21957_v29  ;;  %2677 = vst [vmem:[#allocation2 + $0x40] sm:$0xf] %v21957_v29  ;;  %16671 = vmatprep.subr.bf16.mxu1 %v17283_v35  ;;  %v17284_v36 = vld [vmem:[#allocation13 + $0x38] sm:$0xff]   ;;  %v17285_v37 = vld [vmem:[#allocation13 + $0x70] sm:$0xff]  }
  0xa2   :  { %2678 = vst [vmem:[#allocation2 + $0x44] sm:$0x1] %v21957_v29  ;;  %2679 = vst [vmem:[#allocation2 + $0x48] sm:$0xf] %v21957_v29  ;;  %16672 = vmatpush3.bf16.msra.mxu1 %v17284_v36  ;;  %v17286_v38 = vld [vmem:[#allocation13 + $0x30] sm:$0xff]   ;;  %v17287_v39 = vld [vmem:[#allocation13 + $0x68] sm:$0xff]  }
  0xa3   :  { %2680 = vst [vmem:[#allocation2 + $0x4c] sm:$0x1] %v21957_v29  ;;  %6881 = vst [vmem:[#allocation4] sm:$0x7] %v21957_v29  ;;  %16673 = vmatprep.subr.bf16.mxu1 %v17285_v37  ;;  %v17288_v40 = vld [vmem:[#allocation13 + $0x178] sm:$0xff]   ;;  %v17289_v41 = vld [vmem:[#allocation13 + $0x28] sm:$0xff]  }
  0xa4   :  { %6882 = vst [vmem:[#allocation4 + $0x4] sm:$0x7] %v21957_v29  ;;  %6883 = vst [vmem:[#allocation4 + $0x8] sm:$0x7] %v21957_v29  ;;  %v17290_v42 = vld [vmem:[#allocation13 + $0x138] sm:$0xff]   ;;  %16799 = vmatprep.subr.bf16.mxu0 %v17288_v40  ;;  %v17291_v3 = vld [vmem:[#allocation13 + $0x60] sm:$0xff]  }
  0xa5   :  { %17118 = vmatmul.mubr.msk.bf16.gmra.mxu0 %vm450_vm0, %v17254_v5  ;;  %6884 = vst [vmem:[#allocation4 + $0xc] sm:$0x7] %v21957_v29  ;;  %6885 = vst [vmem:[#allocation4 + $0x10] sm:$0x7] %v21957_v29  ;;  %v19016_v43 = vld [vmem:[#allocation11] ss:$0 sm:$0xff] }
  0xa6   :  { %17121 = vmatprep.mubr.msk.bf16.mxu0 %vm450_vm0, %v17255_v6  ;;  %6886 = vst [vmem:[#allocation4 + $0x14] sm:$0x7] %v21957_v29  ;;  %9493 = vst [vmem:[#allocation6] sm:$0x3] %v21957_v29  ;;  %16674 = vmatpush3.bf16.msra.mxu1 %v17286_v38  ;;  %v18727_v44 = vmov 1983009808  }
  0xa7   :  { %9494 = vst [vmem:[#allocation6 + $0x2] sm:$0x3] %v21957_v29  ;;  %9495 = vst [vmem:[#allocation6 + $0x4] sm:$0x3] %v21957_v29  ;;  %16675 = vmatprep.subr.bf16.mxu1 %v17287_v39  ;;  %16800 = vmatpush3.bf16.msra.mxu0 %v17290_v42  ;;  %v934_v45 = vunpack.c.l.s4 %v18727_v44  ;;  %v17292_v4 = vld [vmem:[#allocation13 + $0x170] sm:$0xff]   ;;  %v17293_v39 = vld [vmem:[#allocation13 + $0x20] sm:$0xff]  }
  0xa8   :  { %9496 = vst [vmem:[#allocation6 + $0x6] sm:$0x3] %v21957_v29  ;;  %21966 = vst [vmem:[#allocation37_spill] sm:$0xff] %v19019_v50  ;;  %16801 = vmatprep.subr.bf16.mxu0 %v17292_v4  ;;  %v17294_v40 = vld [vmem:[#allocation13 + $0x130] sm:$0xff]   ;;  %vm3031_vm4 = vsmask.f32 256 }
  0xa9   :  { %v935_v49 = vunpack.c.0.s8 %v934_v45  ;;  %vm3024_vm10 = vcmask 1043456   ;;  %vm3025_vm11 = vsmask.f32 7938  ;;  %vm19063_vm12 = vmand %vm3030_vm3, %vm3031_vm4  ;;  %vm3110_vm14 = vsmask.f32 3328 }
  0xaa   :  { %16676 = vmatpush3.bf16.msra.mxu1 %v17289_v41  ;;  %vm19083_vm13 = vmand %vm3024_vm10, %vm3025_vm11  ;;  %vm3111_vm15 = vsmask.f32 7440  ;;  %vm3273_vm11 = vcmask 1042432  }
  0xab   :  { %v19023_v56 = vsub.s32 %v935_v49, %v19019_v50  ;;  %16677 = vmatprep.subr.bf16.mxu1 %v17291_v3  ;;  %16802 = vmatpush3.bf16.msra.mxu0 %v17294_v40  ;;  %v17296_v3 = vld [vmem:[#allocation13 + $0x168] sm:$0xff]  }
  0xac   :  { %16803 = vmatprep.subr.bf16.mxu0 %v17296_v3  ;;  %v17301_v3 = vld [vmem:[#allocation13 + $0x10] sm:$0xff]  }
  0xad   :  { %17122 = vmatmul.mubr.msk.bf16.gmra.mxu0 %vm450_vm0, %v17256_v7 }
  0xae   :  { %17125 = vmatprep.mubr.msk.bf16.mxu0 %vm450_vm0, %v17257_v8  ;;  %16678 = vmatpush3.bf16.msra.mxu1 %v17293_v39  ;;  %v18125_v39 = vld [vmem:[#allocation19 + $0x2a8] ss:$16 sps:$4 sm:$0xff]  }
  0xb5   :  { %17126 = vmatmul.mubr.msk.bf16.gmra.mxu0 %vm450_vm0, %v17258_v9 }
  0xb6   :  { %17129 = vmatprep.mubr.msk.bf16.mxu0 %vm450_vm0, %v17259_v10 }
  0xbd   :  { %17130 = vmatmul.mubr.msk.bf16.gmra.mxu0 %vm450_vm0, %v17260_v11 }
  0xbe   :  { %17133 = vmatprep.mubr.msk.bf16.mxu0 %vm450_vm0, %v17261_v12 }
  0xc5   :  { %17134 = vmatmul.mubr.msk.bf16.gmra.mxu0 %vm450_vm0, %v17262_v13 }
  0xc6   :  { %17137 = vmatprep.mubr.msk.bf16.mxu0 %vm450_vm0, %v17263_v14 }
  0xcd   :  { %17138 = vmatmul.mubr.msk.bf16.gmra.mxu0 %vm450_vm0, %v17264_v15 }
  0xce   :  { %17141 = vmatprep.mubr.msk.bf16.mxu0 %vm450_vm0, %v17265_v16 }
  0xd5   :  { %17142 = vmatmul.mubr.msk.bf16.gmra.mxu0 %vm450_vm0, %v17266_v17 }
  0xd6   :  { %17145 = vmatprep.mubr.msk.bf16.mxu0 %vm450_vm0, %v17267_v18 }
  0xdd   :  { %17146 = vmatmul.mubr.msk.bf16.gmra.mxu0 %vm450_vm0, %v17268_v19 }
  0xde   :  { %17149 = vmatprep.mubr.msk.bf16.mxu0 %vm450_vm0, %v17269_v20 }
  0xe5   :  { %17150 = vmatmul.mubr.msk.bf16.gmra.mxu0 %vm450_vm0, %v17270_v21 }
  0xe6   :  { %17153 = vmatprep.mubr.msk.bf16.mxu0 %vm450_vm0, %v17271_v22 }
  0xed   :  { %17154 = vmatmul.mubr.msk.bf16.gmra.mxu0 %vm450_vm0, %v17272_v23 }
  0xee   :  { %17157 = vmatprep.mubr.msk.bf16.mxu0 %vm450_vm0, %v17273_v24 }
  0xf5   :  { %17158 = vmatmul.mubr.msk.bf16.gmra.mxu0 %vm450_vm0, %v17274_v25 }
  0xf6   :  { %17161 = vmatprep.mubr.msk.bf16.mxu0 %vm450_vm0, %v17275_v26 }
  0xfd   :  { %17162 = vmatmul.mubr.msk.bf16.gmra.mxu0 %vm450_vm0, %v17276_v27 }
  0xfe   :  { %17165 = vmatprep.mubr.msk.bf16.mxu0 %vm450_vm0, %v17277_v28 }
 0x105   :  { %17166 = vmatmul.mubr.msk.bf16.gmra.mxu0 %vm450_vm0, %v17278_v30 }
 0x106   :  { %17169 = vmatprep.mubr.msk.bf16.mxu0 %vm450_vm0, %v17279_v31 }
 0x10d   :  { %17170 = vmatmul.mubr.msk.bf16.gmra.mxu0 %vm450_vm0, %v17280_v32 }
 0x10e   :  { %17173 = vmatprep.mubr.msk.bf16.mxu0 %vm450_vm0, %v17281_v33 }
 0x115   :  { %17174 = vmatmul.mubr.msk.bf16.gmra.mxu0 %vm450_vm0, %v17282_v34  ;;  %vm19405_vm0 = vmor %vm3110_vm14, %vm3111_vm15  ;;  %vm3274_vm14 = vcmask 1046532  }
 0x116   :  { %vm19476_vm15 = vmor %vm3273_vm11, %vm3274_vm14  ;;  %vm7057_vm14 = vsmask.f32 5392 }
 0x15d   :  { %v17115_v47 = vpop.f32.mrf.mxu0 }
 0x15e   :  { %v590_v48 = vadd.f32 %v17115_v47, %v19016_v43 }
 0x15f   :  { %v581_v51 = vpop.f32.mrf.mxu0 }
 0x160   :  { %v582_v52 = vadd.f32 %v19016_v43, %v581_v51  ;;  %v838_v54 = vmax.f32 %v590_v48, 0.0 }
 0x161   :  { %v17116_v53 = vpop.f32.mrf.mxu0 }
 0x162   :  { %v836_v55 = vmax.f32 %v582_v52, 0.0  ;;  %v593_v57 = vadd.f32 %v17116_v53, %v19016_v43 }
 0x163   :  { %v584_v58 = vpop.f32.mrf.mxu0 }
 0x164   :  { %v900_v59 = vmax.f32 %v836_v55, %v838_v54  ;;  %v585_v60 = vadd.f32 %v19016_v43, %v584_v58  ;;  %v839_v61 = vmax.f32 %v593_v57, 0.0 }
 0x165   :  { %v17119_v62 = vpop.f32.mrf.mxu0 }
 0x166   :  { %v932_v63 = vcombine.high %v900_v59, %v900_v59  ;;  %v939_v0 = vrot.slane %v900_v59, %v19023_v56  ;;  %v837_v1 = vmax.f32 %v585_v60, 0.0  ;;  %v19029_v2 = vadd.f32 %v17119_v62, %v19016_v43 }
 0x167   :  { %v597_v5 = vpop.f32.mrf.mxu0 }
 0x168   :  { %v946_v6 = vrot.slane %v932_v63, %v19023_v56  ;;  %v947_v7 = vcombine.high %v939_v0, %v939_v0  ;;  %v1269_v8 = vsel %vm1268_vm1, %v939_v0, -inf  ;;  %v901_v9 = vmax.f32 %v837_v1, %v839_v61  ;;  %v17295_v1 = vld [vmem:[#allocation13 + $0x58] sm:$0xff]  }
 0x169   :  { %v1270_v10 = vrot.slane %v1269_v8, 4  ;;  %v842_v11 = vmax.f32 %v19029_v2, 0.0  ;;  %v19035_v12 = vadd.f32 %v19016_v43, %v597_v5  ;;  %v17120_v13 = vpop.f32.mrf.mxu0  ;;  %16679 = vmatprep.subr.bf16.mxu1 %v17295_v1 }
 0x16a   :  { %v948_v14 = vcombine.high %v946_v6, %v946_v6  ;;  %v1276_v15 = vsel %vm1268_vm1, %v947_v7, -inf  ;;  %v1283_v16 = vsel %vm1268_vm1, %v946_v6, -inf  ;;  %v949_v17 = vcombine.high %v901_v9, %v901_v9 }
 0x16b   :  { %v1271_v18 = vmax.f32 %v1269_v8, %v1270_v10  ;;  %v1277_v19 = vrot.slane %v1276_v15, 4  ;;  %v1284_v20 = vrot.slane %v1283_v16, 4  ;;  %v956_v21 = vrot.slane %v901_v9, %v19023_v56  ;;  %v19050_v51 = vpop.f32.mrf.mxu0  ;;  %v17297_v9 = vld [vmem:[#allocation13 + $0x18] sm:$0xff]   ;;  %v17298_v10 = vld [vmem:[#allocation13 + $0x128] sm:$0xff]  }
 0x16c   :  { %v1290_v22 = vsel %vm1268_vm1, %v948_v14, -inf  ;;  %v963_v23 = vrot.slane %v949_v17, %v19023_v56  ;;  %v840_v24 = vmax.f32 %v19035_v12, 0.0  ;;  %v19044_v25 = vadd.f32 %v17120_v13, %v19016_v43  ;;  %16680 = vmatpush3.bf16.msra.mxu1 %v17297_v9  ;;  %16804 = vmatpush3.bf16.msra.mxu0 %v17298_v10 }
 0x16d   :  { %v1272_v26 = vrot.slane %v1271_v18, 2  ;;  %v1278_v27 = vmax.f32 %v1276_v15, %v1277_v19  ;;  %v1285_v28 = vmax.f32 %v1283_v16, %v1284_v20  ;;  %v1291_v30 = vrot.slane %v1290_v22, 4  ;;  %v19052_v8 = vpop.f32.mrf.mxu0 }
 0x16e   :  { %v964_v31 = vcombine.high %v956_v21, %v956_v21  ;;  %v965_v32 = vcombine.high %v963_v23, %v963_v23  ;;  %v1297_v33 = vsel %vm1268_vm1, %v956_v21, -inf  ;;  %v1311_v34 = vsel %vm1268_vm1, %v963_v23, -inf }
 0x16f   :  { %v1273_v35 = vmax.f32 %v1271_v18, %v1272_v26  ;;  %v1279_v36 = vrot.slane %v1278_v27, 2  ;;  %v1286_v37 = vrot.slane %v1285_v28, 2  ;;  %v1292_v38 = vmax.f32 %v1290_v22, %v1291_v30 }
 0x170   :  { %v1298_v41 = vrot.slane %v1297_v33, 4  ;;  %v1304_v42 = vsel %vm1268_vm1, %v964_v31, -inf  ;;  %v1312_v44 = vrot.slane %v1311_v34, 4  ;;  %v1318_v45 = vsel %vm1268_vm1, %v965_v32, -inf  ;;  %v19058_v32 = vpop.f32.mrf.mxu0 }
 0x171   :  { %v1274_v46 = vrot.slane %v1273_v35, 1  ;;  %v1280_v47 = vmax.f32 %v1278_v27, %v1279_v36  ;;  %v1287_v48 = vmax.f32 %v1285_v28, %v1286_v37  ;;  %v1293_v49 = vrot.slane %v1292_v38, 2 }
 0x172   :  { %v1299_v52 = vmax.f32 %v1297_v33, %v1298_v41  ;;  %v1305_v53 = vrot.slane %v1304_v42, 4  ;;  %v1313_v54 = vmax.f32 %v1311_v34, %v1312_v44  ;;  %v1319_v55 = vrot.slane %v1318_v45, 4 }
 0x173   :  { %v1275_v57 = vmax.f32 %v1273_v35, %v1274_v46  ;;  %v1281_v58 = vrot.slane %v1280_v47, 1  ;;  %v1288_v59 = vrot.slane %v1287_v48, 1  ;;  %v1294_v60 = vmax.f32 %v1292_v38, %v1293_v49 }
 0x174   :  { %v1300_v61 = vrot.slane %v1299_v52, 2  ;;  %v1306_v62 = vmax.f32 %v1304_v42, %v1305_v53  ;;  %v1314_v63 = vrot.slane %v1313_v54, 2  ;;  %v1320_v0 = vmax.f32 %v1318_v45, %v1319_v55  ;;  %v3033_v42 = vld [vmem:[#allocation2 + $0xc] sm:$0x1] }
 0x175   :  { %v1282_v4 = vmax.f32 %v1280_v47, %v1281_v58  ;;  %v1289_v5 = vmax.f32 %v1287_v48, %v1288_v59  ;;  %v1295_v6 = vrot.slane %v1294_v60, 1  ;;  %v16461_v7 = vpack.c.bf16 %v1275_v57, %v1275_v57  ;;  %v17124_v48 = vpop.f32.mrf.mxu0 }
 0x176   :  { %v1301_v13 = vmax.f32 %v1299_v52, %v1300_v61  ;;  %v1307_v14 = vrot.slane %v1306_v62, 2  ;;  %v1315_v15 = vmax.f32 %v1313_v54, %v1314_v63  ;;  %v1321_v16 = vrot.slane %v1320_v0, 2  ;;  %v17300_v61 = vld [vmem:[#allocation13 + $0x160] sm:$0xff]  }
 0x177   :  { %v1296_v17 = vmax.f32 %v1294_v60, %v1295_v6  ;;  %v16462_v18 = vpack.c.bf16 %v1282_v4, %v1282_v4  ;;  %v16463_v19 = vpack.c.bf16 %v1289_v5, %v1289_v5  ;;  %v2873_v20 = vunpack.c.l.b16 %v16461_v7  ;;  %v17299_v60 = vld [vmem:[#allocation13 + $0x50] sm:$0xff]   ;;  %v17302_v4 = vld [vmem:[#allocation13 + $0x120] sm:$0xff]   ;;  %16805 = vmatprep.subr.bf16.mxu0 %v17300_v61 }
 0x178   :  { %v1302_v21 = vrot.slane %v1301_v13, 1  ;;  %v1308_v22 = vmax.f32 %v1306_v62, %v1307_v14  ;;  %v1316_v23 = vrot.slane %v1315_v15, 1  ;;  %v1322_v26 = vmax.f32 %v1320_v0, %v1321_v16  ;;  %v3027_v5 = vld [vmem:[#allocation2 + $0x8] sm:$0xf]  ;;  %16681 = vmatprep.subr.bf16.mxu1 %v17299_v60  ;;  %16806 = vmatpush3.bf16.msra.mxu0 %v17302_v4 }
 0x179   :  { %v16464_v27 = vpack.c.bf16 %v1296_v17, %v1296_v17  ;;  %v2874_v28 = vunpack.c.l.b16 %v16462_v18  ;;  %v2875_v30 = vunpack.c.l.b16 %v16463_v19  ;;  %v902_v31 = vmax.f32 %v840_v24, %v842_v11  ;;  %16682 = vmatpush3.bf16.msra.mxu1 %v17301_v3 }
 0x17a   :  { %v1303_v33 = vmax.f32 %v1301_v13, %v1302_v21  ;;  %v1309_v34 = vrot.slane %v1308_v22, 1  ;;  %v1317_v35 = vmax.f32 %v1315_v15, %v1316_v23  ;;  %v1323_v36 = vrot.slane %v1322_v26, 1  ;;  %v616_v13 = vpop.f32.mrf.mxu0 }
 0x17b   :  { %v2876_v37 = vunpack.c.l.b16 %v16464_v27  ;;  %v2938_v38 = vsel %vm2937_vm2, %v2874_v28, %v2873_v20  ;;  %v966_v40 = vcombine.high %v902_v31, %v902_v31  ;;  %v973_v2 = vrot.slane %v902_v31, %v19023_v56 }
 0x17c   :  { %v2940_v11 = vsel %vm2939_vm5, %v2875_v30, %v2938_v38  ;;  %v1310_v12 = vmax.f32 %v1308_v22, %v1309_v34  ;;  %v1324_v24 = vmax.f32 %v1322_v26, %v1323_v36  ;;  %v16465_v41 = vpack.c.bf16 %v1303_v33, %v1303_v33  ;;  %v17127_v34 = vpop.f32.mrf.mxu0 }
 0x17d   :  { %v16467_v44 = vpack.c.bf16 %v1317_v35, %v1317_v35  ;;  %v2942_v45 = vsel %vm2941_vm6, %v2876_v37, %v2940_v11  ;;  %v980_v46 = vrot.slane %v966_v40, %v19023_v56  ;;  %v981_v47 = vcombine.high %v973_v2, %v973_v2 }
 0x17e   :  { %v16466_v49 = vpack.c.bf16 %v1310_v12, %v1310_v12  ;;  %v2877_v52 = vunpack.c.l.b16 %v16465_v41  ;;  %v16525_v53 = vpack.c.bf16 %v1324_v24, %v1324_v24  ;;  %v1325_v54 = vsel %vm1268_vm1, %v973_v2, -inf }
 0x17f   :  { %v2879_v55 = vunpack.c.l.b16 %v16467_v44  ;;  %v982_v57 = vcombine.high %v980_v46, %v980_v46  ;;  %v1326_v58 = vrot.slane %v1325_v54, 4  ;;  %v1332_v59 = vsel %vm1268_vm1, %v981_v47, -inf }
 0x180   :  { %v2878_v62 = vunpack.c.l.b16 %v16466_v49  ;;  %v2944_v63 = vsel %vm2943_vm7, %v2877_v52, %v2942_v45  ;;  %v3034_v0 = vsel %vm19063_vm12, %v16525_v53, %v3033_v42  ;;  %v1333_v1 = vrot.slane %v1332_v59, 4  ;;  %v17304_v53 = vld [vmem:[#allocation13 + $0x158] sm:$0xff]  }
 0x181   :  { %3035 = vst [vmem:[#allocation2 + $0xc] sm:$0x1] %v3034_v0  ;;  %v1327_v6 = vmax.f32 %v1325_v54, %v1326_v58  ;;  %v1339_v7 = vsel %vm1268_vm1, %v980_v46, -inf  ;;  %v1346_v9 = vsel %vm1268_vm1, %v982_v57, -inf  ;;  %v843_v10 = vmax.f32 %v19044_v25, 0.0  ;;  %16807 = vmatprep.subr.bf16.mxu0 %v17304_v53 }
 0x182   :  { %v2946_v14 = vsel %vm2945_vm8, %v2878_v62, %v2944_v63  ;;  %v1334_v15 = vmax.f32 %v1332_v59, %v1333_v1  ;;  %v1340_v16 = vrot.slane %v1339_v7, 4  ;;  %v1347_v17 = vrot.slane %v1346_v9, 4 }
 0x183   :  { %v2948_v18 = vsel %vm2947_vm9, %v2879_v55, %v2946_v14  ;;  %v1328_v20 = vrot.slane %v1327_v6, 2  ;;  %v601_v25 = vadd.f32 %v19016_v43, %v19050_v51  ;;  %v622_v21 = vadd.f32 %v19052_v8, %v19016_v43 }
 0x184   :  { %v2991_v22 = vpack.c.b16 %v2948_v18, %v2948_v18  ;;  %v1335_v23 = vrot.slane %v1334_v15, 2  ;;  %v1341_v26 = vmax.f32 %v1339_v7, %v1340_v16  ;;  %v1348_v27 = vmax.f32 %v1346_v9, %v1347_v17 }
 0x185   :  { %v1329_v28 = vmax.f32 %v1327_v6, %v1328_v20  ;;  %v841_v30 = vmax.f32 %v601_v25, 0.0  ;;  %v846_v31 = vmax.f32 %v622_v21, 0.0  ;;  %v614_v33 = vadd.f32 %v19016_v43, %v19058_v32  ;;  %v19112_v21 = vpop.f32.mrf.mxu0 }
 0x186   :  { %v3028_v35 = vsel %vm19083_vm13, %v2991_v22, %v3027_v5  ;;  %v1336_v36 = vmax.f32 %v1334_v15, %v1335_v23  ;;  %v1342_v37 = vrot.slane %v1341_v26, 2  ;;  %v1349_v51 = vrot.slane %v1348_v27, 2 }
 0x187   :  { %3029 = vst [vmem:[#allocation2 + $0x8] sm:$0xf] %v3028_v35  ;;  %v1330_v38 = vrot.slane %v1329_v28, 1  ;;  %v903_v8 = vmax.f32 %v841_v30, %v843_v10  ;;  %v844_v40 = vmax.f32 %v614_v33, 0.0  ;;  %v19096_v2 = vadd.f32 %v17124_v48, %v19016_v43  ;;  %v17303_v48 = vld [vmem:[#allocation13 + $0x48] sm:$0xff]  }
 0x188   :  { %v1343_v11 = vmax.f32 %v1341_v26, %v1342_v37  ;;  %v1350_v12 = vmax.f32 %v1348_v27, %v1349_v51  ;;  %v19099_v24 = vadd.f32 %v19016_v43, %v616_v13  ;;  %v19102_v32 = vadd.f32 %v17127_v34, %v19016_v43  ;;  %16683 = vmatprep.subr.bf16.mxu1 %v17303_v48 }
 0x189   :  { %v1331_v41 = vmax.f32 %v1329_v28, %v1330_v38  ;;  %v1337_v42 = vrot.slane %v1336_v36, 1  ;;  %v983_v44 = vcombine.high %v903_v8, %v903_v8  ;;  %v990_v45 = vrot.slane %v903_v8, %v19023_v56 }
 0x18a   :  { %v1344_v46 = vrot.slane %v1343_v11, 1  ;;  %v1351_v47 = vrot.slane %v1350_v12, 1  ;;  %v904_v49 = vmax.f32 %v844_v40, %v846_v31  ;;  %v847_v52 = vmax.f32 %v19096_v2, 0.0 }
 0x18b   :  { %v1338_v54 = vmax.f32 %v1336_v36, %v1337_v42  ;;  %v16469_v55 = vpack.c.bf16 %v1331_v41, %v1331_v41  ;;  %v997_v57 = vrot.slane %v983_v44, %v19023_v56  ;;  %v998_v58 = vcombine.high %v990_v45, %v990_v45  ;;  %v17306_v41 = vld [vmem:[#allocation13 + $0x118] sm:$0xff]  }
 0x18c   :  { %v1345_v59 = vmax.f32 %v1343_v11, %v1344_v46  ;;  %v1352_v60 = vmax.f32 %v1350_v12, %v1351_v47  ;;  %v1353_v61 = vsel %vm1268_vm1, %v990_v45, -inf  ;;  %v1000_v62 = vcombine.high %v904_v49, %v904_v49  ;;  %v19120_v11 = vpop.f32.mrf.mxu0  ;;  %v17305_v12 = vld [vmem:[#allocation13 + $0x8] sm:$0xff]   ;;  %16808 = vmatpush3.bf16.msra.mxu0 %v17306_v41 }
 0x18d   :  { %v16470_v63 = vpack.c.bf16 %v1338_v54, %v1338_v54  ;;  %v2881_v0 = vunpack.c.l.b16 %v16469_v55  ;;  %v999_v1 = vcombine.high %v997_v57, %v997_v57  ;;  %v1354_v3 = vrot.slane %v1353_v61, 4  ;;  %16684 = vmatpush3.bf16.msra.mxu1 %v17305_v12 }
 0x18e   :  { %v3324_v4 = vld [vmem:[#allocation2 + $0x8] sm:$0xf]  ;;  %v16471_v5 = vpack.c.bf16 %v1345_v59, %v1345_v59  ;;  %v16472_v6 = vpack.c.bf16 %v1352_v60, %v1352_v60  ;;  %v1360_v7 = vsel %vm1268_vm1, %v998_v58, -inf  ;;  %v1367_v9 = vsel %vm1268_vm1, %v997_v57, -inf  ;;  %v3078_v59 = vld [vmem:[#allocation2] sm:$0xf] }
 0x18f   :  { %3332 = vst [vmem:[#allocation3 + $0xc] sm:$0xf] %v3324_v4  ;;  %v2882_v10 = vunpack.c.l.b16 %v16470_v63  ;;  %v1355_v13 = vmax.f32 %v1353_v61, %v1354_v3  ;;  %v1361_v14 = vrot.slane %v1360_v7, 4  ;;  %v1368_v15 = vrot.slane %v1367_v9, 4  ;;  %v3079_v16 = vld [vmem:[#allocation2 + $0x8] sm:$0xf] }
 0x190   :  { %v2883_v17 = vunpack.c.l.b16 %v16471_v5  ;;  %v2884_v18 = vunpack.c.l.b16 %v16472_v6  ;;  %v1374_v20 = vsel %vm1268_vm1, %v999_v1, -inf  ;;  %v1007_v25 = vrot.slane %v904_v49, %v19023_v56  ;;  %3087 = vst [vmem:[#allocation3 + $0x24] sm:$0xf] %v3079_v16  ;;  %v17307_v1 = vld [vmem:[#allocation13 + $0x40] sm:$0xff]   ;;  %v17308_v3 = vld [vmem:[#allocation13 + $0x150] sm:$0xff]  }
 0x191   :  { %v2949_v22 = vsel %vm2937_vm2, %v2882_v10, %v2881_v0  ;;  %v1356_v23 = vrot.slane %v1355_v13, 2  ;;  %v1362_v26 = vmax.f32 %v1360_v7, %v1361_v14  ;;  %v1369_v27 = vmax.f32 %v1367_v9, %v1368_v15  ;;  %v19124_v0 = vpop.f32.mrf.mxu0  ;;  %3086 = vst [vmem:[#allocation3] sm:$0xf] %v3078_v59  ;;  %v17309_v9 = vld [vmem:[#allocation13] sm:$0xff]   ;;  %v17310_v10 = vld [vmem:[#allocation13 + $0x110] sm:$0xff]   ;;  %16685 = vmatprep.subr.bf16.mxu1 %v17307_v1 }
 0x192   :  { %v2950_v28 = vsel %vm2939_vm5, %v2883_v17, %v2949_v22  ;;  %v1375_v30 = vrot.slane %v1374_v20, 4  ;;  %v1014_v31 = vrot.slane %v1000_v62, %v19023_v56  ;;  %v1015_v33 = vcombine.high %v1007_v25, %v1007_v25  ;;  %16809 = vmatprep.subr.bf16.mxu0 %v17308_v3  ;;  %16686 = vmatpush3.bf16.msra.mxu1 %v17309_v9 }
 0x193   :  { %v1357_v34 = vmax.f32 %v1355_v13, %v1356_v23  ;;  %v1363_v35 = vrot.slane %v1362_v26, 2  ;;  %v1370_v36 = vrot.slane %v1369_v27, 2  ;;  %v2951_v37 = vsel %vm2941_vm6, %v2884_v18, %v2950_v28  ;;  %16810 = vmatpush3.bf16.msra.mxu0 %v17310_v10  ;;  %v3039_v23 = vld [vmem:[#allocation2 + $0x14] sm:$0x1] }
 0x194   :  { %v1376_v51 = vmax.f32 %v1374_v20, %v1375_v30  ;;  %v1016_v38 = vcombine.high %v1014_v31, %v1014_v31  ;;  %v1381_v8 = vsel %vm1268_vm1, %v1007_v25, -inf  ;;  %v1388_v40 = vsel %vm1268_vm1, %v1015_v33, -inf  ;;  %v17131_v30 = vpop.f32.mrf.mxu0 }
 0x195   :  { %v1358_v42 = vrot.slane %v1357_v34, 1  ;;  %v1364_v44 = vmax.f32 %v1362_v26, %v1363_v35  ;;  %v1371_v45 = vmax.f32 %v1369_v27, %v1370_v36  ;;  %v1382_v46 = vrot.slane %v1381_v8, 4 }
 0x196   :  { %v1377_v47 = vrot.slane %v1376_v51, 2  ;;  %v1389_v49 = vrot.slane %v1388_v40, 4  ;;  %v1395_v48 = vsel %vm1268_vm1, %v1014_v31, -inf  ;;  %v1402_v53 = vsel %vm1268_vm1, %v1016_v38, -inf }
 0x197   :  { %v1359_v54 = vmax.f32 %v1357_v34, %v1358_v42  ;;  %v1365_v55 = vrot.slane %v1364_v44, 1  ;;  %v1372_v57 = vrot.slane %v1371_v45, 1  ;;  %v1383_v58 = vmax.f32 %v1381_v8, %v1382_v46 }
 0x198   :  { %v1378_v60 = vmax.f32 %v1376_v51, %v1377_v47  ;;  %v1390_v61 = vmax.f32 %v1388_v40, %v1389_v49  ;;  %v1396_v62 = vrot.slane %v1395_v48, 4  ;;  %v1403_v63 = vrot.slane %v1402_v53, 4  ;;  %v3036_v51 = vld [vmem:[#allocation2 + $0x10] sm:$0xf]  ;;  %v645_v49 = vpop.f32.mrf.mxu0 }
 0x199   :  { %v1366_v4 = vmax.f32 %v1364_v44, %v1365_v55  ;;  %v1373_v5 = vmax.f32 %v1371_v45, %v1372_v57  ;;  %v16473_v6 = vpack.c.bf16 %v1359_v54, %v1359_v54  ;;  %v1384_v7 = vrot.slane %v1383_v58, 2 }
 0x19a   :  { %v1379_v13 = vrot.slane %v1378_v60, 1  ;;  %v1391_v14 = vrot.slane %v1390_v61, 2  ;;  %v1397_v15 = vmax.f32 %v1395_v48, %v1396_v62  ;;  %v1404_v16 = vmax.f32 %v1402_v53, %v1403_v63  ;;  %v17132_v3 = vpop.f32.mrf.mxu0 }
 0x19b   :  { %v16474_v17 = vpack.c.bf16 %v1366_v4, %v1366_v4  ;;  %v16475_v18 = vpack.c.bf16 %v1373_v5, %v1373_v5  ;;  %v2885_v20 = vunpack.c.l.b16 %v16473_v6  ;;  %v1385_v25 = vmax.f32 %v1383_v58, %v1384_v7 }
 0x19c   :  { %v1380_v22 = vmax.f32 %v1378_v60, %v1379_v13  ;;  %v1392_v26 = vmax.f32 %v1390_v61, %v1391_v14  ;;  %v1398_v27 = vrot.slane %v1397_v15, 2  ;;  %v1405_v28 = vrot.slane %v1404_v16, 2 }
 0x19d   :  { %v2886_v31 = vunpack.c.l.b16 %v16474_v17  ;;  %v2887_v33 = vunpack.c.l.b16 %v16475_v18  ;;  %v2952_v34 = vsel %vm2943_vm7, %v2885_v20, %v2951_v37  ;;  %v1386_v35 = vrot.slane %v1385_v25, 1 }
 0x19e   :  { %v16526_v36 = vpack.c.bf16 %v1380_v22, %v1380_v22  ;;  %v1393_v38 = vrot.slane %v1392_v26, 1  ;;  %v1399_v8 = vmax.f32 %v1397_v15, %v1398_v27  ;;  %v1406_v40 = vmax.f32 %v1404_v16, %v1405_v28 }
 0x19f   :  { %v2953_v12 = vsel %vm2945_vm8, %v2886_v31, %v2952_v34  ;;  %v1387_v41 = vmax.f32 %v1385_v25, %v1386_v35  ;;  %v845_v42 = vmax.f32 %v19099_v24, 0.0  ;;  %v850_v44 = vmax.f32 %v19102_v32, 0.0  ;;  %v648_v25 = vpop.f32.mrf.mxu0 }
 0x1a0   :  { %v2954_v45 = vsel %vm2947_vm9, %v2887_v33, %v2953_v12  ;;  %v3040_v46 = vsel %vm19063_vm12, %v16526_v36, %v3039_v23  ;;  %v1394_v47 = vmax.f32 %v1392_v26, %v1393_v38  ;;  %v1400_v37 = vrot.slane %v1399_v8, 1 }
 0x1a1   :  { %v2993_v48 = vpack.c.b16 %v2954_v45, %v2954_v45  ;;  %3041 = vst [vmem:[#allocation2 + $0x14] sm:$0x1] %v3040_v46  ;;  %v1407_v53 = vrot.slane %v1406_v40, 1  ;;  %v16477_v54 = vpack.c.bf16 %v1387_v41, %v1387_v41  ;;  %v905_v55 = vmax.f32 %v845_v42, %v847_v52 }
 0x1a2   :  { %v1401_v57 = vmax.f32 %v1399_v8, %v1400_v37  ;;  %v16478_v58 = vpack.c.bf16 %v1394_v47, %v1394_v47  ;;  %v630_v24 = vadd.f32 %v19016_v43, %v19112_v21  ;;  %v19139_v32 = vadd.f32 %v19120_v11, %v19016_v43  ;;  %v19146_v43 = vld [vmem:[#allocation11] ss:$0 sm:$0xff] }
 0x1a3   :  { %v3037_v59 = vsel %vm19083_vm13, %v2993_v48, %v3036_v51  ;;  %v1408_v60 = vmax.f32 %v1406_v40, %v1407_v53  ;;  %v2889_v61 = vunpack.c.l.b16 %v16477_v54  ;;  %v1017_v62 = vcombine.high %v905_v55, %v905_v55 }
 0x1a4   :  { %3038 = vst [vmem:[#allocation2 + $0x10] sm:$0xf] %v3037_v59  ;;  %v16479_v63 = vpack.c.bf16 %v1401_v57, %v1401_v57  ;;  %v2890_v1 = vunpack.c.l.b16 %v16478_v58  ;;  %v1024_v2 = vrot.slane %v905_v55, %v19023_v56  ;;  %v848_v52 = vmax.f32 %v630_v24, 0.0 }
 0x1a5   :  { %v16480_v4 = vpack.c.bf16 %v1408_v60, %v1408_v60  ;;  %v1031_v21 = vrot.slane %v1017_v62, %v19023_v56  ;;  %v851_v5 = vmax.f32 %v19139_v32, 0.0  ;;  %v19150_v11 = vadd.f32 %v19146_v43, %v19124_v0 }
 0x1a6   :  { %v2891_v6 = vunpack.c.l.b16 %v16479_v63  ;;  %v2955_v7 = vsel %vm2937_vm2, %v2890_v1, %v2889_v61  ;;  %v1032_v9 = vcombine.high %v1024_v2, %v1024_v2  ;;  %v1409_v10 = vsel %vm1268_vm1, %v1024_v2, -inf }
 0x1a7   :  { %v2892_v13 = vunpack.c.l.b16 %v16480_v4  ;;  %v1033_v14 = vcombine.high %v1031_v21, %v1031_v21  ;;  %v1410_v15 = vrot.slane %v1409_v10, 4  ;;  %v1423_v16 = vsel %vm1268_vm1, %v1031_v21, -inf }
 0x1a8   :  { %v2956_v17 = vsel %vm2939_vm5, %v2891_v6, %v2955_v7  ;;  %v906_v18 = vmax.f32 %v848_v52, %v850_v44  ;;  %v19157_v20 = vadd.f32 %v19146_v43, %v17131_v30  ;;  %v19160_v0 = vadd.f32 %v19146_v43, %v645_v49 }
 0x1a9   :  { %v1411_v22 = vmax.f32 %v1409_v10, %v1410_v15  ;;  %v1416_v23 = vsel %vm1268_vm1, %v1032_v9, -inf  ;;  %v1424_v26 = vrot.slane %v1423_v16, 4  ;;  %v1430_v27 = vsel %vm1268_vm1, %v1033_v14, -inf  ;;  %v17135_v10 = vpop.f32.mrf.mxu0 }
 0x1aa   :  { %v1417_v28 = vrot.slane %v1416_v23, 4  ;;  %v1431_v31 = vrot.slane %v1430_v27, 4  ;;  %v19165_v33 = vsel %vm2941_vm6, %v2892_v13, %v2956_v17  ;;  %v1034_v34 = vcombine.high %v906_v18, %v906_v18 }
 0x1ab   :  { %v3325_v35 = vld [vmem:[#allocation2 + $0x10] sm:$0xf]  ;;  %v1425_v30 = vmax.f32 %v1423_v16, %v1424_v26  ;;  %v1041_v51 = vrot.slane %v906_v18, %v19023_v56  ;;  %v19169_v38 = vadd.f32 %v19146_v43, %v17132_v3  ;;  %v19172_v8 = vadd.f32 %v19146_v43, %v648_v25  ;;  %v3045_v18 = vld [vmem:[#allocation2 + $0x1c] sm:$0x1] }
 0x1ac   :  { %v3565_v36 = vld [vmem:[#allocation2 + $0x10] sm:$0xf]  ;;  %3333 = vst [vmem:[#allocation3 + $0x30] sm:$0xf] %v3325_v35  ;;  %v1412_v40 = vrot.slane %v1411_v22, 2  ;;  %v1418_v12 = vmax.f32 %v1416_v23, %v1417_v28  ;;  %v1432_v41 = vmax.f32 %v1430_v27, %v1431_v31  ;;  %v1048_v42 = vrot.slane %v1034_v34, %v19023_v56 }
 0x1ad   :  { %3573 = vst [vmem:[#allocation3 + $0x18] sm:$0xf] %v3565_v36  ;;  %v1426_v44 = vrot.slane %v1425_v30, 2  ;;  %v1049_v45 = vcombine.high %v1041_v51, %v1041_v51  ;;  %v1437_v46 = vsel %vm1268_vm1, %v1041_v51, -inf  ;;  %v849_v47 = vmax.f32 %v19150_v11, 0.0  ;;  %v19180_v51 = vpop.f32.mrf.mxu0 }
 0x1ae   :  { %v1413_v37 = vmax.f32 %v1411_v22, %v1412_v40  ;;  %v1419_v49 = vrot.slane %v1418_v12, 2  ;;  %v1433_v48 = vrot.slane %v1432_v41, 2  ;;  %v1050_v53 = vcombine.high %v1048_v42, %v1048_v42 }
 0x1af   :  { %v1427_v54 = vmax.f32 %v1425_v30, %v1426_v44  ;;  %v1438_v55 = vrot.slane %v1437_v46, 4  ;;  %v1444_v57 = vsel %vm1268_vm1, %v1049_v45, -inf  ;;  %v1451_v58 = vsel %vm1268_vm1, %v1048_v42, -inf }
 0x1b0   :  { %v1414_v24 = vrot.slane %v1413_v37, 1  ;;  %v1420_v59 = vmax.f32 %v1418_v12, %v1419_v49  ;;  %v1434_v60 = vmax.f32 %v1432_v41, %v1433_v48  ;;  %v1445_v61 = vrot.slane %v1444_v57, 4 }
 0x1b1   :  { %v1428_v62 = vrot.slane %v1427_v54, 1  ;;  %v1439_v63 = vmax.f32 %v1437_v46, %v1438_v55  ;;  %v1452_v1 = vrot.slane %v1451_v58, 4  ;;  %v1458_v2 = vsel %vm1268_vm1, %v1050_v53, -inf  ;;  %v3042_v55 = vld [vmem:[#allocation2 + $0x18] sm:$0xf] }
 0x1b2   :  { %v1415_v52 = vmax.f32 %v1413_v37, %v1414_v24  ;;  %v1421_v3 = vrot.slane %v1420_v59, 1  ;;  %v1435_v4 = vrot.slane %v1434_v60, 1  ;;  %v1446_v21 = vmax.f32 %v1444_v57, %v1445_v61 }
 0x1b3   :  { %v1429_v11 = vmax.f32 %v1427_v54, %v1428_v62  ;;  %v1440_v6 = vrot.slane %v1439_v63, 2  ;;  %v1453_v7 = vmax.f32 %v1451_v58, %v1452_v1  ;;  %v1459_v9 = vrot.slane %v1458_v2, 4 }
 0x1b4   :  { %v1422_v13 = vmax.f32 %v1420_v59, %v1421_v3  ;;  %v1436_v14 = vmax.f32 %v1434_v60, %v1435_v4  ;;  %v16481_v15 = vpack.c.bf16 %v1415_v52, %v1415_v52  ;;  %v1447_v16 = vrot.slane %v1446_v21, 2  ;;  %v17136_v59 = vpop.f32.mrf.mxu0 }
 0x1b5   :  { %v16483_v17 = vpack.c.bf16 %v1429_v11, %v1429_v11  ;;  %v1441_v25 = vmax.f32 %v1439_v63, %v1440_v6  ;;  %v1454_v22 = vrot.slane %v1453_v7, 2  ;;  %v1460_v23 = vmax.f32 %v1458_v2, %v1459_v9 }
 0x1b6   :  { %v16482_v26 = vpack.c.bf16 %v1422_v13, %v1422_v13  ;;  %v2893_v27 = vunpack.c.l.b16 %v16481_v15  ;;  %v16527_v28 = vpack.c.bf16 %v1436_v14, %v1436_v14  ;;  %v1448_v31 = vmax.f32 %v1446_v21, %v1447_v16  ;;  %v664_v6 = vpop.f32.mrf.mxu0 }
 0x1b7   :  { %v2895_v34 = vunpack.c.l.b16 %v16483_v17  ;;  %v1442_v35 = vrot.slane %v1441_v25, 1  ;;  %v1455_v36 = vmax.f32 %v1453_v7, %v1454_v22  ;;  %v1461_v30 = vrot.slane %v1460_v23, 2 }
 0x1b8   :  { %v2894_v40 = vunpack.c.l.b16 %v16482_v26  ;;  %v2958_v12 = vsel %vm2943_vm7, %v2893_v27, %v19165_v33  ;;  %v3046_v41 = vsel %vm19063_vm12, %v16527_v28, %v3045_v18  ;;  %v1449_v42 = vrot.slane %v1448_v31, 1 }
 0x1b9   :  { %3047 = vst [vmem:[#allocation2 + $0x1c] sm:$0x1] %v3046_v41  ;;  %v1443_v44 = vmax.f32 %v1441_v25, %v1442_v35  ;;  %v1456_v45 = vrot.slane %v1455_v36, 1  ;;  %v1462_v46 = vmax.f32 %v1460_v23, %v1461_v30  ;;  %v907_v37 = vmax.f32 %v849_v47, %v851_v5 }
 0x1ba   :  { %v2959_v49 = vsel %vm2945_vm8, %v2894_v40, %v2958_v12  ;;  %v1450_v48 = vmax.f32 %v1448_v31, %v1449_v42  ;;  %v854_v53 = vmax.f32 %v19157_v20, 0.0  ;;  %v852_v54 = vmax.f32 %v19160_v0, 0.0 }
 0x1bb   :  { %v2960_v33 = vsel %vm2947_vm9, %v2895_v34, %v2959_v49  ;;  %v1457_v57 = vmax.f32 %v1455_v36, %v1456_v45  ;;  %v1463_v58 = vrot.slane %v1462_v46, 1  ;;  %v16485_v24 = vpack.c.bf16 %v1443_v44, %v1443_v44 }
 0x1bc   :  { %v2995_v60 = vpack.c.b16 %v2960_v33, %v2960_v33  ;;  %v16486_v61 = vpack.c.bf16 %v1450_v48, %v1450_v48  ;;  %v1051_v62 = vcombine.high %v907_v37, %v907_v37  ;;  %v1058_v32 = vrot.slane %v907_v37, %v19023_v56 }
 0x1bd   :  { %v1464_v5 = vmax.f32 %v1462_v46, %v1463_v58  ;;  %v16487_v47 = vpack.c.bf16 %v1457_v57, %v1457_v57  ;;  %v2897_v63 = vunpack.c.l.b16 %v16485_v24  ;;  %v908_v1 = vmax.f32 %v852_v54, %v854_v53 }
 0x1be   :  { %v3043_v20 = vsel %vm19083_vm13, %v2995_v60, %v3042_v55  ;;  %v2898_v0 = vunpack.c.l.b16 %v16486_v61  ;;  %v1065_v2 = vrot.slane %v1051_v62, %v19023_v56  ;;  %v1066_v52 = vcombine.high %v1058_v32, %v1058_v32 }
 0x1bf   :  { %3044 = vst [vmem:[#allocation2 + $0x18] sm:$0xf] %v3043_v20  ;;  %v16488_v3 = vpack.c.bf16 %v1464_v5, %v1464_v5  ;;  %v2899_v4 = vunpack.c.l.b16 %v16487_v47  ;;  %v1465_v21 = vsel %vm1268_vm1, %v1058_v32, -inf  ;;  %v1068_v11 = vcombine.high %v908_v1, %v908_v1 }
 0x1c0   :  { %v2961_v7 = vsel %vm2937_vm2, %v2898_v0, %v2897_v63  ;;  %v1067_v9 = vcombine.high %v1065_v2, %v1065_v2  ;;  %v1075_v13 = vrot.slane %v908_v1, %v19023_v56  ;;  %v19200_v14 = vadd.f32 %v19146_v43, %v17135_v10  ;;  %v17139_v10 = vpop.f32.mrf.mxu0 }
 0x1c1   :  { %v2900_v15 = vunpack.c.l.b16 %v16488_v3  ;;  %v2962_v16 = vsel %vm2939_vm5, %v2899_v4, %v2961_v7  ;;  %v1466_v17 = vrot.slane %v1465_v21, 4  ;;  %v1472_v18 = vsel %vm1268_vm1, %v1066_v52, -inf }
 0x1c2   :  { %v1473_v25 = vrot.slane %v1472_v18, 4  ;;  %v1479_v22 = vsel %vm1268_vm1, %v1065_v2, -inf  ;;  %v1486_v23 = vsel %vm1268_vm1, %v1067_v9, -inf  ;;  %v1082_v26 = vrot.slane %v1068_v11, %v19023_v56 }
 0x1c3   :  { %v1467_v27 = vmax.f32 %v1465_v21, %v1466_v17  ;;  %v1480_v28 = vrot.slane %v1479_v22, 4  ;;  %v1487_v31 = vrot.slane %v1486_v23, 4  ;;  %v19208_v34 = vsel %vm2941_vm6, %v2900_v15, %v2962_v16 }
 0x1c4   :  { %v1474_v35 = vmax.f32 %v1472_v18, %v1473_v25  ;;  %v1083_v36 = vcombine.high %v1075_v13, %v1075_v13  ;;  %v1084_v30 = vcombine.high %v1082_v26, %v1082_v26  ;;  %v1493_v40 = vsel %vm1268_vm1, %v1075_v13, -inf  ;;  %v3051_v13 = vld [vmem:[#allocation2 + $0x24] sm:$0x1] }
 0x1c5   :  { %v1468_v12 = vrot.slane %v1467_v27, 2  ;;  %v1481_v41 = vmax.f32 %v1479_v22, %v1480_v28  ;;  %v1488_v42 = vmax.f32 %v1486_v23, %v1487_v31  ;;  %v1494_v44 = vrot.slane %v1493_v40, 4  ;;  %v17314_v28 = vld [vmem:[#allocation13 + $0x148] sm:$0xff]  }
 0x1c6   :  { %v3326_v45 = vld [vmem:[#allocation2 + $0x18] sm:$0xf]  ;;  %v19213_v37 = vadd.f32 %v19146_v43, %v19180_v51  ;;  %v19216_v49 = vadd.f32 %v19146_v43, %v17136_v59  ;;  %v19219_v48 = vadd.f32 %v19146_v43, %v664_v6  ;;  %v19222_v53 = vadd.f32 %v19146_v43, %v17139_v10  ;;  %v17315_v31 = vld [vmem:[#allocation13 + $0x108] sm:$0xff]   ;;  %16811 = vmatprep.subr.bf16.mxu0 %v17314_v28 }
 0x1c7   :  { %v3566_v46 = vld [vmem:[#allocation2 + $0x18] sm:$0xf]  ;;  %3334 = vst [vmem:[#allocation3 + $0x54] sm:$0xf] %v3326_v45  ;;  %v1469_v54 = vmax.f32 %v1467_v27, %v1468_v12  ;;  %v1475_v33 = vrot.slane %v1474_v35, 2  ;;  %v1482_v55 = vrot.slane %v1481_v41, 2  ;;  %v1495_v57 = vmax.f32 %v1493_v40, %v1494_v44  ;;  %16812 = vmatpush3.bf16.msra.mxu0 %v17315_v31 }
 0x1c8   :  { %3574 = vst [vmem:[#allocation3 + $0x3c] sm:$0xf] %v3566_v46  ;;  %v1489_v58 = vrot.slane %v1488_v42, 2  ;;  %v1500_v24 = vsel %vm1268_vm1, %v1083_v36, -inf  ;;  %v1507_v51 = vsel %vm1268_vm1, %v1082_v26, -inf  ;;  %v1514_v59 = vsel %vm1268_vm1, %v1084_v30, -inf }
 0x1c9   :  { %v1470_v60 = vrot.slane %v1469_v54, 1  ;;  %v1476_v61 = vmax.f32 %v1474_v35, %v1475_v33  ;;  %v1483_v62 = vmax.f32 %v1481_v41, %v1482_v55  ;;  %v1496_v32 = vrot.slane %v1495_v57, 2  ;;  %v3048_v44 = vld [vmem:[#allocation2 + $0x20] sm:$0xf] }
 0x1ca   :  { %v1490_v5 = vmax.f32 %v1488_v42, %v1489_v58  ;;  %v1501_v47 = vrot.slane %v1500_v24, 4  ;;  %v1508_v63 = vrot.slane %v1507_v51, 4  ;;  %v1515_v1 = vrot.slane %v1514_v59, 4 }
 0x1cb   :  { %v1471_v20 = vmax.f32 %v1469_v54, %v1470_v60  ;;  %v1477_v0 = vrot.slane %v1476_v61, 1  ;;  %v1484_v2 = vrot.slane %v1483_v62, 1  ;;  %v1497_v52 = vmax.f32 %v1495_v57, %v1496_v32 }
 0x1cc   :  { %v1491_v3 = vrot.slane %v1490_v5, 1  ;;  %v1502_v4 = vmax.f32 %v1500_v24, %v1501_v47  ;;  %v1509_v21 = vmax.f32 %v1507_v51, %v1508_v63  ;;  %v1516_v11 = vmax.f32 %v1514_v59, %v1515_v1  ;;  %v677_v47 = vpop.f32.mrf.mxu0  ;;  %v17316_v63 = vld [vmem:[#allocation13 + $0x140] sm:$0xff]  }
 0x1cd   :  { %v1478_v6 = vmax.f32 %v1476_v61, %v1477_v0  ;;  %v1485_v7 = vmax.f32 %v1483_v62, %v1484_v2  ;;  %v16489_v9 = vpack.c.bf16 %v1471_v20, %v1471_v20  ;;  %v1498_v15 = vrot.slane %v1497_v52, 1  ;;  %v17317_v2 = vld [vmem:[#allocation13 + $0x100] sm:$0xff]   ;;  %16813 = vmatprep.subr.bf16.mxu0 %v17316_v63 }
 0x1ce   :  { %v1492_v16 = vmax.f32 %v1490_v5, %v1491_v3  ;;  %v1503_v17 = vrot.slane %v1502_v4, 2  ;;  %v1510_v18 = vrot.slane %v1509_v21, 2  ;;  %v1517_v25 = vrot.slane %v1516_v11, 2  ;;  %16814 = vmatpush3.bf16.msra.mxu0 %v17317_v2 }
 0x1cf   :  { %v16490_v22 = vpack.c.bf16 %v1478_v6, %v1478_v6  ;;  %v16491_v23 = vpack.c.bf16 %v1485_v7, %v1485_v7  ;;  %v2901_v26 = vunpack.c.l.b16 %v16489_v9  ;;  %v1499_v27 = vmax.f32 %v1497_v52, %v1498_v15 }
 0x1d0   :  { %v16528_v10 = vpack.c.bf16 %v1492_v16, %v1492_v16  ;;  %v1504_v35 = vmax.f32 %v1502_v4, %v1503_v17  ;;  %v1511_v36 = vmax.f32 %v1509_v21, %v1510_v18  ;;  %v1518_v30 = vmax.f32 %v1516_v11, %v1517_v25 }
 0x1d1   :  { %v2902_v40 = vunpack.c.l.b16 %v16490_v22  ;;  %v2903_v12 = vunpack.c.l.b16 %v16491_v23  ;;  %v2964_v41 = vsel %vm2943_vm7, %v2901_v26, %v19208_v34  ;;  %v16493_v42 = vpack.c.bf16 %v1499_v27, %v1499_v27 }
 0x1d2   :  { %v3052_v45 = vsel %vm19063_vm12, %v16528_v10, %v3051_v13  ;;  %v1505_v46 = vrot.slane %v1504_v35, 1  ;;  %v1512_v54 = vrot.slane %v1511_v36, 1  ;;  %v1519_v33 = vrot.slane %v1518_v30, 1  ;;  %v17140_v13 = vpop.f32.mrf.mxu0 }
 0x1d3   :  { %v2965_v55 = vsel %vm2945_vm8, %v2902_v40, %v2964_v41  ;;  %3053 = vst [vmem:[#allocation2 + $0x24] sm:$0x1] %v3052_v45  ;;  %v2905_v57 = vunpack.c.l.b16 %v16493_v42  ;;  %v855_v58 = vmax.f32 %v19169_v38, 0.0  ;;  %v853_v24 = vmax.f32 %v19172_v8, 0.0 }
 0x1d4   :  { %v2966_v34 = vsel %vm2947_vm9, %v2903_v12, %v2965_v55  ;;  %v1506_v51 = vmax.f32 %v1504_v35, %v1505_v46  ;;  %v1513_v59 = vmax.f32 %v1511_v36, %v1512_v54  ;;  %v1520_v60 = vmax.f32 %v1518_v30, %v1519_v33  ;;  %v680_v40 = vpop.f32.mrf.mxu0 }
 0x1d5   :  { %v2997_v61 = vpack.c.b16 %v2966_v34, %v2966_v34  ;;  %v909_v62 = vmax.f32 %v853_v24, %v855_v58  ;;  %v858_v32 = vmax.f32 %v19200_v14, 0.0  ;;  %v856_v5 = vmax.f32 %v19213_v37, 0.0 }
 0x1d6   :  { %v16494_v1 = vpack.c.bf16 %v1506_v51, %v1506_v51  ;;  %v16495_v20 = vpack.c.bf16 %v1513_v59, %v1513_v59  ;;  %v16496_v0 = vpack.c.bf16 %v1520_v60, %v1520_v60  ;;  %v859_v38 = vmax.f32 %v19216_v49, 0.0 }
 0x1d7   :  { %v3049_v8 = vsel %vm19083_vm13, %v2997_v61, %v3048_v44  ;;  %v1085_v52 = vcombine.high %v909_v62, %v909_v62  ;;  %v1092_v3 = vrot.slane %v909_v62, %v19023_v56  ;;  %v910_v4 = vmax.f32 %v856_v5, %v858_v32 }
 0x1d8   :  { %3050 = vst [vmem:[#allocation2 + $0x20] sm:$0xf] %v3049_v8  ;;  %v2906_v14 = vunpack.c.l.b16 %v16494_v1  ;;  %v2907_v21 = vunpack.c.l.b16 %v16495_v20  ;;  %v2908_v37 = vunpack.c.l.b16 %v16496_v0  ;;  %v857_v11 = vmax.f32 %v19219_v48, 0.0 }
 0x1d9   :  { %v1099_v6 = vrot.slane %v1085_v52, %v19023_v56  ;;  %v1100_v7 = vcombine.high %v1092_v3, %v1092_v3  ;;  %v1521_v49 = vsel %vm1268_vm1, %v1092_v3, -inf  ;;  %v1102_v9 = vcombine.high %v910_v4, %v910_v4 }
 0x1da   :  { %v2967_v15 = vsel %vm2937_vm2, %v2906_v14, %v2905_v57  ;;  %v1109_v16 = vrot.slane %v910_v4, %v19023_v56  ;;  %v19246_v17 = vmax.f32 %v857_v11, %v859_v38  ;;  %v19249_v18 = vadd.f32 %v19146_v43, %v677_v47 }
 0x1db   :  { %v2968_v25 = vsel %vm2939_vm5, %v2907_v21, %v2967_v15  ;;  %v1101_v48 = vcombine.high %v1099_v6, %v1099_v6  ;;  %v1522_v22 = vrot.slane %v1521_v49, 4  ;;  %v1528_v23 = vsel %vm1268_vm1, %v1100_v7, -inf }
 0x1dc   :  { %v1529_v26 = vrot.slane %v1528_v23, 4  ;;  %v1535_v27 = vsel %vm1268_vm1, %v1099_v6, -inf  ;;  %v19255_v28 = vsel %vm2941_vm6, %v2908_v37, %v2968_v25  ;;  %v1116_v31 = vrot.slane %v1102_v9, %v19023_v56 }
 0x1dd   :  { %v1523_v10 = vmax.f32 %v1521_v49, %v1522_v22  ;;  %v1536_v35 = vrot.slane %v1535_v27, 4  ;;  %v1542_v36 = vsel %vm1268_vm1, %v1101_v48, -inf  ;;  %v1117_v30 = vcombine.high %v1109_v16, %v1109_v16  ;;  %v3057_v22 = vld [vmem:[#allocation2 + $0x2c] sm:$0x1] }
 0x1de   :  { %v1530_v12 = vmax.f32 %v1528_v23, %v1529_v26  ;;  %v1543_v41 = vrot.slane %v1542_v36, 4  ;;  %v1118_v42 = vcombine.high %v1116_v31, %v1116_v31  ;;  %v1549_v44 = vsel %vm1268_vm1, %v1109_v16, -inf  ;;  %v3080_v16 = vld [vmem:[#allocation2 + $0x10] sm:$0xf] }
 0x1df   :  { %v3327_v45 = vld [vmem:[#allocation2 + $0x20] sm:$0xf]  ;;  %v1537_v54 = vmax.f32 %v1535_v27, %v1536_v35  ;;  %v1119_v33 = vcombine.high %v19246_v17, %v19246_v17  ;;  %v19264_v55 = vrot.slane %v19246_v17, %v19023_v56  ;;  %v19267_v57 = vadd.f32 %v19146_v43, %v17140_v13  ;;  %3088 = vst [vmem:[#allocation3 + $0x48] sm:$0xf] %v3080_v16 }
 0x1e0   :  { %v3567_v46 = vld [vmem:[#allocation2 + $0x20] sm:$0xf]  ;;  %3335 = vst [vmem:[#allocation3 + $0x78] sm:$0xf] %v3327_v45  ;;  %v1524_v58 = vrot.slane %v1523_v10, 2  ;;  %v1531_v24 = vrot.slane %v1530_v12, 2  ;;  %v1544_v34 = vmax.f32 %v1542_v36, %v1543_v41  ;;  %v19270_v51 = vadd.f32 %v19146_v43, %v680_v40 }
 0x1e1   :  { %3575 = vst [vmem:[#allocation3 + $0x60] sm:$0xf] %v3567_v46  ;;  %v1538_v59 = vrot.slane %v1537_v54, 2  ;;  %v1550_v60 = vrot.slane %v1549_v44, 4  ;;  %v1556_v61 = vsel %vm1268_vm1, %v1117_v30, -inf  ;;  %v1563_v62 = vsel %vm1268_vm1, %v1116_v31, -inf }
 0x1e2   :  { %v1525_v32 = vmax.f32 %v1523_v10, %v1524_v58  ;;  %v1532_v5 = vmax.f32 %v1530_v12, %v1531_v24  ;;  %v1545_v47 = vrot.slane %v1544_v34, 2  ;;  %v1557_v63 = vrot.slane %v1556_v61, 4  ;;  %v3054_v46 = vld [vmem:[#allocation2 + $0x28] sm:$0xf] }
 0x1e3   :  { %v1539_v1 = vmax.f32 %v1537_v54, %v1538_v59  ;;  %v1551_v20 = vmax.f32 %v1549_v44, %v1550_v60  ;;  %v1564_v0 = vrot.slane %v1563_v62, 4  ;;  %v1570_v38 = vsel %vm1268_vm1, %v1118_v42, -inf }
 0x1e4   :  { %v1526_v2 = vrot.slane %v1525_v32, 1  ;;  %v1533_v8 = vrot.slane %v1532_v5, 1  ;;  %v1546_v52 = vmax.f32 %v1544_v34, %v1545_v47  ;;  %v1558_v43 = vmax.f32 %v1556_v61, %v1557_v63  ;;  %v17143_v47 = vpop.f32.mrf.mxu0 }
 0x1e5   :  { %v1540_v3 = vrot.slane %v1539_v1, 1  ;;  %v1552_v4 = vrot.slane %v1551_v20, 2  ;;  %v1565_v14 = vmax.f32 %v1563_v62, %v1564_v0  ;;  %v1571_v21 = vrot.slane %v1570_v38, 4 }
 0x1e6   :  { %v1527_v37 = vmax.f32 %v1525_v32, %v1526_v2  ;;  %v1534_v11 = vmax.f32 %v1532_v5, %v1533_v8  ;;  %v1547_v6 = vrot.slane %v1546_v52, 1  ;;  %v1559_v7 = vrot.slane %v1558_v43, 2 }
 0x1e7   :  { %v1541_v49 = vmax.f32 %v1539_v1, %v1540_v3  ;;  %v1553_v9 = vmax.f32 %v1551_v20, %v1552_v4  ;;  %v1566_v13 = vrot.slane %v1565_v14, 2  ;;  %v1572_v15 = vmax.f32 %v1570_v38, %v1571_v21  ;;  %v3081_v38 = vld [vmem:[#allocation2 + $0x18] sm:$0xf] }
 0x1e8   :  { %v1548_v17 = vmax.f32 %v1546_v52, %v1547_v6  ;;  %v16497_v25 = vpack.c.bf16 %v1527_v37, %v1527_v37  ;;  %v16498_v48 = vpack.c.bf16 %v1534_v11, %v1534_v11  ;;  %v1560_v23 = vmax.f32 %v1558_v43, %v1559_v7  ;;  %3089 = vst [vmem:[#allocation3 + $0x6c] sm:$0xf] %v3081_v38  ;;  %v693_v7 = vpop.f32.mrf.mxu0 }
 0x1e9   :  { %v16499_v26 = vpack.c.bf16 %v1541_v49, %v1541_v49  ;;  %v1554_v27 = vrot.slane %v1553_v9, 1  ;;  %v1567_v31 = vmax.f32 %v1565_v14, %v1566_v13  ;;  %v1573_v10 = vrot.slane %v1572_v15, 2 }
 0x1ea   :  { %v2909_v35 = vunpack.c.l.b16 %v16497_v25  ;;  %v2910_v36 = vunpack.c.l.b16 %v16498_v48  ;;  %v16529_v30 = vpack.c.bf16 %v1548_v17, %v1548_v17  ;;  %v1561_v40 = vrot.slane %v1560_v23, 1  ;;  %v19293_v17 = vld [vmem:[#allocation11] ss:$0 sm:$0xff] }
 0x1eb   :  { %v2911_v12 = vunpack.c.l.b16 %v16499_v26  ;;  %v1555_v41 = vmax.f32 %v1553_v9, %v1554_v27  ;;  %v1568_v42 = vrot.slane %v1567_v31, 1  ;;  %v1574_v44 = vmax.f32 %v1572_v15, %v1573_v10 }
 0x1ec   :  { %v2970_v45 = vsel %vm2943_vm7, %v2909_v35, %v19255_v28  ;;  %v3058_v54 = vsel %vm19063_vm12, %v16529_v30, %v3057_v22  ;;  %v1562_v58 = vmax.f32 %v1560_v23, %v1561_v40  ;;  %v1133_v24 = vrot.slane %v1119_v33, %v19023_v56 }
 0x1ed   :  { %v2971_v34 = vsel %vm2945_vm8, %v2910_v36, %v2970_v45  ;;  %3059 = vst [vmem:[#allocation2 + $0x2c] sm:$0x1] %v3058_v54  ;;  %v1569_v59 = vmax.f32 %v1567_v31, %v1568_v42  ;;  %v1575_v60 = vrot.slane %v1574_v44, 1  ;;  %v16501_v61 = vpack.c.bf16 %v1555_v41, %v1555_v41  ;;  %v17144_v36 = vpop.f32.mrf.mxu0 }
 0x1ee   :  { %v2972_v62 = vsel %vm2947_vm9, %v2911_v12, %v2971_v34  ;;  %v16502_v32 = vpack.c.bf16 %v1562_v58, %v1562_v58  ;;  %v1134_v5 = vcombine.high %v19264_v55, %v19264_v55  ;;  %v1135_v28 = vcombine.high %v1133_v24, %v1133_v24 }
 0x1ef   :  { %v2999_v63 = vpack.c.b16 %v2972_v62, %v2972_v62  ;;  %v1576_v1 = vmax.f32 %v1574_v44, %v1575_v60  ;;  %v16503_v20 = vpack.c.bf16 %v1569_v59, %v1569_v59  ;;  %v2913_v0 = vunpack.c.l.b16 %v16501_v61 }
 0x1f0   :  { %v2914_v33 = vunpack.c.l.b16 %v16502_v32  ;;  %v1577_v2 = vsel %vm1268_vm1, %v19264_v55, -inf  ;;  %v1584_v8 = vsel %vm1268_vm1, %v1134_v5, -inf  ;;  %v1591_v52 = vsel %vm1268_vm1, %v1133_v24, -inf }
 0x1f1   :  { %v3055_v43 = vsel %vm19083_vm13, %v2999_v63, %v3054_v46  ;;  %v16504_v3 = vpack.c.bf16 %v1576_v1, %v1576_v1  ;;  %v2915_v4 = vunpack.c.l.b16 %v16503_v20  ;;  %v1578_v14 = vrot.slane %v1577_v2, 4  ;;  %v3063_v63 = vld [vmem:[#allocation2 + $0x34] sm:$0x1] }
 0x1f2   :  { %3056 = vst [vmem:[#allocation2 + $0x28] sm:$0xf] %v3055_v43  ;;  %v2973_v21 = vsel %vm2937_vm2, %v2914_v33, %v2913_v0  ;;  %v1585_v37 = vrot.slane %v1584_v8, 4  ;;  %v1592_v11 = vrot.slane %v1591_v52, 4  ;;  %v1598_v6 = vsel %vm1268_vm1, %v1135_v28, -inf }
 0x1f3   :  { %v2916_v55 = vunpack.c.l.b16 %v16504_v3  ;;  %v2974_v49 = vsel %vm2939_vm5, %v2915_v4, %v2973_v21  ;;  %v1579_v9 = vmax.f32 %v1577_v2, %v1578_v14  ;;  %v1599_v13 = vrot.slane %v1598_v6, 4 }
 0x1f4   :  { %v1586_v15 = vmax.f32 %v1584_v8, %v1585_v37  ;;  %v1593_v16 = vmax.f32 %v1591_v52, %v1592_v11  ;;  %v19296_v25 = vadd.f32 %v19293_v17, %v17143_v47  ;;  %v19300_v26 = vadd.f32 %v19293_v17, %v693_v7 }
 0x1f5   :  { %v1580_v48 = vrot.slane %v1579_v9, 2  ;;  %v1600_v22 = vmax.f32 %v1598_v6, %v1599_v13  ;;  %v2975_v23 = vsel %vm2941_vm6, %v2916_v55, %v2974_v49  ;;  %v862_v10 = vmax.f32 %v19222_v53, 0.0  ;;  %v696_v49 = vpop.f32.mrf.mxu0 }
 0x1f6   :  { %v1587_v27 = vrot.slane %v1586_v15, 2  ;;  %v1594_v31 = vrot.slane %v1593_v16, 2  ;;  %v860_v35 = vmax.f32 %v19249_v18, 0.0  ;;  %v863_v12 = vmax.f32 %v19267_v57, 0.0 }
 0x1f7   :  { %v1581_v30 = vmax.f32 %v1579_v9, %v1580_v48  ;;  %v1601_v40 = vrot.slane %v1600_v22, 2  ;;  %v861_v41 = vmax.f32 %v19270_v51, 0.0  ;;  %v866_v46 = vmax.f32 %v19296_v25, 0.0 }
 0x1f8   :  { %v1588_v42 = vmax.f32 %v1586_v15, %v1587_v27  ;;  %v1595_v44 = vmax.f32 %v1593_v16, %v1594_v31  ;;  %v912_v45 = vmax.f32 %v860_v35, %v862_v10  ;;  %v864_v53 = vmax.f32 %v19300_v26, 0.0 }
 0x1f9   :  { %v3328_v54 = vld [vmem:[#allocation2 + $0x28] sm:$0xf]  ;;  %v1602_v24 = vmax.f32 %v1600_v22, %v1601_v40  ;;  %v913_v34 = vmax.f32 %v861_v41, %v863_v12  ;;  %v19309_v18 = vadd.f32 %v19293_v17, %v17144_v36  ;;  %v1582_v59 = vrot.slane %v1581_v30, 1  ;;  %v3060_v12 = vld [vmem:[#allocation2 + $0x30] sm:$0xf] }
 0x1fa   :  { %v3568_v58 = vld [vmem:[#allocation2 + $0x28] sm:$0xf]  ;;  %3336 = vst [vmem:[#allocation3 + $0x9c] sm:$0xf] %v3328_v54  ;;  %v1589_v57 = vrot.slane %v1588_v42, 1  ;;  %v1136_v60 = vcombine.high %v912_v45, %v912_v45  ;;  %v1143_v51 = vrot.slane %v912_v45, %v19023_v56  ;;  %v1596_v61 = vrot.slane %v1595_v44, 1  ;;  %v17147_v45 = vpop.f32.mrf.mxu0 }
 0x1fb   :  { %3576 = vst [vmem:[#allocation3 + $0x84] sm:$0xf] %v3568_v58  ;;  %v1603_v62 = vrot.slane %v1602_v24, 1  ;;  %v1153_v32 = vcombine.high %v913_v34, %v913_v34  ;;  %v1160_v5 = vrot.slane %v913_v34, %v19023_v56  ;;  %v1583_v28 = vmax.f32 %v1581_v30, %v1582_v59 }
 0x1fc   :  { %v1590_v47 = vmax.f32 %v1588_v42, %v1589_v57  ;;  %v1150_v1 = vrot.slane %v1136_v60, %v19023_v56  ;;  %v1151_v20 = vcombine.high %v1143_v51, %v1143_v51  ;;  %v1597_v0 = vmax.f32 %v1595_v44, %v1596_v61 }
 0x1fd   :  { %v1604_v38 = vmax.f32 %v1602_v24, %v1603_v62  ;;  %v1605_v33 = vsel %vm1268_vm1, %v1143_v51, -inf  ;;  %v19316_v2 = vrot.slane %v1153_v32, %v19023_v56  ;;  %v16505_v8 = vpack.c.bf16 %v1583_v28, %v1583_v28 }
 0x1fe   :  { %v16506_v52 = vpack.c.bf16 %v1590_v47, %v1590_v47  ;;  %v1152_v43 = vcombine.high %v1150_v1, %v1150_v1  ;;  %v1606_v3 = vrot.slane %v1605_v33, 4  ;;  %v16507_v4 = vpack.c.bf16 %v1597_v0, %v1597_v0 }
 0x1ff   :  { %v16530_v14 = vpack.c.bf16 %v1604_v38, %v1604_v38  ;;  %v1612_v21 = vsel %vm1268_vm1, %v1151_v20, -inf  ;;  %v1619_v37 = vsel %vm1268_vm1, %v1150_v1, -inf  ;;  %v2917_v11 = vunpack.c.l.b16 %v16505_v8 }
 0x200   :  { %v2918_v6 = vunpack.c.l.b16 %v16506_v52  ;;  %v1607_v7 = vmax.f32 %v1605_v33, %v1606_v3  ;;  %v1613_v55 = vrot.slane %v1612_v21, 4  ;;  %v2919_v9 = vunpack.c.l.b16 %v16507_v4 }
 0x201   :  { %v3064_v13 = vsel %vm19063_vm12, %v16530_v14, %v3063_v63  ;;  %v1620_v15 = vrot.slane %v1619_v37, 4  ;;  %v1626_v16 = vsel %vm1268_vm1, %v1152_v43, -inf  ;;  %v2976_v48 = vsel %vm2943_vm7, %v2917_v11, %v2975_v23 }
 0x202   :  { %3065 = vst [vmem:[#allocation2 + $0x34] sm:$0x1] %v3064_v13  ;;  %v1608_v22 = vrot.slane %v1607_v7, 2  ;;  %v1614_v27 = vmax.f32 %v1612_v21, %v1613_v55  ;;  %v1627_v31 = vrot.slane %v1626_v16, 4  ;;  %v2977_v10 = vsel %vm2945_vm8, %v2918_v6, %v2976_v48 }
 0x203   :  { %v1621_v35 = vmax.f32 %v1619_v37, %v1620_v15  ;;  %v1168_v36 = vcombine.high %v1160_v5, %v1160_v5  ;;  %v1169_v30 = vcombine.high %v19316_v2, %v19316_v2  ;;  %v2978_v40 = vsel %vm2947_vm9, %v2919_v9, %v2977_v10 }
 0x204   :  { %v1609_v41 = vmax.f32 %v1607_v7, %v1608_v22  ;;  %v1615_v42 = vrot.slane %v1614_v27, 2  ;;  %v1628_v44 = vmax.f32 %v1626_v16, %v1627_v31  ;;  %v3001_v54 = vpack.c.b16 %v2978_v40, %v2978_v40 }
 0x205   :  { %v1622_v23 = vrot.slane %v1621_v35, 2  ;;  %v1633_v58 = vsel %vm1268_vm1, %v1160_v5, -inf  ;;  %v1640_v24 = vsel %vm1268_vm1, %v1168_v36, -inf  ;;  %v1647_v32 = vsel %vm1268_vm1, %v19316_v2, -inf  ;;  %v709_v5 = vpop.f32.mrf.mxu0 }
 0x206   :  { %v1610_v34 = vrot.slane %v1609_v41, 1  ;;  %v1616_v59 = vmax.f32 %v1614_v27, %v1615_v42  ;;  %v1629_v57 = vrot.slane %v1628_v44, 2  ;;  %v1634_v60 = vrot.slane %v1633_v58, 4 }
 0x207   :  { %v3061_v51 = vsel %vm19083_vm13, %v3001_v54, %v3060_v12  ;;  %v1623_v61 = vmax.f32 %v1621_v35, %v1622_v23  ;;  %v1641_v62 = vrot.slane %v1640_v24, 4  ;;  %v914_v0 = vmax.f32 %v864_v53, %v866_v46  ;;  %v17148_v46 = vpop.f32.mrf.mxu0 }
 0x208   :  { %3062 = vst [vmem:[#allocation2 + $0x30] sm:$0xf] %v3061_v51  ;;  %v1611_v28 = vmax.f32 %v1609_v41, %v1610_v34  ;;  %v1617_v47 = vrot.slane %v1616_v59, 1  ;;  %v1630_v63 = vmax.f32 %v1628_v44, %v1629_v57  ;;  %v1635_v1 = vmax.f32 %v1633_v58, %v1634_v60 }
 0x209   :  { %v1642_v20 = vmax.f32 %v1640_v24, %v1641_v62  ;;  %v19339_v38 = vadd.f32 %v19293_v17, %v696_v49  ;;  %v19342_v33 = vadd.f32 %v19293_v17, %v17147_v45  ;;  %v1624_v2 = vrot.slane %v1623_v61, 1 }
 0x20a   :  { %v1618_v8 = vmax.f32 %v1616_v59, %v1617_v47  ;;  %v1631_v52 = vrot.slane %v1630_v63, 1  ;;  %v16509_v43 = vpack.c.bf16 %v1611_v28, %v1611_v28  ;;  %v1636_v3 = vrot.slane %v1635_v1, 2 }
 0x20b   :  { %v1643_v4 = vrot.slane %v1642_v20, 2  ;;  %v1648_v14 = vrot.slane %v1647_v32, 4  ;;  %v1654_v21 = vsel %vm1268_vm1, %v1169_v30, -inf  ;;  %v1625_v37 = vmax.f32 %v1623_v61, %v1624_v2 }
 0x20c   :  { %v1632_v25 = vmax.f32 %v1630_v63, %v1631_v52  ;;  %v16510_v11 = vpack.c.bf16 %v1618_v8, %v1618_v8  ;;  %v2921_v26 = vunpack.c.l.b16 %v16509_v43  ;;  %v1637_v53 = vmax.f32 %v1635_v1, %v1636_v3 }
 0x20d   :  { %v1644_v6 = vmax.f32 %v1642_v20, %v1643_v4  ;;  %v1649_v7 = vmax.f32 %v1647_v32, %v1648_v14  ;;  %v1655_v55 = vrot.slane %v1654_v21, 4  ;;  %v16511_v49 = vpack.c.bf16 %v1625_v37, %v1625_v37  ;;  %v3069_v4 = vld [vmem:[#allocation2 + $0x3c] sm:$0x1] }
 0x20e   :  { %v16512_v9 = vpack.c.bf16 %v1632_v25, %v1632_v25  ;;  %v2922_v13 = vunpack.c.l.b16 %v16510_v11  ;;  %v1170_v15 = vcombine.high %v914_v0, %v914_v0  ;;  %v1177_v27 = vrot.slane %v914_v0, %v19023_v56 }
 0x20f   :  { %v3329_v16 = vld [vmem:[#allocation2 + $0x30] sm:$0xf]  ;;  %v1656_v22 = vmax.f32 %v1654_v21, %v1655_v55  ;;  %v19347_v31 = vadd.f32 %v19293_v17, %v709_v5  ;;  %v19350_v10 = vadd.f32 %v19293_v17, %v17148_v46  ;;  %v2923_v35 = vunpack.c.l.b16 %v16511_v49 }
 0x210   :  { %v3569_v48 = vld [vmem:[#allocation2 + $0x30] sm:$0xf]  ;;  %3337 = vst [vmem:[#allocation3 + $0xc0] sm:$0xf] %v3329_v16  ;;  %v2924_v36 = vunpack.c.l.b16 %v16512_v9  ;;  %v2979_v30 = vsel %vm2937_vm2, %v2922_v13, %v2921_v26  ;;  %v1638_v40 = vrot.slane %v1637_v53, 1  ;;  %v1645_v12 = vrot.slane %v1644_v6, 1 }
 0x211   :  { %3577 = vst [vmem:[#allocation3 + $0xa8] sm:$0xf] %v3569_v48  ;;  %v1650_v41 = vrot.slane %v1649_v7, 2  ;;  %v1657_v42 = vrot.slane %v1656_v22, 2  ;;  %v1184_v44 = vrot.slane %v1170_v15, %v19023_v56  ;;  %v2980_v45 = vsel %vm2939_vm5, %v2923_v35, %v2979_v30  ;;  %v3066_v9 = vld [vmem:[#allocation2 + $0x38] sm:$0xf] }
 0x212   :  { %v1639_v54 = vmax.f32 %v1637_v53, %v1638_v40  ;;  %v1185_v23 = vcombine.high %v1177_v27, %v1177_v27  ;;  %v1661_v58 = vsel %vm1268_vm1, %v1177_v27, -inf  ;;  %v1646_v24 = vmax.f32 %v1644_v6, %v1645_v12 }
 0x213   :  { %v1651_v34 = vmax.f32 %v1649_v7, %v1650_v41  ;;  %v1658_v59 = vmax.f32 %v1656_v22, %v1657_v42  ;;  %v2981_v57 = vsel %vm2941_vm6, %v2924_v36, %v2980_v45  ;;  %v1186_v51 = vcombine.high %v1184_v44, %v1184_v44 }
 0x214   :  { %v16513_v60 = vpack.c.bf16 %v1639_v54, %v1639_v54  ;;  %v1662_v61 = vrot.slane %v1661_v58, 4  ;;  %v1668_v62 = vsel %vm1268_vm1, %v1185_v23, -inf  ;;  %v16514_v47 = vpack.c.bf16 %v1646_v24, %v1646_v24 }
 0x215   :  { %v1652_v32 = vrot.slane %v1651_v34, 1  ;;  %v1659_v28 = vrot.slane %v1658_v59, 1  ;;  %v1669_v63 = vrot.slane %v1668_v62, 4  ;;  %v1675_v20 = vsel %vm1268_vm1, %v1184_v44, -inf }
 0x216   :  { %v2925_v1 = vunpack.c.l.b16 %v16513_v60  ;;  %v1663_v5 = vmax.f32 %v1661_v58, %v1662_v61  ;;  %v1682_v0 = vsel %vm1268_vm1, %v1186_v51, -inf  ;;  %v2926_v52 = vunpack.c.l.b16 %v16514_v47 }
 0x217   :  { %v1653_v8 = vmax.f32 %v1651_v34, %v1652_v32  ;;  %v1660_v2 = vmax.f32 %v1658_v59, %v1659_v28  ;;  %v1670_v43 = vmax.f32 %v1668_v62, %v1669_v63  ;;  %v1676_v21 = vrot.slane %v1675_v20, 4  ;;  %v3082_v28 = vld [vmem:[#allocation2 + $0x20] sm:$0xf] }
 0x218   :  { %v2982_v3 = vsel %vm2943_vm7, %v2925_v1, %v2981_v57  ;;  %v1664_v14 = vrot.slane %v1663_v5, 2  ;;  %v1683_v37 = vrot.slane %v1682_v0, 4  ;;  %v867_v55 = vmax.f32 %v19309_v18, 0.0  ;;  %3090 = vst [vmem:[#allocation3 + $0x90] sm:$0xf] %v3082_v28 }
 0x219   :  { %v16515_v25 = vpack.c.bf16 %v1653_v8, %v1653_v8  ;;  %v2983_v11 = vsel %vm2945_vm8, %v2926_v52, %v2982_v3  ;;  %v16531_v26 = vpack.c.bf16 %v1660_v2, %v1660_v2  ;;  %v1671_v46 = vrot.slane %v1670_v43, 2 }
 0x21a   :  { %v1665_v53 = vmax.f32 %v1663_v5, %v1664_v14  ;;  %v1677_v6 = vmax.f32 %v1675_v20, %v1676_v21  ;;  %v1684_v7 = vmax.f32 %v1682_v0, %v1683_v37  ;;  %v865_v16 = vmax.f32 %v19339_v38, 0.0  ;;  %v712_v14 = vpop.f32.mrf.mxu0 }
 0x21b   :  { %v2927_v49 = vunpack.c.l.b16 %v16515_v25  ;;  %v3070_v13 = vsel %vm19063_vm12, %v16531_v26, %v3069_v4  ;;  %v1672_v15 = vmax.f32 %v1670_v43, %v1671_v46  ;;  %v870_v35 = vmax.f32 %v19342_v33, 0.0 }
 0x21c   :  { %3071 = vst [vmem:[#allocation2 + $0x3c] sm:$0x1] %v3070_v13  ;;  %v1666_v48 = vrot.slane %v1665_v53, 1  ;;  %v1678_v22 = vrot.slane %v1677_v6, 2  ;;  %v1685_v27 = vrot.slane %v1684_v7, 2  ;;  %v915_v40 = vmax.f32 %v865_v16, %v867_v55 }
 0x21d   :  { %v2984_v36 = vsel %vm2947_vm9, %v2927_v49, %v2983_v11  ;;  %v1673_v30 = vrot.slane %v1672_v15, 1  ;;  %v868_v18 = vmax.f32 %v19347_v31, 0.0 }
 0x21e   :  { %v3003_v12 = vpack.c.b16 %v2984_v36, %v2984_v36  ;;  %v1667_v41 = vmax.f32 %v1665_v53, %v1666_v48  ;;  %v1679_v42 = vmax.f32 %v1677_v6, %v1678_v22  ;;  %v1686_v44 = vmax.f32 %v1684_v7, %v1685_v27 }
 0x21f   :  { %v1674_v45 = vmax.f32 %v1672_v15, %v1673_v30  ;;  %v1187_v54 = vcombine.high %v915_v40, %v915_v40  ;;  %v1194_v38 = vrot.slane %v915_v40, %v19023_v56  ;;  %v1781_v23 = vmax.f32 %v868_v18, %v870_v35  ;;  %v17151_v18 = vpop.f32.mrf.mxu0 }
 0x220   :  { %v3067_v58 = vsel %vm19083_vm13, %v3003_v12, %v3066_v9  ;;  %v1680_v24 = vrot.slane %v1679_v42, 1  ;;  %v1687_v33 = vrot.slane %v1686_v44, 1  ;;  %v16517_v34 = vpack.c.bf16 %v1667_v41, %v1667_v41  ;;  %v3083_v12 = vld [vmem:[#allocation2 + $0x28] sm:$0xf] }
 0x221   :  { %3068 = vst [vmem:[#allocation2 + $0x38] sm:$0xf] %v3067_v58  ;;  %v16518_v59 = vpack.c.bf16 %v1674_v45, %v1674_v45  ;;  %v1201_v57 = vrot.slane %v1187_v54, %v19023_v56  ;;  %v1202_v31 = vcombine.high %v1194_v38, %v1194_v38  ;;  %v1689_v60 = vsel %vm1268_vm1, %v1194_v38, -inf  ;;  %3091 = vst [vmem:[#allocation3 + $0xb4] sm:$0xf] %v3083_v12 }
 0x222   :  { %v1681_v51 = vmax.f32 %v1679_v42, %v1680_v24  ;;  %v1688_v61 = vmax.f32 %v1686_v44, %v1687_v33  ;;  %v2929_v62 = vunpack.c.l.b16 %v16517_v34  ;;  %v1690_v32 = vrot.slane %v1689_v60, 4 }
 0x223   :  { %v2930_v47 = vunpack.c.l.b16 %v16518_v59  ;;  %v1203_v63 = vcombine.high %v1201_v57, %v1201_v57  ;;  %v1813_v1 = vcombine.high %v1781_v23, %v1781_v23  ;;  %v1820_v5 = vrot.slane %v1781_v23, %v19023_v56 }
 0x224   :  { %v16519_v20 = vpack.c.bf16 %v1681_v51, %v1681_v51  ;;  %v16520_v0 = vpack.c.bf16 %v1688_v61, %v1688_v61  ;;  %v1691_v8 = vmax.f32 %v1689_v60, %v1690_v32  ;;  %v1696_v2 = vsel %vm1268_vm1, %v1202_v31, -inf  ;;  %v19389_v61 = vpop.f32.mrf.mxu0 }
 0x225   :  { %v2985_v52 = vsel %vm2937_vm2, %v2930_v47, %v2929_v62  ;;  %v1697_v43 = vrot.slane %v1696_v2, 4  ;;  %v1703_v3 = vsel %vm1268_vm1, %v1201_v57, -inf  ;;  %v1710_v4 = vsel %vm1268_vm1, %v1203_v63, -inf }
 0x226   :  { %v2931_v21 = vunpack.c.l.b16 %v16519_v20  ;;  %v2932_v37 = vunpack.c.l.b16 %v16520_v0  ;;  %v1692_v25 = vrot.slane %v1691_v8, 2  ;;  %v1704_v11 = vrot.slane %v1703_v3, 4 }
 0x227   :  { %v1698_v26 = vmax.f32 %v1696_v2, %v1697_v43  ;;  %v1711_v46 = vrot.slane %v1710_v4, 4  ;;  %v1827_v53 = vrot.slane %v1813_v1, %v19023_v56  ;;  %v1828_v6 = vcombine.high %v1820_v5, %v1820_v5 }
 0x228   :  { %v3330_v7 = vld [vmem:[#allocation2 + $0x38] sm:$0xf]  ;;  %v2986_v49 = vsel %vm2939_vm5, %v2931_v21, %v2985_v52  ;;  %v1693_v9 = vmax.f32 %v1691_v8, %v1692_v25  ;;  %v1705_v13 = vmax.f32 %v1703_v3, %v1704_v11  ;;  %v19382_v15 = vadd.f32 %v19293_v17, %v712_v14 }
 0x229   :  { %v3570_v55 = vld [vmem:[#allocation2 + $0x38] sm:$0xf]  ;;  %3338 = vst [vmem:[#allocation3 + $0xe4] sm:$0xf] %v3330_v7  ;;  %v1699_v16 = vrot.slane %v1698_v26, 2  ;;  %v1712_v48 = vmax.f32 %v1710_v4, %v1711_v46  ;;  %v2987_v22 = vsel %vm2941_vm6, %v2932_v37, %v2986_v49  ;;  %v1829_v27 = vcombine.high %v1827_v53, %v1827_v53  ;;  %v19392_v37 = vpop.f32.mrf.mxu0 }
 0x22a   :  { %3578 = vst [vmem:[#allocation3 + $0xcc] sm:$0xf] %v3570_v55  ;;  %v1694_v35 = vrot.slane %v1693_v9, 1  ;;  %v1706_v36 = vrot.slane %v1705_v13, 2  ;;  %v2149_v30 = vsel %vm1268_vm1, %v1820_v5, -inf  ;;  %v2156_v40 = vsel %vm1268_vm1, %v1828_v6, -inf }
 0x22b   :  { %v1700_v41 = vmax.f32 %v1698_v26, %v1699_v16  ;;  %v1713_v42 = vrot.slane %v1712_v48, 2  ;;  %v2150_v44 = vrot.slane %v2149_v30, 4  ;;  %v2157_v45 = vrot.slane %v2156_v40, 4  ;;  %v3075_v4 = vld [vmem:[#allocation2 + $0x44] sm:$0x1] }
 0x22c   :  { %v1695_v54 = vmax.f32 %v1693_v9, %v1694_v35  ;;  %v1707_v38 = vmax.f32 %v1705_v13, %v1706_v36  ;;  %v2163_v23 = vsel %vm1268_vm1, %v1827_v53, -inf  ;;  %v2170_v58 = vsel %vm1268_vm1, %v1829_v27, -inf  ;;  %v3094_v55 = vld [vmem:[#allocation2] sm:$0xf] }
 0x22d   :  { %v1701_v24 = vrot.slane %v1700_v41, 1  ;;  %v1714_v33 = vmax.f32 %v1712_v48, %v1713_v42  ;;  %v2151_v34 = vmax.f32 %v2149_v30, %v2150_v44  ;;  %v2158_v59 = vmax.f32 %v2156_v40, %v2157_v45  ;;  %v3072_v35 = vld [vmem:[#allocation2 + $0x40] sm:$0xf]  ;;  %v728_v40 = vpop.f32.mrf.mxu0 }
 0x22e   :  { %v1708_v57 = vrot.slane %v1707_v38, 1  ;;  %v16521_v31 = vpack.c.bf16 %v1695_v54, %v1695_v54  ;;  %v2164_v60 = vrot.slane %v2163_v23, 4  ;;  %v2171_v51 = vrot.slane %v2170_v58, 4  ;;  %v3096_v54 = vld [vmem:[#allocation2 + $0x8] sm:$0xf] }
 0x22f   :  { %v1702_v62 = vmax.f32 %v1700_v41, %v1701_v24  ;;  %v1715_v32 = vrot.slane %v1714_v33, 1  ;;  %v2152_v28 = vrot.slane %v2151_v34, 2  ;;  %v2159_v47 = vrot.slane %v2158_v59, 2 }
 0x230   :  { %v1709_v63 = vmax.f32 %v1707_v38, %v1708_v57  ;;  %v2933_v1 = vunpack.c.l.b16 %v16521_v31  ;;  %v2165_v5 = vmax.f32 %v2163_v23, %v2164_v60  ;;  %v2172_v20 = vmax.f32 %v2170_v58, %v2171_v51  ;;  %v17155_v51 = vpop.f32.mrf.mxu0 }
 0x231   :  { %v1716_v0 = vmax.f32 %v1714_v33, %v1715_v32  ;;  %v16522_v8 = vpack.c.bf16 %v1702_v62, %v1702_v62  ;;  %v2153_v2 = vmax.f32 %v2151_v34, %v2152_v28  ;;  %v2160_v52 = vmax.f32 %v2158_v59, %v2159_v47  ;;  %v3097_v34 = vld [vmem:[#allocation2 + $0xc] sm:$0x1] }
 0x232   :  { %v16523_v43 = vpack.c.bf16 %v1709_v63, %v1709_v63  ;;  %v2988_v3 = vsel %vm2943_vm7, %v2933_v1, %v2987_v22  ;;  %v2166_v14 = vrot.slane %v2165_v5, 2  ;;  %v2173_v21 = vrot.slane %v2172_v20, 2  ;;  %v3095_v22 = vld [vmem:[#allocation2 + $0x4] sm:$0x1] }
 0x233   :  { %v2934_v25 = vunpack.c.l.b16 %v16522_v8  ;;  %v16532_v11 = vpack.c.bf16 %v1716_v0, %v1716_v0  ;;  %v2154_v26 = vrot.slane %v2153_v2, 1  ;;  %v2161_v46 = vrot.slane %v2160_v52, 1 }
 0x234   :  { %v2935_v53 = vunpack.c.l.b16 %v16523_v43  ;;  %v2167_v6 = vmax.f32 %v2165_v5, %v2166_v14  ;;  %v2174_v7 = vmax.f32 %v2172_v20, %v2173_v21  ;;  %v19395_v49 = vadd.f32 %v19293_v17, %v17151_v18  ;;  %v741_v21 = vpop.f32.mrf.mxu0 }
 0x235   :  { %v2989_v9 = vsel %vm2945_vm8, %v2934_v25, %v2988_v3  ;;  %v3076_v13 = vsel %vm19063_vm12, %v16532_v11, %v3075_v4  ;;  %v2155_v16 = vmax.f32 %v2153_v2, %v2154_v26  ;;  %v2162_v48 = vmax.f32 %v2160_v52, %v2161_v46  ;;  %v19415_v46 = vld [vmem:[#allocation2 + $0x8] sm:$0xf] }
 0x236   :  { %v2990_v27 = vsel %vm2947_vm9, %v2935_v53, %v2989_v9  ;;  %3077 = vst [vmem:[#allocation2 + $0x44] sm:$0x1] %v3076_v13  ;;  %v2168_v36 = vrot.slane %v2167_v6, 1  ;;  %v2175_v30 = vrot.slane %v2174_v7, 1  ;;  %v3114_v42 = vshrl.u32 %v3094_v55, 16 }
 0x237   :  { %v3005_v12 = vpack.c.b16 %v2990_v27, %v2990_v27  ;;  %v16533_v41 = vpack.c.bf16 %v2155_v16, %v2155_v16  ;;  %v16534_v18 = vpack.c.bf16 %v2162_v48, %v2162_v48  ;;  %v3117_v38 = vshll.u32 %v3094_v55, 16 }
 0x238   :  { %v2169_v44 = vmax.f32 %v2167_v6, %v2168_v36  ;;  %v2176_v45 = vmax.f32 %v2174_v7, %v2175_v30  ;;  %v3123_v23 = vshll.u32 %v3095_v22, 16  ;;  %v3116_v59 = vrot.slane %v3114_v42, 4  ;;  %v19421_v6 = vld [vmem:[#allocation2 + $0xc] sm:$0x1] }
 0x239   :  { %v3073_v58 = vsel %vm19083_vm13, %v3005_v12, %v3072_v35  ;;  %v3997_v24 = vunpack.c.l.b16 %v16533_v41  ;;  %v3998_v33 = vunpack.c.l.b16 %v16534_v18  ;;  %v3119_v60 = vrot.slane %v3117_v38, 5 }
 0x23a   :  { %3074 = vst [vmem:[#allocation2 + $0x40] sm:$0xf] %v3073_v58  ;;  %v16535_v57 = vpack.c.bf16 %v2169_v44, %v2169_v44  ;;  %v16536_v31 = vpack.c.bf16 %v2176_v45, %v2176_v45  ;;  %v3125_v32 = vrot.slane %v3123_v23, 5  ;;  %v3128_v28 = vshrl.u32 %v3096_v54, 16 }
 0x23b   :  { %v4061_v62 = vsel %vm2937_vm2, %v3998_v33, %v3997_v24  ;;  %v3131_v47 = vshll.u32 %v3096_v54, 16  ;;  %v3120_v5 = vor.u32 %v3119_v60, %v3116_v59  ;;  %v3137_v20 = vshll.u32 %v3097_v34, 16 }
 0x23c   :  { %v3999_v63 = vunpack.c.l.b16 %v16535_v57  ;;  %v4000_v1 = vunpack.c.l.b16 %v16536_v31  ;;  %v3130_v8 = vrot.slane %v3128_v28, 4  ;;  %v726_v52 = vadd.f32 %v19293_v17, %v19389_v61 }
 0x23d   :  { %v3133_v2 = vrot.slane %v3131_v47, 5  ;;  %v3121_v3 = vrot.slane %v3120_v5, 4  ;;  %v871_v4 = vmax.f32 %v19350_v10, 0.0  ;;  %v869_v14 = vmax.f32 %v19382_v15, 0.0 }
 0x23e   :  { %v4062_v43 = vsel %vm2939_vm5, %v3999_v63, %v4061_v62  ;;  %v874_v11 = vmax.f32 %v19395_v49, 0.0  ;;  %v872_v26 = vmax.f32 %v726_v52, 0.0  ;;  %v19419_v53 = vadd.f32 %v19293_v17, %v19392_v37 }
 0x23f   :  { %v3134_v25 = vor.u32 %v3133_v2, %v3130_v8  ;;  %v3126_v61 = vsel %vm19405_vm0, %v3121_v3, %v3125_v32  ;;  %v3139_v7 = vrot.slane %v3137_v20, 5  ;;  %v1782_v10 = vmax.f32 %v869_v14, %v871_v4  ;;  %v17311_v14 = vld [vmem:[#allocation3] ss:$36 sps:$4 sm:$0xff]  }
 0x240   :  { %v19426_v15 = vsel %vm2941_vm6, %v4000_v1, %v4062_v43  ;;  %3233 = vst [vmem:[#allocation3 + $0x4] sm:$0xf] %v3126_v61  ;;  %v1783_v49 = vmax.f32 %v872_v26, %v874_v11  ;;  %v19429_v13 = vadd.f32 %v19293_v17, %v728_v40  ;;  %v19432_v37 = vadd.f32 %v19293_v17, %v17155_v51 }
 0x241   :  { %v3331_v55 = vld [vmem:[#allocation2 + $0x40] sm:$0xf]  ;;  %v19435_v16 = vadd.f32 %v19293_v17, %v741_v21  ;;  %v3135_v48 = vrot.slane %v3134_v25, 4  ;;  %v1830_v22 = vcombine.high %v1782_v10, %v1782_v10  ;;  %v1837_v27 = vrot.slane %v1782_v10, %v19023_v56 }
 0x242   :  { %v3571_v9 = vld [vmem:[#allocation2 + $0x40] sm:$0xf]  ;;  %3339 = vst [vmem:[#allocation3 + $0x108] sm:$0xf] %v3331_v55  ;;  %v3357_v35 = vshrl.u32 %v19415_v46, 16  ;;  %v1847_v36 = vcombine.high %v1783_v49, %v1783_v49  ;;  %v1854_v30 = vrot.slane %v1783_v49, %v19023_v56  ;;  %v3360_v40 = vshll.u32 %v19415_v46, 16 }
 0x243   :  { %3579 = vst [vmem:[#allocation3 + $0xf0] sm:$0xf] %v3571_v9  ;;  %v3366_v12 = vshll.u32 %v19421_v6, 16  ;;  %v3140_v41 = vsel %vm19405_vm0, %v3135_v48, %v3139_v7  ;;  %v1844_v17 = vrot.slane %v1830_v22, %v19023_v56  ;;  %v1845_v18 = vcombine.high %v1837_v27, %v1837_v27 }
 0x244   :  { %v2177_v42 = vsel %vm1268_vm1, %v1837_v27, -inf  ;;  %3234 = vst [vmem:[#allocation3 + $0x28] sm:$0xf] %v3140_v41  ;;  %v1861_v45 = vrot.slane %v1847_v36, %v19023_v56  ;;  %v1862_v54 = vcombine.high %v1854_v30, %v1854_v30  ;;  %v2205_v38 = vsel %vm1268_vm1, %v1854_v30, -inf }
 0x245   :  { %v2178_v44 = vrot.slane %v2177_v42, 4  ;;  %v1846_v23 = vcombine.high %v1844_v17, %v1844_v17  ;;  %v2184_v58 = vsel %vm1268_vm1, %v1845_v18, -inf  ;;  %v2191_v24 = vsel %vm1268_vm1, %v1844_v17, -inf }
 0x246   :  { %v2206_v33 = vrot.slane %v2205_v38, 4  ;;  %v2185_v59 = vrot.slane %v2184_v58, 4  ;;  %v2192_v57 = vrot.slane %v2191_v24, 4  ;;  %v1863_v31 = vcombine.high %v1861_v45, %v1861_v45 }
 0x247   :  { %v2179_v34 = vmax.f32 %v2177_v42, %v2178_v44  ;;  %v2198_v60 = vsel %vm1268_vm1, %v1846_v23, -inf  ;;  %v2212_v62 = vsel %vm1268_vm1, %v1862_v54, -inf  ;;  %v2219_v32 = vsel %vm1268_vm1, %v1861_v45, -inf }
 0x248   :  { %v2207_v51 = vmax.f32 %v2205_v38, %v2206_v33  ;;  %v2186_v47 = vmax.f32 %v2184_v58, %v2185_v59  ;;  %v2193_v63 = vmax.f32 %v2191_v24, %v2192_v57  ;;  %v2199_v1 = vrot.slane %v2198_v60, 4 }
 0x249   :  { %v2180_v28 = vrot.slane %v2179_v34, 2  ;;  %v2213_v20 = vrot.slane %v2212_v62, 4  ;;  %v2220_v8 = vrot.slane %v2219_v32, 4  ;;  %v2226_v2 = vsel %vm1268_vm1, %v1863_v31, -inf }
 0x24a   :  { %v2208_v5 = vrot.slane %v2207_v51, 2  ;;  %v2187_v43 = vrot.slane %v2186_v47, 2  ;;  %v2194_v3 = vrot.slane %v2193_v63, 2  ;;  %v2200_v4 = vmax.f32 %v2198_v60, %v2199_v1  ;;  %v3485_v1 = vld [vmem:[#allocation2 + $0xc] sm:$0x1] }
 0x24b   :  { %v2181_v52 = vmax.f32 %v2179_v34, %v2180_v28  ;;  %v17313_v21 = vld [vmem:[#allocation3 + $0x4] ss:$36 sps:$4 sm:$0xff]   ;;  %v2214_v11 = vmax.f32 %v2212_v62, %v2213_v20  ;;  %v2221_v26 = vmax.f32 %v2219_v32, %v2220_v8  ;;  %v2227_v61 = vrot.slane %v2226_v2, 4 }
 0x24c   :  { %v2209_v25 = vmax.f32 %v2207_v51, %v2208_v5  ;;  %v2188_v10 = vmax.f32 %v2186_v47, %v2187_v43  ;;  %v2195_v55 = vmax.f32 %v2193_v63, %v2194_v3  ;;  %v2201_v9 = vrot.slane %v2200_v4, 2  ;;  %5972 = vmatprep.mubr.bf16.mxu1 %v17313_v21  ;;  %v19454_v63 = vld [vmem:[#allocation2 + $0xc] sm:$0x1] }
 0x24d   :  { %v2182_v7 = vrot.slane %v2181_v52, 1  ;;  %v2215_v48 = vrot.slane %v2214_v11, 2  ;;  %v2222_v22 = vrot.slane %v2221_v26, 2  ;;  %v2228_v27 = vmax.f32 %v2226_v2, %v2227_v61  ;;  %5973 = vmatmul.mubr.bf16.vlgmr.msra.gmra.mxu1 %v17311_v14  ;;  %v3342_v14 = vld [vmem:[#allocation2 + $0x10] sm:$0xf] }
 0x24e   :  { %v2210_v49 = vrot.slane %v2209_v25, 1  ;;  %v2189_v30 = vrot.slane %v2188_v10, 1  ;;  %v2196_v41 = vrot.slane %v2195_v55, 1  ;;  %v2202_v17 = vmax.f32 %v2200_v4, %v2201_v9 }
 0x24f   :  { %v2183_v36 = vmax.f32 %v2181_v52, %v2182_v7  ;;  %v2216_v42 = vmax.f32 %v2214_v11, %v2215_v48  ;;  %v2223_v44 = vmax.f32 %v2221_v26, %v2222_v22  ;;  %v2229_v45 = vrot.slane %v2228_v27, 2  ;;  %v4144_v52 = vld [vmem:[#allocation2 + $0xc] sm:$0x1]  ;;  %v3343_v26 = vld [vmem:[#allocation2 + $0x14] sm:$0x1] }
 0x250   :  { %v2211_v18 = vmax.f32 %v2209_v25, %v2210_v49  ;;  %v2190_v54 = vmax.f32 %v2188_v10, %v2189_v30  ;;  %v2197_v38 = vmax.f32 %v2195_v55, %v2196_v41  ;;  %v2203_v23 = vrot.slane %v2202_v17, 1  ;;  %v3484_v7 = vld [vmem:[#allocation2 + $0x8] sm:$0xe] }
 0x251   :  { %v16537_v58 = vpack.c.bf16 %v2183_v36, %v2183_v36  ;;  %v2217_v24 = vrot.slane %v2216_v42, 1  ;;  %v2224_v33 = vrot.slane %v2223_v44, 1  ;;  %v2230_v34 = vmax.f32 %v2228_v27, %v2229_v45  ;;  %v3486_v36 = vld [vmem:[#allocation2 + $0x10] sm:$0xe]  ;;  %v4141_v30 = vld [vmem:[#allocation2 + $0x8] sm:$0xf] }
 0x252   :  { %v16541_v59 = vpack.c.bf16 %v2211_v18, %v2211_v18  ;;  %v2204_v57 = vmax.f32 %v2202_v17, %v2203_v23  ;;  %v16538_v31 = vpack.c.bf16 %v2190_v54, %v2190_v54  ;;  %v16539_v60 = vpack.c.bf16 %v2197_v38, %v2197_v38  ;;  %v3487_v17 = vld [vmem:[#allocation2 + $0x14] sm:$0x1] }
 0x253   :  { %v4001_v51 = vunpack.c.l.b16 %v16537_v58  ;;  %v2218_v62 = vmax.f32 %v2216_v42, %v2217_v24  ;;  %v2225_v32 = vmax.f32 %v2223_v44, %v2224_v33  ;;  %v2231_v28 = vrot.slane %v2230_v34, 1  ;;  %v3099_v54 = vld [vmem:[#allocation2 + $0x14] sm:$0x1]  ;;  %v3098_v33 = vld [vmem:[#allocation2 + $0x10] sm:$0xf] }
 0x254   :  { %v4005_v47 = vunpack.c.l.b16 %v16541_v59  ;;  %v4002_v5 = vunpack.c.l.b16 %v16538_v31  ;;  %v4003_v20 = vunpack.c.l.b16 %v16539_v60  ;;  %v16597_v2 = vpack.c.bf16 %v2204_v57, %v2204_v57 }
 0x255   :  { %v4064_v8 = vsel %vm2943_vm7, %v4001_v51, %v19426_v15  ;;  %v2232_v43 = vmax.f32 %v2230_v34, %v2231_v28  ;;  %v16542_v3 = vpack.c.bf16 %v2218_v62, %v2218_v62  ;;  %v16543_v4 = vpack.c.bf16 %v2225_v32, %v2225_v32  ;;  %v19484_v51 = vld [vmem:[#allocation2 + $0x18] sm:$0xf] }
 0x256   :  { %v3359_v21 = vrot.slane %v3357_v35, 4  ;;  %v4065_v25 = vsel %vm2945_vm8, %v4002_v5, %v4064_v8  ;;  %v4145_v11 = vsel %vm19063_vm12, %v16597_v2, %v4144_v52  ;;  %v3362_v61 = vrot.slane %v3360_v40, 5 }
 0x257   :  { %v3368_v15 = vrot.slane %v3366_v12, 5  ;;  %v4066_v10 = vsel %vm2947_vm9, %v4003_v20, %v4065_v25  ;;  %4146 = vst [vmem:[#allocation2 + $0xc] sm:$0x1] %v4145_v11  ;;  %v16544_v55 = vpack.c.bf16 %v2232_v43, %v2232_v43  ;;  %v4006_v9 = vunpack.c.l.b16 %v16542_v3  ;;  %v19469_v12 = vld [vmem:[#allocation2 + $0x8] sm:$0xe] }
 0x258   :  { %v4007_v49 = vunpack.c.l.b16 %v16543_v4  ;;  %v4109_v35 = vpack.c.b16 %v4066_v10, %v4066_v10  ;;  %v3363_v48 = vor.u32 %v3362_v61, %v3359_v21  ;;  %v3371_v22 = vshrl.u32 %v3342_v14, 16  ;;  %v3084_v20 = vld [vmem:[#allocation2 + $0x30] sm:$0xf] }
 0x259   :  { %v3374_v27 = vshll.u32 %v3342_v14, 16  ;;  %v4008_v41 = vunpack.c.l.b16 %v16544_v55  ;;  %v4067_v46 = vsel %vm2937_vm2, %v4006_v9, %v4005_v47  ;;  %v3380_v40 = vshll.u32 %v3343_v26, 16  ;;  %3092 = vst [vmem:[#allocation3 + $0xd8] sm:$0xf] %v3084_v20 }
 0x25a   :  { %v15321_v6 = vrot.slane %v3484_v7, 9  ;;  %v4142_v18 = vsel %vm19083_vm13, %v4109_v35, %v4141_v30  ;;  %v4068_v42 = vsel %vm2939_vm5, %v4007_v49, %v4067_v46  ;;  %v3364_v44 = vrot.slane %v3363_v48, 4 }
 0x25b   :  { %v3373_v45 = vrot.slane %v3371_v22, 4  ;;  %v3376_v38 = vrot.slane %v3374_v27, 5  ;;  %v3382_v23 = vrot.slane %v3380_v40, 5  ;;  %v3518_v58 = vrot.slane %v3485_v1, 5  ;;  %4143 = vst [vmem:[#allocation2 + $0x8] sm:$0xf] %v4142_v18 }
 0x25c   :  { %v15322_v24 = vrot.slane %v3486_v36, 9  ;;  %v3369_v59 = vsel %vm19405_vm0, %v3364_v44, %v3368_v15  ;;  %v3522_v57 = vrot.slane %v3487_v17, 5  ;;  %v875_v31 = vmax.f32 %v19419_v53, 0.0  ;;  %v3085_v44 = vld [vmem:[#allocation2 + $0x38] sm:$0xf] }
 0x25d   :  { %v873_v60 = vmax.f32 %v19429_v13, 0.0  ;;  %v3377_v62 = vor.u32 %v3376_v38, %v3373_v45  ;;  %3476 = vst [vmem:[#allocation3 + $0x10] sm:$0xf] %v3369_v59  ;;  %v3519_v32 = vsel %vm19476_vm15, %v15321_v6, %v3518_v58  ;;  %v19489_v28 = vsel %vm2941_vm6, %v4008_v41, %v4068_v42  ;;  %v17156_v42 = vpop.f32.mrf.mxu0  ;;  %3093 = vst [vmem:[#allocation3 + $0xfc] sm:$0xf] %v3085_v44 }
 0x25e   :  { %v878_v47 = vmax.f32 %v19432_v37, 0.0  ;;  %v3523_v1 = vsel %vm19476_vm15, %v15322_v24, %v3522_v57  ;;  %3556 = vst [vmem:[#allocation3 + $0x14] sm:$0xf] %v3519_v32  ;;  %v876_v53 = vmax.f32 %v19435_v16, 0.0  ;;  %v3142_v13 = vshrl.u32 %v3098_v33, 16 }
 0x25f   :  { %v1784_v5 = vmax.f32 %v873_v60, %v875_v31  ;;  %v3378_v8 = vrot.slane %v3377_v62, 4  ;;  %3557 = vst [vmem:[#allocation3 + $0x38] sm:$0xf] %v3523_v1  ;;  %v3145_v2 = vshll.u32 %v3098_v33, 16  ;;  %v3151_v52 = vshll.u32 %v3099_v54, 16 }
 0x260   :  { %v3156_v43 = vshrl.u32 %v19484_v51, 16  ;;  %v1785_v37 = vmax.f32 %v876_v53, %v878_v47  ;;  %v19497_v14 = vrot.slane %v3142_v13, 4  ;;  %v3159_v49 = vshll.u32 %v19484_v51, 16  ;;  %v19521_v47 = vld [vmem:[#allocation11] ss:$0 sm:$0xff] }
 0x261   :  { %v1864_v3 = vcombine.high %v1784_v5, %v1784_v5  ;;  %v1871_v4 = vrot.slane %v1784_v5, %v19023_v56  ;;  %v3383_v21 = vsel %vm19405_vm0, %v3378_v8, %v3382_v23  ;;  %v19501_v25 = vrot.slane %v3145_v2, 5 }
 0x262   :  { %v19503_v16 = vrot.slane %v3151_v52, 5  ;;  %v19505_v11 = vrot.slane %v3156_v43, 4  ;;  %3477 = vst [vmem:[#allocation3 + $0x34] sm:$0xf] %v3383_v21  ;;  %v1881_v7 = vcombine.high %v1785_v37, %v1785_v37  ;;  %v1888_v55 = vrot.slane %v1785_v37, %v19023_v56 }
 0x263   :  { %v1878_v26 = vrot.slane %v1864_v3, %v19023_v56  ;;  %v1879_v61 = vcombine.high %v1871_v4, %v1871_v4  ;;  %v2233_v15 = vsel %vm1268_vm1, %v1871_v4, -inf  ;;  %v3148_v9 = vor.u32 %v19501_v25, %v19497_v14 }
 0x264   :  { %v2234_v10 = vrot.slane %v2233_v15, 4  ;;  %v1895_v27 = vrot.slane %v1881_v7, %v19023_v56  ;;  %v1896_v46 = vcombine.high %v1888_v55, %v1888_v55  ;;  %v2261_v6 = vsel %vm1268_vm1, %v1888_v55, -inf }
 0x265   :  { %v1880_v35 = vcombine.high %v1878_v26, %v1878_v26  ;;  %v2240_v48 = vsel %vm1268_vm1, %v1879_v61, -inf  ;;  %v2247_v22 = vsel %vm1268_vm1, %v1878_v26, -inf  ;;  %v2262_v58 = vrot.slane %v2261_v6, 4 }
 0x266   :  { %v2235_v36 = vmax.f32 %v2233_v15, %v2234_v10  ;;  %v2241_v30 = vrot.slane %v2240_v48, 4  ;;  %v2248_v41 = vrot.slane %v2247_v22, 4  ;;  %v1897_v17 = vcombine.high %v1895_v27, %v1895_v27  ;;  %v17320_v31 = vld [vmem:[#allocation3 + $0x14] ss:$36 sps:$4 sm:$0xff]  }
 0x267   :  { %v2254_v40 = vsel %vm1268_vm1, %v1880_v35, -inf  ;;  %v2275_v18 = vsel %vm1268_vm1, %v1895_v27, -inf  ;;  %v2268_v24 = vsel %vm1268_vm1, %v1896_v46, -inf  ;;  %v19524_v1 = vadd.f32 %v19521_v47, %v17156_v42  ;;  %6166 = vmatprep.mubr.bf16.mxu0 %v17320_v31 }
 0x268   :  { %v2236_v45 = vrot.slane %v2235_v36, 2  ;;  %v2242_v54 = vmax.f32 %v2240_v48, %v2241_v30  ;;  %v2249_v38 = vmax.f32 %v2247_v22, %v2248_v41  ;;  %v2255_v23 = vrot.slane %v2254_v40, 4  ;;  %v744_v41 = vpop.f32.mrf.mxu0 }
 0x269   :  { %v2276_v33 = vrot.slane %v2275_v18, 4  ;;  %v2282_v59 = vsel %vm1268_vm1, %v1897_v17, -inf  ;;  %v17318_v57 = vld [vmem:[#allocation3 + $0x10] ss:$36 sps:$4 sm:$0xff]   ;;  %v2263_v53 = vmax.f32 %v2261_v6, %v2262_v58  ;;  %v2269_v13 = vrot.slane %v2268_v24, 4 }
 0x26a   :  { %v2237_v60 = vmax.f32 %v2235_v36, %v2236_v45  ;;  %v2243_v62 = vrot.slane %v2242_v54, 2  ;;  %v2256_v32 = vmax.f32 %v2254_v40, %v2255_v23  ;;  %v2250_v5 = vrot.slane %v2249_v38, 2  ;;  %6167 = vmatmul.mubr.bf16.vlgmr.msra.gmra.mxu0 %v17318_v57  ;;  %v17159_v31 = vpop.f32.mrf.mxu0 }
 0x26b   :  { %v2277_v20 = vmax.f32 %v2275_v18, %v2276_v33  ;;  %v2283_v43 = vrot.slane %v2282_v59, 4  ;;  %v2264_v4 = vrot.slane %v2263_v53, 2  ;;  %v2270_v37 = vmax.f32 %v2268_v24, %v2269_v13 }
 0x26c   :  { %v2238_v8 = vrot.slane %v2237_v60, 1  ;;  %v2244_v2 = vmax.f32 %v2242_v54, %v2243_v62  ;;  %v2257_v52 = vrot.slane %v2256_v32, 2  ;;  %v2251_v3 = vmax.f32 %v2249_v38, %v2250_v5  ;;  %v19530_v62 = vld [vmem:[#allocation2 + $0x14] sm:$0x1] }
 0x26d   :  { %v2278_v21 = vrot.slane %v2277_v20, 2  ;;  %v2284_v7 = vmax.f32 %v2282_v59, %v2283_v43  ;;  %v2265_v55 = vmax.f32 %v2263_v53, %v2264_v4  ;;  %v2271_v35 = vrot.slane %v2270_v37, 2  ;;  %21975 = vst [vmem:[#allocation38_spill] sm:$0xff] %v19530_v62  ;;  %v4150_v5 = vld [vmem:[#allocation2 + $0x14] sm:$0x1] }
 0x26e   :  { %v2239_v26 = vmax.f32 %v2237_v60, %v2238_v8  ;;  %v2245_v61 = vrot.slane %v2244_v2, 1  ;;  %v2258_v15 = vmax.f32 %v2256_v32, %v2257_v52  ;;  %v2252_v10 = vrot.slane %v2251_v3, 1  ;;  %v19528_v60 = vld [vmem:[#allocation2 + $0x14] sm:$0x1]  ;;  %v3101_v43 = vld [vmem:[#allocation2 + $0x1c] sm:$0x1] }
 0x26f   :  { %v2279_v48 = vmax.f32 %v2277_v20, %v2278_v21  ;;  %v2285_v30 = vrot.slane %v2284_v7, 2  ;;  %v2266_v40 = vrot.slane %v2265_v55, 1  ;;  %v2272_v17 = vmax.f32 %v2270_v37, %v2271_v35  ;;  %v19532_v8 = vld [vmem:[#allocation2 + $0x14] sm:$0x1]  ;;  %v4147_v35 = vld [vmem:[#allocation2 + $0x10] sm:$0xf] }
 0x270   :  { %v2246_v22 = vmax.f32 %v2244_v2, %v2245_v61  ;;  %v2259_v27 = vrot.slane %v2258_v15, 1  ;;  %v16545_v36 = vpack.c.bf16 %v2239_v26, %v2239_v26  ;;  %v2253_v46 = vmax.f32 %v2251_v3, %v2252_v10 }
 0x271   :  { %v2280_v6 = vrot.slane %v2279_v48, 1  ;;  %v2286_v45 = vmax.f32 %v2284_v7, %v2285_v30  ;;  %v2267_v38 = vmax.f32 %v2265_v55, %v2266_v40  ;;  %v2273_v23 = vrot.slane %v2272_v17, 1  ;;  %v757_v55 = vpop.f32.mrf.mxu0  ;;  %v19552_v30 = vld [vmem:[#allocation2 + $0x10] sm:$0xe] }
 0x272   :  { %v2260_v18 = vmax.f32 %v2258_v15, %v2259_v27  ;;  %v16546_v42 = vpack.c.bf16 %v2246_v22, %v2246_v22  ;;  %v4009_v44 = vunpack.c.l.b16 %v16545_v36  ;;  %v16547_v54 = vpack.c.bf16 %v2253_v46, %v2253_v46  ;;  %v3344_v22 = vld [vmem:[#allocation2 + $0x18] sm:$0xf]  ;;  %v19548_v27 = vld [vmem:[#allocation2 + $0x10] sm:$0xe] }
 0x273   :  { %v2281_v58 = vmax.f32 %v2279_v48, %v2280_v6  ;;  %v2287_v57 = vrot.slane %v2286_v45, 1  ;;  %v2274_v53 = vmax.f32 %v2272_v17, %v2273_v23  ;;  %v16549_v13 = vpack.c.bf16 %v2267_v38, %v2267_v38  ;;  %v19550_v36 = vld [vmem:[#allocation2 + $0x10] sm:$0xf]  ;;  %v3345_v6 = vld [vmem:[#allocation2 + $0x1c] sm:$0x1] }
 0x274   :  { %v4010_v24 = vunpack.c.l.b16 %v16546_v42  ;;  %v4070_v33 = vsel %vm2943_vm7, %v4009_v44, %v19489_v28  ;;  %v16598_v59 = vpack.c.bf16 %v2260_v18, %v2260_v18  ;;  %v4011_v32 = vunpack.c.l.b16 %v16547_v54  ;;  %21976 = vst [vmem:[#allocation39_spill] sm:$0xff] %v19550_v36  ;;  %v3346_v18 = vld [vmem:[#allocation2 + $0x20] sm:$0xf] }
 0x275   :  { %v16551_v20 = vpack.c.bf16 %v2281_v58, %v2281_v58  ;;  %v2288_v28 = vmax.f32 %v2286_v45, %v2287_v57  ;;  %v3149_v3 = vrot.slane %v3148_v9, 4  ;;  %v16550_v37 = vpack.c.bf16 %v2274_v53, %v2274_v53  ;;  %v19564_v58 = vld [vmem:[#allocation2 + $0x24] sm:$0x1] }
 0x276   :  { %v4071_v2 = vsel %vm2945_vm8, %v4010_v24, %v4070_v33  ;;  %v4151_v52 = vsel %vm19063_vm12, %v16598_v59, %v4150_v5  ;;  %v4013_v21 = vunpack.c.l.b16 %v16549_v13  ;;  %v3161_v10 = vrot.slane %v3159_v49, 5 }
 0x277   :  { %v4072_v4 = vsel %vm2947_vm9, %v4011_v32, %v4071_v2  ;;  %v4015_v26 = vunpack.c.l.b16 %v16551_v20  ;;  %4152 = vst [vmem:[#allocation2 + $0x14] sm:$0x1] %v4151_v52  ;;  %v16552_v15 = vpack.c.bf16 %v2288_v28, %v2288_v28  ;;  %v3154_v7 = vsel %vm19405_vm0, %v3149_v3, %v19503_v16 }
 0x278   :  { %v4111_v61 = vpack.c.b16 %v4072_v4, %v4072_v4  ;;  %v4014_v48 = vunpack.c.l.b16 %v16550_v37  ;;  %v3165_v14 = vshll.u32 %v3101_v43, 16  ;;  %3235 = vst [vmem:[#allocation3 + $0x4c] sm:$0xf] %v3154_v7  ;;  %v879_v25 = vmax.f32 %v19524_v1, 0.0 }
 0x279   :  { %v745_v9 = vadd.f32 %v19521_v47, %v744_v41  ;;  %v4016_v16 = vunpack.c.l.b16 %v16552_v15  ;;  %v3162_v49 = vor.u32 %v3161_v10, %v19505_v11  ;;  %v766_v46 = vadd.f32 %v19521_v47, %v17159_v31 }
 0x27a   :  { %v4148_v51 = vsel %vm19083_vm13, %v4111_v61, %v4147_v35  ;;  %v4073_v40 = vsel %vm2937_vm2, %v4014_v48, %v4013_v21  ;;  %v3167_v1 = vrot.slane %v3165_v14, 5  ;;  %v758_v17 = vadd.f32 %v19521_v47, %v757_v55 }
 0x27b   :  { %4149 = vst [vmem:[#allocation2 + $0x10] sm:$0xf] %v4148_v51  ;;  %v877_v41 = vmax.f32 %v745_v9, 0.0  ;;  %v4074_v42 = vsel %vm2939_vm5, %v4015_v26, %v4073_v40  ;;  %v3163_v44 = vrot.slane %v3162_v49, 4  ;;  %v882_v45 = vmax.f32 %v766_v46, 0.0 }
 0x27c   :  { %v3385_v54 = vshrl.u32 %v3344_v22, 16  ;;  %v19562_v23 = vsel %vm2941_vm6, %v4016_v16, %v4074_v42  ;;  %v880_v11 = vmax.f32 %v758_v17, 0.0  ;;  %v3388_v24 = vshll.u32 %v3344_v22, 16  ;;  %v17323_v40 = vld [vmem:[#allocation3 + $0x48] ss:$36 sps:$4 sm:$0xff]  }
 0x27d   :  { %v1786_v38 = vmax.f32 %v877_v41, %v879_v25  ;;  %v3168_v33 = vsel %vm19405_vm0, %v3163_v44, %v3167_v1  ;;  %v3394_v57 = vshll.u32 %v3345_v6, 16  ;;  %v3399_v31 = vshrl.u32 %v3346_v18, 16 }
 0x27e   :  { %v19568_v59 = vrot.slane %v3385_v54, 4  ;;  %3236 = vst [vmem:[#allocation3 + $0x70] sm:$0xf] %v3168_v33  ;;  %v1787_v53 = vmax.f32 %v880_v11, %v882_v45  ;;  %v19571_v13 = vrot.slane %v3388_v24, 5  ;;  %v3402_v52 = vshll.u32 %v3346_v18, 16 }
 0x27f   :  { %v1898_v32 = vcombine.high %v1786_v38, %v1786_v38  ;;  %v1905_v5 = vrot.slane %v1786_v38, %v19023_v56  ;;  %v19573_v20 = vrot.slane %v3394_v57, 5  ;;  %v19575_v2 = vrot.slane %v3399_v31, 4 }
 0x280   :  { %v3408_v28 = vshll.u32 %v19564_v58, 16  ;;  %v1915_v37 = vcombine.high %v1787_v53, %v1787_v53  ;;  %v1922_v26 = vrot.slane %v1787_v53, %v19023_v56  ;;  %v3391_v61 = vor.u32 %v19571_v13, %v19568_v59  ;;  %v19615_v59 = vld [vmem:[#allocation2 + $0x18] sm:$0xe] }
 0x281   :  { %v1912_v43 = vrot.slane %v1898_v32, %v19023_v56  ;;  %v1913_v3 = vcombine.high %v1905_v5, %v1905_v5  ;;  %v2289_v4 = vsel %vm1268_vm1, %v1905_v5, -inf  ;;  %v19583_v15 = vrot.slane %v3402_v52, 5  ;;  %v19617_v13 = vld [vmem:[#allocation2 + $0x18] sm:$0xf] }
 0x282   :  { %v2290_v21 = vrot.slane %v2289_v4, 4  ;;  %v1929_v35 = vrot.slane %v1915_v37, %v19023_v56  ;;  %v1930_v9 = vcombine.high %v1922_v26, %v1922_v26  ;;  %v2317_v16 = vsel %vm1268_vm1, %v1922_v26, -inf  ;;  %21978 = vst [vmem:[#allocation41_spill] sm:$0xff] %v19617_v13 }
 0x283   :  { %v1914_v7 = vcombine.high %v1912_v43, %v1912_v43  ;;  %v2296_v10 = vsel %vm1268_vm1, %v1913_v3, -inf  ;;  %v2303_v55 = vsel %vm1268_vm1, %v1912_v43, -inf  ;;  %v3405_v6 = vor.u32 %v19583_v15, %v19575_v2 }
 0x284   :  { %v2291_v48 = vmax.f32 %v2289_v4, %v2290_v21  ;;  %v2297_v14 = vrot.slane %v2296_v10, 4  ;;  %v2304_v25 = vrot.slane %v2303_v55, 4  ;;  %v1931_v51 = vcombine.high %v1929_v35, %v1929_v35 }
 0x285   :  { %v2310_v22 = vsel %vm1268_vm1, %v1914_v7, -inf  ;;  %v2331_v49 = vsel %vm1268_vm1, %v1929_v35, -inf  ;;  %v17321_v46 = vld [vmem:[#allocation3 + $0x4c] ss:$36 sps:$4 sm:$0xff]   ;;  %v2318_v42 = vrot.slane %v2317_v16, 4  ;;  %v2324_v44 = vsel %vm1268_vm1, %v1930_v9, -inf  ;;  %v19595_v35 = vpop.f32.mrf.mxu0 }
 0x286   :  { %v2292_v1 = vrot.slane %v2291_v48, 2  ;;  %v2298_v41 = vmax.f32 %v2296_v10, %v2297_v14  ;;  %v2305_v17 = vmax.f32 %v2303_v55, %v2304_v25  ;;  %v2311_v18 = vrot.slane %v2310_v22, 4  ;;  %5980 = vmatprep.mubr.bf16.mxu1 %v17321_v46 }
 0x287   :  { %v2332_v45 = vrot.slane %v2331_v49, 4  ;;  %v2325_v24 = vrot.slane %v2324_v44, 4  ;;  %5981 = vmatmul.mubr.bf16.gmra.mxu1 %v17323_v40  ;;  %v2319_v57 = vmax.f32 %v2317_v16, %v2318_v42  ;;  %v2338_v32 = vsel %vm1268_vm1, %v1931_v51, -inf }
 0x288   :  { %v2293_v54 = vmax.f32 %v2291_v48, %v2292_v1  ;;  %v2299_v38 = vrot.slane %v2298_v41, 2  ;;  %v2306_v11 = vrot.slane %v2305_v17, 2  ;;  %v2312_v33 = vmax.f32 %v2310_v22, %v2311_v18 }
 0x289   :  { %v2333_v31 = vmax.f32 %v2331_v49, %v2332_v45  ;;  %v2326_v43 = vmax.f32 %v2324_v44, %v2325_v24  ;;  %v2320_v4 = vrot.slane %v2319_v57, 2  ;;  %v2339_v21 = vrot.slane %v2338_v32, 4  ;;  %v760_v45 = vpop.f32.mrf.mxu0 }
 0x28a   :  { %v2294_v5 = vrot.slane %v2293_v54, 1  ;;  %v2300_v53 = vmax.f32 %v2298_v41, %v2299_v38  ;;  %v2307_v52 = vmax.f32 %v2305_v17, %v2306_v11  ;;  %v2313_v3 = vrot.slane %v2312_v33, 2 }
 0x28b   :  { %v2334_v37 = vrot.slane %v2333_v31, 2  ;;  %v2327_v55 = vrot.slane %v2326_v43, 2  ;;  %v2321_v14 = vmax.f32 %v2319_v57, %v2320_v4  ;;  %v2340_v9 = vmax.f32 %v2338_v32, %v2339_v21  ;;  %v3489_v21 = vld [vmem:[#allocation2 + $0x1c] sm:$0x1] }
 0x28c   :  { %v2295_v26 = vmax.f32 %v2293_v54, %v2294_v5  ;;  %v2301_v7 = vrot.slane %v2300_v53, 1  ;;  %v2308_v10 = vrot.slane %v2307_v52, 1  ;;  %v2314_v48 = vmax.f32 %v2312_v33, %v2313_v3  ;;  %v19599_v5 = vld [vmem:[#allocation2 + $0x1c] sm:$0x1] }
 0x28d   :  { %v2335_v25 = vmax.f32 %v2333_v31, %v2334_v37  ;;  %v2328_v49 = vmax.f32 %v2326_v43, %v2327_v55  ;;  %v2322_v40 = vrot.slane %v2321_v14, 1  ;;  %v2341_v41 = vrot.slane %v2340_v9, 2  ;;  %v4156_v43 = vld [vmem:[#allocation2 + $0x1c] sm:$0x1]  ;;  %v3488_v55 = vld [vmem:[#allocation2 + $0x18] sm:$0xe] }
 0x28e   :  { %v2302_v22 = vmax.f32 %v2300_v53, %v2301_v7  ;;  %v2309_v51 = vmax.f32 %v2307_v52, %v2308_v10  ;;  %v16553_v16 = vpack.c.bf16 %v2295_v26, %v2295_v26  ;;  %v2315_v46 = vrot.slane %v2314_v48, 1  ;;  %v19601_v53 = vld [vmem:[#allocation2 + $0x1c] sm:$0x1] }
 0x28f   :  { %v2336_v1 = vrot.slane %v2335_v25, 1  ;;  %v2329_v44 = vrot.slane %v2328_v49, 1  ;;  %v2323_v38 = vmax.f32 %v2321_v14, %v2322_v40  ;;  %v2342_v24 = vmax.f32 %v2340_v9, %v2341_v41  ;;  %21977 = vst [vmem:[#allocation40_spill] sm:$0xff] %v19601_v53  ;;  %v17336_v14 = vld [vmem:[#allocation13 + $0xf8] sm:$0xff]   ;;  %v4153_v40 = vld [vmem:[#allocation2 + $0x18] sm:$0xf] }
 0x290   :  { %v16554_v17 = vpack.c.bf16 %v2302_v22, %v2302_v22  ;;  %v16555_v18 = vpack.c.bf16 %v2309_v51, %v2309_v51  ;;  %v4017_v42 = vunpack.c.l.b16 %v16553_v16  ;;  %v2316_v54 = vmax.f32 %v2314_v48, %v2315_v46  ;;  %v17163_v48 = vpop.f32.mrf.mxu0  ;;  %v3491_v46 = vld [vmem:[#allocation2 + $0x24] sm:$0x1]  ;;  %16735 = vmatprep.subr.bf16.mxu1 %v17336_v14 }
 0x291   :  { %v2337_v11 = vmax.f32 %v2335_v25, %v2336_v1  ;;  %v2330_v32 = vmax.f32 %v2328_v49, %v2329_v44  ;;  %v2343_v3 = vrot.slane %v2342_v24, 1  ;;  %v16557_v4 = vpack.c.bf16 %v2323_v38, %v2323_v38  ;;  %v19610_v25 = vld [vmem:[#allocation2 + $0x1c] sm:$0x1]  ;;  %v3490_v49 = vld [vmem:[#allocation2 + $0x20] sm:$0xe] }
 0x292   :  { %v4018_v33 = vunpack.c.l.b16 %v16554_v17  ;;  %v4019_v57 = vunpack.c.l.b16 %v16555_v18  ;;  %v4076_v31 = vsel %vm2943_vm7, %v4017_v42, %v19562_v23  ;;  %v16599_v52 = vpack.c.bf16 %v2316_v54, %v2316_v54  ;;  %v19624_v42 = vld [vmem:[#allocation2 + $0x18] sm:$0xe] }
 0x293   :  { %v16559_v37 = vpack.c.bf16 %v2337_v11, %v2337_v11  ;;  %v16558_v7 = vpack.c.bf16 %v2330_v32, %v2330_v32  ;;  %v3392_v10 = vrot.slane %v3391_v61, 4  ;;  %v3406_v23 = vrot.slane %v3405_v6, 4 }
 0x294   :  { %v4077_v26 = vsel %vm2945_vm8, %v4018_v33, %v4076_v31  ;;  %v4157_v22 = vsel %vm19063_vm12, %v16599_v52, %v4156_v43  ;;  %v2344_v51 = vmax.f32 %v2342_v24, %v2343_v3  ;;  %v4021_v16 = vunpack.c.l.b16 %v16557_v4  ;;  %v3102_v24 = vld [vmem:[#allocation2 + $0x20] sm:$0xf]  ;;  %v3103_v31 = vld [vmem:[#allocation2 + $0x24] sm:$0x1]  ;;  %v3104_v4 = vld [vmem:[#allocation2 + $0x28] sm:$0xf] }
 0x295   :  { %v4078_v9 = vsel %vm2947_vm9, %v4019_v57, %v4077_v26  ;;  %v4022_v61 = vunpack.c.l.b16 %v16558_v7  ;;  %v4023_v15 = vunpack.c.l.b16 %v16559_v37  ;;  %v3397_v6 = vsel %vm19405_vm0, %v3392_v10, %v19573_v20  ;;  %4158 = vst [vmem:[#allocation2 + $0x1c] sm:$0x1] %v4157_v22  ;;  %v773_v20 = vpop.f32.mrf.mxu0  ;;  %v3105_v26 = vld [vmem:[#allocation2 + $0x2c] sm:$0x1] }
 0x296   :  { %v4113_v2 = vpack.c.b16 %v4078_v9, %v4078_v9  ;;  %v16560_v1 = vpack.c.bf16 %v2344_v51, %v2344_v51  ;;  %v3410_v41 = vrot.slane %v3408_v28, 5  ;;  %3478 = vst [vmem:[#allocation3 + $0x58] sm:$0xf] %v3397_v6  ;;  %v15323_v17 = vrot.slane %v3488_v55, 9 }
 0x297   :  { %v3526_v18 = vrot.slane %v3489_v21, 5  ;;  %v4079_v54 = vsel %vm2937_vm2, %v4022_v61, %v4021_v16  ;;  %v15324_v38 = vrot.slane %v3490_v49, 9  ;;  %v3530_v11 = vrot.slane %v3491_v46, 5  ;;  %v17164_v22 = vpop.f32.mrf.mxu0 }
 0x298   :  { %v4154_v44 = vsel %vm19083_vm13, %v4113_v2, %v4153_v40  ;;  %v4024_v33 = vunpack.c.l.b16 %v16560_v1  ;;  %v4080_v57 = vsel %vm2939_vm5, %v4023_v15, %v4079_v54  ;;  %v3411_v58 = vsel %vm19405_vm0, %v3406_v23, %v3410_v41 }
 0x299   :  { %v3527_v28 = vsel %vm19476_vm15, %v15323_v17, %v3526_v18  ;;  %4155 = vst [vmem:[#allocation2 + $0x18] sm:$0xf] %v4154_v44  ;;  %3479 = vst [vmem:[#allocation3 + $0x7c] sm:$0xf] %v3411_v58  ;;  %v3531_v32 = vsel %vm19476_vm15, %v15324_v38, %v3530_v11  ;;  %v769_v52 = vadd.f32 %v19521_v47, %v19595_v35  ;;  %v3170_v7 = vshrl.u32 %v3102_v24, 16 }
 0x29a   :  { %3558 = vst [vmem:[#allocation3 + $0x5c] sm:$0xf] %v3527_v28  ;;  %v761_v43 = vadd.f32 %v19521_v47, %v760_v45  ;;  %v782_v3 = vadd.f32 %v19521_v47, %v17163_v48  ;;  %3559 = vst [vmem:[#allocation3 + $0x80] sm:$0xf] %v3531_v32  ;;  %v19641_v37 = vsel %vm2941_vm6, %v4024_v33, %v4080_v57  ;;  %v3173_v10 = vshll.u32 %v3102_v24, 16  ;;  %v17339_v48 = vld [vmem:[#allocation13 + $0xb8] sm:$0xff]  }
 0x29b   :  { %v774_v21 = vadd.f32 %v19521_v47, %v773_v20  ;;  %v883_v23 = vmax.f32 %v769_v52, 0.0  ;;  %v3179_v9 = vshll.u32 %v3103_v31, 16  ;;  %v3172_v51 = vrot.slane %v3170_v7, 4  ;;  %16736 = vmatpush3.bf16.msra.mxu1 %v17339_v48 }
 0x29c   :  { %v881_v55 = vmax.f32 %v761_v43, 0.0  ;;  %v886_v14 = vmax.f32 %v782_v3, 0.0  ;;  %v3175_v45 = vrot.slane %v3173_v10, 5  ;;  %v3184_v16 = vshrl.u32 %v3104_v4, 16 }
 0x29d   :  { %v884_v35 = vmax.f32 %v774_v21, 0.0  ;;  %v19644_v46 = vrot.slane %v3179_v9, 5  ;;  %v3187_v2 = vshll.u32 %v3104_v4, 16  ;;  %v3193_v61 = vshll.u32 %v3105_v26, 16  ;;  %v4190_v4 = vld [vmem:[#allocation2 + $0x8] sm:$0xf] }
 0x29e   :  { %v1788_v49 = vmax.f32 %v881_v55, %v883_v23  ;;  %v3176_v6 = vor.u32 %v3175_v45, %v3172_v51  ;;  %v19646_v40 = vrot.slane %v3184_v16, 4  ;;  %v19649_v1 = vadd.f32 %v19521_v47, %v17164_v22  ;;  %4198 = vst [vmem:[#allocation3 + $0x144] sm:$0xf] %v4190_v4 }
 0x29f   :  { %v1789_v15 = vmax.f32 %v884_v35, %v886_v14  ;;  %v19652_v18 = vrot.slane %v3187_v2, 5  ;;  %v19654_v44 = vrot.slane %v3193_v61, 5 }
 0x2a0   :  { %v1932_v41 = vcombine.high %v1788_v49, %v1788_v49  ;;  %v1939_v17 = vrot.slane %v1788_v49, %v19023_v56  ;;  %v19657_v11 = vrot.slane %v3176_v6, 4  ;;  %v887_v20 = vmax.f32 %v19649_v1, 0.0  ;;  %v17326_v33 = vld [vmem:[#allocation3 + $0x58] ss:$36 sps:$4 sm:$0xff]   ;;  %v17353_v1 = vld [vmem:[#allocation13 + $0xe0] sm:$0xff]  }
 0x2a1   :  { %v1949_v54 = vcombine.high %v1789_v15, %v1789_v15  ;;  %v1956_v38 = vrot.slane %v1789_v15, %v19023_v56  ;;  %v17324_v24 = vld [vmem:[#allocation3 + $0x5c] ss:$36 sps:$4 sm:$0xff]   ;;  %v3190_v31 = vor.u32 %v19652_v18, %v19646_v40  ;;  %v4159_v18 = vld [vmem:[#allocation2 + $0x20] sm:$0xf] }
 0x2a2   :  { %v1946_v57 = vrot.slane %v1932_v41, %v19023_v56  ;;  %v1947_v58 = vcombine.high %v1939_v17, %v1939_v17  ;;  %v2345_v28 = vsel %vm1268_vm1, %v1939_v17, -inf  ;;  %6174 = vmatprep.mubr.bf16.mxu0 %v17324_v24 }
 0x2a3   :  { %v2346_v32 = vrot.slane %v2345_v28, 4  ;;  %v1963_v52 = vrot.slane %v1949_v54, %v19023_v56  ;;  %v1964_v43 = vcombine.high %v1956_v38, %v1956_v38  ;;  %v2373_v3 = vsel %vm1268_vm1, %v1956_v38, -inf  ;;  %6175 = vmatmul.mubr.bf16.gmra.mxu0 %v17326_v33 }
 0x2a4   :  { %v1948_v21 = vcombine.high %v1946_v57, %v1946_v57  ;;  %v2352_v26 = vsel %vm1268_vm1, %v1947_v58, -inf  ;;  %v2359_v7 = vsel %vm1268_vm1, %v1946_v57, -inf  ;;  %v2374_v10 = vrot.slane %v2373_v3, 4 }
 0x2a5   :  { %v2347_v23 = vmax.f32 %v2345_v28, %v2346_v32  ;;  %v2353_v55 = vrot.slane %v2352_v26, 4  ;;  %v2360_v14 = vrot.slane %v2359_v7, 4  ;;  %v1965_v9 = vcombine.high %v1963_v52, %v1963_v52 }
 0x2a6   :  { %v2366_v22 = vsel %vm1268_vm1, %v1948_v21, -inf  ;;  %v2375_v35 = vmax.f32 %v2373_v3, %v2374_v10  ;;  %v2380_v51 = vsel %vm1268_vm1, %v1964_v43, -inf  ;;  %v2387_v45 = vsel %vm1268_vm1, %v1963_v52, -inf  ;;  %v776_v10 = vpop.f32.mrf.mxu0 }
 0x2a7   :  { %v2348_v16 = vrot.slane %v2347_v23, 2  ;;  %v2354_v48 = vmax.f32 %v2352_v26, %v2353_v55  ;;  %v2361_v49 = vmax.f32 %v2359_v7, %v2360_v14  ;;  %v2367_v2 = vrot.slane %v2366_v22, 4  ;;  %v4189_v55 = vld [vmem:[#allocation2] sm:$0xf] }
 0x2a8   :  { %v2376_v61 = vrot.slane %v2375_v35, 2  ;;  %v2381_v15 = vrot.slane %v2380_v51, 4  ;;  %v2388_v6 = vrot.slane %v2387_v45, 4  ;;  %v2394_v41 = vsel %vm1268_vm1, %v1965_v9, -inf  ;;  %4197 = vst [vmem:[#allocation3 + $0x120] sm:$0xf] %v4189_v55 }
 0x2a9   :  { %v2349_v17 = vmax.f32 %v2347_v23, %v2348_v16  ;;  %v2355_v54 = vrot.slane %v2354_v48, 2  ;;  %v2362_v38 = vrot.slane %v2361_v49, 2  ;;  %v2368_v24 = vmax.f32 %v2366_v22, %v2367_v2  ;;  %v4191_v2 = vld [vmem:[#allocation2 + $0x10] sm:$0xf]  ;;  %v17343_v55 = vld [vmem:[#allocation13 + $0xf0] sm:$0xff]  }
 0x2aa   :  { %v2377_v33 = vmax.f32 %v2375_v35, %v2376_v61  ;;  %v2382_v57 = vmax.f32 %v2380_v51, %v2381_v15  ;;  %v2389_v58 = vmax.f32 %v2387_v45, %v2388_v6  ;;  %v2395_v28 = vrot.slane %v2394_v41, 4  ;;  %4199 = vst [vmem:[#allocation3 + $0x168] sm:$0xf] %v4191_v2  ;;  %v19682_v2 = vld [vmem:[#allocation2 + $0x24] sm:$0x1]  ;;  %16737 = vmatprep.subr.bf16.mxu1 %v17343_v55 }
 0x2ab   :  { %v2350_v32 = vrot.slane %v2349_v17, 1  ;;  %v2356_v43 = vmax.f32 %v2354_v48, %v2355_v54  ;;  %v2363_v52 = vmax.f32 %v2361_v49, %v2362_v38  ;;  %v2369_v3 = vrot.slane %v2368_v24, 2 }
 0x2ac   :  { %v2378_v4 = vrot.slane %v2377_v33, 1  ;;  %v2383_v21 = vrot.slane %v2382_v57, 2  ;;  %v2390_v26 = vrot.slane %v2389_v58, 2  ;;  %v2396_v7 = vmax.f32 %v2394_v41, %v2395_v28  ;;  %v17167_v28 = vpop.f32.mrf.mxu0 }
 0x2ad   :  { %v2351_v14 = vmax.f32 %v2349_v17, %v2350_v32  ;;  %v2357_v9 = vrot.slane %v2356_v43, 1  ;;  %v2364_v23 = vrot.slane %v2363_v52, 1  ;;  %v2370_v16 = vmax.f32 %v2368_v24, %v2369_v3 }
 0x2ae   :  { %v2379_v22 = vmax.f32 %v2377_v33, %v2378_v4  ;;  %v2384_v35 = vmax.f32 %v2382_v57, %v2383_v21  ;;  %v2391_v51 = vmax.f32 %v2389_v58, %v2390_v26  ;;  %v2397_v45 = vrot.slane %v2396_v7, 2  ;;  %v19672_v4 = vld [vmem:[#allocation2 + $0x24] sm:$0x1] }
 0x2af   :  { %v2358_v61 = vmax.f32 %v2356_v43, %v2357_v9  ;;  %v2365_v48 = vmax.f32 %v2363_v52, %v2364_v23  ;;  %v2371_v49 = vrot.slane %v2370_v16, 1  ;;  %v16561_v15 = vpack.c.bf16 %v2351_v14, %v2351_v14  ;;  %v17346_v14 = vld [vmem:[#allocation13 + $0xe8] sm:$0xff]  }
 0x2b0   :  { %v2385_v6 = vrot.slane %v2384_v35, 1  ;;  %v2392_v54 = vrot.slane %v2391_v51, 1  ;;  %v2398_v41 = vmax.f32 %v2396_v7, %v2397_v45  ;;  %v16565_v38 = vpack.c.bf16 %v2379_v22, %v2379_v22  ;;  %v17345_v7 = vld [vmem:[#allocation13 + $0xb0] sm:$0xff]   ;;  %v19676_v9 = vld [vmem:[#allocation2 + $0x24] sm:$0x1]  ;;  %v789_v45 = vpop.f32.mrf.mxu0 }
 0x2b1   :  { %v2372_v17 = vmax.f32 %v2370_v16, %v2371_v49  ;;  %v16562_v32 = vpack.c.bf16 %v2358_v61, %v2358_v61  ;;  %v16563_v29 = vpack.c.bf16 %v2365_v48, %v2365_v48  ;;  %v4025_v24 = vunpack.c.l.b16 %v16561_v15  ;;  %21979 = vst [vmem:[#allocation42_spill] sm:$0xff] %v19676_v9  ;;  %v4162_v23 = vld [vmem:[#allocation2 + $0x24] sm:$0x1]  ;;  %v3348_v15 = vld [vmem:[#allocation2 + $0x28] sm:$0xf]  ;;  %16738 = vmatpush3.bf16.msra.mxu1 %v17345_v7 }
 0x2b2   :  { %v2386_v3 = vmax.f32 %v2384_v35, %v2385_v6  ;;  %v2393_v33 = vmax.f32 %v2391_v51, %v2392_v54  ;;  %v2399_v57 = vrot.slane %v2398_v41, 1  ;;  %v4029_v58 = vunpack.c.l.b16 %v16565_v38  ;;  %v19692_v38 = vld [vmem:[#allocation2 + $0x20] sm:$0xe]  ;;  %16739 = vmatprep.subr.bf16.mxu1 %v17346_v14 }
 0x2b3   :  { %v4026_v43 = vunpack.c.l.b16 %v16562_v32  ;;  %v4027_v52 = vunpack.c.l.b16 %v16563_v29  ;;  %v4082_v21 = vsel %vm2943_vm7, %v4025_v24, %v19641_v37  ;;  %v16600_v26 = vpack.c.bf16 %v2372_v17, %v2372_v17  ;;  %v4192_v29 = vld [vmem:[#allocation2 + $0x18] sm:$0xf]  ;;  %v19694_v17 = vld [vmem:[#allocation2 + $0x20] sm:$0xf] }
 0x2b4   :  { %v2400_v16 = vmax.f32 %v2398_v41, %v2399_v57  ;;  %v16566_v22 = vpack.c.bf16 %v2386_v3, %v2386_v3  ;;  %v16567_v35 = vpack.c.bf16 %v2393_v33, %v2393_v33  ;;  %v3182_v51 = vsel %vm19405_vm0, %v19657_v11, %v19644_v46  ;;  %4200 = vst [vmem:[#allocation3 + $0x18c] sm:$0xf] %v4192_v29  ;;  %v17349_v41 = vld [vmem:[#allocation13 + $0xa8] sm:$0xff]   ;;  %v3349_v57 = vld [vmem:[#allocation2 + $0x2c] sm:$0x1] }
 0x2b5   :  { %v4083_v37 = vsel %vm2945_vm8, %v4026_v43, %v4082_v21  ;;  %v4163_v61 = vsel %vm19063_vm12, %v16600_v26, %v4162_v23  ;;  %v3191_v48 = vrot.slane %v3190_v31, 4  ;;  %3237 = vst [vmem:[#allocation3 + $0x94] sm:$0xf] %v3182_v51  ;;  %v777_v49 = vadd.f32 %v19521_v47, %v776_v10  ;;  %21980 = vst [vmem:[#allocation43_spill] sm:$0xff] %v19694_v17  ;;  %v19702_v43 = vld [vmem:[#allocation2 + $0x30] sm:$0xf]  ;;  %v17168_v21 = vpop.f32.mrf.mxu0 }
 0x2b6   :  { %v4084_v46 = vsel %vm2947_vm9, %v4027_v52, %v4083_v37  ;;  %v16568_v11 = vpack.c.bf16 %v2400_v16, %v2400_v16  ;;  %v4030_v6 = vunpack.c.l.b16 %v16566_v22  ;;  %v4031_v54 = vunpack.c.l.b16 %v16567_v35  ;;  %4164 = vst [vmem:[#allocation2 + $0x24] sm:$0x1] %v4163_v61  ;;  %v19704_v26 = vld [vmem:[#allocation2 + $0x20] sm:$0xe]  ;;  %16740 = vmatpush3.bf16.msra.mxu1 %v17349_v41 }
 0x2b7   :  { %v4115_v40 = vpack.c.b16 %v4084_v46, %v4084_v46  ;;  %v3196_v31 = vsel %vm19405_vm0, %v3191_v48, %v19654_v44  ;;  %v885_v10 = vmax.f32 %v777_v49, 0.0  ;;  %v798_v32 = vadd.f32 %v19521_v47, %v17167_v28  ;;  %v792_v49 = vpop.f32.mrf.mxu0  ;;  %v17355_v46 = vld [vmem:[#allocation13 + $0xa0] sm:$0xff]   ;;  %16741 = vmatprep.subr.bf16.mxu1 %v17353_v1 }
 0x2b8   :  { %v4032_v24 = vunpack.c.l.b16 %v16568_v11  ;;  %v4085_v3 = vsel %vm2937_vm2, %v4030_v6, %v4029_v58  ;;  %3238 = vst [vmem:[#allocation3 + $0xb8] sm:$0xf] %v3196_v31  ;;  %v790_v33 = vadd.f32 %v19521_v47, %v789_v45  ;;  %v3413_v52 = vshrl.u32 %v3348_v15, 16  ;;  %v19711_v58 = vld [vmem:[#allocation2 + $0x34] sm:$0x1] }
 0x2b9   :  { %v4160_v44 = vsel %vm19083_vm13, %v4115_v40, %v4159_v18  ;;  %v4086_v55 = vsel %vm2939_vm5, %v4031_v54, %v4085_v3  ;;  %v1790_v28 = vmax.f32 %v885_v10, %v887_v20  ;;  %v890_v7 = vmax.f32 %v798_v32, 0.0  ;;  %v17356_v11 = vld [vmem:[#allocation13 + $0xd8] sm:$0xff]  }
 0x2ba   :  { %4161 = vst [vmem:[#allocation2 + $0x20] sm:$0xf] %v4160_v44  ;;  %v19714_v14 = vsel %vm2941_vm6, %v4032_v24, %v4086_v55  ;;  %v888_v23 = vmax.f32 %v790_v33, 0.0  ;;  %v19716_v16 = vrot.slane %v3413_v52, 4  ;;  %v3416_v22 = vshll.u32 %v3348_v15, 16  ;;  %16742 = vmatpush3.bf16.msra.mxu1 %v17355_v46 }
 0x2bb   :  { %v1966_v35 = vcombine.high %v1790_v28, %v1790_v28  ;;  %v1973_v51 = vrot.slane %v1790_v28, %v19023_v56  ;;  %v3422_v45 = vshll.u32 %v3349_v57, 16  ;;  %v17329_v24 = vld [vmem:[#allocation3 + $0x90] ss:$36 sps:$4 sm:$0xff]   ;;  %v19733_v57 = vadd.f32 %v19521_v47, %v17168_v21  ;;  %16743 = vmatprep.subr.bf16.mxu1 %v17356_v11 }
 0x2bc   :  { %v1791_v20 = vmax.f32 %v888_v23, %v890_v7  ;;  %v19720_v37 = vrot.slane %v3416_v22, 5  ;;  %v19736_v52 = vadd.f32 %v19521_v47, %v792_v49 }
 0x2bd   :  { %v1980_v15 = vrot.slane %v1966_v35, %v19023_v56  ;;  %v1981_v6 = vcombine.high %v1973_v51, %v1973_v51  ;;  %v2401_v54 = vsel %vm1268_vm1, %v1973_v51, -inf  ;;  %v19726_v41 = vrot.slane %v3422_v45, 5 }
 0x2be   :  { %v2402_v40 = vrot.slane %v2401_v54, 4  ;;  %v1983_v18 = vcombine.high %v1791_v20, %v1791_v20  ;;  %v1990_v31 = vrot.slane %v1791_v20, %v19023_v56  ;;  %v17359_v20 = vld [vmem:[#allocation13 + $0x98] sm:$0xff]  }
 0x2bf   :  { %v17327_v32 = vld [vmem:[#allocation3 + $0x94] ss:$36 sps:$4 sm:$0xff]   ;;  %v1982_v3 = vcombine.high %v1980_v15, %v1980_v15  ;;  %v2408_v33 = vsel %vm1268_vm1, %v1981_v6, -inf  ;;  %v2415_v28 = vsel %vm1268_vm1, %v1980_v15, -inf  ;;  %16744 = vmatpush3.bf16.msra.mxu1 %v17359_v20 }
 0x2c0   :  { %v2403_v44 = vmax.f32 %v2401_v54, %v2402_v40  ;;  %v2409_v55 = vrot.slane %v2408_v33, 4  ;;  %v1997_v7 = vrot.slane %v1983_v18, %v19023_v56  ;;  %5988 = vmatprep.mubr.bf16.mxu1 %v17327_v32  ;;  %v2416_v23 = vrot.slane %v2415_v28, 4 }
 0x2c1   :  { %v2422_v22 = vsel %vm1268_vm1, %v1982_v3, -inf  ;;  %v1998_v35 = vcombine.high %v1990_v31, %v1990_v31  ;;  %v2429_v51 = vsel %vm1268_vm1, %v1990_v31, -inf  ;;  %5989 = vmatmul.mubr.bf16.gmra.mxu1 %v17329_v24  ;;  %v4193_v6 = vld [vmem:[#allocation2 + $0x20] sm:$0xf] }
 0x2c2   :  { %v2404_v21 = vrot.slane %v2403_v44, 2  ;;  %v2410_v45 = vmax.f32 %v2408_v33, %v2409_v55  ;;  %v2423_v1 = vrot.slane %v2422_v22, 4  ;;  %v1999_v47 = vcombine.high %v1997_v7, %v1997_v7  ;;  %4201 = vst [vmem:[#allocation3 + $0x1b0] sm:$0xf] %v4193_v6 }
 0x2c3   :  { %v2417_v49 = vmax.f32 %v2415_v28, %v2416_v23  ;;  %v2430_v46 = vrot.slane %v2429_v51, 4  ;;  %v2436_v11 = vsel %vm1268_vm1, %v1998_v35, -inf  ;;  %v2443_v15 = vsel %vm1268_vm1, %v1997_v7, -inf }
 0x2c4   :  { %v2405_v54 = vmax.f32 %v2403_v44, %v2404_v21  ;;  %v2411_v40 = vrot.slane %v2410_v45, 2  ;;  %v2424_v18 = vmax.f32 %v2422_v22, %v2423_v1  ;;  %v2437_v32 = vrot.slane %v2436_v11, 4 }
 0x2c5   :  { %v2418_v31 = vrot.slane %v2417_v49, 2  ;;  %v2431_v24 = vmax.f32 %v2429_v51, %v2430_v46  ;;  %v2444_v3 = vrot.slane %v2443_v15, 4  ;;  %v2450_v33 = vsel %vm1268_vm1, %v1999_v47, -inf  ;;  %v17363_v51 = vld [vmem:[#allocation13 + $0xd0] sm:$0xff]  }
 0x2c6   :  { %v2406_v55 = vrot.slane %v2405_v54, 1  ;;  %v2412_v48 = vmax.f32 %v2410_v45, %v2411_v40  ;;  %v2425_v28 = vrot.slane %v2424_v18, 2  ;;  %v2438_v23 = vmax.f32 %v2436_v11, %v2437_v32  ;;  %v17365_v45 = vld [vmem:[#allocation13 + $0x90] sm:$0xff]   ;;  %v17366_v40 = vld [vmem:[#allocation13 + $0x238] sm:$0xff]   ;;  %16745 = vmatprep.subr.bf16.mxu1 %v17363_v51 }
 0x2c7   :  { %v2419_v61 = vmax.f32 %v2417_v49, %v2418_v31  ;;  %v2432_v35 = vrot.slane %v2431_v24, 2  ;;  %v2445_v29 = vmax.f32 %v2443_v15, %v2444_v3  ;;  %v2451_v7 = vrot.slane %v2450_v33, 4  ;;  %v17367_v11 = vld [vmem:[#allocation13 + $0x230] sm:$0xff]   ;;  %16746 = vmatpush3.bf16.msra.mxu1 %v17365_v45  ;;  %17177 = vmatprep.subr.bf16.mxu0 %v17366_v40 }
 0x2c8   :  { %v2407_v10 = vmax.f32 %v2405_v54, %v2406_v55  ;;  %v2413_v44 = vrot.slane %v2412_v48, 1  ;;  %v2426_v21 = vmax.f32 %v2424_v18, %v2425_v28  ;;  %v2439_v22 = vrot.slane %v2438_v23, 2  ;;  %v17368_v54 = vld [vmem:[#allocation13 + $0xc8] sm:$0xff]   ;;  %17178 = vmatpush3.bf16.msra.mxu0 %v17366_v40  ;;  %v19751_v51 = vld [vmem:[#allocation2 + $0x2c] sm:$0x1] }
 0x2c9   :  { %v2420_v1 = vrot.slane %v2419_v61, 1  ;;  %v2433_v20 = vmax.f32 %v2431_v24, %v2432_v35  ;;  %v2446_v6 = vrot.slane %v2445_v29, 2  ;;  %v2452_v50 = vmax.f32 %v2450_v33, %v2451_v7  ;;  %16747 = vmatprep.subr.bf16.mxu1 %v17368_v54  ;;  %v19745_v35 = vld [vmem:[#allocation2 + $0x2c] sm:$0x1]  ;;  %17179 = vmatprep.subr.bf16.mxu0 %v17367_v11 }
 0x2ca   :  { %v2414_v46 = vmax.f32 %v2412_v48, %v2413_v44  ;;  %v2427_v9 = vrot.slane %v2426_v21, 1  ;;  %v16569_v47 = vpack.c.bf16 %v2407_v10, %v2407_v10  ;;  %v2440_v53 = vmax.f32 %v2438_v23, %v2439_v22  ;;  %v17371_v23 = vld [vmem:[#allocation13 + $0x88] sm:$0xff]   ;;  %21981 = vst [vmem:[#allocation44_spill] sm:$0xff] %v19745_v35  ;;  %v3493_v40 = vld [vmem:[#allocation2 + $0x2c] sm:$0x1] }
 0x2cb   :  { %v2421_v49 = vmax.f32 %v2419_v61, %v2420_v1  ;;  %v2434_v32 = vrot.slane %v2433_v20, 1  ;;  %v2447_v15 = vmax.f32 %v2445_v29, %v2446_v6  ;;  %v2453_v31 = vrot.slane %v2452_v50, 2  ;;  %v17373_v44 = vld [vmem:[#allocation13 + $0x228] sm:$0xff]   ;;  %v4168_v1 = vld [vmem:[#allocation2 + $0x2c] sm:$0x1]  ;;  %16748 = vmatpush3.bf16.msra.mxu1 %v17371_v23 }
 0x2cc   :  { %v2428_v18 = vmax.f32 %v2426_v21, %v2427_v9  ;;  %v16570_v3 = vpack.c.bf16 %v2414_v46, %v2414_v46  ;;  %v4033_v55 = vunpack.c.l.b16 %v16569_v47  ;;  %v2441_v24 = vrot.slane %v2440_v53, 1  ;;  %v19749_v21 = vld [vmem:[#allocation2 + $0x2c] sm:$0x1]  ;;  %17180 = vmatpush3.bf16.msra.mxu0 %v17367_v11  ;;  %v4165_v23 = vld [vmem:[#allocation2 + $0x28] sm:$0xf] }
 0x2cd   :  { %v16571_v33 = vpack.c.bf16 %v2421_v49, %v2421_v49  ;;  %v2435_v48 = vmax.f32 %v2433_v20, %v2434_v32  ;;  %v2448_v28 = vrot.slane %v2447_v15, 1  ;;  %v2454_v10 = vmax.f32 %v2452_v50, %v2453_v31  ;;  %21982 = vst [vmem:[#allocation45_spill] sm:$0xff] %v19749_v21  ;;  %v17171_v49 = vpop.f32.mrf.mxu0  ;;  %17181 = vmatprep.subr.bf16.mxu0 %v17373_v44 }
 0x2ce   :  { %v4034_v61 = vunpack.c.l.b16 %v16570_v3  ;;  %v4088_v29 = vsel %vm2943_vm7, %v4033_v55, %v19714_v14  ;;  %v16601_v7 = vpack.c.bf16 %v2428_v18, %v2428_v18  ;;  %v2442_v9 = vmax.f32 %v2440_v53, %v2441_v24  ;;  %v3492_v18 = vld [vmem:[#allocation2 + $0x28] sm:$0xe] }
 0x2cf   :  { %v4035_v22 = vunpack.c.l.b16 %v16571_v33  ;;  %v2449_v20 = vmax.f32 %v2447_v15, %v2448_v28  ;;  %v2455_v6 = vrot.slane %v2454_v10, 1  ;;  %v16573_v50 = vpack.c.bf16 %v2435_v48, %v2435_v48  ;;  %v19760_v3 = vld [vmem:[#allocation2 + $0x28] sm:$0xe]  ;;  %v3494_v28 = vld [vmem:[#allocation2 + $0x30] sm:$0xe] }
 0x2d0   :  { %v4089_v46 = vsel %vm2945_vm8, %v4034_v61, %v4088_v29  ;;  %v4169_v47 = vsel %vm19063_vm12, %v16601_v7, %v4168_v1  ;;  %v16574_v45 = vpack.c.bf16 %v2442_v9, %v2442_v9  ;;  %v21983_v53 = vor.u32 %v19720_v37, %v19716_v16  ;;  %21984 = vst [vmem:[#allocation46_spill] sm:$0xff] %v19760_v3  ;;  %v19762_v55 = vld [vmem:[#allocation2 + $0x28] sm:$0xf]  ;;  %v3495_v1 = vld [vmem:[#allocation2 + $0x34] sm:$0x1] }
 0x2d1   :  { %v4090_v32 = vsel %vm2947_vm9, %v4035_v22, %v4089_v46  ;;  %v2456_v15 = vmax.f32 %v2454_v10, %v2455_v6  ;;  %v16575_v31 = vpack.c.bf16 %v2449_v20, %v2449_v20  ;;  %v4037_v54 = vunpack.c.l.b16 %v16573_v50  ;;  %4170 = vst [vmem:[#allocation2 + $0x2c] sm:$0x1] %v4169_v47  ;;  %21985 = vst [vmem:[#allocation47_spill] sm:$0xff] %v19762_v55  ;;  %v17374_v10 = vld [vmem:[#allocation13 + $0x220] sm:$0xff]   ;;  %v19773_v20 = vld [vmem:[#allocation2 + $0x28] sm:$0xe]  ;;  %v805_v47 = vpop.f32.mrf.mxu0 }
 0x2d2   :  { %v3420_v14 = vrot.slane %v21983_v53, 4  ;;  %v4117_v24 = vpack.c.b16 %v4090_v32, %v4090_v32  ;;  %v4038_v33 = vunpack.c.l.b16 %v16574_v45  ;;  %v21986_v37 = vshrl.u32 %v19702_v43, 16  ;;  %v17377_v45 = vld [vmem:[#allocation13 + $0xc0] sm:$0xff]   ;;  %17182 = vmatpush3.bf16.msra.mxu0 %v17373_v44 }
 0x2d3   :  { %v16576_v61 = vpack.c.bf16 %v2456_v15, %v2456_v15  ;;  %v4039_v29 = vunpack.c.l.b16 %v16575_v31  ;;  %v21987_v11 = vshll.u32 %v19702_v43, 16  ;;  %v21988_v9 = vshll.u32 %v19711_v58, 16  ;;  %v3106_v58 = vld [vmem:[#allocation2 + $0x30] sm:$0xf]  ;;  %v17379_v15 = vld [vmem:[#allocation13 + $0x80] sm:$0xff]   ;;  %17183 = vmatprep.subr.bf16.mxu0 %v17374_v10  ;;  %16749 = vmatprep.subr.bf16.mxu1 %v17377_v45 }
 0x2d4   :  { %v3425_v16 = vsel %vm19405_vm0, %v3420_v14, %v19726_v41  ;;  %v3429_v48 = vrot.slane %v21986_v37, 4  ;;  %v4166_v41 = vsel %vm19083_vm13, %v4117_v24, %v4165_v23  ;;  %v4091_v6 = vsel %vm2937_vm2, %v4038_v33, %v4037_v54  ;;  %16750 = vmatpush3.bf16.msra.mxu1 %v17379_v15  ;;  %v19792_v23 = vld [vmem:[#allocation2 + $0x38] sm:$0xf]  ;;  %v17387_v15 = vld [vmem:[#allocation13 + $0x1f8] sm:$0xff]  }
 0x2d5   :  { %v3432_v7 = vrot.slane %v21987_v11, 5  ;;  %v3438_v22 = vrot.slane %v21988_v9, 5  ;;  %3480 = vst [vmem:[#allocation3 + $0xa0] sm:$0xf] %v3425_v16  ;;  %v15325_v50 = vrot.slane %v3492_v18, 9  ;;  %v3534_v46 = vrot.slane %v3493_v40, 5  ;;  %16863 = vmatprep.subr.bf16.mxu1 %v17387_v15 }
 0x2d6   :  { %v4040_v53 = vunpack.c.l.b16 %v16576_v61  ;;  %v4092_v43 = vsel %vm2939_vm5, %v4039_v29, %v4091_v6  ;;  %v15326_v32 = vrot.slane %v3494_v28, 9  ;;  %4167 = vst [vmem:[#allocation2 + $0x28] sm:$0xf] %v4166_v41  ;;  %v3538_v16 = vrot.slane %v3495_v1, 5  ;;  %v3107_v40 = vld [vmem:[#allocation2 + $0x34] sm:$0x1]  ;;  %17184 = vmatpush3.bf16.msra.mxu0 %v17374_v10 }
 0x2d7   :  { %v3433_v14 = vor.u32 %v3432_v7, %v3429_v48  ;;  %v3535_v31 = vsel %vm19476_vm15, %v15325_v50, %v3534_v46  ;;  %v891_v24 = vmax.f32 %v19733_v57, 0.0  ;;  %v889_v54 = vmax.f32 %v19736_v52, 0.0  ;;  %v17380_v18 = vld [vmem:[#allocation13 + $0x218] sm:$0xff]   ;;  %v17384_v46 = vld [vmem:[#allocation13 + $0x210] sm:$0xff]  }
 0x2d8   :  { %3560 = vst [vmem:[#allocation3 + $0xa4] sm:$0xf] %v3535_v31  ;;  %v19784_v37 = vsel %vm2941_vm6, %v4040_v53, %v4092_v43  ;;  %v19786_v48 = vld [vmem:[#allocation11] ss:$0 sm:$0xff]  ;;  %v3539_v57 = vsel %vm19476_vm15, %v15326_v32, %v3538_v16  ;;  %v3198_v61 = vshrl.u32 %v3106_v58, 16  ;;  %v3201_v29 = vshll.u32 %v3106_v58, 16  ;;  %17185 = vmatprep.subr.bf16.mxu0 %v17380_v18 }
 0x2d9   :  { %v3434_v33 = vrot.slane %v3433_v14, 4  ;;  %v814_v44 = vadd.f32 %v19786_v48, %v17171_v49  ;;  %v806_v28 = vadd.f32 %v19786_v48, %v805_v47  ;;  %v1792_v52 = vmax.f32 %v889_v54, %v891_v24  ;;  %3561 = vst [vmem:[#allocation3 + $0xc8] sm:$0xf] %v3539_v57  ;;  %v17390_v57 = vld [vmem:[#allocation13 + $0x208] sm:$0xff]  }
 0x2da   :  { %v3207_v1 = vshll.u32 %v3107_v40, 16  ;;  %v3200_v6 = vrot.slane %v3198_v61, 4  ;;  %v3203_v50 = vrot.slane %v3201_v29, 5  ;;  %v3212_v53 = vshrl.u32 %v19792_v23, 16  ;;  %17186 = vmatpush3.bf16.msra.mxu0 %v17380_v18 }
 0x2db   :  { %v3439_v11 = vsel %vm19405_vm0, %v3434_v33, %v3438_v22  ;;  %v894_v7 = vmax.f32 %v814_v44, 0.0  ;;  %v892_v9 = vmax.f32 %v806_v28, 0.0  ;;  %v2000_v49 = vcombine.high %v1792_v52, %v1792_v52  ;;  %17187 = vmatprep.subr.bf16.mxu0 %v17384_v46 }
 0x2dc   :  { %3481 = vst [vmem:[#allocation3 + $0xc4] sm:$0xf] %v3439_v11  ;;  %v2007_v41 = vrot.slane %v1792_v52, %v19023_v56  ;;  %v3209_v45 = vrot.slane %v3207_v1, 5  ;;  %v3204_v10 = vor.u32 %v3203_v50, %v3200_v6  ;;  %v19802_v54 = vrot.slane %v3212_v53, 4 }
 0x2dd   :  { %v1793_v47 = vmax.f32 %v892_v9, %v894_v7  ;;  %v2014_v22 = vrot.slane %v2000_v49, %v19023_v56  ;;  %v4194_v58 = vld [vmem:[#allocation2 + $0x28] sm:$0xf] }
 0x2de   :  { %v2015_v14 = vcombine.high %v2007_v41, %v2007_v41  ;;  %v2457_v32 = vsel %vm1268_vm1, %v2007_v41, -inf  ;;  %4202 = vst [vmem:[#allocation3 + $0x1d4] sm:$0xf] %v4194_v58  ;;  %v3205_v28 = vrot.slane %v3204_v10, 4  ;;  %17188 = vmatpush3.bf16.msra.mxu0 %v17384_v46  ;;  %v17394_v58 = vld [vmem:[#allocation13 + $0x200] sm:$0xff]  }
 0x2df   :  { %v2458_v31 = vrot.slane %v2457_v32, 4  ;;  %v2017_v16 = vcombine.high %v1793_v47, %v1793_v47  ;;  %v2024_v24 = vrot.slane %v1793_v47, %v19023_v56  ;;  %v2016_v40 = vcombine.high %v2014_v22, %v2014_v22  ;;  %17189 = vmatprep.subr.bf16.mxu0 %v17390_v57 }
 0x2e0   :  { %v2464_v33 = vsel %vm1268_vm1, %v2015_v14, -inf  ;;  %v2471_v44 = vsel %vm1268_vm1, %v2014_v22, -inf  ;;  %v3210_v18 = vsel %vm19405_vm0, %v3205_v28, %v3209_v45  ;;  %v17330_v49 = vld [vmem:[#allocation3 + $0xa4] ss:$36 sps:$4 sm:$0xff]  }
 0x2e1   :  { %v2459_v52 = vmax.f32 %v2457_v32, %v2458_v31  ;;  %v2465_v61 = vrot.slane %v2464_v33, 4  ;;  %v2472_v29 = vrot.slane %v2471_v44, 4  ;;  %v2031_v11 = vrot.slane %v2017_v16, %v19023_v56  ;;  %3239 = vst [vmem:[#allocation3 + $0xdc] sm:$0xf] %v3210_v18  ;;  %6182 = vmatprep.mubr.bf16.mxu0 %v17330_v49  ;;  %v17172_v49 = vpop.f32.mrf.mxu0 }
 0x2e2   :  { %v2478_v7 = vsel %vm1268_vm1, %v2016_v40, -inf  ;;  %v2032_v9 = vcombine.high %v2024_v24, %v2024_v24  ;;  %v2485_v1 = vsel %vm1268_vm1, %v2024_v24, -inf  ;;  %17190 = vmatpush3.bf16.msra.mxu0 %v17390_v57 }
 0x2e3   :  { %v17332_v41 = vld [vmem:[#allocation3 + $0xa0] ss:$36 sps:$4 sm:$0xff]   ;;  %v2460_v6 = vrot.slane %v2459_v52, 2  ;;  %v2466_v50 = vmax.f32 %v2464_v33, %v2465_v61  ;;  %v2473_v47 = vmax.f32 %v2471_v44, %v2472_v29  ;;  %v2033_v53 = vcombine.high %v2031_v11, %v2031_v11  ;;  %17191 = vmatprep.subr.bf16.mxu0 %v17394_v58 }
 0x2e4   :  { %v2479_v22 = vrot.slane %v2478_v7, 4  ;;  %v2486_v14 = vrot.slane %v2485_v1, 4  ;;  %v2492_v32 = vsel %vm1268_vm1, %v2032_v9, -inf  ;;  %v2499_v10 = vsel %vm1268_vm1, %v2031_v11, -inf  ;;  %6183 = vmatmul.mubr.bf16.gmra.mxu0 %v17332_v41 }
 0x2e5   :  { %v2461_v15 = vmax.f32 %v2459_v52, %v2460_v6  ;;  %v2467_v31 = vrot.slane %v2466_v50, 2  ;;  %v2474_v45 = vrot.slane %v2473_v47, 2  ;;  %v2493_v16 = vrot.slane %v2492_v32, 4 }
 0x2e6   :  { %v2480_v24 = vmax.f32 %v2478_v7, %v2479_v22  ;;  %v2487_v40 = vmax.f32 %v2485_v1, %v2486_v14  ;;  %v2500_v33 = vrot.slane %v2499_v10, 4  ;;  %v2506_v44 = vsel %vm1268_vm1, %v2033_v53, -inf  ;;  %17192 = vmatpush3.bf16.msra.mxu0 %v17394_v58 }
 0x2e7   :  { %v2462_v46 = vrot.slane %v2461_v15, 1  ;;  %v2468_v28 = vmax.f32 %v2466_v50, %v2467_v31  ;;  %v2475_v61 = vmax.f32 %v2473_v47, %v2474_v45  ;;  %v2494_v29 = vmax.f32 %v2492_v32, %v2493_v16  ;;  %v808_v45 = vpop.f32.mrf.mxu0 }
 0x2e8   :  { %v2481_v9 = vrot.slane %v2480_v24, 2  ;;  %v2488_v11 = vrot.slane %v2487_v40, 2  ;;  %v2501_v18 = vmax.f32 %v2499_v10, %v2500_v33  ;;  %v2507_v43 = vrot.slane %v2506_v44, 4 }
 0x2e9   :  { %v2463_v52 = vmax.f32 %v2461_v15, %v2462_v46  ;;  %v2469_v6 = vrot.slane %v2468_v28, 1  ;;  %v2476_v21 = vrot.slane %v2475_v61, 1  ;;  %v2495_v41 = vrot.slane %v2494_v29, 2 }
 0x2ea   :  { %v2482_v7 = vmax.f32 %v2480_v24, %v2481_v9  ;;  %v2489_v1 = vmax.f32 %v2487_v40, %v2488_v11  ;;  %v2502_v22 = vrot.slane %v2501_v18, 2  ;;  %v2508_v14 = vmax.f32 %v2506_v44, %v2507_v43  ;;  %v3109_v9 = vld [vmem:[#allocation2 + $0x3c] sm:$0x1] }
 0x2eb   :  { %v2470_v53 = vmax.f32 %v2468_v28, %v2469_v6  ;;  %v2477_v55 = vmax.f32 %v2475_v61, %v2476_v21  ;;  %v16577_v50 = vpack.c.bf16 %v2463_v52, %v2463_v52  ;;  %v2496_v47 = vmax.f32 %v2494_v29, %v2495_v41  ;;  %v4174_v52 = vld [vmem:[#allocation2 + $0x34] sm:$0x1] }
 0x2ec   :  { %v2483_v57 = vrot.slane %v2482_v7, 1  ;;  %v2490_v32 = vrot.slane %v2489_v1, 1  ;;  %v2503_v31 = vmax.f32 %v2501_v18, %v2502_v22  ;;  %v2509_v10 = vrot.slane %v2508_v14, 2  ;;  %v17175_v18 = vpop.f32.mrf.mxu0  ;;  %v19819_v22 = vld [vmem:[#allocation2 + $0x34] sm:$0x1] }
 0x2ed   :  { %v16578_v16 = vpack.c.bf16 %v2470_v53, %v2470_v53  ;;  %v16579_v33 = vpack.c.bf16 %v2477_v55, %v2477_v55  ;;  %v4041_v15 = vunpack.c.l.b16 %v16577_v50  ;;  %v2497_v46 = vrot.slane %v2496_v47, 1  ;;  %21990 = vst [vmem:[#allocation48_spill] sm:$0xff] %v19819_v22  ;;  %v19823_v53 = vld [vmem:[#allocation2 + $0x34] sm:$0x1] }
 0x2ee   :  { %v2484_v17 = vmax.f32 %v2482_v7, %v2483_v57  ;;  %v2491_v62 = vmax.f32 %v2489_v1, %v2490_v32  ;;  %v2504_v24 = vrot.slane %v2503_v31, 1  ;;  %v2510_v40 = vmax.f32 %v2508_v14, %v2509_v10  ;;  %v19821_v14 = vld [vmem:[#allocation2 + $0x34] sm:$0x1]  ;;  %21992 = vst [vmem:[#allocation50_spill] sm:$0xff] %v19823_v53  ;;  %v19830_v57 = vld [vmem:[#allocation2 + $0x30] sm:$0xf] }
 0x2ef   :  { %v4042_v43 = vunpack.c.l.b16 %v16578_v16  ;;  %v4043_v44 = vunpack.c.l.b16 %v16579_v33  ;;  %v4094_v21 = vsel %vm2943_vm7, %v4041_v15, %v19784_v37  ;;  %v2498_v58 = vmax.f32 %v2496_v47, %v2497_v46  ;;  %21991 = vst [vmem:[#allocation49_spill] sm:$0xff] %v19821_v14  ;;  %v19828_v47 = vld [vmem:[#allocation2 + $0x30] sm:$0xe]  ;;  %21994 = vst [vmem:[#allocation52_spill] sm:$0xff] %v19830_v57  ;;  %v4431_v53 = vld [vmem:[#allocation2 + $0x18] sm:$0xf] }
 0x2f0   :  { %v16602_v28 = vpack.c.bf16 %v2484_v17, %v2484_v17  ;;  %v2505_v61 = vmax.f32 %v2503_v31, %v2504_v24  ;;  %v2511_v29 = vrot.slane %v2510_v40, 1  ;;  %v16581_v11 = vpack.c.bf16 %v2491_v62, %v2491_v62  ;;  %21993 = vst [vmem:[#allocation51_spill] sm:$0xff] %v19828_v47  ;;  %v4171_v16 = vld [vmem:[#allocation2 + $0x30] sm:$0xf]  ;;  %4439 = vst [vmem:[#allocation3 + $0x174] sm:$0xf] %v4431_v53 }
 0x2f1   :  { %v4095_v55 = vsel %vm2945_vm8, %v4042_v43, %v4094_v21  ;;  %v16582_v6 = vpack.c.bf16 %v2498_v58, %v2498_v58  ;;  %v21989_v41 = vshll.u32 %v19792_v23, 16  ;;  %v3221_v1 = vshll.u32 %v3109_v9, 16  ;;  %v821_v9 = vpop.f32.mrf.mxu0  ;;  %v3352_v43 = vld [vmem:[#allocation2 + $0x38] sm:$0xf]  ;;  %v4430_v57 = vld [vmem:[#allocation2 + $0x10] sm:$0xf] }
 0x2f2   :  { %v4096_v17 = vsel %vm2947_vm9, %v4043_v44, %v4095_v55  ;;  %v4175_v62 = vsel %vm19063_vm12, %v16602_v28, %v4174_v52  ;;  %v2512_v37 = vmax.f32 %v2510_v40, %v2511_v29  ;;  %v16583_v50 = vpack.c.bf16 %v2505_v61, %v2505_v61  ;;  %v19834_v40 = vld [vmem:[#allocation2 + $0x30] sm:$0xe]  ;;  %v3354_v55 = vld [vmem:[#allocation2 + $0x40] sm:$0xf]  ;;  %4438 = vst [vmem:[#allocation3 + $0x150] sm:$0xf] %v4430_v57 }
 0x2f3   :  { %v3217_v7 = vrot.slane %v21989_v41, 5  ;;  %v4119_v23 = vpack.c.b16 %v4096_v17, %v4096_v17  ;;  %v4045_v32 = vunpack.c.l.b16 %v16581_v11  ;;  %v4046_v31 = vunpack.c.l.b16 %v16582_v6  ;;  %4176 = vst [vmem:[#allocation2 + $0x34] sm:$0x1] %v4175_v62  ;;  %21995 = vst [vmem:[#allocation53_spill] sm:$0xff] %v19834_v40 }
 0x2f4   :  { %v16584_v33 = vpack.c.bf16 %v2512_v37, %v2512_v37  ;;  %v4047_v15 = vunpack.c.l.b16 %v16583_v50  ;;  %v3223_v46 = vrot.slane %v3221_v1, 5  ;;  %v817_v24 = vadd.f32 %v19786_v48, %v17172_v49 }
 0x2f5   :  { %v3218_v10 = vor.u32 %v3217_v7, %v19802_v54  ;;  %v4172_v44 = vsel %vm19083_vm13, %v4119_v23, %v4171_v16  ;;  %v4097_v21 = vsel %vm2937_vm2, %v4046_v31, %v4045_v32  ;;  %v809_v28 = vadd.f32 %v19786_v48, %v808_v45  ;;  %v3353_v54 = vld [vmem:[#allocation2 + $0x3c] sm:$0x1]  ;;  %v3355_v7 = vld [vmem:[#allocation2 + $0x44] sm:$0x1]  ;;  %v19848_v31 = vld [vmem:[#allocation2 + $0x38] sm:$0xe] }
 0x2f6   :  { %v4048_v61 = vunpack.c.l.b16 %v16584_v33  ;;  %v4098_v29 = vsel %vm2939_vm5, %v4047_v15, %v4097_v21  ;;  %4173 = vst [vmem:[#allocation2 + $0x30] sm:$0xf] %v4172_v44  ;;  %v895_v11 = vmax.f32 %v817_v24, 0.0  ;;  %v830_v49 = vadd.f32 %v19786_v48, %v17175_v18 }
 0x2f7   :  { %v3219_v58 = vrot.slane %v3218_v10, 4  ;;  %v893_v6 = vmax.f32 %v809_v28, 0.0  ;;  %v822_v41 = vadd.f32 %v19786_v48, %v821_v9  ;;  %v3441_v1 = vshrl.u32 %v3352_v43, 16 }
 0x2f8   :  { %v19846_v45 = vsel %vm2941_vm6, %v4048_v61, %v4098_v29  ;;  %v898_v17 = vmax.f32 %v830_v49, 0.0  ;;  %v3444_v62 = vshll.u32 %v3352_v43, 16  ;;  %v3450_v37 = vshll.u32 %v3353_v54, 16 }
 0x2f9   :  { %v3224_v52 = vsel %vm19405_vm0, %v3219_v58, %v3223_v46  ;;  %v1794_v50 = vmax.f32 %v893_v6, %v895_v11  ;;  %v896_v23 = vmax.f32 %v822_v41, 0.0  ;;  %v3443_v32 = vrot.slane %v3441_v1, 4  ;;  %v17176_v41 = vpop.f32.mrf.mxu0 }
 0x2fa   :  { %3240 = vst [vmem:[#allocation3 + $0x100] sm:$0xf] %v3224_v52  ;;  %v3455_v18 = vshrl.u32 %v3354_v55, 16  ;;  %v3446_v10 = vrot.slane %v3444_v62, 5  ;;  %v19850_v16 = vrot.slane %v3450_v37, 5  ;;  %v3458_v33 = vshll.u32 %v3354_v55, 16 }
 0x2fb   :  { %v3464_v15 = vshll.u32 %v3355_v7, 16  ;;  %v2034_v46 = vcombine.high %v1794_v50, %v1794_v50  ;;  %v2041_v24 = vrot.slane %v1794_v50, %v19023_v56  ;;  %v1795_v9 = vmax.f32 %v896_v23, %v898_v17  ;;  %v17335_v17 = vld [vmem:[#allocation3 + $0xd8] ss:$36 sps:$4 sm:$0xff]  }
 0x2fc   :  { %v19853_v44 = vrot.slane %v3455_v18, 4  ;;  %v3447_v21 = vor.u32 %v3446_v10, %v3443_v32  ;;  %v19855_v43 = vrot.slane %v3458_v33, 5  ;;  %v19870_v23 = vadd.f32 %v19786_v48, %v17176_v41 }
 0x2fd   :  { %v19857_v58 = vrot.slane %v3464_v15, 5  ;;  %v2048_v54 = vrot.slane %v2034_v46, %v19023_v56  ;;  %v2049_v61 = vcombine.high %v2041_v24, %v2041_v24  ;;  %v2513_v29 = vsel %vm1268_vm1, %v2041_v24, -inf  ;;  %v4195_v7 = vld [vmem:[#allocation2 + $0x30] sm:$0xf] }
 0x2fe   :  { %v2051_v11 = vcombine.high %v1795_v9, %v1795_v9  ;;  %v2514_v49 = vrot.slane %v2513_v29, 4  ;;  %v2058_v55 = vrot.slane %v1795_v9, %v19023_v56  ;;  %v19863_v52 = vrot.slane %v3447_v21, 4  ;;  %4203 = vst [vmem:[#allocation3 + $0x1f8] sm:$0xf] %v4195_v7 }
 0x2ff   :  { %v2050_v62 = vcombine.high %v2048_v54, %v2048_v54  ;;  %v2520_v37 = vsel %vm1268_vm1, %v2049_v61, -inf  ;;  %v2527_v10 = vsel %vm1268_vm1, %v2048_v54, -inf }
 0x300   :  { %v2065_v50 = vrot.slane %v2051_v11, %v19023_v56  ;;  %v2515_v32 = vmax.f32 %v2513_v29, %v2514_v49  ;;  %v2521_v18 = vrot.slane %v2520_v37, 4  ;;  %v2066_v33 = vcombine.high %v2058_v55, %v2058_v55  ;;  %v4429_v49 = vld [vmem:[#allocation2 + $0x8] sm:$0xf] }
 0x301   :  { %v17333_v1 = vld [vmem:[#allocation3 + $0xdc] ss:$36 sps:$4 sm:$0xff]   ;;  %v2528_v15 = vrot.slane %v2527_v10, 4  ;;  %v2534_v46 = vsel %vm1268_vm1, %v2050_v62, -inf  ;;  %v2541_v9 = vsel %vm1268_vm1, %v2058_v55, -inf }
 0x302   :  { %5996 = vmatprep.mubr.bf16.mxu1 %v17333_v1  ;;  %v2067_v24 = vcombine.high %v2065_v50, %v2065_v50  ;;  %v2516_v21 = vrot.slane %v2515_v32, 2  ;;  %v2522_v61 = vmax.f32 %v2520_v37, %v2521_v18  ;;  %v2535_v11 = vrot.slane %v2534_v46, 4  ;;  %4437 = vst [vmem:[#allocation3 + $0x12c] sm:$0xf] %v4429_v49 }
 0x303   :  { %5997 = vmatmul.mubr.bf16.gmra.mxu1 %v17335_v17  ;;  %v2542_v28 = vrot.slane %v2541_v9, 4  ;;  %v2529_v41 = vmax.f32 %v2527_v10, %v2528_v15  ;;  %v2548_v7 = vsel %vm1268_vm1, %v2066_v33, -inf  ;;  %v2555_v29 = vsel %vm1268_vm1, %v2065_v50, -inf }
 0x304   :  { %v2562_v54 = vsel %vm1268_vm1, %v2067_v24, -inf  ;;  %v2517_v1 = vmax.f32 %v2515_v32, %v2516_v21  ;;  %v2523_v6 = vrot.slane %v2522_v61, 2  ;;  %v2536_v14 = vmax.f32 %v2534_v46, %v2535_v11 }
 0x305   :  { %v2543_v62 = vmax.f32 %v2541_v9, %v2542_v28  ;;  %v2530_v55 = vrot.slane %v2529_v41, 2  ;;  %v2549_v17 = vrot.slane %v2548_v7, 4  ;;  %v2556_v13 = vrot.slane %v2555_v29, 4 }
 0x306   :  { %v2563_v37 = vrot.slane %v2562_v54, 4  ;;  %v2518_v18 = vrot.slane %v2517_v1, 1  ;;  %v2524_v10 = vmax.f32 %v2522_v61, %v2523_v6  ;;  %v2537_v15 = vrot.slane %v2536_v14, 2  ;;  %v4432_v6 = vld [vmem:[#allocation2 + $0x20] sm:$0xf] }
 0x307   :  { %v2544_v33 = vrot.slane %v2543_v62, 2  ;;  %v2531_v36 = vmax.f32 %v2529_v41, %v2530_v55  ;;  %v2550_v50 = vmax.f32 %v2548_v7, %v2549_v17  ;;  %v2557_v22 = vmax.f32 %v2555_v29, %v2556_v13  ;;  %4440 = vst [vmem:[#allocation3 + $0x198] sm:$0xf] %v4432_v6  ;;  %v4434_v55 = vld [vmem:[#allocation2 + $0x30] sm:$0xf] }
 0x308   :  { %v2564_v24 = vmax.f32 %v2562_v54, %v2563_v37  ;;  %v2519_v47 = vmax.f32 %v2517_v1, %v2518_v18  ;;  %v2525_v32 = vrot.slane %v2524_v10, 1  ;;  %v2538_v21 = vmax.f32 %v2536_v14, %v2537_v15  ;;  %4442 = vst [vmem:[#allocation3 + $0x1e0] sm:$0xf] %v4434_v55  ;;  %v4177_v6 = vld [vmem:[#allocation2 + $0x38] sm:$0xf]  ;;  %v824_v55 = vpop.f32.mrf.mxu0 }
 0x309   :  { %v2545_v46 = vmax.f32 %v2543_v62, %v2544_v33  ;;  %v2532_v28 = vrot.slane %v2531_v36, 1  ;;  %v2551_v9 = vrot.slane %v2550_v50, 2  ;;  %v2558_v11 = vrot.slane %v2557_v22, 2  ;;  %v4433_v62 = vld [vmem:[#allocation2 + $0x28] sm:$0xf] }
 0x30a   :  { %v2565_v49 = vrot.slane %v2564_v24, 2  ;;  %v2526_v40 = vmax.f32 %v2524_v10, %v2525_v32  ;;  %v2539_v35 = vrot.slane %v2538_v21, 1  ;;  %v16585_v57 = vpack.c.bf16 %v2519_v47, %v2519_v47  ;;  %4441 = vst [vmem:[#allocation3 + $0x1bc] sm:$0xf] %v4433_v62  ;;  %v19878_v47 = vld [vmem:[#allocation2 + $0x3c] sm:$0x1] }
 0x30b   :  { %v2546_v3 = vrot.slane %v2545_v46, 1  ;;  %v2533_v61 = vmax.f32 %v2531_v36, %v2532_v28  ;;  %v2552_v41 = vmax.f32 %v2550_v50, %v2551_v9  ;;  %v2559_v7 = vmax.f32 %v2557_v22, %v2558_v11  ;;  %v3498_v32 = vld [vmem:[#allocation2 + $0x40] sm:$0xe] }
 0x30c   :  { %v2566_v13 = vmax.f32 %v2564_v24, %v2565_v49  ;;  %v2540_v29 = vmax.f32 %v2538_v21, %v2539_v35  ;;  %v16586_v54 = vpack.c.bf16 %v2526_v40, %v2526_v40  ;;  %v4049_v14 = vunpack.c.l.b16 %v16585_v57  ;;  %v4180_v40 = vld [vmem:[#allocation2 + $0x3c] sm:$0x1]  ;;  %v3499_v49 = vld [vmem:[#allocation2 + $0x44] sm:$0x1] }
 0x30d   :  { %v2547_v1 = vmax.f32 %v2545_v46, %v2546_v3  ;;  %v16587_v17 = vpack.c.bf16 %v2533_v61, %v2533_v61  ;;  %v2553_v37 = vrot.slane %v2552_v41, 1  ;;  %v2560_v18 = vrot.slane %v2559_v7, 1  ;;  %v3497_v24 = vld [vmem:[#allocation2 + $0x3c] sm:$0x1] }
 0x30e   :  { %v2567_v10 = vrot.slane %v2566_v13, 1  ;;  %v4050_v53 = vunpack.c.l.b16 %v16586_v54  ;;  %v4100_v36 = vsel %vm2943_vm7, %v4049_v14, %v19846_v45  ;;  %v16603_v22 = vpack.c.bf16 %v2540_v29, %v2540_v29  ;;  %v19882_v21 = vld [vmem:[#allocation2 + $0x3c] sm:$0x1] }
 0x30f   :  { %v16589_v15 = vpack.c.bf16 %v2547_v1, %v2547_v1  ;;  %v4051_v35 = vunpack.c.l.b16 %v16587_v17  ;;  %v2554_v33 = vmax.f32 %v2552_v41, %v2553_v37  ;;  %v2561_v3 = vmax.f32 %v2559_v7, %v2560_v18  ;;  %v19884_v46 = vld [vmem:[#allocation2 + $0x3c] sm:$0x1]  ;;  %v4206_v18 = vld [vmem:[#allocation2 + $0x4] sm:$0x1] }
 0x310   :  { %v2568_v50 = vmax.f32 %v2566_v13, %v2567_v10  ;;  %v4101_v28 = vsel %vm2945_vm8, %v4050_v53, %v4100_v36  ;;  %v4181_v9 = vsel %vm19063_vm12, %v16603_v22, %v4180_v40  ;;  %v3453_v45 = vsel %vm19405_vm0, %v19863_v52, %v19850_v16  ;;  %v19894_v13 = vld [vmem:[#allocation2 + $0x38] sm:$0xe]  ;;  %v4205_v16 = vld [vmem:[#allocation2] sm:$0xf]  ;;  %v4207_v10 = vld [vmem:[#allocation2 + $0x8] sm:$0xf] }
 0x311   :  { %v4053_v11 = vunpack.c.l.b16 %v16589_v15  ;;  %v4102_v57 = vsel %vm2947_vm9, %v4051_v35, %v4101_v28  ;;  %v16590_v61 = vpack.c.bf16 %v2554_v33, %v2554_v33  ;;  %v16591_v41 = vpack.c.bf16 %v2561_v3, %v2561_v3  ;;  %3482 = vst [vmem:[#allocation3 + $0xe8] sm:$0xf] %v3453_v45  ;;  %4182 = vst [vmem:[#allocation2 + $0x3c] sm:$0x1] %v4181_v9  ;;  %v19899_v53 = vld [vmem:[#allocation2 + $0x38] sm:$0xf] }
 0x312   :  { %v16592_v7 = vpack.c.bf16 %v2568_v50, %v2568_v50  ;;  %v4121_v29 = vpack.c.b16 %v4102_v57, %v4102_v57  ;;  %v21996_v54 = vor.u32 %v19855_v43, %v19853_v44  ;;  %v3542_v1 = vrot.slane %v3497_v24, 5  ;;  %v19901_v36 = vld [vmem:[#allocation2 + $0x38] sm:$0xe]  ;;  %v4208_v50 = vld [vmem:[#allocation2 + $0xc] sm:$0x1] }
 0x313   :  { %v15328_v62 = vrot.slane %v3498_v32, 9  ;;  %v4054_v52 = vunpack.c.l.b16 %v16590_v61  ;;  %v4055_v17 = vunpack.c.l.b16 %v16591_v41  ;;  %v3546_v37 = vrot.slane %v3499_v49, 5  ;;  %v4445_v45 = vld [vmem:[#allocation2 + $0x8] sm:$0xf] }
 0x314   :  { %v3462_v14 = vrot.slane %v21996_v54, 4  ;;  %v4178_v22 = vsel %vm19083_vm13, %v4121_v29, %v4177_v6  ;;  %v21997_v43 = vrot.slane %v19848_v31, 9  ;;  %v899_v35 = vmax.f32 %v19870_v23, 0.0  ;;  %v4447_v6 = vld [vmem:[#allocation2 + $0x10] sm:$0xf] }
 0x315   :  { %v4103_v40 = vsel %vm2937_vm2, %v4054_v52, %v4053_v11  ;;  %v3547_v33 = vsel %vm19476_vm15, %v15328_v62, %v3546_v37  ;;  %4179 = vst [vmem:[#allocation2 + $0x38] sm:$0xf] %v4178_v22  ;;  %v825_v3 = vadd.f32 %v19786_v48, %v824_v55  ;;  %v4222_v24 = vshrl.u32 %v4205_v16, 16 }
 0x316   :  { %v3467_v44 = vsel %vm19405_vm0, %v3462_v14, %v19857_v58  ;;  %v3543_v15 = vsel %vm19476_vm15, %v21997_v43, %v3542_v1  ;;  %v4446_v58 = vld [vmem:[#allocation2 + $0xc] sm:$0x1]  ;;  %v4056_v32 = vunpack.c.l.b16 %v16592_v7  ;;  %3563 = vst [vmem:[#allocation3 + $0x110] sm:$0xf] %v3547_v33  ;;  %v4225_v31 = vshll.u32 %v4205_v16, 16 }
 0x317   :  { %3483 = vst [vmem:[#allocation3 + $0x10c] sm:$0xf] %v3467_v44  ;;  %3562 = vst [vmem:[#allocation3 + $0xec] sm:$0xf] %v3543_v15  ;;  %v4231_v28 = vshll.u32 %v4206_v18, 16  ;;  %v4236_v9 = vshrl.u32 %v4207_v10, 16  ;;  %v4104_v23 = vsel %vm2939_vm5, %v4055_v17, %v4103_v40 }
 0x318   :  { %v897_v11 = vmax.f32 %v825_v3, 0.0  ;;  %v4224_v49 = vrot.slane %v4222_v24, 4  ;;  %v4239_v57 = vshll.u32 %v4207_v10, 16  ;;  %v4227_v61 = vrot.slane %v4225_v31, 5 }
 0x319   :  { %v4233_v41 = vrot.slane %v4231_v28, 5  ;;  %v4238_v29 = vrot.slane %v4236_v9, 4  ;;  %v4245_v54 = vshll.u32 %v4208_v50, 16  ;;  %v4462_v1 = vshrl.u32 %v4445_v45, 16  ;;  %v4448_v9 = vld [vmem:[#allocation2 + $0x14] sm:$0x1] }
 0x31a   :  { %v1796_v48 = vmax.f32 %v897_v11, %v899_v35  ;;  %v4241_v14 = vrot.slane %v4239_v57, 5  ;;  %v4465_v62 = vshll.u32 %v4445_v45, 16  ;;  %v4228_v7 = vor.u32 %v4227_v61, %v4224_v49 }
 0x31b   :  { %v4247_v55 = vrot.slane %v4245_v54, 5  ;;  %v4471_v16 = vshll.u32 %v4446_v58, 16  ;;  %v4476_v52 = vshrl.u32 %v4447_v6, 16  ;;  %v4464_v22 = vrot.slane %v4462_v1, 4 }
 0x31c   :  { %v2068_v37 = vcombine.high %v1796_v48, %v1796_v48  ;;  %v2075_v18 = vrot.slane %v1796_v48, %v19023_v56  ;;  %v4242_v17 = vor.u32 %v4241_v14, %v4238_v29  ;;  %v4229_v44 = vrot.slane %v4228_v7, 4  ;;  %v4196_v11 = vld [vmem:[#allocation2 + $0x38] sm:$0xf]  ;;  %v4589_v48 = vld [vmem:[#allocation2 + $0x8] sm:$0xe] }
 0x31d   :  { %v4467_v10 = vrot.slane %v4465_v62, 5  ;;  %v4473_v43 = vrot.slane %v4471_v16, 5  ;;  %v4478_v15 = vrot.slane %v4476_v52, 4  ;;  %v19922_v24 = vsel %vm2941_vm6, %v4056_v32, %v4104_v23  ;;  %4204 = vst [vmem:[#allocation3 + $0x21c] sm:$0xf] %v4196_v11 }
 0x31e   :  { %v17337_v40 = vld [vmem:[#allocation3 + $0xec] ss:$36 sps:$4 sm:$0xff]   ;;  %v2082_v35 = vrot.slane %v2068_v37, %v19023_v56  ;;  %v2083_v3 = vcombine.high %v2075_v18, %v2075_v18  ;;  %v2569_v50 = vsel %vm1268_vm1, %v2075_v18, -inf  ;;  %v4234_v31 = vsel %vm19405_vm0, %v4229_v44, %v4233_v41  ;;  %v4590_v14 = vld [vmem:[#allocation2 + $0xc] sm:$0x1] }
 0x31f   :  { %v17340_v33 = vld [vmem:[#allocation3 + $0xe8] ss:$36 sps:$4 sm:$0xff]   ;;  %v2570_v58 = vrot.slane %v2569_v50, 4  ;;  %v4243_v28 = vrot.slane %v4242_v17, 4  ;;  %v4468_v45 = vor.u32 %v4467_v10, %v4464_v22  ;;  %6190 = vmatprep.mubr.bf16.mxu0 %v17337_v40  ;;  %4341 = vst [vmem:[#allocation3 + $0x124] sm:$0xf] %v4234_v31 }
 0x320   :  { %v2084_v49 = vcombine.high %v2082_v35, %v2082_v35  ;;  %v2576_v57 = vsel %vm1268_vm1, %v2083_v3, -inf  ;;  %v2583_v61 = vsel %vm1268_vm1, %v2082_v35, -inf  ;;  %v4479_v29 = vshll.u32 %v4447_v6, 16  ;;  %6191 = vmatmul.mubr.bf16.gmra.mxu0 %v17340_v33  ;;  %v4592_v52 = vld [vmem:[#allocation2 + $0x14] sm:$0x1] }
 0x321   :  { %v2571_v32 = vmax.f32 %v2569_v50, %v2570_v58  ;;  %v2577_v23 = vrot.slane %v2576_v57, 4  ;;  %v2584_v54 = vrot.slane %v2583_v61, 4  ;;  %v4248_v41 = vsel %vm19405_vm0, %v4243_v28, %v4247_v55  ;;  %v4591_v22 = vld [vmem:[#allocation2 + $0x10] sm:$0xe]  ;;  %v4435_v44 = vld [vmem:[#allocation2 + $0x38] sm:$0xf] }
 0x322   :  { %v2590_v1 = vsel %vm1268_vm1, %v2084_v49, -inf  ;;  %4342 = vst [vmem:[#allocation3 + $0x148] sm:$0xf] %v4248_v41  ;;  %v4469_v62 = vrot.slane %v4468_v45, 4  ;;  %v4481_v7 = vrot.slane %v4479_v29, 5  ;;  %v4485_v16 = vshll.u32 %v4448_v9, 16 }
 0x323   :  { %v2572_v37 = vrot.slane %v2571_v32, 2  ;;  %v2578_v18 = vmax.f32 %v2576_v57, %v2577_v23  ;;  %v2585_v6 = vmax.f32 %v2583_v61, %v2584_v54  ;;  %v2591_v17 = vrot.slane %v2590_v1, 4  ;;  %4443 = vst [vmem:[#allocation3 + $0x204] sm:$0xf] %v4435_v44  ;;  %v4209_v31 = vld [vmem:[#allocation2 + $0x10] sm:$0xf] }
 0x324   :  { %v4474_v10 = vsel %vm19405_vm0, %v4469_v62, %v4473_v43  ;;  %v4482_v40 = vor.u32 %v4481_v7, %v4478_v15  ;;  %v4487_v55 = vrot.slane %v4485_v16, 5  ;;  %v15417_v33 = vrot.slane %v4589_v48, 9  ;;  %v4210_v49 = vld [vmem:[#allocation2 + $0x14] sm:$0x1]  ;;  %v4211_v43 = vld [vmem:[#allocation2 + $0x18] sm:$0xf] }
 0x325   :  { %v2573_v35 = vmax.f32 %v2571_v32, %v2572_v37  ;;  %v2579_v3 = vrot.slane %v2578_v18, 2  ;;  %v2586_v50 = vrot.slane %v2585_v6, 2  ;;  %v2592_v58 = vmax.f32 %v2590_v1, %v2591_v17  ;;  %4581 = vst [vmem:[#allocation3 + $0x130] sm:$0xf] %v4474_v10  ;;  %v4212_v16 = vld [vmem:[#allocation2 + $0x1c] sm:$0x1] }
 0x326   :  { %v4483_v28 = vrot.slane %v4482_v40, 4  ;;  %v4623_v9 = vrot.slane %v4590_v14, 5  ;;  %v15418_v45 = vrot.slane %v4591_v22, 9  ;;  %v4627_v11 = vrot.slane %v4592_v52, 5  ;;  %v16687_v52 = vpop.f32.mrf.mxu1  ;;  %v17344_v37 = vld [vmem:[#allocation3 + $0x120] ss:$36 sps:$4 sm:$0xff]  }
 0x327   :  { %v2574_v57 = vrot.slane %v2573_v35, 1  ;;  %v2580_v61 = vmax.f32 %v2578_v18, %v2579_v3  ;;  %v2587_v29 = vmax.f32 %v2585_v6, %v2586_v50  ;;  %v2593_v23 = vrot.slane %v2592_v58, 2 }
 0x328   :  { %v4488_v15 = vsel %vm19405_vm0, %v4483_v28, %v4487_v55  ;;  %v4624_v32 = vsel %vm19476_vm15, %v15417_v33, %v4623_v9  ;;  %v4628_v54 = vsel %vm19476_vm15, %v15418_v45, %v4627_v11  ;;  %v4250_v41 = vshrl.u32 %v4209_v31, 16  ;;  %v4449_v33 = vld [vmem:[#allocation2 + $0x18] sm:$0xf] }
 0x329   :  { %v2575_v48 = vmax.f32 %v2573_v35, %v2574_v57  ;;  %v2581_v14 = vrot.slane %v2580_v61, 1  ;;  %v2588_v1 = vrot.slane %v2587_v29, 1  ;;  %v2594_v62 = vmax.f32 %v2592_v58, %v2593_v23  ;;  %v17341_v7 = vld [vmem:[#allocation3 + $0x124] ss:$36 sps:$4 sm:$0xff]   ;;  %4582 = vst [vmem:[#allocation3 + $0x154] sm:$0xf] %v4488_v15 }
 0x32a   :  { %4661 = vst [vmem:[#allocation3 + $0x134] sm:$0xf] %v4624_v32  ;;  %4662 = vst [vmem:[#allocation3 + $0x158] sm:$0xf] %v4628_v54  ;;  %v4252_v18 = vrot.slane %v4250_v41, 4  ;;  %v4253_v6 = vshll.u32 %v4209_v31, 16  ;;  %6004 = vmatprep.mubr.bf16.mxu1 %v17341_v7  ;;  %v16688_v31 = vpop.f32.mrf.mxu1 }
 0x32b   :  { %v4259_v17 = vshll.u32 %v4210_v49, 16  ;;  %v4264_v22 = vshrl.u32 %v4211_v43, 16  ;;  %v2582_v44 = vmax.f32 %v2580_v61, %v2581_v14  ;;  %v2589_v10 = vmax.f32 %v2587_v29, %v2588_v1  ;;  %v3572_v35 = vld [vmem:[#allocation2 + $0x48] sm:$0xf]  ;;  %6005 = vmatmul.mubr.bf16.gmra.mxu1 %v17344_v37  ;;  %v4186_v49 = vld [vmem:[#allocation2 + $0x44] sm:$0x1] }
 0x32c   :  { %v2595_v40 = vrot.slane %v2594_v62, 1  ;;  %v16593_v55 = vpack.c.bf16 %v2575_v48, %v2575_v48  ;;  %v4255_v3 = vrot.slane %v4253_v6, 5  ;;  %v4267_v28 = vshll.u32 %v4211_v43, 16  ;;  %3580 = vst [vmem:[#allocation3 + $0x114] sm:$0xf] %v3572_v35 }
 0x32d   :  { %v4261_v50 = vrot.slane %v4259_v17, 5  ;;  %v4266_v58 = vrot.slane %v4264_v22, 4  ;;  %v16594_v45 = vpack.c.bf16 %v2582_v44, %v2582_v44  ;;  %v16595_v11 = vpack.c.bf16 %v2589_v10, %v2589_v10  ;;  %v4450_v15 = vld [vmem:[#allocation2 + $0x1c] sm:$0x1]  ;;  %v19939_v54 = vld [vmem:[#allocation2 + $0x44] sm:$0x1] }
 0x32e   :  { %v2596_v9 = vmax.f32 %v2594_v62, %v2595_v40  ;;  %v4057_v57 = vunpack.c.l.b16 %v16593_v55  ;;  %v4256_v23 = vor.u32 %v4255_v3, %v4252_v18  ;;  %v4269_v61 = vrot.slane %v4267_v28, 5  ;;  %v19941_v41 = vld [vmem:[#allocation2 + $0x44] sm:$0x1]  ;;  %v4451_v62 = vld [vmem:[#allocation2 + $0x20] sm:$0xf] }
 0x32f   :  { %v4273_v29 = vshll.u32 %v4212_v16, 16  ;;  %v4490_v32 = vshrl.u32 %v4449_v33, 16  ;;  %v4058_v48 = vunpack.c.l.b16 %v16594_v45  ;;  %v4059_v14 = vunpack.c.l.b16 %v16595_v11  ;;  %v4452_v7 = vld [vmem:[#allocation2 + $0x24] sm:$0x1]  ;;  %v4593_v37 = vld [vmem:[#allocation2 + $0x18] sm:$0xe] }
 0x330   :  { %v4106_v43 = vsel %vm2943_vm7, %v4057_v57, %v19922_v24  ;;  %v16604_v1 = vpack.c.bf16 %v2596_v9, %v2596_v9  ;;  %v4257_v17 = vrot.slane %v4256_v23, 4  ;;  %v4270_v18 = vor.u32 %v4269_v61, %v4266_v58  ;;  %v17350_v40 = vld [vmem:[#allocation3 + $0x130] ss:$36 sps:$4 sm:$0xff]   ;;  %v4669_v3 = vld [vmem:[#allocation2 + $0x10] sm:$0xf] }
 0x331   :  { %v17347_v6 = vld [vmem:[#allocation3 + $0x134] ss:$36 sps:$4 sm:$0xff]   ;;  %v4275_v22 = vrot.slane %v4273_v29, 5  ;;  %v19945_v16 = vadd.f32 %v16688_v31, %v16687_v52  ;;  %v4107_v44 = vsel %vm2945_vm8, %v4058_v48, %v4106_v43  ;;  %v4492_v55 = vrot.slane %v4490_v32, 4  ;;  %v4183_v28 = vld [vmem:[#allocation2 + $0x40] sm:$0xf] }
 0x332   :  { %v4187_v10 = vsel %vm19063_vm12, %v16604_v1, %v4186_v49  ;;  %v4493_v35 = vshll.u32 %v4449_v33, 16  ;;  %v4108_v24 = vsel %vm2947_vm9, %v4059_v14, %v4107_v44  ;;  %6198 = vmatprep.mubr.bf16.mxu0 %v17347_v6  ;;  %v4262_v58 = vsel %vm19405_vm0, %v4257_v17, %v4261_v50  ;;  %v4594_v45 = vld [vmem:[#allocation2 + $0x1c] sm:$0x1]  ;;  %v4596_v11 = vld [vmem:[#allocation2 + $0x24] sm:$0x1] }
 0x333   :  { %4188 = vst [vmem:[#allocation2 + $0x44] sm:$0x1] %v4187_v10  ;;  %v4271_v9 = vrot.slane %v4270_v18, 4  ;;  %v4499_v52 = vshll.u32 %v4450_v15, 16  ;;  %4677 = vst [vmem:[#allocation3 + $0x138] sm:$0xf] %v4669_v3  ;;  %v4123_v49 = vpack.c.b16 %v4108_v24, %v4108_v24  ;;  %6199 = vmatmul.mubr.bf16.gmra.mxu0 %v17350_v40 }
 0x334   :  { %v19953_v57 = vld [vmem:[#allocation2 + $0x40] sm:$0xf]  ;;  %4343 = vst [vmem:[#allocation3 + $0x16c] sm:$0xf] %v4262_v58  ;;  %v4495_v33 = vrot.slane %v4493_v35, 5  ;;  %v4504_v23 = vshrl.u32 %v4451_v62, 16 }
 0x335   :  { %v19955_v31 = vld [vmem:[#allocation2 + $0x40] sm:$0xe]  ;;  %v4507_v61 = vshll.u32 %v4451_v62, 16  ;;  %v4276_v32 = vsel %vm19405_vm0, %v4271_v9, %v4275_v22  ;;  %v4501_v50 = vrot.slane %v4499_v52, 5  ;;  %v4513_v48 = vshll.u32 %v4452_v7, 16 }
 0x336   :  { %v4595_v29 = vld [vmem:[#allocation2 + $0x20] sm:$0xe]  ;;  %v15419_v15 = vrot.slane %v4593_v37, 9  ;;  %v4184_v43 = vsel %vm19083_vm13, %v4123_v49, %v4183_v28  ;;  %4344 = vst [vmem:[#allocation3 + $0x190] sm:$0xf] %v4276_v32  ;;  %v4496_v1 = vor.u32 %v4495_v33, %v4492_v55  ;;  %v4506_v6 = vrot.slane %v4504_v23, 4  ;;  %vm20461_vm13 = vmor %vm3030_vm3, %vm2937_vm2 }
 0x337   :  { %v4213_v14 = vld [vmem:[#allocation2 + $0x20] sm:$0xf]  ;;  %v4509_v17 = vrot.slane %v4507_v61, 5  ;;  %v4214_v18 = vld [vmem:[#allocation2 + $0x24] sm:$0x1]  ;;  %v4515_v10 = vrot.slane %v4513_v48, 5  ;;  %vm20476_vm3 = vmor %vm20461_vm13, %vm2941_vm6 }
 0x338   :  { %v4215_v44 = vld [vmem:[#allocation2 + $0x28] sm:$0xf]  ;;  %4185 = vst [vmem:[#allocation2 + $0x40] sm:$0xf] %v4184_v43  ;;  %v4631_v62 = vrot.slane %v4594_v45, 5  ;;  %v15420_v40 = vrot.slane %v4595_v29, 9 }
 0x339   :  { %v4635_v35 = vrot.slane %v4596_v11, 5  ;;  %v4497_v3 = vrot.slane %v4496_v1, 4  ;;  %v4510_v22 = vor.u32 %v4509_v17, %v4506_v6  ;;  %v4216_v24 = vld [vmem:[#allocation2 + $0x2c] sm:$0x1]  ;;  %v4278_v7 = vshrl.u32 %v4213_v14, 16 }
 0x33a   :  { %v4281_v37 = vshll.u32 %v4213_v14, 16  ;;  %v4632_v19 = vsel %vm19476_vm15, %v15419_v15, %v4631_v62  ;;  %v4287_v28 = vshll.u32 %v4214_v18, 16  ;;  %v4292_v58 = vshrl.u32 %v4215_v44, 16  ;;  %v4453_v9 = vld [vmem:[#allocation2 + $0x28] sm:$0xf] }
 0x33b   :  { %v4636_v55 = vsel %vm19476_vm15, %v15420_v40, %v4635_v35  ;;  %v4670_v52 = vld [vmem:[#allocation2 + $0x18] sm:$0xf]  ;;  %v4502_v45 = vsel %vm19405_vm0, %v4497_v3, %v4501_v50  ;;  %v4511_v49 = vrot.slane %v4510_v22, 4  ;;  %4663 = vst [vmem:[#allocation3 + $0x17c] sm:$0xf] %v4632_v19  ;;  %v4280_v11 = vrot.slane %v4278_v7, 4 }
 0x33c   :  { %4664 = vst [vmem:[#allocation3 + $0x1a0] sm:$0xf] %v4636_v55  ;;  %v4283_v33 = vrot.slane %v4281_v37, 5  ;;  %v4454_v23 = vld [vmem:[#allocation2 + $0x2c] sm:$0x1]  ;;  %v4289_v61 = vrot.slane %v4287_v28, 5 }
 0x33d   :  { %4678 = vst [vmem:[#allocation3 + $0x15c] sm:$0xf] %v4670_v52  ;;  %4583 = vst [vmem:[#allocation3 + $0x178] sm:$0xf] %v4502_v45  ;;  %v4294_v29 = vrot.slane %v4292_v58, 4  ;;  %v4295_v32 = vshll.u32 %v4215_v44, 16  ;;  %v4516_v14 = vsel %vm19405_vm0, %v4511_v49, %v4515_v10 }
 0x33e   :  { %v4301_v48 = vshll.u32 %v4216_v24, 16  ;;  %v4597_v15 = vld [vmem:[#allocation2 + $0x28] sm:$0xe]  ;;  %v4284_v43 = vor.u32 %v4283_v33, %v4280_v11  ;;  %v4455_v1 = vld [vmem:[#allocation2 + $0x30] sm:$0xf]  ;;  %v4518_v50 = vshrl.u32 %v4453_v9, 16 }
 0x33f   :  { %v4456_v6 = vld [vmem:[#allocation2 + $0x34] sm:$0x1]  ;;  %v4521_v17 = vshll.u32 %v4453_v9, 16  ;;  %v17351_v18 = vld [vmem:[#allocation3 + $0x16c] ss:$36 sps:$4 sm:$0xff]   ;;  %v4297_v40 = vrot.slane %v4295_v32, 5 }
 0x340   :  { %v17354_v62 = vld [vmem:[#allocation3 + $0x168] ss:$36 sps:$4 sm:$0xff]   ;;  %4584 = vst [vmem:[#allocation3 + $0x19c] sm:$0xf] %v4516_v14  ;;  %v4598_v35 = vld [vmem:[#allocation2 + $0x2c] sm:$0x1]  ;;  %6012 = vmatprep.mubr.bf16.mxu1 %v17351_v18 }
 0x341   :  { %v4285_v3 = vrot.slane %v4284_v43, 4  ;;  %v4303_v22 = vrot.slane %v4301_v48, 5  ;;  %v4520_v7 = vrot.slane %v4518_v50, 4  ;;  %v4523_v37 = vrot.slane %v4521_v17, 5  ;;  %v4600_v44 = vld [vmem:[#allocation2 + $0x34] sm:$0x1]  ;;  %6013 = vmatmul.mubr.bf16.gmra.mxu1 %v17354_v62 }
 0x342   :  { %v4298_v24 = vor.u32 %v4297_v40, %v4294_v29  ;;  %v4527_v19 = vshll.u32 %v4454_v23, 16  ;;  %v4532_v55 = vshrl.u32 %v4455_v1, 16  ;;  %v4535_v10 = vshll.u32 %v4455_v1, 16  ;;  %v4599_v28 = vld [vmem:[#allocation2 + $0x30] sm:$0xe] }
 0x343   :  { %v4290_v58 = vsel %vm19405_vm0, %v4285_v3, %v4289_v61  ;;  %v4524_v9 = vor.u32 %v4523_v37, %v4520_v7  ;;  %v4541_v52 = vshll.u32 %v4456_v6, 16  ;;  %v15421_v45 = vrot.slane %v4597_v15, 9  ;;  %v4217_v49 = vld [vmem:[#allocation2 + $0x30] sm:$0xf]  ;;  %v4218_v11 = vld [vmem:[#allocation2 + $0x34] sm:$0x1] }
 0x344   :  { %v4436_v33 = vld [vmem:[#allocation2 + $0x40] sm:$0xf]  ;;  %v4299_v32 = vrot.slane %v4298_v24, 4  ;;  %4345 = vst [vmem:[#allocation3 + $0x1b4] sm:$0xf] %v4290_v58  ;;  %v4529_v48 = vrot.slane %v4527_v19, 5 }
 0x345   :  { %v4534_v14 = vrot.slane %v4532_v55, 4  ;;  %v4537_v43 = vrot.slane %v4535_v10, 5  ;;  %v4220_v29 = vld [vmem:[#allocation2 + $0x3c] sm:$0x1]  ;;  %4444 = vst [vmem:[#allocation3 + $0x228] sm:$0xf] %v4436_v33 }
 0x346   :  { %v4671_v23 = vld [vmem:[#allocation2 + $0x20] sm:$0xf]  ;;  %v4525_v1 = vrot.slane %v4524_v9, 4  ;;  %v4543_v50 = vrot.slane %v4541_v52, 5  ;;  %v4639_v17 = vrot.slane %v4598_v35, 5  ;;  %v15422_v18 = vrot.slane %v4599_v28, 9 }
 0x347   :  { %v3241_v62 = vld [vmem:[#allocation2] sm:$0xe]  ;;  %v3242_v61 = vld [vmem:[#allocation2 + $0x4] sm:$0x1]  ;;  %4679 = vst [vmem:[#allocation3 + $0x180] sm:$0xf] %v4671_v23  ;;  %v4304_v15 = vsel %vm19405_vm0, %v4299_v32, %v4303_v22  ;;  %v4538_v6 = vor.u32 %v4537_v43, %v4534_v14 }
 0x348   :  { %v4643_v40 = vrot.slane %v4600_v44, 5  ;;  %v4219_v3 = vld [vmem:[#allocation2 + $0x38] sm:$0xf]  ;;  %v4306_v7 = vshrl.u32 %v4217_v49, 16  ;;  %v4672_v37 = vld [vmem:[#allocation2 + $0x28] sm:$0xf]  ;;  %v4530_v55 = vsel %vm19405_vm0, %v4525_v1, %v4529_v48  ;;  %v4640_v35 = vsel %vm19476_vm15, %v15421_v45, %v4639_v17  ;;  %v19981_v1 = vpop.f32.mrf.mxu1 }
 0x349   :  { %v17357_v24 = vld [vmem:[#allocation3 + $0x17c] ss:$36 sps:$4 sm:$0xff]   ;;  %4346 = vst [vmem:[#allocation3 + $0x1d8] sm:$0xf] %v4304_v15  ;;  %v4309_v10 = vshll.u32 %v4217_v49, 16  ;;  %v4539_v28 = vrot.slane %v4538_v6, 4 }
 0x34a   :  { %v17360_v19 = vld [vmem:[#allocation3 + $0x178] ss:$36 sps:$4 sm:$0xff]   ;;  %4680 = vst [vmem:[#allocation3 + $0x1a4] sm:$0xf] %v4672_v37  ;;  %4585 = vst [vmem:[#allocation3 + $0x1c0] sm:$0xf] %v4530_v55  ;;  %v4644_v22 = vsel %vm19476_vm15, %v15422_v18, %v4643_v40  ;;  %6206 = vmatprep.mubr.bf16.mxu0 %v17357_v24 }
 0x34b   :  { %4665 = vst [vmem:[#allocation3 + $0x1c4] sm:$0xf] %v4640_v35  ;;  %v4308_v44 = vrot.slane %v4306_v7, 4  ;;  %v4315_v58 = vshll.u32 %v4218_v11, 16  ;;  %4666 = vst [vmem:[#allocation3 + $0x1e8] sm:$0xf] %v4644_v22  ;;  %6207 = vmatmul.mubr.bf16.gmra.mxu0 %v17360_v19  ;;  %v4544_v45 = vsel %vm19405_vm0, %v4539_v28, %v4543_v50 }
 0x34c   :  { %v4311_v9 = vrot.slane %v4309_v10, 5  ;;  %v4320_v52 = vshrl.u32 %v4219_v3, 16  ;;  %v4323_v33 = vshll.u32 %v4219_v3, 16  ;;  %v4329_v32 = vshll.u32 %v4220_v29, 16  ;;  %v4457_v48 = vld [vmem:[#allocation2 + $0x38] sm:$0xf] }
 0x34d   :  { %v4317_v49 = vrot.slane %v4315_v58, 5  ;;  %v15313_v14 = vrot.slane %v3241_v62, 9  ;;  %v3278_v43 = vrot.slane %v3242_v61, 5  ;;  %v4458_v23 = vld [vmem:[#allocation2 + $0x3c] sm:$0x1]  ;;  %v15314_v7 = vrot.slane %v19469_v12, 9  ;;  %v19989_v12 = vpop.f32.mrf.mxu1 }
 0x34e   :  { %4586 = vst [vmem:[#allocation3 + $0x1e4] sm:$0xf] %v4544_v45  ;;  %v4312_v17 = vor.u32 %v4311_v9, %v4308_v44  ;;  %v4322_v11 = vrot.slane %v4320_v52, 4  ;;  %v4325_v18 = vrot.slane %v4323_v33, 5  ;;  %v4331_v15 = vrot.slane %v4329_v32, 5 }
 0x34f   :  { %v4459_v6 = vld [vmem:[#allocation2 + $0x40] sm:$0xf]  ;;  %v4460_v40 = vld [vmem:[#allocation2 + $0x44] sm:$0x1]  ;;  %v4601_v3 = vld [vmem:[#allocation2 + $0x38] sm:$0xe]  ;;  %v3279_v29 = vsel %vm19476_vm15, %v15313_v14, %v3278_v43 }
 0x350   :  { %v3282_v50 = vrot.slane %v19454_v63, 5  ;;  %v4546_v62 = vshrl.u32 %v4457_v48, 16  ;;  %v4602_v61 = vld [vmem:[#allocation2 + $0x3c] sm:$0x1]  ;;  %v4603_v37 = vld [vmem:[#allocation2 + $0x40] sm:$0xe]  ;;  %v4326_v55 = vor.u32 %v4325_v18, %v4322_v11 }
 0x351   :  { %v4673_v24 = vld [vmem:[#allocation2 + $0x30] sm:$0xf]  ;;  %v4313_v19 = vrot.slane %v4312_v17, 4  ;;  %3316 = vst [vmem:[#allocation3 + $0x8] sm:$0xf] %v3279_v29  ;;  %v4549_v35 = vshll.u32 %v4457_v48, 16 }
 0x352   :  { %v4555_v10 = vshll.u32 %v4458_v23, 16  ;;  %v4674_v28 = vld [vmem:[#allocation2 + $0x38] sm:$0xf]  ;;  %4681 = vst [vmem:[#allocation3 + $0x1c8] sm:$0xf] %v4673_v24  ;;  %v3283_v58 = vsel %vm19476_vm15, %v15314_v7, %v3282_v50  ;;  %v4548_v9 = vrot.slane %v4546_v62, 4  ;;  %v16693_v23 = vpop.f32.mrf.mxu1 }
 0x353   :  { %v17361_v22 = vld [vmem:[#allocation3 + $0x1b4] ss:$36 sps:$4 sm:$0xff]   ;;  %4682 = vst [vmem:[#allocation3 + $0x1ec] sm:$0xf] %v4674_v28  ;;  %v4318_v63 = vsel %vm19405_vm0, %v4313_v19, %v4317_v49  ;;  %v4327_v52 = vrot.slane %v4326_v55, 4  ;;  %v4551_v33 = vrot.slane %v4549_v35, 5 }
 0x354   :  { %v17364_v44 = vld [vmem:[#allocation3 + $0x1b0] ss:$36 sps:$4 sm:$0xff]   ;;  %3317 = vst [vmem:[#allocation3 + $0x2c] sm:$0xf] %v3283_v58  ;;  %v4557_v32 = vrot.slane %v4555_v10, 5  ;;  %6020 = vmatprep.mubr.bf16.mxu1 %v17361_v22  ;;  %v4560_v48 = vshrl.u32 %v4459_v6, 16 }
 0x355   :  { %4347 = vst [vmem:[#allocation3 + $0x1fc] sm:$0xf] %v4318_v63  ;;  %v4563_v45 = vshll.u32 %v4459_v6, 16  ;;  %v4569_v14 = vshll.u32 %v4460_v40, 16  ;;  %v15423_v43 = vrot.slane %v4601_v3, 9  ;;  %6021 = vmatmul.mubr.bf16.gmra.mxu1 %v17364_v44  ;;  %v4332_v17 = vsel %vm19405_vm0, %v4327_v52, %v4331_v15  ;;  %v16694_v40 = vpop.f32.mrf.mxu1 }
 0x356   :  { %v4552_v11 = vor.u32 %v4551_v33, %v4548_v9  ;;  %v4604_v18 = vld [vmem:[#allocation2 + $0x44] sm:$0x1]  ;;  %v4647_v29 = vrot.slane %v4602_v61, 5  ;;  %v15424_v7 = vrot.slane %v4603_v37, 9  ;;  %v17369_v49 = vld [vmem:[#allocation3 + $0x1c4] ss:$36 sps:$4 sm:$0xff]  }
 0x357   :  { %v17372_v50 = vld [vmem:[#allocation3 + $0x1c0] ss:$36 sps:$4 sm:$0xff]   ;;  %4348 = vst [vmem:[#allocation3 + $0x220] sm:$0xf] %v4332_v17  ;;  %v4562_v62 = vrot.slane %v4560_v48, 4  ;;  %v4565_v19 = vrot.slane %v4563_v45, 5  ;;  %6214 = vmatprep.mubr.bf16.mxu0 %v17369_v49 }
 0x358   :  { %v4553_v24 = vrot.slane %v4552_v11, 4  ;;  %v4571_v55 = vrot.slane %v4569_v14, 5  ;;  %v4648_v6 = vsel %vm19476_vm15, %v15423_v43, %v4647_v29  ;;  %v4651_v3 = vrot.slane %v4604_v18, 5  ;;  %6215 = vmatmul.mubr.bf16.gmra.mxu0 %v17372_v50  ;;  %v4675_v44 = vld [vmem:[#allocation2 + $0x40] sm:$0xf]  ;;  %v21998_v17 = vld [vmem:[#allocation46_spill] sm:$0xff] }
 0x359   :  { %4667 = vst [vmem:[#allocation3 + $0x20c] sm:$0xf] %v4648_v6  ;;  %v15315_v15 = vrot.slane %v19548_v27, 9  ;;  %v3286_v35 = vrot.slane %v19528_v60, 5  ;;  %v15316_v61 = vrot.slane %v19615_v59, 9  ;;  %v4566_v10 = vor.u32 %v4565_v19, %v4562_v62  ;;  %v21999_v49 = vld [vmem:[#allocation44_spill] sm:$0xff] }
 0x35a   :  { %v4558_v37 = vsel %vm19405_vm0, %v4553_v24, %v4557_v32  ;;  %v3290_v28 = vrot.slane %v19599_v5, 5  ;;  %v15329_v22 = vrot.slane %v19552_v30, 9  ;;  %v4676_v58 = vld [vmem:[#allocation2 + $0x48] sm:$0xf]  ;;  %v4652_v9 = vsel %vm19476_vm15, %v15424_v7, %v4651_v3  ;;  %4683 = vst [vmem:[#allocation3 + $0x210] sm:$0xf] %v4675_v44 }
 0x35b   :  { %4587 = vst [vmem:[#allocation3 + $0x208] sm:$0xf] %v4558_v37  ;;  %v3287_v60 = vsel %vm19476_vm15, %v15315_v15, %v3286_v35  ;;  %v3759_v27 = vrot.slane %v19532_v8, 5  ;;  %v20009_v59 = vadd.f32 %v16694_v40, %v16693_v23  ;;  %4684 = vst [vmem:[#allocation3 + $0x234] sm:$0xf] %v4676_v58  ;;  %v4567_v63 = vrot.slane %v4566_v10, 4 }
 0x35c   :  { %4668 = vst [vmem:[#allocation3 + $0x230] sm:$0xf] %v4652_v9  ;;  %v3291_v30 = vsel %vm19476_vm15, %v15316_v61, %v3290_v28  ;;  %3318 = vst [vmem:[#allocation3 + $0x50] sm:$0xf] %v3287_v60  ;;  %v15330_v5 = vrot.slane %v19624_v42, 9  ;;  %v3763_v52 = vrot.slane %v19610_v25, 5  ;;  %v20049_v9 = vpop.f32.mrf.mxu0 }
 0x35d   :  { %3319 = vst [vmem:[#allocation3 + $0x74] sm:$0xf] %v3291_v30  ;;  %v3760_v33 = vsel %vm19476_vm15, %v15329_v22, %v3759_v27  ;;  %v15331_v8 = vrot.slane %v19704_v26, 9  ;;  %v3767_v32 = vrot.slane %v19682_v2, 5  ;;  %v15332_v48 = vrot.slane %v19773_v20, 9  ;;  %v22000_v50 = vld [vmem:[#allocation53_spill] sm:$0xff] }
 0x35e   :  { %v3739_v45 = vld [vmem:[#allocation2 + $0x48] sm:$0xe]  ;;  %v17375_v14 = vld [vmem:[#allocation3 + $0x1fc] ss:$36 sps:$4 sm:$0xff]   ;;  %v4572_v23 = vsel %vm19405_vm0, %v4567_v63, %v4571_v55  ;;  %v3764_v42 = vsel %vm19476_vm15, %v15330_v5, %v3763_v52  ;;  %3797 = vst [vmem:[#allocation3 + $0x20] sm:$0xf] %v3760_v33 }
 0x35f   :  { %v17378_v43 = vld [vmem:[#allocation3 + $0x1f8] ss:$36 sps:$4 sm:$0xff]   ;;  %v3771_v25 = vrot.slane %v19751_v51, 5  ;;  %4588 = vst [vmem:[#allocation3 + $0x22c] sm:$0xf] %v4572_v23  ;;  %v3768_v26 = vsel %vm19476_vm15, %v15331_v8, %v3767_v32  ;;  %v15317_v2 = vrot.slane %v19692_v38, 9  ;;  %6028 = vmatprep.mubr.bf16.mxu1 %v17375_v14 }
 0x360   :  { %3798 = vst [vmem:[#allocation3 + $0x44] sm:$0xf] %v3764_v42  ;;  %v3294_v20 = vrot.slane %v19672_v4, 5  ;;  %v15318_v11 = vrot.slane %v21998_v17, 9  ;;  %v3740_v18 = vld [vmem:[#allocation2 + $0x4c] sm:$0x1]  ;;  %6029 = vmatmul.mubr.bf16.gmra.mxu1 %v17378_v43 }
 0x361   :  { %v17383_v29 = vld [vmem:[#allocation3 + $0xc] ss:$36 sps:$4 sm:$0xff]   ;;  %v3772_v7 = vsel %vm19476_vm15, %v15332_v48, %v3771_v25  ;;  %3799 = vst [vmem:[#allocation3 + $0x68] sm:$0xf] %v3768_v26  ;;  %v3298_v51 = vrot.slane %v21999_v49, 5  ;;  %v15333_v62 = vrot.slane %v22000_v50, 9 }
 0x362   :  { %v22001_v24 = vld [vmem:[#allocation50_spill] sm:$0xff]  ;;  %3800 = vst [vmem:[#allocation3 + $0x8c] sm:$0xf] %v3772_v7  ;;  %v3295_v4 = vsel %vm19476_vm15, %v15317_v2, %v3294_v20  ;;  %v15334_v38 = vrot.slane %v19901_v36, 9  ;;  %v3779_v55 = vrot.slane %v19884_v46, 5  ;;  %v15335_v6 = vrot.slane %v19955_v31, 9  ;;  %6069 = vmatprep.mubr.bf16.mxu1 %v17383_v29 }
 0x363   :  { %v3775_v19 = vrot.slane %v22001_v24, 5  ;;  %v4829_v40 = vld [vmem:[#allocation2 + $0x10] sm:$0xe]  ;;  %v3299_v3 = vsel %vm19476_vm15, %v15318_v11, %v3298_v51  ;;  %3320 = vst [vmem:[#allocation3 + $0x98] sm:$0xf] %v3295_v4  ;;  %v3783_v35 = vrot.slane %v19941_v41, 5 }
 0x364   :  { %v15336_v61 = vrot.slane %v3739_v45, 9  ;;  %v4830_v37 = vld [vmem:[#allocation2 + $0x14] sm:$0x1]  ;;  %3321 = vst [vmem:[#allocation3 + $0xbc] sm:$0xf] %v3299_v3  ;;  %v3780_v36 = vsel %vm19476_vm15, %v15334_v38, %v3779_v55  ;;  %v3787_v46 = vrot.slane %v3740_v18, 5  ;;  %v20063_v18 = vpop.f32.mrf.mxu0 }
 0x365   :  { %v3776_v15 = vsel %vm19476_vm15, %v15333_v62, %v3775_v19  ;;  %v22002_v31 = vld [vmem:[#allocation51_spill] sm:$0xff]  ;;  %v22003_v28 = vld [vmem:[#allocation48_spill] sm:$0xff]  ;;  %v17389_v60 = vld [vmem:[#allocation13 + $0x1b8] sm:$0xff]   ;;  %3802 = vst [vmem:[#allocation3 + $0xd4] sm:$0xf] %v3780_v36  ;;  %v3784_v41 = vsel %vm19476_vm15, %v15335_v6, %v3783_v35  ;;  %v15320_v27 = vrot.slane %v19894_v13, 9 }
 0x366   :  { %3801 = vst [vmem:[#allocation3 + $0xb0] sm:$0xf] %v3776_v15  ;;  %v15319_v10 = vrot.slane %v22002_v31, 9  ;;  %v3302_v22 = vrot.slane %v22003_v28, 5  ;;  %v4831_v44 = vld [vmem:[#allocation2 + $0x18] sm:$0xe]  ;;  %v3788_v32 = vsel %vm19476_vm15, %v15336_v61, %v3787_v46  ;;  %v20074_v46 = vpop.f32.mrf.mxu0 }
 0x367   :  { %v4832_v58 = vld [vmem:[#allocation2 + $0x1c] sm:$0x1]  ;;  %v4833_v63 = vld [vmem:[#allocation2 + $0x20] sm:$0xe]  ;;  %v4834_v30 = vld [vmem:[#allocation2 + $0x24] sm:$0x1] }
 0x368   :  { %v4835_v5 = vld [vmem:[#allocation2 + $0x28] sm:$0xe]  ;;  %v4836_v52 = vld [vmem:[#allocation2 + $0x2c] sm:$0x1]  ;;  %v17381_v33 = vld [vmem:[#allocation3 + $0x8] ss:$36 sps:$4 sm:$0xff]   ;;  %v3303_v48 = vsel %vm19476_vm15, %v15319_v10, %v3302_v22 }
 0x369   :  { %v17395_v8 = vld [vmem:[#allocation13 + $0x1f0] sm:$0xff]   ;;  %3803 = vst [vmem:[#allocation3 + $0xf8] sm:$0xf] %v3784_v41  ;;  %v3306_v45 = vrot.slane %v19878_v47, 5  ;;  %v15425_v14 = vrot.slane %v4829_v40, 9  ;;  %v4863_v42 = vrot.slane %v4830_v37, 5  ;;  %6070 = vmatmul.mubr.bf16.vlgmr.msra.gmra.mxu1 %v17381_v33 }
 0x36a   :  { %v20059_v43 = vld [vmem:[#allocation2] sm:$0xe]  ;;  %v17388_v13 = vld [vmem:[#allocation3 + $0x208] ss:$36 sps:$4 sm:$0xff]   ;;  %3804 = vst [vmem:[#allocation3 + $0x11c] sm:$0xf] %v3788_v32  ;;  %16864 = vmatpush3.bf16.msra.mxu1 %v17389_v60 }
 0x36b   :  { %v17385_v23 = vld [vmem:[#allocation3 + $0x20c] ss:$36 sps:$4 sm:$0xff]   ;;  %3322 = vst [vmem:[#allocation3 + $0xe0] sm:$0xf] %v3303_v48  ;;  %v17391_v25 = vld [vmem:[#allocation3 + $0x54] ss:$36 sps:$4 sm:$0xff]   ;;  %v3307_v26 = vsel %vm19476_vm15, %v15320_v27, %v3306_v45  ;;  %v4864_v7 = vsel %vm19476_vm15, %v15425_v14, %v4863_v42  ;;  %16865 = vmatprep.subr.bf16.mxu1 %v17395_v8 }
 0x36c   :  { %v4350_v2 = vld [vmem:[#allocation2 + $0x4] sm:$0x1]  ;;  %v4351_v20 = vld [vmem:[#allocation2 + $0x8] sm:$0xe]  ;;  %v4352_v17 = vld [vmem:[#allocation2 + $0xc] sm:$0x1]  ;;  %6222 = vmatprep.mubr.bf16.mxu0 %v17385_v23  ;;  %6077 = vmatprep.mubr.bf16.mxu1 %v17391_v25 }
 0x36d   :  { %v4837_v11 = vld [vmem:[#allocation2 + $0x30] sm:$0xe]  ;;  %v17397_v29 = vld [vmem:[#allocation13 + $0x1b0] sm:$0xff]   ;;  %3323 = vst [vmem:[#allocation3 + $0x104] sm:$0xf] %v3307_v26  ;;  %v15426_v49 = vrot.slane %v4831_v44, 9  ;;  %6223 = vmatmul.mubr.bf16.gmra.mxu0 %v17388_v13 }
 0x36e   :  { %v17393_v47 = vld [vmem:[#allocation3 + $0x20] ss:$36 sps:$4 sm:$0xff]   ;;  %v4867_v51 = vrot.slane %v4832_v58, 5  ;;  %v17402_v62 = vld [vmem:[#allocation13 + $0x1e8] sm:$0xff]   ;;  %4901 = vst [vmem:[#allocation3 + $0x140] sm:$0xf] %v4864_v7  ;;  %16866 = vmatpush3.bf16.msra.mxu1 %v17397_v29 }
 0x36f   :  { %v4838_v50 = vld [vmem:[#allocation2 + $0x34] sm:$0x1]  ;;  %v15427_v24 = vrot.slane %v4833_v63, 9  ;;  %v4871_v19 = vrot.slane %v4834_v30, 5  ;;  %v15428_v4 = vrot.slane %v4835_v5, 9  ;;  %v4875_v38 = vrot.slane %v4836_v52, 5  ;;  %17193 = vmatprep.mubr.bf16.mxu0 %v17393_v47  ;;  %16867 = vmatprep.subr.bf16.mxu1 %v17402_v62 }
 0x370   :  { %v4868_v55 = vsel %vm19476_vm15, %v15426_v49, %v4867_v51  ;;  %v15409_v6 = vrot.slane %v20059_v43, 9  ;;  %v4840_v40 = vld [vmem:[#allocation2 + $0x3c] sm:$0x1]  ;;  %v4839_v35 = vld [vmem:[#allocation2 + $0x38] sm:$0xe]  ;;  %v4383_v31 = vrot.slane %v4350_v2, 5 }
 0x371   :  { %4902 = vst [vmem:[#allocation3 + $0x164] sm:$0xf] %v4868_v55  ;;  %v4872_v3 = vsel %vm19476_vm15, %v15427_v24, %v4871_v19  ;;  %v4876_v15 = vsel %vm19476_vm15, %v15428_v4, %v4875_v38  ;;  %v4841_v61 = vld [vmem:[#allocation2 + $0x40] sm:$0xe]  ;;  %v4843_v37 = vld [vmem:[#allocation2 + $0x48] sm:$0xe] }
 0x372   :  { %v4844_v36 = vld [vmem:[#allocation2 + $0x4c] sm:$0x1]  ;;  %4903 = vst [vmem:[#allocation3 + $0x188] sm:$0xf] %v4872_v3  ;;  %4904 = vst [vmem:[#allocation3 + $0x1ac] sm:$0xf] %v4876_v15  ;;  %v4384_v32 = vsel %vm19476_vm15, %v15409_v6, %v4383_v31 }
 0x373   :  { %v15410_v10 = vrot.slane %v4351_v20, 9  ;;  %v4387_v28 = vrot.slane %v4352_v17, 5  ;;  %v15429_v22 = vrot.slane %v4837_v11, 9  ;;  %v4353_v44 = vld [vmem:[#allocation2 + $0x10] sm:$0xe]  ;;  %v17404_v27 = vld [vmem:[#allocation13 + $0x1a8] sm:$0xff]   ;;  %v20082_v20 = vpop.f32.mrf.mxu0 }
 0x374   :  { %v4354_v58 = vld [vmem:[#allocation2 + $0x14] sm:$0x1]  ;;  %v4355_v60 = vld [vmem:[#allocation2 + $0x18] sm:$0xe]  ;;  %v4356_v41 = vld [vmem:[#allocation2 + $0x1c] sm:$0x1]  ;;  %16868 = vmatpush3.bf16.msra.mxu1 %v17404_v27 }
 0x375   :  { %v4879_v63 = vrot.slane %v4838_v50, 5  ;;  %v4842_v30 = vld [vmem:[#allocation2 + $0x44] sm:$0x1]  ;;  %v4357_v5 = vld [vmem:[#allocation2 + $0x20] sm:$0xe]  ;;  %v4388_v48 = vsel %vm19476_vm15, %v15410_v10, %v4387_v28  ;;  %v15430_v45 = vrot.slane %v4839_v35, 9  ;;  %v16821_v4 = vpop.f32.mrf.mxu0 }
 0x376   :  { %v4358_v52 = vld [vmem:[#allocation2 + $0x24] sm:$0x1]  ;;  %v17398_v8 = vld [vmem:[#allocation3 + $0x68] ss:$36 sps:$4 sm:$0xff]   ;;  %v4883_v14 = vrot.slane %v4840_v40, 5  ;;  %v15431_v42 = vrot.slane %v4841_v61, 9 }
 0x377   :  { %v17396_v33 = vld [vmem:[#allocation3 + $0x50] ss:$36 sps:$4 sm:$0xff]   ;;  %v17399_v43 = vld [vmem:[#allocation3 + $0x9c] ss:$36 sps:$4 sm:$0xff]   ;;  %4421 = vst [vmem:[#allocation3 + $0x128] sm:$0xf] %v4384_v32  ;;  %v4880_v13 = vsel %vm19476_vm15, %v15429_v22, %v4879_v63  ;;  %17194 = vmatmul.mubr.bf16.vlgmr.msra.gmra.mxu0 %v17398_v8 }
 0x378   :  { %v17401_v23 = vld [vmem:[#allocation3 + $0xb0] ss:$36 sps:$4 sm:$0xff]   ;;  %4422 = vst [vmem:[#allocation3 + $0x14c] sm:$0xf] %v4388_v48  ;;  %v4359_v25 = vld [vmem:[#allocation2 + $0x28] sm:$0xe]  ;;  %v4884_v11 = vsel %vm19476_vm15, %v15430_v45, %v4883_v14  ;;  %6078 = vmatmul.mubr.bf16.gmra.mxu1 %v17396_v33 }
 0x379   :  { %v4360_v26 = vld [vmem:[#allocation2 + $0x2c] sm:$0x1]  ;;  %v4361_v2 = vld [vmem:[#allocation2 + $0x30] sm:$0xe]  ;;  %v17409_v17 = vld [vmem:[#allocation13 + $0x1e0] sm:$0xff]   ;;  %v4887_v47 = vrot.slane %v4842_v30, 5  ;;  %6085 = vmatprep.mubr.bf16.mxu1 %v17399_v43  ;;  %17197 = vmatprep.mubr.bf16.mxu0 %v17401_v23 }
 0x37a   :  { %4905 = vst [vmem:[#allocation3 + $0x1d0] sm:$0xf] %v4880_v13  ;;  %v15432_v29 = vrot.slane %v4843_v37, 9  ;;  %v4891_v7 = vrot.slane %v4844_v36, 5  ;;  %v4362_v49 = vld [vmem:[#allocation2 + $0x34] sm:$0x1]  ;;  %v16822_v37 = vpop.f32.mrf.mxu0  ;;  %16869 = vmatprep.subr.bf16.mxu1 %v17409_v17 }
 0x37b   :  { %4906 = vst [vmem:[#allocation3 + $0x1f4] sm:$0xf] %v4884_v11  ;;  %v15411_v51 = vrot.slane %v4353_v44, 9  ;;  %v4391_v50 = vrot.slane %v4354_v58, 5  ;;  %v15412_v62 = vrot.slane %v4355_v60, 9  ;;  %v4395_v24 = vrot.slane %v4356_v41, 5 }
 0x37c   :  { %v4364_v19 = vld [vmem:[#allocation2 + $0x3c] sm:$0x1]  ;;  %v4888_v38 = vsel %vm19476_vm15, %v15431_v42, %v4887_v47  ;;  %v4892_v55 = vsel %vm19476_vm15, %v15432_v29, %v4891_v7  ;;  %v15413_v6 = vrot.slane %v4357_v5, 9  ;;  %v4399_v40 = vrot.slane %v4358_v52, 5  ;;  %v4363_v3 = vld [vmem:[#allocation2 + $0x38] sm:$0xe] }
 0x37d   :  { %v17411_v15 = vld [vmem:[#allocation13 + $0x1a0] sm:$0xff]   ;;  %4907 = vst [vmem:[#allocation3 + $0x218] sm:$0xf] %v4888_v38  ;;  %4908 = vst [vmem:[#allocation3 + $0x23c] sm:$0xf] %v4892_v55  ;;  %v4392_v35 = vsel %vm19476_vm15, %v15411_v51, %v4391_v50  ;;  %v4396_v61 = vsel %vm19476_vm15, %v15412_v62, %v4395_v24  ;;  %v17416_v36 = vld [vmem:[#allocation13 + $0x1d8] sm:$0xff]   ;;  %v20100_v32 = vadd.f32 %v16822_v37, %v16821_v4 }
 0x37e   :  { %4423 = vst [vmem:[#allocation3 + $0x170] sm:$0xf] %v4392_v35  ;;  %4424 = vst [vmem:[#allocation3 + $0x194] sm:$0xf] %v4396_v61  ;;  %v4400_v31 = vsel %vm19476_vm15, %v15413_v6, %v4399_v40  ;;  %v15414_v10 = vrot.slane %v4359_v25, 9  ;;  %v4403_v28 = vrot.slane %v4360_v26, 5  ;;  %16870 = vmatpush3.bf16.msra.mxu1 %v17411_v15 }
 0x37f   :  { %v15415_v22 = vrot.slane %v4361_v2, 9  ;;  %v17403_v44 = vld [vmem:[#allocation3 + $0x98] ss:$36 sps:$4 sm:$0xff]   ;;  %4425 = vst [vmem:[#allocation3 + $0x1b8] sm:$0xf] %v4400_v31  ;;  %v4407_v60 = vrot.slane %v4362_v49, 5  ;;  %16871 = vmatprep.subr.bf16.mxu1 %v17416_v36 }
 0x380   :  { %v17418_v58 = vld [vmem:[#allocation13 + $0x198] sm:$0xff]   ;;  %v15416_v41 = vrot.slane %v4363_v3, 9  ;;  %v4411_v27 = vrot.slane %v4364_v19, 5  ;;  %v22004_v63 = vld [vmem:[#allocation39_spill] sm:$0xff]  ;;  %v17422_v52 = vld [vmem:[#allocation13 + $0x1d0] sm:$0xff]   ;;  %v4404_v33 = vsel %vm19476_vm15, %v15414_v10, %v4403_v28  ;;  %6086 = vmatmul.mubr.bf16.gmra.mxu1 %v17403_v44 }
 0x381   :  { %v3598_v30 = vshrl.u32 %v22004_v63, 16  ;;  %v17405_v5 = vld [vmem:[#allocation3 + $0xf8] ss:$36 sps:$4 sm:$0xff]   ;;  %v3601_v8 = vshll.u32 %v22004_v63, 16  ;;  %v17406_v48 = vld [vmem:[#allocation3 + $0xe4] ss:$36 sps:$4 sm:$0xff]   ;;  %v4408_v45 = vsel %vm19476_vm15, %v15415_v22, %v4407_v60 }
 0x382   :  { %4426 = vst [vmem:[#allocation3 + $0x1dc] sm:$0xf] %v4404_v33  ;;  %v4412_v14 = vsel %vm19476_vm15, %v15416_v41, %v4411_v27  ;;  %v22005_v23 = vld [vmem:[#allocation41_spill] sm:$0xff]  ;;  %v17408_v42 = vld [vmem:[#allocation3 + $0x140] ss:$36 sps:$4 sm:$0xff]   ;;  %17198 = vmatmul.mubr.bf16.gmra.mxu0 %v17405_v5  ;;  %6093 = vmatprep.mubr.bf16.mxu1 %v17406_v48  ;;  %v22008_v51 = vld [vmem:[#allocation40_spill] sm:$0xff] }
 0x383   :  { %v3600_v43 = vrot.slane %v3598_v30, 4  ;;  %v3612_v13 = vshrl.u32 %v22005_v23, 16  ;;  %4427 = vst [vmem:[#allocation3 + $0x200] sm:$0xf] %v4408_v45  ;;  %4428 = vst [vmem:[#allocation3 + $0x224] sm:$0xf] %v4412_v14  ;;  %17201 = vmatprep.mubr.bf16.mxu0 %v17408_v42  ;;  %16872 = vmatpush3.bf16.msra.mxu1 %v17418_v58 }
 0x384   :  { %v3603_v25 = vrot.slane %v3601_v8, 5  ;;  %v22006_v26 = vld [vmem:[#allocation38_spill] sm:$0xff]  ;;  %v3615_v11 = vshll.u32 %v22005_v23, 16  ;;  %v22007_v47 = vld [vmem:[#allocation43_spill] sm:$0xff]  ;;  %v17424_v7 = vld [vmem:[#allocation13 + $0x190] sm:$0xff]   ;;  %v3621_v50 = vshll.u32 %v22008_v51, 16  ;;  %16873 = vmatprep.subr.bf16.mxu1 %v17422_v52 }
 0x385   :  { %v3607_v2 = vshll.u32 %v22006_v26, 16  ;;  %v3614_v17 = vrot.slane %v3612_v13, 4  ;;  %v3626_v29 = vshrl.u32 %v22007_v47, 16  ;;  %v17427_v62 = vld [vmem:[#allocation13 + $0x1c8] sm:$0xff]   ;;  %v3629_v38 = vshll.u32 %v22007_v47, 16  ;;  %v22009_v40 = vld [vmem:[#allocation42_spill] sm:$0xff] }
 0x386   :  { %v3604_v34 = vor.u32 %v3603_v25, %v3600_v43  ;;  %v3617_v49 = vrot.slane %v3615_v11, 5  ;;  %v17429_v55 = vld [vmem:[#allocation13 + $0x188] sm:$0xff]   ;;  %v3635_v3 = vshll.u32 %v22009_v40, 16  ;;  %v22010_v15 = vld [vmem:[#allocation47_spill] sm:$0xff]  ;;  %v3623_v44 = vrot.slane %v3621_v50, 5  ;;  %v22011_v30 = vld [vmem:[#allocation45_spill] sm:$0xff] }
 0x387   :  { %v3609_v19 = vrot.slane %v3607_v2, 5  ;;  %v3628_v4 = vrot.slane %v3626_v29, 4  ;;  %v3640_v35 = vshrl.u32 %v22010_v15, 16  ;;  %v3643_v61 = vshll.u32 %v22010_v15, 16  ;;  %v17410_v37 = vld [vmem:[#allocation3 + $0xe0] ss:$36 sps:$4 sm:$0xff]   ;;  %16874 = vmatpush3.bf16.msra.mxu1 %v17424_v7 }
 0x388   :  { %v3605_v24 = vrot.slane %v3604_v34, 4  ;;  %v3618_v6 = vor.u32 %v3617_v49, %v3614_v17  ;;  %v17412_v36 = vld [vmem:[#allocation3 + $0x188] ss:$36 sps:$4 sm:$0xff]   ;;  %v3631_v10 = vrot.slane %v3629_v38, 5  ;;  %v17415_v58 = vld [vmem:[#allocation3 + $0x1d0] ss:$36 sps:$4 sm:$0xff]   ;;  %16875 = vmatprep.subr.bf16.mxu1 %v17427_v62  ;;  %6094 = vmatmul.mubr.bf16.gmra.mxu1 %v17410_v37 }
 0x389   :  { %v17413_v28 = vld [vmem:[#allocation3 + $0x12c] ss:$36 sps:$4 sm:$0xff]   ;;  %v3642_v27 = vrot.slane %v3640_v35, 4  ;;  %v3645_v63 = vrot.slane %v3643_v61, 5  ;;  %v3649_v5 = vshll.u32 %v22011_v30, 16  ;;  %v3637_v33 = vrot.slane %v3635_v3, 5 }
 0x38a   :  { %v3610_v31 = vsel %vm19405_vm0, %v3605_v24, %v3609_v19  ;;  %v3619_v22 = vrot.slane %v3618_v6, 4  ;;  %v17432_v60 = vld [vmem:[#allocation13 + $0x1c0] sm:$0xff]   ;;  %v3632_v41 = vor.u32 %v3631_v10, %v3628_v4  ;;  %17202 = vmatmul.mubr.bf16.gmra.mxu0 %v17412_v36  ;;  %v22012_v8 = vld [vmem:[#allocation52_spill] sm:$0xff]  ;;  %6101 = vmatprep.mubr.bf16.mxu1 %v17413_v28  ;;  %v22013_v13 = vld [vmem:[#allocation49_spill] sm:$0xff]  ;;  %v3668_v25 = vshrl.u32 %v19899_v53, 16 }
 0x38b   :  { %3717 = vst [vmem:[#allocation3 + $0x1c] sm:$0xf] %v3610_v31  ;;  %v3654_v48 = vshrl.u32 %v22012_v8, 16  ;;  %v3657_v45 = vshll.u32 %v22012_v8, 16  ;;  %17205 = vmatprep.mubr.bf16.mxu0 %v17415_v58  ;;  %v17434_v14 = vld [vmem:[#allocation13 + $0x180] sm:$0xff]   ;;  %v3646_v23 = vor.u32 %v3645_v63, %v3642_v27  ;;  %v3663_v42 = vshll.u32 %v22013_v13, 16  ;;  %16876 = vmatpush3.bf16.msra.mxu1 %v17429_v55 }
 0x38c   :  { %v3624_v52 = vsel %vm19405_vm0, %v3619_v22, %v3623_v44  ;;  %v3633_v43 = vrot.slane %v3632_v41, 4  ;;  %v3651_v26 = vrot.slane %v3649_v5, 5  ;;  %v3671_v11 = vshll.u32 %v19899_v53, 16  ;;  %v3595_v47 = vld [vmem:[#allocation2 + $0x48] sm:$0xf]  ;;  %16877 = vmatprep.subr.bf16.mxu1 %v17432_v60  ;;  %v20133_v44 = vpop.f32.mrf.mxu1 }
 0x38d   :  { %3718 = vst [vmem:[#allocation3 + $0x40] sm:$0xf] %v3624_v52  ;;  %v3656_v2 = vrot.slane %v3654_v48, 4  ;;  %v3659_v17 = vrot.slane %v3657_v45, 5  ;;  %v3647_v34 = vrot.slane %v3646_v23, 4  ;;  %v3670_v7 = vrot.slane %v3668_v25, 4 }
 0x38e   :  { %v3638_v29 = vsel %vm19405_vm0, %v3633_v43, %v3637_v33  ;;  %v3677_v49 = vshll.u32 %v19882_v21, 16  ;;  %v3596_v51 = vld [vmem:[#allocation2 + $0x4c] sm:$0x1]  ;;  %v3673_v62 = vrot.slane %v3671_v11, 5  ;;  %v3682_v24 = vshrl.u32 %v19953_v57, 16 }
 0x38f   :  { %3719 = vst [vmem:[#allocation3 + $0x64] sm:$0xf] %v3638_v29  ;;  %v3660_v50 = vor.u32 %v3659_v17, %v3656_v2  ;;  %v3685_v19 = vshll.u32 %v19953_v57, 16  ;;  %v4685_v4 = vld [vmem:[#allocation2 + $0x10] sm:$0xf]  ;;  %v3652_v53 = vsel %vm19405_vm0, %v3647_v34, %v3651_v26  ;;  %v3665_v55 = vrot.slane %v3663_v42, 5  ;;  %16878 = vmatpush3.bf16.msra.mxu1 %v17434_v14  ;;  %v20139_v42 = vpop.f32.mrf.mxu1 }
 0x390   :  { %v17417_v38 = vld [vmem:[#allocation3 + $0x128] ss:$36 sps:$4 sm:$0xff]   ;;  %v3691_v6 = vshll.u32 %v19939_v54, 16  ;;  %v3696_v40 = vshrl.u32 %v3595_v47, 16  ;;  %v4686_v3 = vld [vmem:[#allocation2 + $0x14] sm:$0x1]  ;;  %v3674_v61 = vor.u32 %v3673_v62, %v3670_v7 }
 0x391   :  { %v4687_v15 = vld [vmem:[#allocation2 + $0x18] sm:$0xf]  ;;  %v17419_v21 = vld [vmem:[#allocation3 + $0x218] ss:$36 sps:$4 sm:$0xff]   ;;  %3720 = vst [vmem:[#allocation3 + $0x88] sm:$0xf] %v3652_v53  ;;  %6102 = vmatmul.mubr.bf16.gmra.mxu1 %v17417_v38  ;;  %v16699_v7 = vpop.f32.mrf.mxu1 }
 0x392   :  { %v3661_v35 = vrot.slane %v3660_v50, 4  ;;  %v3684_v37 = vrot.slane %v3682_v24, 4  ;;  %v3687_v36 = vrot.slane %v3685_v19, 5  ;;  %v17420_v31 = vld [vmem:[#allocation3 + $0x174] ss:$36 sps:$4 sm:$0xff]   ;;  %v3679_v57 = vrot.slane %v3677_v49, 5  ;;  %17206 = vmatmul.mubr.bf16.gmra.mxu0 %v17419_v21 }
 0x393   :  { %v3698_v10 = vrot.slane %v3696_v40, 4  ;;  %v3699_v28 = vshll.u32 %v3595_v47, 16  ;;  %v3705_v22 = vshll.u32 %v3596_v51, 16  ;;  %v3675_v58 = vrot.slane %v3674_v61, 4  ;;  %6109 = vmatprep.mubr.bf16.mxu1 %v17420_v31  ;;  %v4688_v8 = vld [vmem:[#allocation2 + $0x1c] sm:$0x1]  ;;  %v16700_v40 = vpop.f32.mrf.mxu1 }
 0x394   :  { %v3666_v54 = vsel %vm19405_vm0, %v3661_v35, %v3665_v55  ;;  %v3688_v60 = vor.u32 %v3687_v36, %v3684_v37  ;;  %v3693_v41 = vrot.slane %v3691_v6, 5  ;;  %v4702_v30 = vshrl.u32 %v4685_v4, 16  ;;  %v4689_v25 = vld [vmem:[#allocation2 + $0x20] sm:$0xf]  ;;  %v4690_v17 = vld [vmem:[#allocation2 + $0x24] sm:$0x1] }
 0x395   :  { %3721 = vst [vmem:[#allocation3 + $0xac] sm:$0xf] %v3666_v54  ;;  %v3701_v27 = vrot.slane %v3699_v28, 5  ;;  %v3707_v63 = vrot.slane %v3705_v22, 5  ;;  %v4705_v5 = vshll.u32 %v4685_v4, 16  ;;  %v3680_v52 = vsel %vm19405_vm0, %v3675_v58, %v3679_v57 }
 0x396   :  { %v3689_v33 = vrot.slane %v3688_v60, 4  ;;  %v4711_v48 = vshll.u32 %v4686_v3, 16  ;;  %v4716_v45 = vshrl.u32 %v4687_v15, 16  ;;  %3722 = vst [vmem:[#allocation3 + $0xd0] sm:$0xf] %v3680_v52  ;;  %v4704_v43 = vrot.slane %v4702_v30, 4 }
 0x397   :  { %v3702_v14 = vor.u32 %v3701_v27, %v3698_v10  ;;  %v4707_v23 = vrot.slane %v4705_v5, 5  ;;  %v4719_v13 = vshll.u32 %v4687_v15, 16  ;;  %v4691_v11 = vld [vmem:[#allocation2 + $0x28] sm:$0xf]  ;;  %v4725_v34 = vshll.u32 %v4688_v8, 16 }
 0x398   :  { %v3694_v26 = vsel %vm19405_vm0, %v3689_v33, %v3693_v41  ;;  %v4718_v2 = vrot.slane %v4716_v45, 4  ;;  %v17423_v49 = vld [vmem:[#allocation3 + $0x170] ss:$36 sps:$4 sm:$0xff]   ;;  %v4713_v51 = vrot.slane %v4711_v48, 5  ;;  %v4692_v62 = vld [vmem:[#allocation2 + $0x2c] sm:$0x1]  ;;  %v20147_v58 = vadd.f32 %v16700_v40, %v16699_v7 }
 0x399   :  { %v3703_v47 = vrot.slane %v3702_v14, 4  ;;  %3723 = vst [vmem:[#allocation3 + $0xf4] sm:$0xf] %v3694_v26  ;;  %v4708_v29 = vor.u32 %v4707_v23, %v4704_v43  ;;  %v4721_v50 = vrot.slane %v4719_v13, 5  ;;  %v4730_v24 = vshrl.u32 %v4689_v25, 16  ;;  %6110 = vmatmul.mubr.bf16.gmra.mxu1 %v17423_v49 }
 0x39a   :  { %v4733_v19 = vshll.u32 %v4689_v25, 16  ;;  %v17425_v4 = vld [vmem:[#allocation3 + $0x1bc] ss:$36 sps:$4 sm:$0xff]   ;;  %v4739_v55 = vshll.u32 %v4690_v17, 16  ;;  %v4744_v6 = vshrl.u32 %v4691_v11, 16  ;;  %v4747_v35 = vshll.u32 %v4691_v11, 16 }
 0x39b   :  { %v3708_v38 = vsel %vm19405_vm0, %v3703_v47, %v3707_v63  ;;  %v4709_v53 = vrot.slane %v4708_v29, 4  ;;  %v4722_v3 = vor.u32 %v4721_v50, %v4718_v2  ;;  %v4732_v15 = vrot.slane %v4730_v24, 4  ;;  %v4693_v61 = vld [vmem:[#allocation2 + $0x30] sm:$0xf]  ;;  %6117 = vmatprep.mubr.bf16.mxu1 %v17425_v4  ;;  %v4694_v57 = vld [vmem:[#allocation2 + $0x34] sm:$0x1] }
 0x39c   :  { %3724 = vst [vmem:[#allocation3 + $0x118] sm:$0xf] %v3708_v38  ;;  %v4735_v21 = vrot.slane %v4733_v19, 5  ;;  %v4727_v36 = vrot.slane %v4725_v34, 5  ;;  %v4746_v31 = vrot.slane %v4744_v6, 4  ;;  %v4741_v54 = vrot.slane %v4739_v55, 5 }
 0x39d   :  { %v4714_v37 = vsel %vm19405_vm0, %v4709_v53, %v4713_v51  ;;  %v4695_v10 = vld [vmem:[#allocation2 + $0x38] sm:$0xf]  ;;  %v4723_v28 = vrot.slane %v4722_v3, 4  ;;  %v4749_v60 = vrot.slane %v4747_v35, 5  ;;  %v4753_v41 = vshll.u32 %v4692_v62, 16 }
 0x39e   :  { %4821 = vst [vmem:[#allocation3 + $0x13c] sm:$0xf] %v4714_v37  ;;  %v4736_v22 = vor.u32 %v4735_v21, %v4732_v15  ;;  %v4696_v27 = vld [vmem:[#allocation2 + $0x3c] sm:$0x1]  ;;  %v4758_v63 = vshrl.u32 %v4693_v61, 16  ;;  %v4761_v30 = vshll.u32 %v4693_v61, 16 }
 0x39f   :  { %v4728_v5 = vsel %vm19405_vm0, %v4723_v28, %v4727_v36  ;;  %v4767_v33 = vshll.u32 %v4694_v57, 16  ;;  %v4772_v8 = vshrl.u32 %v4695_v10, 16  ;;  %v4697_v48 = vld [vmem:[#allocation2 + $0x40] sm:$0xf]  ;;  %v4750_v45 = vor.u32 %v4749_v60, %v4746_v31  ;;  %v4698_v13 = vld [vmem:[#allocation2 + $0x44] sm:$0x1] }
 0x3a0   :  { %v4737_v52 = vrot.slane %v4736_v22, 4  ;;  %4822 = vst [vmem:[#allocation3 + $0x160] sm:$0xf] %v4728_v5  ;;  %v4760_v14 = vrot.slane %v4758_v63, 4  ;;  %v4763_v43 = vrot.slane %v4761_v30, 5  ;;  %v4775_v23 = vshll.u32 %v4695_v10, 16 }
 0x3a1   :  { %v17428_v25 = vld [vmem:[#allocation3 + $0x1b8] ss:$36 sps:$4 sm:$0xff]   ;;  %v4774_v2 = vrot.slane %v4772_v8, 4  ;;  %v17430_v11 = vld [vmem:[#allocation3 + $0x204] ss:$36 sps:$4 sm:$0xff]   ;;  %v4751_v47 = vrot.slane %v4750_v45, 4 }
 0x3a2   :  { %v4742_v26 = vsel %vm19405_vm0, %v4737_v52, %v4741_v54  ;;  %v4699_v17 = vld [vmem:[#allocation2 + $0x48] sm:$0xf]  ;;  %v4755_v29 = vrot.slane %v4753_v41, 5  ;;  %v4764_v34 = vor.u32 %v4763_v43, %v4760_v14  ;;  %6118 = vmatmul.mubr.bf16.gmra.mxu1 %v17428_v25  ;;  %v4777_v7 = vrot.slane %v4775_v23, 5  ;;  %v4700_v51 = vld [vmem:[#allocation2 + $0x4c] sm:$0x1] }
 0x3a3   :  { %4823 = vst [vmem:[#allocation3 + $0x184] sm:$0xf] %v4742_v26  ;;  %v4781_v49 = vshll.u32 %v4696_v27, 16  ;;  %v4786_v50 = vshrl.u32 %v4697_v48, 16  ;;  %v4789_v62 = vshll.u32 %v4697_v48, 16  ;;  %6125 = vmatprep.mubr.bf16.mxu1 %v17430_v11  ;;  %v4769_v4 = vrot.slane %v4767_v33, 5  ;;  %v20163_v33 = vpop.f32.mrf.mxu0 }
 0x3a4   :  { %v4756_v24 = vsel %vm19405_vm0, %v4751_v47, %v4755_v29  ;;  %v4765_v19 = vrot.slane %v4764_v34, 4  ;;  %v4795_v38 = vshll.u32 %v4698_v13, 16  ;;  %v4778_v53 = vor.u32 %v4777_v7, %v4774_v2  ;;  %v17433_v57 = vld [vmem:[#allocation3 + $0x200] ss:$36 sps:$4 sm:$0xff]   ;;  %v17435_v5 = vld [vmem:[#allocation3 + $0x18] ss:$36 sps:$4 sm:$0xff]   ;;  %v20171_v47 = vpop.f32.mrf.mxu1 }
 0x3a5   :  { %4824 = vst [vmem:[#allocation3 + $0x1a8] sm:$0xf] %v4756_v24  ;;  %v4788_v55 = vrot.slane %v4786_v50, 4  ;;  %v4791_v6 = vrot.slane %v4789_v62, 5  ;;  %v4800_v40 = vshrl.u32 %v4699_v17, 16  ;;  %v4803_v15 = vshll.u32 %v4699_v17, 16  ;;  %v20165_v8 = vpop.f32.mrf.mxu0 }
 0x3a6   :  { %v4770_v3 = vsel %vm19405_vm0, %v4765_v19, %v4769_v4  ;;  %v4809_v21 = vshll.u32 %v4700_v51, 16  ;;  %v4779_v35 = vrot.slane %v4778_v53, 4  ;;  %v4783_v61 = vrot.slane %v4781_v49, 5  ;;  %v17437_v54 = vld [vmem:[#allocation3 + $0x1c] ss:$36 sps:$4 sm:$0xff]   ;;  %v20173_v7 = vpop.f32.mrf.mxu1 }
 0x3a7   :  { %4825 = vst [vmem:[#allocation3 + $0x1cc] sm:$0xf] %v4770_v3  ;;  %v4792_v37 = vor.u32 %v4791_v6, %v4788_v55  ;;  %v4802_v36 = vrot.slane %v4800_v40, 4  ;;  %v4805_v31 = vrot.slane %v4803_v15, 5  ;;  %v4797_v22 = vrot.slane %v4795_v38, 5  ;;  %v16827_v14 = vpop.f32.mrf.mxu0 }
 0x3a8   :  { %v4784_v10 = vsel %vm19405_vm0, %v4779_v35, %v4783_v61  ;;  %v4811_v41 = vrot.slane %v4809_v21, 5  ;;  %v17438_v52 = vld [vmem:[#allocation3 + $0x64] ss:$36 sps:$4 sm:$0xff]   ;;  %v17441_v45 = vld [vmem:[#allocation3 + $0xac] ss:$36 sps:$4 sm:$0xff]  }
 0x3a9   :  { %v4793_v28 = vrot.slane %v4792_v37, 4  ;;  %4826 = vst [vmem:[#allocation3 + $0x1f0] sm:$0xf] %v4784_v10  ;;  %v4806_v60 = vor.u32 %v4805_v31, %v4802_v36  ;;  %v17440_v48 = vld [vmem:[#allocation3 + $0x60] ss:$36 sps:$4 sm:$0xff]   ;;  %v16828_v43 = vpop.f32.mrf.mxu0 }
 0x3aa   :  { %6126 = vmatmul.mubr.bf16.gmra.mxu1 %v17433_v57  ;;  %v20167_v23 = vadd.f32 %v16828_v43, %v16827_v14  ;;  %v17443_v25 = vld [vmem:[#allocation3 + $0xa8] ss:$36 sps:$4 sm:$0xff]   ;;  %v17444_v2 = vld [vmem:[#allocation3 + $0xf4] ss:$36 sps:$4 sm:$0xff]   ;;  %v17447_v11 = vld [vmem:[#allocation3 + $0x13c] ss:$36 sps:$4 sm:$0xff]  }
 0x3ab   :  { %v4798_v27 = vsel %vm19405_vm0, %v4793_v28, %v4797_v22  ;;  %6263 = vmatprep.mubr.bf16.mxu1 %v17437_v54  ;;  %v4807_v63 = vrot.slane %v4806_v60, 4  ;;  %v16830_v13 = vpop.f32.mrf.mxu0  ;;  %v17446_v17 = vld [vmem:[#allocation3 + $0xf0] ss:$36 sps:$4 sm:$0xff]   ;;  %v17449_v29 = vld [vmem:[#allocation3 + $0x138] ss:$36 sps:$4 sm:$0xff]  }
 0x3ac   :  { %4827 = vst [vmem:[#allocation3 + $0x214] sm:$0xf] %v4798_v27  ;;  %v17450_v34 = vld [vmem:[#allocation3 + $0x184] ss:$36 sps:$4 sm:$0xff]   ;;  %v17458_v38 = vld [vmem:[#allocation3 + $0x210] ss:$36 sps:$4 sm:$0xff]  }
 0x3ad   :  { %v4812_v30 = vsel %vm19405_vm0, %v4807_v63, %v4811_v41  ;;  %v16831_v0 = vpop.f32.mrf.mxu0  ;;  %v17452_v50 = vld [vmem:[#allocation3 + $0x180] ss:$36 sps:$4 sm:$0xff]   ;;  %v17455_v19 = vld [vmem:[#allocation3 + $0x1c8] ss:$36 sps:$4 sm:$0xff]   ;;  %vm6972_vm7 = vsmask.f32 2306  ;;  %vm20492_vm0 = vmor %vm20476_vm3, %vm2945_vm8 }
 0x3ae   :  { %4828 = vst [vmem:[#allocation3 + $0x238] sm:$0xf] %v4812_v30  ;;  %v20169_v26 = vadd.f32 %v16831_v0, %v16830_v13  ;;  %vm20377_vm9 = vmand %vm3273_vm11, %vm6972_vm7  ;;  %vm7054_vm8 = vsmask.f32 1280  ;;  %vm7055_vm11 = vsmask.f32 3336 }
 0x3af   :  { %vm7059_vm15 = vsmask.f32 7448  ;;  %vm7056_vm7 = vmor %vm7054_vm8, %vm7055_vm11  ;;  %vm9649_vm11 = vsmask.f32 4368 }
 0x3b0   :  { %v17453_v24 = vld [vmem:[#allocation3 + $0x1cc] ss:$36 sps:$4 sm:$0xff]   ;;  %vm7058_vm13 = vmor %vm7056_vm7, %vm7057_vm14  ;;  %vm9651_vm7 = vsmask.f32 5396 }
 0x3b1   :  { %vm20618_vm3 = vmor %vm7058_vm13, %vm7059_vm15 }
 0x3b2   :  { %6264 = vmatmul.mubr.bf16.vlgmr.msra.gmra.mxu1 %v17435_v5 }
 0x3b3   :  { %6271 = vmatprep.mubr.bf16.mxu1 %v17438_v52 }
 0x3b5   :  { %v17456_v4 = vld [vmem:[#allocation3 + $0x214] ss:$36 sps:$4 sm:$0xff]  }
 0x3ba   :  { %6272 = vmatmul.mubr.bf16.gmra.mxu1 %v17440_v48 }
 0x3bb   :  { %6279 = vmatprep.mubr.bf16.mxu1 %v17441_v45 }
 0x3c2   :  { %6280 = vmatmul.mubr.bf16.gmra.mxu1 %v17443_v25 }
 0x3c3   :  { %6287 = vmatprep.mubr.bf16.mxu1 %v17444_v2  ;;  %v16705_v49 = vpop.f32.mrf.mxu1 }
 0x3c5   :  { %v16706_v51 = vpop.f32.mrf.mxu1 }
 0x3c6   :  { %v20175_v62 = vadd.f32 %v16706_v51, %v16705_v49 }
 0x3c7   :  { %v20179_v3 = vpop.f32.mrf.mxu1 }
 0x3c9   :  { %v20183_v35 = vpop.f32.mrf.mxu1 }
 0x3ca   :  { %6288 = vmatmul.mubr.bf16.gmra.mxu1 %v17446_v17 }
 0x3cb   :  { %6295 = vmatprep.mubr.bf16.mxu1 %v17447_v11 }
 0x3d2   :  { %6296 = vmatmul.mubr.bf16.gmra.mxu1 %v17449_v29 }
 0x3d3   :  { %6303 = vmatprep.mubr.bf16.mxu1 %v17450_v34 }
 0x3da   :  { %6304 = vmatmul.mubr.bf16.gmra.mxu1 %v17452_v50 }
 0x3db   :  { %6311 = vmatprep.mubr.bf16.mxu1 %v17453_v24 }
 0x3e0   :  { %v16833_v53 = vpop.f32.mrf.mxu0 }
 0x3e2   :  { %6312 = vmatmul.mubr.bf16.gmra.mxu1 %v17455_v19  ;;  %v16834_v55 = vpop.f32.mrf.mxu0 }
 0x3e3   :  { %6319 = vmatprep.mubr.bf16.mxu1 %v17456_v4  ;;  %v20177_v6 = vadd.f32 %v16834_v55, %v16833_v53 }
 0x3e4   :  { %v16836_v40 = vpop.f32.mrf.mxu0 }
 0x3e6   :  { %v16837_v15 = vpop.f32.mrf.mxu0 }
 0x3e7   :  { %v20181_v21 = vadd.f32 %v16837_v15, %v16836_v40  ;;  %v20221_v15 = vld [vmem:[#allocation14] ss:$0 sm:$0xff] }
 0x3ea   :  { %6320 = vmatmul.mubr.bf16.gmra.mxu1 %v17458_v38 }
 0x3eb   :  { %v16711_v61 = vpop.f32.mrf.mxu1 }
 0x3ed   :  { %v16712_v37 = vpop.f32.mrf.mxu1 }
 0x3ee   :  { %v20185_v36 = vadd.f32 %v16712_v37, %v16711_v61 }
 0x3ef   :  { %v20189_v22 = vpop.f32.mrf.mxu1 }
 0x3f1   :  { %v20193_v41 = vpop.f32.mrf.mxu1 }
 0x3f3   :  { %v16839_v31 = vpop.f32.mrf.mxu0 }
 0x3f5   :  { %v16840_v57 = vpop.f32.mrf.mxu0 }
 0x3f6   :  { %v20187_v10 = vadd.f32 %v16840_v57, %v16839_v31 }
 0x3f7   :  { %v16842_v28 = vpop.f32.mrf.mxu0 }
 0x3f9   :  { %v16843_v54 = vpop.f32.mrf.mxu0 }
 0x3fa   :  { %v20191_v60 = vadd.f32 %v16843_v54, %v16842_v28  ;;  %v5975_v28 = vadd.f32 %v19945_v16, %v20221_v15  ;;  %v5983_v16 = vadd.f32 %v20009_v59, %v20221_v15  ;;  %v5991_v59 = vadd.f32 %v20147_v58, %v20221_v15 }
 0x3fb   :  { %v16710_v58 = vadd.f32 %v20183_v35, %v20179_v3  ;;  %v17462_v3 = vld [vmem:[#allocation16 + $0x30] sm:$0xff]  }
 0x401   :  { %v16717_v27 = vpop.f32.mrf.mxu1 }
 0x403   :  { %v16718_v63 = vpop.f32.mrf.mxu1 }
 0x404   :  { %v20195_v30 = vadd.f32 %v16718_v63, %v16717_v27 }
 0x405   :  { %v20197_v52 = vpop.f32.mrf.mxu1 }
 0x407   :  { %v20201_v43 = vpop.f32.mrf.mxu1 }
 0x40b   :  { %v16845_v5 = vpop.f32.mrf.mxu0 }
 0x40d   :  { %v16846_v48 = vpop.f32.mrf.mxu0 }
 0x40e   :  { %v20199_v45 = vadd.f32 %v16846_v48, %v16845_v5  ;;  %v16817_v48 = vadd.f32 %v20063_v18, %v20049_v9 }
 0x40f   :  { %v16848_v14 = vpop.f32.mrf.mxu0 }
 0x411   :  { %v16849_v13 = vpop.f32.mrf.mxu0 }
 0x412   :  { %v20203_v0 = vadd.f32 %v16849_v13, %v16848_v14 }
 0x415   :  { %v16723_v25 = vpop.f32.mrf.mxu1 }
 0x417   :  { %v16724_v2 = vpop.f32.mrf.mxu1 }
 0x418   :  { %v20205_v17 = vadd.f32 %v16724_v2, %v16723_v25  ;;  %v16851_v11 = vpop.f32.mrf.mxu0 }
 0x419   :  { %v20207_v29 = vpop.f32.mrf.mxu1 }
 0x41a   :  { %v16852_v34 = vpop.f32.mrf.mxu0 }
 0x41b   :  { %v20209_v49 = vadd.f32 %v16852_v34, %v16851_v11  ;;  %v20211_v50 = vpop.f32.mrf.mxu1 }
 0x41c   :  { %v16854_v51 = vpop.f32.mrf.mxu0 }
 0x41e   :  { %v16855_v24 = vpop.f32.mrf.mxu0 }
 0x41f   :  { %v20213_v19 = vadd.f32 %v16855_v24, %v16854_v51  ;;  %v16698_v24 = vadd.f32 %v20139_v42, %v20133_v44  ;;  %v16704_v44 = vadd.f32 %v20173_v7, %v20171_v47 }
 0x420   :  { %v16729_v4 = vpop.f32.mrf.mxu1 }
 0x421   :  { %v5986_v18 = vadd.f32 %v16698_v24, %v20221_v15 }
 0x422   :  { %v16730_v38 = vpop.f32.mrf.mxu1 }
 0x423   :  { %v20215_v53 = vadd.f32 %v16730_v38, %v16729_v4 }
 0x424   :  { %v20217_v55 = vpop.f32.mrf.mxu1 }
 0x426   :  { %v20219_v40 = vpop.f32.mrf.mxu1 }
 0x429   :  { %v16751_v61 = vpop.f32.mrf.mxu1 }
 0x42b   :  { %v16752_v31 = vpop.f32.mrf.mxu1 }
 0x42c   :  { %v16753_v54 = vadd.f32 %v16752_v31, %v16751_v61 }
 0x42d   :  { %v16857_v37 = vpop.f32.mrf.mxu0  ;;  %v20227_v63 = vpop.f32.mrf.mxu1 }
 0x42e   :  { %v6072_v14 = vadd.f32 %v16753_v54, %v5975_v28 }
 0x42f   :  { %v16858_v57 = vpop.f32.mrf.mxu0  ;;  %v20231_v13 = vpop.f32.mrf.mxu1 }
 0x430   :  { %v20225_v27 = vadd.f32 %v16858_v57, %v16857_v37  ;;  %v20235_v11 = vadd.f32 %v16817_v48, %v6072_v14 }
 0x431   :  { %v16860_v5 = vpop.f32.mrf.mxu0 }
 0x433   :  { %v16861_v25 = vpop.f32.mrf.mxu0 }
 0x434   :  { %v20233_v2 = vadd.f32 %v16861_v25, %v16860_v5  ;;  %v5994_v25 = vadd.f32 %v16704_v44, %v20221_v15 }
 0x438   :  { %v16757_v34 = vpop.f32.mrf.mxu1 }
 0x43a   :  { %v16758_v51 = vpop.f32.mrf.mxu1 }
 0x43b   :  { %v16759_v4 = vadd.f32 %v16758_v51, %v16757_v34 }
 0x43c   :  { %v16760_v38 = vpop.f32.mrf.mxu1 }
 0x43d   :  { %v6080_v61 = vadd.f32 %v16759_v4, %v5983_v16  ;;  %v5999_v4 = vadd.f32 %v20175_v62, %v20221_v15 }
 0x43e   :  { %v16761_v9 = vpop.f32.mrf.mxu1 }
 0x43f   :  { %v16762_v37 = vadd.f32 %v16761_v9, %v16760_v38  ;;  %v20243_v31 = vadd.f32 %v20100_v32, %v6080_v61 }
 0x440   :  { %v16763_v57 = vpop.f32.mrf.mxu1 }
 0x441   :  { %v20245_v28 = vadd.f32 %v16762_v37, %v5986_v18  ;;  %v17459_v18 = vld [vmem:[#allocation16 + $0x78] sm:$0xff]  }
 0x442   :  { %v16764_v54 = vpop.f32.mrf.mxu1  ;;  %v17460_v37 = vld [vmem:[#allocation16 + $0x38] sm:$0xff]   ;;  %16943 = vmatprep.subr.bf16.mxu1 %v17459_v18 }
 0x443   :  { %v16765_v42 = vadd.f32 %v16764_v54, %v16763_v57  ;;  %v6002_v57 = vadd.f32 %v16710_v58, %v20221_v15  ;;  %16944 = vmatpush3.bf16.msra.mxu1 %v17460_v37 }
 0x444   :  { %v16766_v5 = vpop.f32.mrf.mxu1 }
 0x445   :  { %v6088_v48 = vadd.f32 %v16765_v42, %v5991_v59  ;;  %v16716_v42 = vadd.f32 %v20193_v41, %v20189_v22  ;;  %v6015_v22 = vadd.f32 %v20195_v30, %v20221_v15  ;;  %v6023_v30 = vadd.f32 %v20205_v17, %v20221_v15 }
 0x446   :  { %v16767_v14 = vpop.f32.mrf.mxu1 }
 0x447   :  { %v16768_v34 = vadd.f32 %v16767_v14, %v16766_v5  ;;  %v20253_v32 = vadd.f32 %v20167_v23, %v6088_v48  ;;  %v17461_v23 = vld [vmem:[#allocation16 + $0x70] sm:$0xff]  }
 0x448   :  { %v16769_v51 = vpop.f32.mrf.mxu1  ;;  %16945 = vmatprep.subr.bf16.mxu1 %v17461_v23 }
 0x449   :  { %v6091_v16 = vadd.f32 %v16768_v34, %v5994_v25  ;;  %16946 = vmatpush3.bf16.msra.mxu1 %v17462_v3  ;;  %v6010_v34 = vadd.f32 %v16716_v42, %v20221_v15 }
 0x44a   :  { %v16770_v24 = vpop.f32.mrf.mxu1 }
 0x44b   :  { %v16771_v47 = vadd.f32 %v16770_v24, %v16769_v51  ;;  %v20260_v7 = vadd.f32 %v20169_v26, %v6091_v16  ;;  %v6007_v26 = vadd.f32 %v20185_v36, %v20221_v15 }
 0x44c   :  { %v16772_v38 = vpop.f32.mrf.mxu1 }
 0x44d   :  { %v6096_v61 = vadd.f32 %v16771_v47, %v5999_v4 }
 0x44e   :  { %v16773_v9 = vpop.f32.mrf.mxu1 }
 0x44f   :  { %v16774_v54 = vadd.f32 %v16773_v9, %v16772_v38  ;;  %v20264_v59 = vadd.f32 %v20177_v6, %v6096_v61 }
 0x451   :  { %v16775_v62 = vpop.f32.mrf.mxu1  ;;  %v6099_v44 = vadd.f32 %v16774_v54, %v6002_v57 }
 0x453   :  { %v16776_v35 = vpop.f32.mrf.mxu1  ;;  %v20271_v48 = vadd.f32 %v20181_v21, %v6099_v44  ;;  %v16722_v21 = vadd.f32 %v20201_v43, %v20197_v52  ;;  %v16728_v52 = vadd.f32 %v20211_v50, %v20207_v29  ;;  %v17464_v44 = vld [vmem:[#allocation16 + $0x28] sm:$0xff]   ;;  %v17465_v29 = vld [vmem:[#allocation16 + $0x60] sm:$0xff]   ;;  %v17466_v50 = vld [vmem:[#allocation16 + $0xf8] sm:$0xff]  }
 0x454   :  { %v16777_v5 = vadd.f32 %v16776_v35, %v16775_v62  ;;  %v17463_v62 = vld [vmem:[#allocation16 + $0x68] sm:$0xff]   ;;  %16971 = vmatprep.subr.bf16.mxu0 %v17466_v50 }
 0x455   :  { %v16778_v14 = vpop.f32.mrf.mxu1  ;;  %v6018_v9 = vadd.f32 %v16722_v21, %v20221_v15  ;;  %16947 = vmatprep.subr.bf16.mxu1 %v17463_v62  ;;  %v17474_v50 = vld [vmem:[#allocation16 + $0xa8] sm:$0xff]  }
 0x456   :  { %v6104_v6 = vadd.f32 %v16777_v5, %v6007_v26  ;;  %16948 = vmatpush3.bf16.msra.mxu1 %v17464_v44 }
 0x457   :  { %v16779_v25 = vpop.f32.mrf.mxu1  ;;  %16949 = vmatprep.subr.bf16.mxu1 %v17465_v29 }
 0x458   :  { %v16780_v51 = vadd.f32 %v16779_v25, %v16778_v14  ;;  %v20275_v16 = vadd.f32 %v20187_v10, %v6104_v6  ;;  %v17467_v14 = vld [vmem:[#allocation16 + $0x20] sm:$0xff]   ;;  %v17468_v25 = vld [vmem:[#allocation16 + $0xb8] sm:$0xff]  }
 0x459   :  { %v16781_v24 = vpop.f32.mrf.mxu1  ;;  %16972 = vmatpush3.bf16.msra.mxu0 %v17468_v25  ;;  %v17479_v25 = vld [vmem:[#allocation16 + $0x10] sm:$0xff]  }
 0x45a   :  { %v6107_v4 = vadd.f32 %v16780_v51, %v6010_v34  ;;  %v17469_v34 = vld [vmem:[#allocation16 + $0xf0] sm:$0xff]   ;;  %v16734_v51 = vadd.f32 %v20219_v40, %v20217_v55  ;;  %16950 = vmatpush3.bf16.msra.mxu1 %v17467_v14  ;;  %v16756_v55 = vadd.f32 %v20231_v13, %v20227_v63 }
 0x45b   :  { %v16782_v36 = vpop.f32.mrf.mxu1  ;;  %16973 = vmatprep.subr.bf16.mxu0 %v17469_v34  ;;  %v17477_v14 = vld [vmem:[#allocation16 + $0x50] sm:$0xff]  }
 0x45c   :  { %v16783_v41 = vadd.f32 %v16782_v36, %v16781_v24  ;;  %v20282_v58 = vadd.f32 %v20191_v60, %v6107_v4  ;;  %v16692_v36 = vadd.f32 %v19989_v12, %v19981_v1 }
 0x45d   :  { %v16784_v47 = vpop.f32.mrf.mxu1 }
 0x45e   :  { %v6112_v38 = vadd.f32 %v16783_v41, %v6015_v22  ;;  %v6034_v41 = vadd.f32 %v16734_v51, %v20221_v15 }
 0x45f   :  { %v16785_v61 = vpop.f32.mrf.mxu1 }
 0x460   :  { %v16786_v10 = vadd.f32 %v16785_v61, %v16784_v47  ;;  %v20286_v18 = vadd.f32 %v20199_v45, %v6112_v38  ;;  %v6026_v45 = vadd.f32 %v16728_v52, %v20221_v15  ;;  %v5978_v38 = vadd.f32 %v16692_v36, %v20221_v15 }
 0x462   :  { %v16787_v37 = vpop.f32.mrf.mxu1  ;;  %v6115_v23 = vadd.f32 %v16786_v10, %v6018_v9  ;;  %v6075_v1 = vadd.f32 %v16756_v55, %v5978_v38  ;;  %v20326_v38 = vld.sshfl [vmem:[#allocation4] sm:$0x12 pattern:$0x76325410] }
 0x464   :  { %v16788_v57 = vpop.f32.mrf.mxu1  ;;  %v20293_v43 = vadd.f32 %v20203_v0, %v6115_v23  ;;  %v6031_v0 = vadd.f32 %v20215_v53, %v20221_v15  ;;  %v17195_v53 = vpop.f32.mrf.mxu0 }
 0x465   :  { %v16789_v60 = vadd.f32 %v16788_v57, %v16787_v37  ;;  %v16820_v57 = vadd.f32 %v20082_v20, %v20074_v46  ;;  %v16826_v46 = vadd.f32 %v20165_v8, %v20163_v33  ;;  %v17483_v33 = vld [vmem:[#allocation16 + $0x48] sm:$0xff]  }
 0x466   :  { %v16790_v54 = vpop.f32.mrf.mxu1  ;;  %v6362_v9 = vpop.f32.mrf.mxu0 }
 0x467   :  { %v6120_v3 = vadd.f32 %v16789_v60, %v6023_v30  ;;  %v6172_v30 = vadd.f32 %v16820_v57, %v6075_v1 }
 0x468   :  { %v16791_v35 = vpop.f32.mrf.mxu1  ;;  %v17196_v13 = vpop.f32.mrf.mxu0 }
 0x469   :  { %v16792_v26 = vadd.f32 %v16791_v35, %v16790_v54  ;;  %v20297_v42 = vadd.f32 %v20209_v49, %v6120_v3 }
 0x46a   :  { %v16793_v17 = vpop.f32.mrf.mxu1  ;;  %v6365_v62 = vpop.f32.mrf.mxu0 }
 0x46b   :  { %v6123_v5 = vadd.f32 %v16792_v26, %v6026_v45  ;;  %v17470_v45 = vld [vmem:[#allocation16 + $0xb0] sm:$0xff]   ;;  %v17472_v26 = vld [vmem:[#allocation16 + $0xe8] sm:$0xff]  }
 0x46c   :  { %v16794_v6 = vpop.f32.mrf.mxu1  ;;  %16974 = vmatpush3.bf16.msra.mxu0 %v17470_v45  ;;  %v20330_v1 = vpop.f32.mrf.mxu0  ;;  %v17481_v45 = vld [vmem:[#allocation16 + $0xd0] sm:$0xff]  }
 0x46d   :  { %v16795_v24 = vadd.f32 %v16794_v6, %v16793_v17  ;;  %v20304_v4 = vadd.f32 %v20213_v19, %v6123_v5  ;;  %v17473_v5 = vld [vmem:[#allocation16 + $0x18] sm:$0xff]   ;;  %16975 = vmatprep.subr.bf16.mxu0 %v17472_v26  ;;  %v17475_v6 = vld [vmem:[#allocation16 + $0xe0] sm:$0xff]  }
 0x46e   :  { %v16796_v49 = vpop.f32.mrf.mxu1 }
 0x46f   :  { %v6128_v22 = vadd.f32 %v16795_v24, %v6031_v0  ;;  %v6180_v24 = vadd.f32 %v16826_v46, %v20245_v28 }
 0x470   :  { %v16797_v21 = vpop.f32.mrf.mxu1  ;;  %16976 = vmatpush3.bf16.msra.mxu0 %v17474_v50 }
 0x471   :  { %v16798_v40 = vadd.f32 %v16797_v21, %v16796_v49  ;;  %v20312_v19 = vadd.f32 %v20225_v27, %v6128_v22  ;;  %v17476_v21 = vld [vmem:[#allocation16 + $0xa0] sm:$0xff]   ;;  %16977 = vmatprep.subr.bf16.mxu0 %v17475_v6 }
 0x472   :  { %v16879_v47 = vpop.f32.mrf.mxu1 }
 0x473   :  { %v6131_v61 = vadd.f32 %v16798_v40, %v6034_v41  ;;  %v17478_v41 = vld [vmem:[#allocation16 + $0xd8] sm:$0xff]  }
 0x474   :  { %v16880_v10 = vpop.f32.mrf.mxu1  ;;  %16978 = vmatpush3.bf16.msra.mxu0 %v17476_v21 }
 0x475   :  { %v16881_v12 = vadd.f32 %v16880_v10, %v16879_v47  ;;  %v20316_v37 = vadd.f32 %v20233_v2, %v6131_v61  ;;  %v17471_v2 = vld [vmem:[#allocation16 + $0x58] sm:$0xff]   ;;  %v17485_v47 = vld [vmem:[#allocation16 + $0x8] sm:$0xff]   ;;  %v17488_v10 = vld [vmem:[#allocation16 + $0x40] sm:$0xff]   ;;  %16979 = vmatprep.subr.bf16.mxu0 %v17478_v41 }
 0x476   :  { %v16882_v23 = vpop.f32.mrf.mxu1  ;;  %16951 = vmatprep.subr.bf16.mxu1 %v17471_v2  ;;  %v17490_v2 = vld [vmem:[#allocation16] sm:$0xff]  }
 0x477   :  { %v6266_v63 = vadd.f32 %v16881_v12, %v20235_v11  ;;  %16952 = vmatpush3.bf16.msra.mxu1 %v17473_v5 }
 0x478   :  { %v16883_v27 = vpop.f32.mrf.mxu1  ;;  %16953 = vmatprep.subr.bf16.mxu1 %v17477_v14 }
 0x479   :  { %v16884_v52 = vadd.f32 %v16883_v27, %v16882_v23  ;;  %v6363_v15 = vadd.f32 %v6362_v9, %v6266_v63  ;;  %v7152_v63 = vcombine.high %v20326_v38, %v20326_v38  ;;  %v15606_v27 = vrot.slane %v20326_v38, 9 }
 0x47a   :  { %v16885_v60 = vpop.f32.mrf.mxu1 }
 0x47b   :  { %v6269_v54 = vadd.f32 %v16884_v52, %v6172_v30  ;;  %v6425_v20 = vmax.f32 %v6363_v15, 0.0  ;;  %16954 = vmatpush3.bf16.msra.mxu1 %v17479_v25  ;;  %v20339_v46 = vrot.slane %v7152_v63, 7 }
 0x47c   :  { %v16886_v44 = vpop.f32.mrf.mxu1  ;;  %16955 = vmatprep.subr.bf16.mxu1 %v17483_v33 }
 0x47d   :  { %v6366_v3 = vadd.f32 %v6365_v62, %v6269_v54  ;;  %v16887_v35 = vadd.f32 %v16886_v44, %v16885_v60 }
 0x47e   :  { %v16888_v17 = vpop.f32.mrf.mxu1 }
 0x47f   :  { %v6426_v11 = vmax.f32 %v6366_v3, 0.0  ;;  %v6274_v29 = vadd.f32 %v16887_v35, %v20243_v31  ;;  %16956 = vmatpush3.bf16.msra.mxu1 %v17485_v47 }
 0x480   :  { %v16889_v0 = vpop.f32.mrf.mxu1  ;;  %16957 = vmatprep.subr.bf16.mxu1 %v17488_v10 }
 0x481   :  { %v6441_v34 = vmax.f32 %v6425_v20, %v6426_v11  ;;  %v6371_v51 = vadd.f32 %v17195_v53, %v6274_v29  ;;  %v16890_v49 = vadd.f32 %v16889_v0, %v16888_v17  ;;  %v6378_v20 = vpop.f32.mrf.mxu0 }
 0x482   :  { %v16891_v8 = vpop.f32.mrf.mxu1 }
 0x483   :  { %v6449_v36 = vcombine.high %v6441_v34, %v6441_v34  ;;  %v6456_v31 = vrot.slane %v6441_v34, %v19023_v56  ;;  %v6277_v22 = vadd.f32 %v16890_v49, %v6180_v24  ;;  %v6427_v55 = vmax.f32 %v6371_v51, 0.0  ;;  %v17482_v51 = vld [vmem:[#allocation16 + $0x90] sm:$0xff]   ;;  %16958 = vmatpush3.bf16.msra.mxu1 %v17490_v2 }
 0x484   :  { %v16892_v40 = vpop.f32.mrf.mxu1 }
 0x485   :  { %v6463_v28 = vrot.slane %v6449_v36, %v19023_v56  ;;  %v6464_v53 = vcombine.high %v6456_v31, %v6456_v31  ;;  %v6533_v61 = vsel %vm1268_vm1, %v6456_v31, -inf  ;;  %v6374_v9 = vadd.f32 %v17196_v13, %v6277_v22  ;;  %v17480_v13 = vld [vmem:[#allocation16 + $0x98] sm:$0xff]   ;;  %v17484_v31 = vld [vmem:[#allocation16 + $0xc8] sm:$0xff]  }
 0x486   :  { %v6534_v12 = vrot.slane %v6533_v61, 4  ;;  %v16893_v23 = vadd.f32 %v16892_v40, %v16891_v8  ;;  %v16894_v57 = vpop.f32.mrf.mxu1  ;;  %16980 = vmatpush3.bf16.msra.mxu0 %v17480_v13  ;;  %v17487_v13 = vld [vmem:[#allocation16 + $0xc0] sm:$0xff]  }
 0x487   :  { %v6465_v30 = vcombine.high %v6463_v28, %v6463_v28  ;;  %v6540_v52 = vsel %vm1268_vm1, %v6464_v53, -inf  ;;  %v6547_v60 = vsel %vm1268_vm1, %v6463_v28, -inf  ;;  %v6428_v15 = vmax.f32 %v6374_v9, 0.0  ;;  %16981 = vmatprep.subr.bf16.mxu0 %v17481_v45 }
 0x488   :  { %v6535_v54 = vmax.f32 %v6533_v61, %v6534_v12  ;;  %v6541_v62 = vrot.slane %v6540_v52, 4  ;;  %v6548_v44 = vrot.slane %v6547_v60, 4  ;;  %v6282_v3 = vadd.f32 %v16893_v23, %v20253_v32  ;;  %v16895_v35 = vpop.f32.mrf.mxu1 }
 0x489   :  { %v6554_v26 = vsel %vm1268_vm1, %v6465_v30, -inf  ;;  %v6442_v17 = vmax.f32 %v6427_v55, %v6428_v15  ;;  %v16896_v5 = vadd.f32 %v16895_v35, %v16894_v57  ;;  %v17486_v57 = vld [vmem:[#allocation16 + $0x88] sm:$0xff]  }
 0x48a   :  { %v6536_v11 = vrot.slane %v6535_v54, 2  ;;  %v6542_v29 = vmax.f32 %v6540_v52, %v6541_v62  ;;  %v6549_v50 = vmax.f32 %v6547_v60, %v6548_v44  ;;  %v6555_v14 = vrot.slane %v6554_v26, 4  ;;  %v20341_v0 = vpop.f32.mrf.mxu1  ;;  %16982 = vmatpush3.bf16.msra.mxu0 %v17482_v51 }
 0x48b   :  { %v6466_v32 = vcombine.high %v6442_v17, %v6442_v17  ;;  %v6473_v6 = vrot.slane %v6442_v17, %v19023_v56  ;;  %v20344_v25 = vadd.f32 %v6378_v20, %v6282_v3  ;;  %v20347_v34 = vadd.f32 %v16896_v5, %v20260_v7  ;;  %v17501_v7 = vld [vmem:[#allocation16 + $0x178] sm:$0xff]   ;;  %16983 = vmatprep.subr.bf16.mxu0 %v17484_v31 }
 0x48c   :  { %v6537_v24 = vmax.f32 %v6535_v54, %v6536_v11  ;;  %v6543_v49 = vrot.slane %v6542_v29, 2  ;;  %v6550_v33 = vrot.slane %v6549_v50, 2  ;;  %v6556_v8 = vmax.f32 %v6554_v26, %v6555_v14  ;;  %v20349_v36 = vpop.f32.mrf.mxu1  ;;  %16999 = vmatprep.subr.bf16.mxu1 %v17501_v7  ;;  %v20360_v54 = vpop.f32.mrf.mxu0  ;;  %v17489_v14 = vld [vmem:[#allocation16 + $0x80] sm:$0xff]  }
 0x48d   :  { %v6480_v22 = vrot.slane %v6466_v32, %v19023_v56  ;;  %v6481_v21 = vcombine.high %v6473_v6, %v6473_v6  ;;  %v6561_v41 = vsel %vm1268_vm1, %v6473_v6, -inf  ;;  %v6429_v55 = vmax.f32 %v20344_v25, 0.0 }
 0x48e   :  { %v6538_v40 = vrot.slane %v6537_v24, 1  ;;  %v6544_v47 = vmax.f32 %v6542_v29, %v6543_v49  ;;  %v6551_v28 = vmax.f32 %v6549_v50, %v6550_v33  ;;  %v6557_v53 = vrot.slane %v6556_v8, 2  ;;  %v20354_v61 = vpop.f32.mrf.mxu1  ;;  %16984 = vmatpush3.bf16.msra.mxu0 %v17486_v57  ;;  %v17502_v33 = vld [vmem:[#allocation16 + $0x1f8] sm:$0xff]  }
 0x48f   :  { %v6482_v9 = vcombine.high %v6480_v22, %v6480_v22  ;;  %v6562_v10 = vrot.slane %v6561_v41, 4  ;;  %v6568_v12 = vsel %vm1268_vm1, %v6481_v21, -inf  ;;  %v6575_v23 = vsel %vm1268_vm1, %v6480_v22, -inf  ;;  %16985 = vmatprep.subr.bf16.mxu0 %v17487_v13 }
 0x490   :  { %v6539_v63 = vmax.f32 %v6537_v24, %v6538_v40  ;;  %v6545_v30 = vrot.slane %v6544_v47, 1  ;;  %v6552_v52 = vrot.slane %v6551_v28, 1  ;;  %v6558_v60 = vmax.f32 %v6556_v8, %v6557_v53  ;;  %v20358_v15 = vpop.f32.mrf.mxu1  ;;  %v6381_v8 = vpop.f32.mrf.mxu0 }
 0x491   :  { %v6563_v62 = vmax.f32 %v6561_v41, %v6562_v10  ;;  %v6569_v44 = vrot.slane %v6568_v12, 4  ;;  %v6576_v3 = vrot.slane %v6575_v23, 4  ;;  %v6582_v35 = vsel %vm1268_vm1, %v6482_v9, -inf }
 0x492   :  { %v6546_v45 = vmax.f32 %v6544_v47, %v6545_v30  ;;  %v6553_v2 = vmax.f32 %v6551_v28, %v6552_v52  ;;  %v6559_v26 = vrot.slane %v6558_v60, 1  ;;  %v16605_v17 = vpack.c.bf16 %v6539_v63, %v6539_v63  ;;  %v20363_v5 = vpop.f32.mrf.mxu1  ;;  %16986 = vmatpush3.bf16.msra.mxu0 %v17489_v14 }
 0x493   :  { %v6564_v20 = vrot.slane %v6563_v62, 2  ;;  %v6570_v11 = vmax.f32 %v6568_v12, %v6569_v44  ;;  %v6577_v29 = vmax.f32 %v6575_v23, %v6576_v3  ;;  %v6583_v50 = vrot.slane %v6582_v35, 4  ;;  %17027 = vmatprep.subr.bf16.mxu0 %v17502_v33 }
 0x494   :  { %v6560_v32 = vmax.f32 %v6558_v60, %v6559_v26  ;;  %v16606_v6 = vpack.c.bf16 %v6546_v45, %v6546_v45  ;;  %v16607_v51 = vpack.c.bf16 %v6553_v2, %v6553_v2  ;;  %v6935_v24 = vunpack.c.l.b16 %v16605_v17  ;;  %v20365_v49 = vpop.f32.mrf.mxu1  ;;  %v6974_v45 = vld [vmem:[#allocation4 + $0x4] sm:$0x7]  ;;  %v20386_v17 = vpop.f32.mrf.mxu0 }
 0x495   :  { %v6565_v31 = vmax.f32 %v6563_v62, %v6564_v20  ;;  %v6571_v22 = vrot.slane %v6570_v11, 2  ;;  %v6578_v21 = vrot.slane %v6577_v29, 2  ;;  %v6584_v41 = vmax.f32 %v6582_v35, %v6583_v50 }
 0x496   :  { %v16608_v7 = vpack.c.bf16 %v6560_v32, %v6560_v32  ;;  %v6936_v40 = vunpack.c.l.b16 %v16606_v6  ;;  %v6937_v47 = vunpack.c.l.b16 %v16607_v51  ;;  %v6382_v28 = vadd.f32 %v6381_v8, %v20347_v34  ;;  %v20368_v53 = vpop.f32.mrf.mxu1 }
 0x497   :  { %v6566_v9 = vrot.slane %v6565_v31, 1  ;;  %v6572_v10 = vmax.f32 %v6570_v11, %v6571_v22  ;;  %v6579_v12 = vmax.f32 %v6577_v29, %v6578_v21  ;;  %v6585_v23 = vrot.slane %v6584_v41, 2 }
 0x498   :  { %v6938_v57 = vunpack.c.l.b16 %v16608_v7  ;;  %v6951_v63 = vsel %vm2937_vm2, %v6936_v40, %v6935_v24  ;;  %v6430_v30 = vmax.f32 %v6382_v28, 0.0  ;;  %v16899_v52 = vadd.f32 %v20349_v36, %v20341_v0  ;;  %v16907_v60 = vpop.f32.mrf.mxu1 }
 0x499   :  { %v6952_v13 = vsel %vm2939_vm5, %v6937_v47, %v6951_v63  ;;  %v6567_v62 = vmax.f32 %v6565_v31, %v6566_v9  ;;  %v6573_v34 = vrot.slane %v6572_v10, 1  ;;  %v6580_v44 = vrot.slane %v6579_v12, 1 }
 0x49a   :  { %v6953_v3 = vsel %vm2941_vm6, %v6938_v57, %v6952_v13  ;;  %v6586_v2 = vmax.f32 %v6584_v41, %v6585_v23  ;;  %v6443_v0 = vmax.f32 %v6429_v55, %v6430_v30  ;;  %v6290_v36 = vadd.f32 %v16899_v52, %v20264_v59  ;;  %v20384_v26 = vpop.f32.mrf.mxu1  ;;  %v6394_v41 = vpop.f32.mrf.mxu0 }
 0x49b   :  { %v6963_v20 = vpack.c.b16 %v6953_v3, %v6953_v3  ;;  %v6574_v11 = vmax.f32 %v6572_v10, %v6573_v34  ;;  %v6581_v29 = vmax.f32 %v6579_v12, %v6580_v44  ;;  %v16609_v50 = vpack.c.bf16 %v6567_v62, %v6567_v62 }
 0x49c   :  { %v6587_v14 = vrot.slane %v6586_v2, 1  ;;  %v6483_v32 = vcombine.high %v6443_v0, %v6443_v0  ;;  %v6490_v6 = vrot.slane %v6443_v0, %v19023_v56  ;;  %v20390_v51 = vadd.f32 %v20330_v1, %v6290_v36  ;;  %v16910_v21 = vpop.f32.mrf.mxu1  ;;  %v20406_v3 = vpop.f32.mrf.mxu0 }
 0x49d   :  { %v6975_v25 = vsel %vm20377_vm9, %v6963_v20, %v6974_v45  ;;  %v16610_v55 = vpack.c.bf16 %v6574_v11, %v6574_v11  ;;  %v16611_v59 = vpack.c.bf16 %v6581_v29, %v6581_v29  ;;  %v6939_v24 = vunpack.c.l.b16 %v16609_v50  ;;  %v6977_v11 = vld [vmem:[#allocation4 + $0x8] sm:$0x7] }
 0x49e   :  { %6976 = vst [vmem:[#allocation4 + $0x4] sm:$0x7] %v6975_v25  ;;  %v6588_v33 = vmax.f32 %v6586_v2, %v6587_v14  ;;  %v6497_v8 = vrot.slane %v6483_v32, %v19023_v56  ;;  %v6498_v31 = vcombine.high %v6490_v6, %v6490_v6  ;;  %v6589_v22 = vsel %vm1268_vm1, %v6490_v6, -inf  ;;  %v20404_v44 = vpop.f32.mrf.mxu1 }
 0x49f   :  { %v6940_v7 = vunpack.c.l.b16 %v16610_v55  ;;  %v6941_v40 = vunpack.c.l.b16 %v16611_v59  ;;  %v6590_v47 = vrot.slane %v6589_v22, 4  ;;  %v6431_v1 = vmax.f32 %v20390_v51, 0.0 }
 0x4a0   :  { %v16612_v28 = vpack.c.bf16 %v6588_v33, %v6588_v33  ;;  %v6499_v9 = vcombine.high %v6497_v8, %v6497_v8  ;;  %v6596_v10 = vsel %vm1268_vm1, %v6498_v31, -inf  ;;  %v6603_v12 = vsel %vm1268_vm1, %v6497_v8, -inf  ;;  %v6397_v33 = vpop.f32.mrf.mxu0 }
 0x4a1   :  { %v6954_v23 = vsel %vm2937_vm2, %v6940_v7, %v6939_v24  ;;  %v6591_v57 = vmax.f32 %v6589_v22, %v6590_v47  ;;  %v6597_v63 = vrot.slane %v6596_v10, 4  ;;  %v6604_v30 = vrot.slane %v6603_v12, 4  ;;  %v20416_v24 = vpop.f32.mrf.mxu1 }
 0x4a2   :  { %v6942_v52 = vunpack.c.l.b16 %v16612_v28  ;;  %v6955_v13 = vsel %vm2939_vm5, %v6941_v40, %v6954_v23  ;;  %v6610_v62 = vsel %vm1268_vm1, %v6499_v9, -inf  ;;  %v16902_v34 = vadd.f32 %v20358_v15, %v20354_v61 }
 0x4a3   :  { %v6592_v45 = vrot.slane %v6591_v57, 2  ;;  %v6598_v2 = vmax.f32 %v6596_v10, %v6597_v63  ;;  %v6605_v0 = vmax.f32 %v6603_v12, %v6604_v30  ;;  %v6611_v36 = vrot.slane %v6610_v62, 4  ;;  %v20421_v12 = vpop.f32.mrf.mxu1 }
 0x4a4   :  { %v6956_v20 = vsel %vm2941_vm6, %v6942_v52, %v6955_v13  ;;  %v6293_v29 = vadd.f32 %v16902_v34, %v20271_v48  ;;  %v16905_v50 = vadd.f32 %v20365_v49, %v20363_v5  ;;  %v16908_v14 = vadd.f32 %v16907_v60, %v20368_v53 }
 0x4a5   :  { %v6964_v32 = vpack.c.b16 %v6956_v20, %v6956_v20  ;;  %v6593_v61 = vmax.f32 %v6591_v57, %v6592_v45  ;;  %v6599_v15 = vrot.slane %v6598_v2, 2  ;;  %v6606_v6 = vrot.slane %v6605_v0, 2  ;;  %v20430_v20 = vpop.f32.mrf.mxu1  ;;  %v20526_v38 = vld.sshfl [vmem:[#allocation4 + $0x4] sm:$0x13 pattern:$0x76325410] }
 0x4a6   :  { %v6612_v51 = vmax.f32 %v6610_v62, %v6611_v36  ;;  %v6390_v25 = vadd.f32 %v20360_v54, %v6293_v29  ;;  %v6298_v55 = vadd.f32 %v16905_v50, %v20275_v16  ;;  %v6301_v59 = vadd.f32 %v16908_v14, %v20282_v58  ;;  %v17496_v58 = vld [vmem:[#allocation4] sm:$0x33]  }
 0x4a7   :  { %v6978_v48 = vsel %vm20377_vm9, %v6964_v32, %v6977_v11  ;;  %v6594_v5 = vrot.slane %v6593_v61, 1  ;;  %v6600_v49 = vmax.f32 %v6598_v2, %v6599_v15  ;;  %v6607_v53 = vmax.f32 %v6605_v0, %v6606_v6  ;;  %15594 = vst.sshfl [vmem:[#allocation5] sm:$0x33 pattern:$0x76325410] %v17496_v58 }
 0x4a8   :  { %6979 = vst [vmem:[#allocation4 + $0x8] sm:$0x7] %v6978_v48  ;;  %v6613_v60 = vrot.slane %v6612_v51, 2  ;;  %v6432_v8 = vmax.f32 %v6390_v25, 0.0  ;;  %v6395_v31 = vadd.f32 %v6394_v41, %v6298_v55  ;;  %v6398_v22 = vadd.f32 %v6397_v33, %v6301_v59 }
 0x4a9   :  { %v6595_v7 = vmax.f32 %v6593_v61, %v6594_v5  ;;  %v6601_v54 = vrot.slane %v6600_v49, 1  ;;  %v6608_v40 = vrot.slane %v6607_v53, 1  ;;  %v16911_v16 = vadd.f32 %v16910_v21, %v20384_v26  ;;  %v20438_v5 = vpop.f32.mrf.mxu1 }
 0x4aa   :  { %v6614_v47 = vmax.f32 %v6612_v51, %v6613_v60  ;;  %v6444_v28 = vmax.f32 %v6431_v1, %v6432_v8  ;;  %v6433_v9 = vmax.f32 %v6395_v31, 0.0  ;;  %v6434_v10 = vmax.f32 %v6398_v22, 0.0 }
 0x4ab   :  { %v6602_v23 = vmax.f32 %v6600_v49, %v6601_v54  ;;  %v6609_v57 = vmax.f32 %v6607_v53, %v6608_v40  ;;  %v16613_v63 = vpack.c.bf16 %v6595_v7, %v6595_v7  ;;  %v6306_v30 = vadd.f32 %v16911_v16, %v20286_v18  ;;  %v6980_v7 = vld [vmem:[#allocation4 + $0xc] sm:$0x7] }
 0x4ac   :  { %v6615_v41 = vrot.slane %v6614_v47, 1  ;;  %v6500_v52 = vcombine.high %v6444_v28, %v6444_v28  ;;  %v6507_v13 = vrot.slane %v6444_v28, %v19023_v56  ;;  %v6661_v62 = vmax.f32 %v6433_v9, %v6434_v10 }
 0x4ad   :  { %v16614_v34 = vpack.c.bf16 %v6602_v23, %v6602_v23  ;;  %v16615_v26 = vpack.c.bf16 %v6609_v57, %v6609_v57  ;;  %v6943_v21 = vunpack.c.l.b16 %v16613_v63  ;;  %v20426_v1 = vadd.f32 %v20386_v17, %v6306_v30  ;;  %v20444_v30 = vpop.f32.mrf.mxu1 }
 0x4ae   :  { %v6616_v45 = vmax.f32 %v6614_v47, %v6615_v41  ;;  %v6514_v2 = vrot.slane %v6500_v52, %v19023_v56  ;;  %v6515_v0 = vcombine.high %v6507_v13, %v6507_v13  ;;  %v6617_v36 = vsel %vm1268_vm1, %v6507_v13, -inf }
 0x4af   :  { %v6944_v18 = vunpack.c.l.b16 %v16614_v34  ;;  %v6945_v11 = vunpack.c.l.b16 %v16615_v26  ;;  %v6669_v29 = vcombine.high %v6661_v62, %v6661_v62  ;;  %v6676_v50 = vrot.slane %v6661_v62, %v19023_v56  ;;  %v17491_v31 = vld [vmem:[#allocation4 + $0x4] sm:$0x33]  }
 0x4b0   :  { %v16616_v14 = vpack.c.bf16 %v6616_v45, %v6616_v45  ;;  %v6516_v32 = vcombine.high %v6514_v2, %v6514_v2  ;;  %v6618_v61 = vrot.slane %v6617_v36, 4  ;;  %v6624_v15 = vsel %vm1268_vm1, %v6515_v0, -inf  ;;  %15612 = vst.sshfl [vmem:[#allocation5 + $0xc] sm:$0x33 pattern:$0x76325410] %v17491_v31 }
 0x4b1   :  { %v6957_v17 = vsel %vm2937_vm2, %v6944_v18, %v6943_v21  ;;  %v6625_v6 = vrot.slane %v6624_v15, 4  ;;  %v6631_v51 = vsel %vm1268_vm1, %v6514_v2, -inf  ;;  %v6683_v25 = vrot.slane %v6669_v29, %v19023_v56 }
 0x4b2   :  { %v6946_v55 = vunpack.c.l.b16 %v16616_v14  ;;  %v6958_v59 = vsel %vm2939_vm5, %v6945_v11, %v6957_v17  ;;  %v6619_v33 = vmax.f32 %v6617_v36, %v6618_v61  ;;  %v6632_v48 = vrot.slane %v6631_v51, 4  ;;  %v20450_v61 = vpop.f32.mrf.mxu0 }
 0x4b3   :  { %v6626_v49 = vmax.f32 %v6624_v15, %v6625_v6  ;;  %v6638_v53 = vsel %vm1268_vm1, %v6516_v32, -inf  ;;  %v6684_v60 = vcombine.high %v6676_v50, %v6676_v50  ;;  %v6685_v8 = vcombine.high %v6683_v25, %v6683_v25  ;;  %v16921_v32 = vpop.f32.mrf.mxu1 }
 0x4b4   :  { %v6959_v22 = vsel %vm2941_vm6, %v6946_v55, %v6958_v59  ;;  %v6620_v54 = vrot.slane %v6619_v33, 2  ;;  %v6633_v40 = vmax.f32 %v6631_v51, %v6632_v48  ;;  %v6639_v16 = vrot.slane %v6638_v53, 4 }
 0x4b5   :  { %v6965_v58 = vpack.c.b16 %v6959_v22, %v6959_v22  ;;  %v6627_v47 = vrot.slane %v6626_v49, 2  ;;  %v6753_v28 = vsel %vm1268_vm1, %v6676_v50, -inf  ;;  %v6760_v9 = vsel %vm1268_vm1, %v6684_v60, -inf }
 0x4b6   :  { %v6621_v10 = vmax.f32 %v6619_v33, %v6620_v54  ;;  %v6634_v23 = vrot.slane %v6633_v40, 2  ;;  %v6640_v57 = vmax.f32 %v6638_v53, %v6639_v16  ;;  %v6754_v63 = vrot.slane %v6753_v28, 4  ;;  %v16922_v54 = vpop.f32.mrf.mxu1 }
 0x4b7   :  { %v6981_v41 = vsel %vm20377_vm9, %v6965_v58, %v6980_v7  ;;  %v6628_v52 = vmax.f32 %v6626_v49, %v6627_v47  ;;  %v6761_v13 = vrot.slane %v6760_v9, 4  ;;  %v6767_v62 = vsel %vm1268_vm1, %v6683_v25, -inf }
 0x4b8   :  { %6982 = vst [vmem:[#allocation4 + $0xc] sm:$0x7] %v6981_v41  ;;  %v6622_v34 = vrot.slane %v6621_v10, 1  ;;  %v6635_v26 = vmax.f32 %v6633_v40, %v6634_v23  ;;  %v6641_v21 = vrot.slane %v6640_v57, 2  ;;  %v6755_v45 = vmax.f32 %v6753_v28, %v6754_v63  ;;  %v6410_v40 = vpop.f32.mrf.mxu0 }
 0x4b9   :  { %v6629_v2 = vrot.slane %v6628_v52, 1  ;;  %v6762_v0 = vmax.f32 %v6760_v9, %v6761_v13  ;;  %v6768_v36 = vrot.slane %v6767_v62, 4  ;;  %v6774_v18 = vsel %vm1268_vm1, %v6685_v8, -inf }
 0x4ba   :  { %v6623_v11 = vmax.f32 %v6621_v10, %v6622_v34  ;;  %v6636_v29 = vrot.slane %v6635_v26, 1  ;;  %v6642_v50 = vmax.f32 %v6640_v57, %v6641_v21  ;;  %v6756_v14 = vrot.slane %v6755_v45, 2 }
 0x4bb   :  { %v6630_v15 = vmax.f32 %v6628_v52, %v6629_v2  ;;  %v6763_v17 = vrot.slane %v6762_v0, 2  ;;  %v6769_v6 = vmax.f32 %v6767_v62, %v6768_v36  ;;  %v6775_v51 = vrot.slane %v6774_v18, 4 }
 0x4bc   :  { %v6637_v25 = vmax.f32 %v6635_v26, %v6636_v29  ;;  %v6643_v55 = vrot.slane %v6642_v50, 1  ;;  %v16617_v59 = vpack.c.bf16 %v6623_v11, %v6623_v11  ;;  %v6757_v33 = vmax.f32 %v6755_v45, %v6756_v14  ;;  %v16924_v45 = vpop.f32.mrf.mxu1 }
 0x4bd   :  { %v16618_v48 = vpack.c.bf16 %v6630_v15, %v6630_v15  ;;  %v6764_v49 = vmax.f32 %v6762_v0, %v6763_v17  ;;  %v6770_v53 = vrot.slane %v6769_v6, 2  ;;  %v6776_v60 = vmax.f32 %v6774_v18, %v6775_v51  ;;  %v6983_v18 = vld [vmem:[#allocation4 + $0x10] sm:$0x7] }
 0x4be   :  { %v6644_v8 = vmax.f32 %v6642_v50, %v6643_v55  ;;  %v16619_v31 = vpack.c.bf16 %v6637_v25, %v6637_v25  ;;  %v6947_v22 = vunpack.c.l.b16 %v16617_v59  ;;  %v6758_v7 = vrot.slane %v6757_v33, 1  ;;  %v16925_v59 = vpop.f32.mrf.mxu1 }
 0x4bf   :  { %v6948_v16 = vunpack.c.l.b16 %v16618_v48  ;;  %v6771_v58 = vmax.f32 %v6769_v6, %v6770_v53  ;;  %v16914_v47 = vadd.f32 %v20416_v24, %v20404_v44  ;;  %v16917_v28 = vadd.f32 %v20430_v20, %v20421_v12  ;;  %v17497_v44 = vld [vmem:[#allocation4 + $0x8] sm:$0x33]   ;;  %v20465_v12 = vpop.f32.mrf.mxu0 }
 0x4c0   :  { %v16620_v9 = vpack.c.bf16 %v6644_v8, %v6644_v8  ;;  %v6949_v10 = vunpack.c.l.b16 %v16619_v31  ;;  %v6759_v23 = vmax.f32 %v6757_v33, %v6758_v7  ;;  %v6765_v57 = vrot.slane %v6764_v49, 1  ;;  %15595 = vst.sshfl [vmem:[#allocation5 + $0x24] sm:$0x33 pattern:$0x76325410] %v17497_v44 }
 0x4c1   :  { %v6960_v63 = vsel %vm2937_vm2, %v6948_v16, %v6947_v22  ;;  %v6772_v41 = vrot.slane %v6771_v58, 1  ;;  %v6777_v52 = vrot.slane %v6776_v60, 2  ;;  %v6435_v13 = vmax.f32 %v20426_v1, 0.0 }
 0x4c2   :  { %v6950_v62 = vunpack.c.l.b16 %v16620_v9  ;;  %v6961_v34 = vsel %vm2939_vm5, %v6949_v10, %v6960_v63  ;;  %v6766_v26 = vmax.f32 %v6764_v49, %v6765_v57  ;;  %v16621_v21 = vpack.c.bf16 %v6759_v23, %v6759_v23  ;;  %v20485_v53 = vld.sshfl [vmem:[#allocation4 + $0x8] sm:$0x12 pattern:$0x76325410] }
 0x4c3   :  { %v6773_v20 = vmax.f32 %v6771_v58, %v6772_v41  ;;  %v6778_v2 = vmax.f32 %v6776_v60, %v6777_v52  ;;  %v6309_v0 = vadd.f32 %v16914_v47, %v20293_v43  ;;  %v6314_v1 = vadd.f32 %v16917_v28, %v20297_v42  ;;  %v20496_v22 = vld.sshfl [vmem:[#allocation4 + $0xc] sm:$0x12 pattern:$0x76325410] }
 0x4c4   :  { %v6962_v36 = vsel %vm2941_vm6, %v6950_v62, %v6961_v34  ;;  %v16622_v11 = vpack.c.bf16 %v6766_v26, %v6766_v26  ;;  %v7708_v29 = vunpack.c.l.b16 %v16621_v21  ;;  %v16920_v50 = vadd.f32 %v20444_v30, %v20438_v5  ;;  %v20481_v5 = vld.sshfl [vmem:[#allocation4 + $0x4] sm:$0x12 pattern:$0x76325410]  ;;  %v6413_v30 = vpop.f32.mrf.mxu0 }
 0x4c5   :  { %v6966_v14 = vpack.c.b16 %v6962_v36, %v6962_v36  ;;  %v6779_v15 = vrot.slane %v6778_v2, 1  ;;  %v16623_v17 = vpack.c.bf16 %v6773_v20, %v6773_v20  ;;  %v6406_v6 = vadd.f32 %v20406_v3, %v6309_v0  ;;  %v20524_v20 = vld.sshfl [vmem:[#allocation4] sm:$0x13 pattern:$0x76325410] }
 0x4c6   :  { %v7709_v42 = vunpack.c.l.b16 %v16622_v11  ;;  %v6411_v51 = vadd.f32 %v6410_v40, %v6314_v1  ;;  %v6317_v25 = vadd.f32 %v16920_v50, %v20304_v4  ;;  %v16923_v55 = vadd.f32 %v16922_v54, %v16921_v32  ;;  %v20535_v36 = vld.sshfl [vmem:[#allocation4 + $0x4] sm:$0x12 pattern:$0x76325410] }
 0x4c7   :  { %v6984_v33 = vsel %vm20377_vm9, %v6966_v14, %v6983_v18  ;;  %v6780_v3 = vmax.f32 %v6778_v2, %v6779_v15  ;;  %v7710_v48 = vunpack.c.l.b16 %v16623_v17  ;;  %v6436_v49 = vmax.f32 %v6406_v6, 0.0 }
 0x4c8   :  { %6985 = vst [vmem:[#allocation4 + $0x10] sm:$0x7] %v6984_v33  ;;  %v7724_v60 = vsel %vm2937_vm2, %v7709_v42, %v7708_v29  ;;  %v6437_v8 = vmax.f32 %v6411_v51, 0.0  ;;  %v6414_v31 = vadd.f32 %v6413_v30, %v6317_v25  ;;  %v6322_v4 = vadd.f32 %v16923_v55, %v20312_v19 }
 0x4c9   :  { %v16624_v7 = vpack.c.bf16 %v6780_v3, %v6780_v3  ;;  %v7725_v54 = vsel %vm2939_vm5, %v7710_v48, %v7724_v60  ;;  %v6662_v40 = vmax.f32 %v6435_v13, %v6436_v49  ;;  %v16926_v16 = vadd.f32 %v16925_v59, %v16924_v45  ;;  %v20518_v13 = vld.sshfl [vmem:[#allocation4 + $0x4] sm:$0x13 pattern:$0x76325410] }
 0x4ca   :  { %v6438_v58 = vmax.f32 %v6414_v31, 0.0  ;;  %v20500_v47 = vadd.f32 %v20450_v61, %v6322_v4  ;;  %v7160_v19 = vcombine.high %v20481_v5, %v20481_v5  ;;  %v7168_v28 = vcombine.high %v20485_v53, %v20485_v53 }
 0x4cb   :  { %v7711_v9 = vunpack.c.l.b16 %v16624_v7  ;;  %v6686_v10 = vcombine.high %v6662_v40, %v6662_v40  ;;  %v6693_v23 = vrot.slane %v6662_v40, %v19023_v56  ;;  %v6325_v57 = vadd.f32 %v16926_v16, %v20316_v37 }
 0x4cc   :  { %v6663_v63 = vmax.f32 %v6437_v8, %v6438_v58  ;;  %v6439_v41 = vmax.f32 %v20500_v47, 0.0  ;;  %v7176_v52 = vcombine.high %v20496_v22, %v20496_v22  ;;  %v20516_v61 = vsel %vm20492_vm0, %v15606_v27, %v20339_v46  ;;  %v7744_v27 = vld [vmem:[#allocation4 + $0x4] sm:$0x7] }
 0x4cd   :  { %v7726_v62 = vsel %vm2941_vm6, %v7711_v9, %v7725_v54  ;;  %v6700_v34 = vrot.slane %v6686_v10, %v19023_v56  ;;  %v6701_v37 = vcombine.high %v6693_v23, %v6693_v23  ;;  %v6781_v26 = vsel %vm1268_vm1, %v6693_v23, -inf }
 0x4ce   :  { %v7736_v21 = vpack.c.b16 %v7726_v62, %v7726_v62  ;;  %v6782_v45 = vrot.slane %v6781_v26, 4  ;;  %v6703_v44 = vcombine.high %v6663_v63, %v6663_v63  ;;  %v6710_v24 = vrot.slane %v6663_v63, %v19023_v56 }
 0x4cf   :  { %v6702_v46 = vcombine.high %v6700_v34, %v6700_v34  ;;  %v20529_v2 = vadd.f32 %v20465_v12, %v6325_v57  ;;  %v7029_v0 = vcombine.high %v20524_v20, %v20524_v20  ;;  %v7037_v1 = vcombine.high %v20518_v13, %v20518_v13  ;;  %v17492_v33 = vld [vmem:[#allocation4 + $0xc] sm:$0x33]  }
 0x4d0   :  { %v7745_v18 = vsel %vm20377_vm9, %v7736_v21, %v7744_v27  ;;  %v6783_v11 = vmax.f32 %v6781_v26, %v6782_v45  ;;  %v6788_v29 = vsel %vm1268_vm1, %v6701_v37, -inf  ;;  %v6795_v50 = vsel %vm1268_vm1, %v6700_v34, -inf  ;;  %15613 = vst.sshfl [vmem:[#allocation5 + $0x30] sm:$0x33 pattern:$0x76325410] %v17492_v33 }
 0x4d1   :  { %v6789_v14 = vrot.slane %v6788_v29, 4  ;;  %v6796_v15 = vrot.slane %v6795_v50, 4  ;;  %v6802_v12 = vsel %vm1268_vm1, %v6702_v46, -inf  ;;  %v6717_v17 = vrot.slane %v6703_v44, %v19023_v56  ;;  %7746 = vst [vmem:[#allocation4 + $0x4] sm:$0x7] %v7745_v18 }
 0x4d2   :  { %v6784_v6 = vrot.slane %v6783_v11, 2  ;;  %v6803_v43 = vrot.slane %v6802_v12, 4  ;;  %v6718_v42 = vcombine.high %v6710_v24, %v6710_v24  ;;  %v6809_v51 = vsel %vm1268_vm1, %v6710_v24, -inf }
 0x4d3   :  { %v6790_v25 = vmax.f32 %v6788_v29, %v6789_v14  ;;  %v6797_v55 = vmax.f32 %v6795_v50, %v6796_v15  ;;  %v6719_v59 = vcombine.high %v6717_v17, %v6717_v17  ;;  %v6810_v30 = vrot.slane %v6809_v51, 4 }
 0x4d4   :  { %v6785_v3 = vmax.f32 %v6783_v11, %v6784_v6  ;;  %v6804_v48 = vmax.f32 %v6802_v12, %v6803_v43  ;;  %v6816_v49 = vsel %vm1268_vm1, %v6718_v42, -inf  ;;  %v6823_v60 = vsel %vm1268_vm1, %v6717_v17, -inf }
 0x4d5   :  { %v6791_v8 = vrot.slane %v6790_v25, 2  ;;  %v6798_v31 = vrot.slane %v6797_v55, 2  ;;  %v6811_v4 = vmax.f32 %v6809_v51, %v6810_v30  ;;  %v6817_v7 = vrot.slane %v6816_v49, 4 }
 0x4d6   :  { %v6786_v54 = vrot.slane %v6785_v3, 1  ;;  %v6805_v40 = vrot.slane %v6804_v48, 2  ;;  %v6824_v16 = vrot.slane %v6823_v60, 4  ;;  %v6830_v58 = vsel %vm1268_vm1, %v6719_v59, -inf }
 0x4d7   :  { %v6792_v9 = vmax.f32 %v6790_v25, %v6791_v8  ;;  %v6799_v10 = vmax.f32 %v6797_v55, %v6798_v31  ;;  %v6812_v23 = vrot.slane %v6811_v4, 2  ;;  %v6818_v57 = vmax.f32 %v6816_v49, %v6817_v7 }
 0x4d8   :  { %v6787_v63 = vmax.f32 %v6785_v3, %v6786_v54  ;;  %v6806_v62 = vmax.f32 %v6804_v48, %v6805_v40  ;;  %v6825_v34 = vmax.f32 %v6823_v60, %v6824_v16  ;;  %v6831_v37 = vrot.slane %v6830_v58, 4  ;;  %v17530_v11 = vld [vmem:[#allocation4] sm:$0x33]  }
 0x4d9   :  { %v6793_v26 = vrot.slane %v6792_v9, 1  ;;  %v6800_v21 = vrot.slane %v6799_v10, 1  ;;  %v6813_v45 = vmax.f32 %v6811_v4, %v6812_v23  ;;  %v6819_v44 = vrot.slane %v6818_v57, 2 }
 0x4da   :  { %v6807_v24 = vrot.slane %v6806_v62, 1  ;;  %v16625_v27 = vpack.c.bf16 %v6787_v63, %v6787_v63  ;;  %v6826_v46 = vrot.slane %v6825_v34, 2  ;;  %v6832_v18 = vmax.f32 %v6830_v58, %v6831_v37  ;;  %15664 = vst.sshfl [vmem:[#allocation5 + $0x48] sm:$0x33 pattern:$0x76325410] %v17530_v11 }
 0x4db   :  { %v6794_v29 = vmax.f32 %v6792_v9, %v6793_v26  ;;  %v6801_v50 = vmax.f32 %v6799_v10, %v6800_v21  ;;  %v6814_v14 = vrot.slane %v6813_v45, 1  ;;  %v6820_v15 = vmax.f32 %v6818_v57, %v6819_v44  ;;  %v20560_v37 = vld.sshfl [vmem:[#allocation4 + $0x8] sm:$0x12 pattern:$0x76325410] }
 0x4dc   :  { %v6808_v12 = vmax.f32 %v6806_v62, %v6807_v24  ;;  %v7712_v17 = vunpack.c.l.b16 %v16625_v27  ;;  %v6827_v6 = vmax.f32 %v6825_v34, %v6826_v46  ;;  %v6833_v43 = vrot.slane %v6832_v18, 2  ;;  %v7747_v24 = vld [vmem:[#allocation4 + $0x8] sm:$0x7] }
 0x4dd   :  { %v16626_v42 = vpack.c.bf16 %v6794_v29, %v6794_v29  ;;  %v16627_v51 = vpack.c.bf16 %v6801_v50, %v6801_v50  ;;  %v6815_v25 = vmax.f32 %v6813_v45, %v6814_v14  ;;  %v6821_v55 = vrot.slane %v6820_v15, 1 }
 0x4de   :  { %v16628_v59 = vpack.c.bf16 %v6808_v12, %v6808_v12  ;;  %v6828_v30 = vrot.slane %v6827_v6, 1  ;;  %v6834_v33 = vmax.f32 %v6832_v18, %v6833_v43  ;;  %v6440_v3 = vmax.f32 %v20529_v2, 0.0 }
 0x4df   :  { %v7713_v48 = vunpack.c.l.b16 %v16626_v42  ;;  %v7714_v49 = vunpack.c.l.b16 %v16627_v51  ;;  %v6822_v60 = vmax.f32 %v6820_v15, %v6821_v55  ;;  %v16629_v8 = vpack.c.bf16 %v6815_v25, %v6815_v25  ;;  %v20572_v15 = vld.sshfl [vmem:[#allocation4 + $0x8] sm:$0x13 pattern:$0x76325410] }
 0x4e0   :  { %v7715_v31 = vunpack.c.l.b16 %v16628_v59  ;;  %v6829_v4 = vmax.f32 %v6827_v6, %v6828_v30  ;;  %v6835_v7 = vrot.slane %v6834_v33, 1  ;;  %v6664_v54 = vmax.f32 %v6439_v41, %v6440_v3  ;;  %v20558_v41 = vld.sshfl [vmem:[#allocation4 + $0x8] sm:$0x13 pattern:$0x76325410] }
 0x4e1   :  { %v7727_v40 = vsel %vm2937_vm2, %v7713_v48, %v7712_v17  ;;  %v16630_v16 = vpack.c.bf16 %v6822_v60, %v6822_v60  ;;  %v7716_v58 = vunpack.c.l.b16 %v16629_v8  ;;  %v15607_v9 = vrot.slane %v20481_v5, 9  ;;  %v20579_v59 = vld.sshfl [vmem:[#allocation4 + $0xc] sm:$0x13 pattern:$0x76325410] }
 0x4e2   :  { %v7728_v10 = vsel %vm2939_vm5, %v7714_v49, %v7727_v40  ;;  %v6836_v23 = vmax.f32 %v6834_v33, %v6835_v7  ;;  %v16631_v2 = vpack.c.bf16 %v6829_v4, %v6829_v4  ;;  %v6720_v57 = vcombine.high %v6664_v54, %v6664_v54  ;;  %v7750_v49 = vld [vmem:[#allocation4 + $0xc] sm:$0x7] }
 0x4e3   :  { %v7729_v63 = vsel %vm2941_vm6, %v7715_v31, %v7728_v10  ;;  %v7717_v62 = vunpack.c.l.b16 %v16630_v16  ;;  %v6727_v34 = vrot.slane %v6664_v54, %v19023_v56  ;;  %v7189_v47 = vrot.slane %v7160_v19, 7  ;;  %v20567_v19 = vld [vmem:[#allocation4 + $0x8] sm:$0x3]  ;;  %v20588_v7 = vld [vmem:[#allocation4 + $0xc] sm:$0x3] }
 0x4e4   :  { %v7737_v26 = vpack.c.b16 %v7729_v63, %v7729_v63  ;;  %v16632_v21 = vpack.c.bf16 %v6836_v23, %v6836_v23  ;;  %v7718_v45 = vunpack.c.l.b16 %v16631_v2  ;;  %v6734_v44 = vrot.slane %v6720_v57, %v19023_v56 }
 0x4e5   :  { %v7730_v27 = vsel %vm2937_vm2, %v7717_v62, %v7716_v58  ;;  %v6735_v46 = vcombine.high %v6727_v34, %v6727_v34  ;;  %v6837_v18 = vsel %vm1268_vm1, %v6727_v34, -inf  ;;  %v7190_v5 = vsel %vm20492_vm0, %v15607_v9, %v7189_v47 }
 0x4e6   :  { %v7748_v11 = vsel %vm20377_vm9, %v7737_v26, %v7747_v24  ;;  %v7719_v29 = vunpack.c.l.b16 %v16632_v21  ;;  %v7731_v50 = vsel %vm2939_vm5, %v7718_v45, %v7730_v27  ;;  %v6736_v14 = vcombine.high %v6734_v44, %v6734_v44 }
 0x4e7   :  { %v6838_v12 = vrot.slane %v6837_v18, 4  ;;  %v6844_v17 = vsel %vm1268_vm1, %v6735_v46, -inf  ;;  %v6851_v6 = vsel %vm1268_vm1, %v6734_v44, -inf  ;;  %v15608_v43 = vrot.slane %v20485_v53, 9  ;;  %7749 = vst [vmem:[#allocation4 + $0x8] sm:$0x7] %v7748_v11 }
 0x4e8   :  { %v7732_v42 = vsel %vm2941_vm6, %v7719_v29, %v7731_v50  ;;  %v6845_v51 = vrot.slane %v6844_v17, 4  ;;  %v6852_v25 = vrot.slane %v6851_v6, 4  ;;  %v6858_v55 = vsel %vm1268_vm1, %v6736_v14, -inf }
 0x4e9   :  { %v7738_v30 = vpack.c.b16 %v7732_v42, %v7732_v42  ;;  %v6839_v33 = vmax.f32 %v6837_v18, %v6838_v12  ;;  %v6859_v3 = vrot.slane %v6858_v55, 4  ;;  %v7193_v48 = vrot.slane %v7168_v28, 7 }
 0x4ea   :  { %v6846_v60 = vmax.f32 %v6844_v17, %v6845_v51  ;;  %v6853_v8 = vmax.f32 %v6851_v6, %v6852_v25  ;;  %v15609_v31 = vrot.slane %v20496_v22, 9  ;;  %v7197_v4 = vrot.slane %v7176_v52, 7 }
 0x4eb   :  { %v7751_v54 = vsel %vm20377_vm9, %v7738_v30, %v7750_v49  ;;  %v6840_v40 = vrot.slane %v6839_v33, 2  ;;  %v6860_v16 = vmax.f32 %v6858_v55, %v6859_v3  ;;  %v7194_v53 = vsel %vm20492_vm0, %v15608_v43, %v7193_v48  ;;  %v17504_v3 = vld [vmem:[#allocation16 + $0x1b8] sm:$0xff]  }
 0x4ec   :  { %v6847_v28 = vrot.slane %v6846_v60, 2  ;;  %v6854_v58 = vrot.slane %v6853_v8, 2  ;;  %v20596_v9 = vsel %vm20492_vm0, %v15609_v31, %v7197_v4  ;;  %v7199_v10 = vcombine.low %v20516_v61, %v7190_v5  ;;  %7752 = vst [vmem:[#allocation4 + $0xc] sm:$0x7] %v7751_v54  ;;  %v17506_v31 = vld [vmem:[#allocation16 + $0x1f0] sm:$0xff]   ;;  %v17549_v55 = vld [vmem:[#allocation16 + $0x238] sm:$0xff]  }
 0x4ed   :  { %v6841_v22 = vmax.f32 %v6839_v33, %v6840_v40  ;;  %v6861_v52 = vrot.slane %v6860_v16, 2  ;;  %v7207_v23 = vcombine.low %v7194_v53, %v20596_v9  ;;  %v7045_v2 = vcombine.high %v20572_v15, %v20572_v15  ;;  %v17495_v40 = vld [vmem:[#allocation5 + $0xc] ss:$36 sps:$4 sm:$0xff]  }
 0x4ee   :  { %v6848_v57 = vmax.f32 %v6846_v60, %v6847_v28  ;;  %v6855_v63 = vmax.f32 %v6853_v8, %v6854_v58  ;;  %15610 = vst.sshfl [vmem:[#allocation5 + $0x8] sm:$0x33 pattern:$0x76325410] %v7199_v10  ;;  %v7053_v62 = vcombine.high %v20579_v59, %v20579_v59  ;;  %v7062_v34 = vshrl.u32 %v20524_v20, 16  ;;  %9192 = vmatprep.mubr.bf16.mxu0 %v17495_v40 }
 0x4ef   :  { %v6842_v47 = vrot.slane %v6841_v22, 1  ;;  %v6862_v26 = vmax.f32 %v6860_v16, %v6861_v52  ;;  %15611 = vst.sshfl [vmem:[#allocation5 + $0x2c] sm:$0x33 pattern:$0x76325410] %v7207_v23  ;;  %v7065_v21 = vshll.u32 %v20524_v20, 16 }
 0x4f0   :  { %v7071_v45 = vshll.u32 %v7029_v0, 16  ;;  %v6849_v44 = vrot.slane %v6848_v57, 1  ;;  %v6856_v24 = vrot.slane %v6855_v63, 1  ;;  %v7064_v27 = vrot.slane %v7062_v34, 6  ;;  %v17525_v18 = vld [vmem:[#allocation4 + $0x4] sm:$0x33]  }
 0x4f1   :  { %v7076_v46 = vshrl.u32 %v20518_v13, 16  ;;  %v6843_v5 = vmax.f32 %v6841_v22, %v6842_v47  ;;  %v6863_v11 = vrot.slane %v6862_v26, 1  ;;  %v7067_v29 = vrot.slane %v7065_v21, 7 }
 0x4f2   :  { %v7073_v50 = vrot.slane %v7071_v45, 7  ;;  %v6850_v14 = vmax.f32 %v6848_v57, %v6849_v44  ;;  %v6857_v12 = vmax.f32 %v6855_v63, %v6856_v24  ;;  %v7079_v6 = vshll.u32 %v20518_v13, 16  ;;  %15682 = vst.sshfl [vmem:[#allocation5 + $0x54] sm:$0x33 pattern:$0x76325410] %v17525_v18 }
 0x4f3   :  { %v7078_v17 = vrot.slane %v7076_v46, 6  ;;  %v6864_v20 = vmax.f32 %v6862_v26, %v6863_v11  ;;  %v16633_v0 = vpack.c.bf16 %v6843_v5, %v6843_v5  ;;  %v7068_v43 = vor.u32 %v7067_v29, %v7064_v27  ;;  %v17531_v4 = vld [vmem:[#allocation4 + $0x8] sm:$0x33]   ;;  %v17508_v18 = vld [vmem:[#allocation16 + $0x1b0] sm:$0xff]  }
 0x4f4   :  { %v7085_v42 = vshll.u32 %v7037_v1, 16  ;;  %v16634_v51 = vpack.c.bf16 %v6850_v14, %v6850_v14  ;;  %v16635_v25 = vpack.c.bf16 %v6857_v12, %v6857_v12  ;;  %v7081_v30 = vrot.slane %v7079_v6, 7  ;;  %v15673_v52 = vld.sshfl [vmem:[#allocation4 + $0x4] sm:$0x12 pattern:$0x76325410] }
 0x4f5   :  { %v7090_v33 = vshrl.u32 %v20572_v15, 16  ;;  %v16636_v48 = vpack.c.bf16 %v6864_v20, %v6864_v20  ;;  %v7720_v49 = vunpack.c.l.b16 %v16633_v0  ;;  %v7069_v60 = vrot.slane %v7068_v43, 2  ;;  %v15674_v23 = vld.sshfl [vmem:[#allocation4 + $0x8] sm:$0x12 pattern:$0x76325410] }
 0x4f6   :  { %v7087_v8 = vrot.slane %v7085_v42, 7  ;;  %v7721_v54 = vunpack.c.l.b16 %v16634_v51  ;;  %v7722_v13 = vunpack.c.l.b16 %v16635_v25  ;;  %v17493_v1 = vld [vmem:[#allocation5 + $0x8] ss:$36 sps:$4 sm:$0xff]   ;;  %v7082_v16 = vor.u32 %v7081_v30, %v7078_v17  ;;  %v17550_v11 = vld [vmem:[#allocation4 + $0x8] sm:$0x33]   ;;  %v17510_v17 = vld [vmem:[#allocation16 + $0x1e8] sm:$0xff]  }
 0x4f7   :  { %v7092_v53 = vrot.slane %v7090_v33, 6  ;;  %v7723_v28 = vunpack.c.l.b16 %v16636_v48  ;;  %v20625_v58 = vsel %vm20618_vm3, %v7069_v60, %v7073_v50  ;;  %v7093_v10 = vshll.u32 %v20572_v15, 16  ;;  %v15675_v57 = vld.sshfl [vmem:[#allocation4 + $0xc] sm:$0x12 pattern:$0x76325410]  ;;  %9193 = vmatmul.mubr.bf16.vlgmr.msra.gmra.mxu0 %v17493_v1 }
 0x4f8   :  { %v7099_v22 = vshll.u32 %v7045_v2, 16  ;;  %15665 = vst.sshfl [vmem:[#allocation5 + $0x6c] sm:$0x33 pattern:$0x76325410] %v17531_v4  ;;  %v7733_v63 = vsel %vm2937_vm2, %v7721_v54, %v7720_v49  ;;  %v7083_v34 = vrot.slane %v7082_v16, 2  ;;  %17028 = vmatpush3.bf16.msra.mxu0 %v17504_v3  ;;  %v7923_v43 = vcombine.high %v15673_v52, %v15673_v52 }
 0x4f9   :  { %v7104_v47 = vshrl.u32 %v20579_v59, 16  ;;  %v7107_v26 = vshll.u32 %v20579_v59, 16  ;;  %v7734_v21 = vsel %vm2939_vm5, %v7722_v13, %v7733_v63  ;;  %v7095_v45 = vrot.slane %v7093_v10, 7  ;;  %17029 = vmatprep.subr.bf16.mxu0 %v17506_v31  ;;  %v7753_v20 = vld [vmem:[#allocation4 + $0x10] sm:$0x7]  ;;  %v17514_v1 = vld [vmem:[#allocation16 + $0x1e0] sm:$0xff]  }
 0x4fa   :  { %v7101_v44 = vrot.slane %v7099_v22, 7  ;;  %v7113_v24 = vshll.u32 %v7053_v62, 16  ;;  %v7735_v15 = vsel %vm2941_vm6, %v7723_v28, %v7734_v21  ;;  %v7088_v2 = vsel %vm20618_vm3, %v7083_v34, %v7087_v8  ;;  %v15667_v5 = vld.sshfl [vmem:[#allocation4 + $0x4] sm:$0x13 pattern:$0x76325410] }
 0x4fb   :  { %v7106_v27 = vrot.slane %v7104_v47, 6  ;;  %v7109_v46 = vrot.slane %v7107_v26, 7  ;;  %v20635_v29 = vld.sshfl [vmem:[#allocation4 + $0x10] sm:$0x13 pattern:$0x76325410]  ;;  %v7739_v50 = vpack.c.b16 %v7735_v15, %v7735_v15  ;;  %v7096_v14 = vor.u32 %v7095_v45, %v7092_v53 }
 0x4fc   :  { %v20637_v59 = vld.sshfl [vmem:[#allocation4 + $0x10] sm:$0x12 pattern:$0x76325410]  ;;  %v7115_v12 = vrot.slane %v7113_v24, 7  ;;  %v7117_v62 = vcombine.low %v20625_v58, %v7088_v2  ;;  %v7931_v42 = vcombine.high %v15674_v23, %v15674_v23  ;;  %v7939_v51 = vcombine.high %v15675_v57, %v15675_v57  ;;  %17030 = vmatpush3.bf16.msra.mxu0 %v17508_v18  ;;  %v17516_v34 = vld [vmem:[#allocation16 + $0x1a0] sm:$0xff]  }
 0x4fd   :  { %v15668_v6 = vld.sshfl [vmem:[#allocation4 + $0x8] sm:$0x13 pattern:$0x76325410]  ;;  %v7110_v0 = vor.u32 %v7109_v46, %v7106_v27  ;;  %v20640_v30 = vld [vmem:[#allocation4 + $0x10] sm:$0x3]  ;;  %v7754_v33 = vsel %vm20377_vm9, %v7739_v50, %v7753_v20  ;;  %17031 = vmatprep.subr.bf16.mxu0 %v17510_v17  ;;  %v7807_v16 = vcombine.high %v15667_v5, %v15667_v5  ;;  %v7448_v17 = vcombine.low %v20567_v19, %v20588_v7 }
 0x4fe   :  { %v15669_v25 = vld.sshfl [vmem:[#allocation4 + $0xc] sm:$0x13 pattern:$0x76325410]  ;;  %v7097_v3 = vrot.slane %v7096_v14, 2  ;;  %v15677_v48 = vrot.slane %v15673_v52, 9  ;;  %v7815_v35 = vcombine.high %v15668_v6, %v15668_v6  ;;  %v7499_v19 = vcombine.high %v20635_v29, %v20635_v29 }
 0x4ff   :  { %15700 = vst.sshfl [vmem:[#allocation5 + $0x60] sm:$0x33 pattern:$0x76325410] %v17550_v11  ;;  %v15678_v49 = vrot.slane %v15674_v23, 9  ;;  %v7111_v60 = vrot.slane %v7110_v0, 2  ;;  %v7823_v22 = vcombine.high %v15669_v25, %v15669_v25 }
 0x500   :  { %15600 = vst.sshfl [vmem:[#allocation5 + $0x4] sm:$0x33 pattern:$0x76325410] %v7117_v62  ;;  %7755 = vst [vmem:[#allocation4 + $0x10] sm:$0x7] %v7754_v33  ;;  %v7102_v13 = vsel %vm20618_vm3, %v7097_v3, %v7101_v44  ;;  %v7483_v3 = vcombine.high %v20558_v41, %v20558_v41 }
 0x501   :  { %v17512_v8 = vld [vmem:[#allocation16 + $0x1a8] sm:$0xff]   ;;  %v7946_v31 = vrot.slane %v7923_v43, 7  ;;  %v7950_v4 = vrot.slane %v7931_v42, 7  ;;  %v15679_v54 = vrot.slane %v15675_v57, 9  ;;  %v7954_v40 = vrot.slane %v7939_v51, 7  ;;  %v17518_v24 = vld [vmem:[#allocation16 + $0x1d8] sm:$0xff]  }
 0x502   :  { %v20648_v53 = vsel %vm20618_vm3, %v7111_v60, %v7115_v12  ;;  %v7839_v63 = vshrl.u32 %v15667_v5, 16  ;;  %17032 = vmatpush3.bf16.msra.mxu0 %v17512_v8  ;;  %v7842_v26 = vshll.u32 %v15667_v5, 16  ;;  %v7848_v21 = vshll.u32 %v7807_v16, 16  ;;  %v7443_v44 = vld [vmem:[#allocation4 + $0x14] sm:$0x3]  ;;  %v17522_v33 = vld [vmem:[#allocation16 + $0x1d0] sm:$0xff]  }
 0x503   :  { %v20652_v28 = vsel %vm20492_vm0, %v15677_v48, %v7946_v31  ;;  %v20656_v10 = vsel %vm20492_vm0, %v15678_v49, %v7950_v4  ;;  %v7125_v52 = vcombine.low %v7102_v13, %v20648_v53  ;;  %v20661_v23 = vsel %vm20492_vm0, %v15679_v54, %v7954_v40  ;;  %17033 = vmatprep.subr.bf16.mxu0 %v17514_v1  ;;  %v20667_v14 = vld.sshfl [vmem:[#allocation4 + $0x14] sm:$0x13 pattern:$0x76325410]  ;;  %v17503_v48 = vld [vmem:[#allocation16 + $0x138] sm:$0xff]   ;;  %v17505_v4 = vld [vmem:[#allocation16 + $0x170] sm:$0xff]  }
 0x504   :  { %v7956_v57 = vcombine.low %v20516_v61, %v20652_v28  ;;  %v7964_v47 = vcombine.low %v20656_v10, %v20661_v23  ;;  %v7853_v45 = vshrl.u32 %v15668_v6, 16  ;;  %v7841_v15 = vrot.slane %v7839_v63, 6  ;;  %15630 = vst.sshfl [vmem:[#allocation5 + $0x18] sm:$0x33 pattern:$0x76325410] %v7448_v17 }
 0x505   :  { %15601 = vst.sshfl [vmem:[#allocation5 + $0x28] sm:$0x33 pattern:$0x76325410] %v7125_v52  ;;  %v7856_v2 = vshll.u32 %v15668_v6, 16  ;;  %v7862_v27 = vshll.u32 %v7815_v35, 16  ;;  %v7456_v20 = vcombine.low %v20640_v30, %v7443_v44  ;;  %v7507_v7 = vcombine.high %v20667_v14, %v20667_v14 }
 0x506   :  { %15680 = vst.sshfl [vmem:[#allocation5 + $0x50] sm:$0x33 pattern:$0x76325410] %v7956_v57  ;;  %v7867_v46 = vshrl.u32 %v15669_v25, 16  ;;  %v7844_v61 = vrot.slane %v7842_v26, 7  ;;  %17034 = vmatpush3.bf16.msra.mxu0 %v17516_v34  ;;  %v7262_v34 = vcombine.high %v20526_v38, %v20526_v38  ;;  %v7386_v17 = vcombine.high %v20560_v37, %v20560_v37 }
 0x507   :  { %15681 = vst.sshfl [vmem:[#allocation5 + $0x74] sm:$0x33 pattern:$0x76325410] %v7964_v47  ;;  %v7850_v18 = vrot.slane %v7848_v21, 7  ;;  %v7855_v11 = vrot.slane %v7853_v45, 6  ;;  %17035 = vmatprep.subr.bf16.mxu0 %v17518_v24 }
 0x508   :  { %v7870_v50 = vshll.u32 %v15669_v25, 16  ;;  %15716 = vst.sshfl [vmem:[#allocation5 + $0x68] sm:$0x33 pattern:$0x76325410] %v7964_v47  ;;  %v7858_v12 = vrot.slane %v7856_v2, 7  ;;  %v7845_v0 = vor.u32 %v7844_v61, %v7841_v15 }
 0x509   :  { %v17526_v5 = vld [vmem:[#allocation4 + $0xc] sm:$0x33]   ;;  %v7864_v62 = vrot.slane %v7862_v27, 7  ;;  %v17520_v6 = vld [vmem:[#allocation16 + $0x198] sm:$0xff]   ;;  %v7869_v43 = vrot.slane %v7867_v46, 6  ;;  %v7876_v51 = vshll.u32 %v7823_v22, 16 }
 0x50a   :  { %v7872_v42 = vrot.slane %v7870_v50, 7  ;;  %15683 = vst.sshfl [vmem:[#allocation5 + $0x78] sm:$0x33 pattern:$0x76325410] %v17526_v5  ;;  %v7859_v25 = vor.u32 %v7858_v12, %v7855_v11  ;;  %v7846_v49 = vrot.slane %v7845_v0, 2  ;;  %17036 = vmatpush3.bf16.msra.mxu0 %v17520_v6 }
 0x50b   :  { %15631 = vst.sshfl [vmem:[#allocation5 + $0x3c] sm:$0x33 pattern:$0x76325410] %v7456_v20  ;;  %v17551_v30 = vld [vmem:[#allocation4 + $0x10] sm:$0x33]   ;;  %17037 = vmatprep.subr.bf16.mxu0 %v17522_v33 }
 0x50c   :  { %v7873_v60 = vor.u32 %v7872_v42, %v7869_v43  ;;  %v7878_v8 = vrot.slane %v7876_v51, 7  ;;  %v7509_v31 = vshrl.u32 %v20558_v41, 16  ;;  %v17524_v54 = vld [vmem:[#allocation16 + $0x190] sm:$0xff]   ;;  %v7860_v13 = vrot.slane %v7859_v25, 2  ;;  %v17535_v21 = vld [vmem:[#allocation16 + $0x1c8] sm:$0xff]   ;;  %v17546_v33 = vld [vmem:[#allocation16 + $0x1c0] sm:$0xff]  }
 0x50d   :  { %v7512_v1 = vshll.u32 %v20558_v41, 16  ;;  %v7518_v40 = vshll.u32 %v7483_v3, 16  ;;  %v7537_v16 = vshrl.u32 %v20635_v29, 16  ;;  %v17498_v22 = vld [vmem:[#allocation5] ss:$36 sps:$4 sm:$0xff]   ;;  %v20685_v57 = vsel %vm20618_vm3, %v7846_v49, %v7850_v18  ;;  %v17538_v18 = vld [vmem:[#allocation16 + $0x188] sm:$0xff]  }
 0x50e   :  { %15701 = vst.sshfl [vmem:[#allocation5 + $0x84] sm:$0x33 pattern:$0x76325410] %v17551_v30  ;;  %v17500_v52 = vld [vmem:[#allocation5 + $0x4] ss:$36 sps:$4 sm:$0xff]   ;;  %v7378_v41 = vcombine.high %v20535_v36, %v20535_v36  ;;  %v20693_v47 = vsel %vm20618_vm3, %v7860_v13, %v7864_v62  ;;  %v7880_v26 = vcombine.low %v20625_v58, %v20685_v57  ;;  %17038 = vmatpush3.bf16.msra.mxu0 %v17524_v54 }
 0x50f   :  { %v20681_v35 = vld.sshfl [vmem:[#allocation4 + $0x10] sm:$0x13 pattern:$0x76325410]  ;;  %v7874_v63 = vrot.slane %v7873_v60, 2  ;;  %v7511_v45 = vrot.slane %v7509_v31, 6  ;;  %9143 = vmatprep.mubr.bf16.mxu1 %v17500_v52  ;;  %17039 = vmatprep.subr.bf16.mxu0 %v17535_v21 }
 0x510   :  { %v7514_v44 = vrot.slane %v7512_v1, 7  ;;  %v7520_v15 = vrot.slane %v7518_v40, 7  ;;  %v7539_v2 = vrot.slane %v7537_v16, 6  ;;  %v7540_v27 = vshll.u32 %v20635_v29, 16  ;;  %9144 = vmatmul.mubr.bf16.vlgmr.msra.gmra.mxu1 %v17498_v22  ;;  %v17507_v46 = vld [vmem:[#allocation16 + $0x130] sm:$0xff]   ;;  %v17509_v6 = vld [vmem:[#allocation16 + $0x168] sm:$0xff]  }
 0x511   :  { %v20699_v24 = vsel %vm20618_vm3, %v7874_v63, %v7878_v8  ;;  %15670 = vst.sshfl [vmem:[#allocation5 + $0x4c] sm:$0x33 pattern:$0x76325410] %v7880_v26  ;;  %v7546_v11 = vshll.u32 %v7499_v19, 16  ;;  %v7551_v50 = vshrl.u32 %v20667_v14, 16  ;;  %17000 = vmatpush3.bf16.msra.mxu1 %v17503_v48  ;;  %v7402_v29 = vcombine.high %v20637_v59, %v20637_v59 }
 0x512   :  { %v7888_v61 = vcombine.low %v20693_v47, %v20699_v24  ;;  %v7515_v58 = vor.u32 %v7514_v44, %v7511_v45  ;;  %v17527_v5 = vld [vmem:[#allocation5 + $0x50] ss:$36 sps:$4 sm:$0xff]   ;;  %v7542_v62 = vrot.slane %v7540_v27, 7  ;;  %v8255_v20 = vcombine.high %v20681_v35, %v20681_v35  ;;  %17001 = vmatprep.subr.bf16.mxu1 %v17505_v4  ;;  %17040 = vmatpush3.bf16.msra.mxu0 %v17538_v18  ;;  %v17536_v27 = vld [vmem:[#allocation5 + $0x48] ss:$36 sps:$4 sm:$0xff]  }
 0x513   :  { %v17529_v12 = vld [vmem:[#allocation5 + $0x54] ss:$36 sps:$4 sm:$0xff]   ;;  %v7548_v43 = vrot.slane %v7546_v11, 7  ;;  %v7553_v42 = vrot.slane %v7551_v50, 6  ;;  %v7554_v51 = vshll.u32 %v20667_v14, 16  ;;  %v7560_v3 = vshll.u32 %v7507_v7, 16  ;;  %17041 = vmatprep.subr.bf16.mxu0 %v17546_v33 }
 0x514   :  { %15671 = vst.sshfl [vmem:[#allocation5 + $0x70] sm:$0x33 pattern:$0x76325410] %v7888_v61  ;;  %v7516_v0 = vrot.slane %v7515_v58, 2  ;;  %9200 = vmatprep.mubr.bf16.mxu0 %v17529_v12  ;;  %v7543_v25 = vor.u32 %v7542_v62, %v7539_v2  ;;  %v7288_v19 = vshrl.u32 %v20526_v38, 16 }
 0x515   :  { %15706 = vst.sshfl [vmem:[#allocation5 + $0x64] sm:$0x33 pattern:$0x76325410] %v7888_v61  ;;  %v7291_v30 = vshll.u32 %v20526_v38, 16  ;;  %9201 = vmatmul.mubr.bf16.gmra.mxu0 %v17527_v5  ;;  %v7556_v49 = vrot.slane %v7554_v51, 7  ;;  %17002 = vmatpush3.bf16.msra.mxu1 %v17507_v46 }
 0x516   :  { %v20716_v48 = vsel %vm20618_vm3, %v7516_v0, %v7520_v15  ;;  %v7297_v60 = vshll.u32 %v7262_v34, 16  ;;  %v15624_v8 = vrot.slane %v20535_v36, 9  ;;  %v20719_v31 = vld.sshfl [vmem:[#allocation4 + $0x10] sm:$0x12 pattern:$0x76325410]  ;;  %17003 = vmatprep.subr.bf16.mxu1 %v17509_v6 }
 0x517   :  { %v17511_v14 = vld [vmem:[#allocation16 + $0x128] sm:$0xff]   ;;  %v7544_v4 = vrot.slane %v7543_v25, 2  ;;  %v7562_v7 = vrot.slane %v7560_v3, 7  ;;  %v7564_v54 = vcombine.low %v20716_v48, %v20648_v53  ;;  %v7290_v38 = vrot.slane %v7288_v19, 6  ;;  %v17548_v13 = vld [vmem:[#allocation16 + $0x180] sm:$0xff]   ;;  %v17517_v18 = vld [vmem:[#allocation16 + $0x158] sm:$0xff]  }
 0x518   :  { %v17513_v1 = vld [vmem:[#allocation16 + $0x160] sm:$0xff]   ;;  %v7557_v40 = vor.u32 %v7556_v49, %v7553_v42  ;;  %v7293_v16 = vrot.slane %v7291_v30, 7  ;;  %v7299_v22 = vrot.slane %v7297_v60, 7  ;;  %v7405_v52 = vrot.slane %v7378_v41, 7  ;;  %17042 = vmatpush3.bf16.msra.mxu0 %v17548_v13  ;;  %v17519_v0 = vld [vmem:[#allocation16 + $0x118] sm:$0xff]   ;;  %v17521_v25 = vld [vmem:[#allocation16 + $0x150] sm:$0xff]  }
 0x519   :  { %v7549_v36 = vsel %vm20618_vm3, %v7544_v4, %v7548_v43  ;;  %15636 = vst.sshfl [vmem:[#allocation5 + $0x1c] sm:$0x33 pattern:$0x76325410] %v7564_v54  ;;  %v15625_v63 = vrot.slane %v20560_v37, 9  ;;  %v7409_v34 = vrot.slane %v7386_v17, 7  ;;  %17004 = vmatpush3.bf16.msra.mxu1 %v17511_v14  ;;  %v8100_v37 = vcombine.low %v20685_v57, %v20693_v47 }
 0x51a   :  { %v15627_v26 = vrot.slane %v20637_v59, 9  ;;  %v17515_v21 = vld [vmem:[#allocation16 + $0x120] sm:$0xff]   ;;  %v7558_v45 = vrot.slane %v7557_v40, 2  ;;  %v7294_v44 = vor.u32 %v7293_v16, %v7290_v38  ;;  %v7351_v15 = vcombine.low %v20648_v53, %v7549_v36  ;;  %17005 = vmatprep.subr.bf16.mxu1 %v17513_v1  ;;  %v17523_v60 = vld [vmem:[#allocation16 + $0x110] sm:$0xff]   ;;  %v17534_v14 = vld [vmem:[#allocation16 + $0x148] sm:$0xff]  }
 0x51b   :  { %v7406_v2 = vsel %vm20492_vm0, %v15624_v8, %v7405_v52  ;;  %v17532_v41 = vld [vmem:[#allocation5 + $0x4c] ss:$36 sps:$4 sm:$0xff]   ;;  %v7410_v46 = vsel %vm20492_vm0, %v15625_v63, %v7409_v34  ;;  %v7417_v61 = vrot.slane %v7402_v29, 7  ;;  %v8159_v59 = vcombine.high %v20719_v31, %v20719_v31  ;;  %v17537_v1 = vld [vmem:[#allocation16 + $0x108] sm:$0xff]  }
 0x51c   :  { %v7563_v53 = vsel %vm20618_vm3, %v7558_v45, %v7562_v7  ;;  %v7295_v58 = vrot.slane %v7294_v44, 2  ;;  %15619 = vst.sshfl [vmem:[#allocation5 + $0x34] sm:$0x33 pattern:$0x76325410] %v7351_v15  ;;  %v7419_v11 = vcombine.low %v7406_v2, %v7410_v46  ;;  %v8293_v50 = vshrl.u32 %v20681_v35, 16  ;;  %9151 = vmatprep.mubr.bf16.mxu1 %v17532_v41 }
 0x51d   :  { %v7572_v5 = vcombine.low %v7549_v36, %v7563_v53  ;;  %v7418_v12 = vsel %vm20492_vm0, %v15627_v26, %v7417_v61  ;;  %v8296_v57 = vshll.u32 %v20681_v35, 16  ;;  %15688 = vst.sshfl [vmem:[#allocation5 + $0x58] sm:$0x33 pattern:$0x76325410] %v8100_v37  ;;  %9152 = vmatmul.mubr.bf16.gmra.mxu1 %v17536_v27  ;;  %v8302_v6 = vshll.u32 %v8255_v20, 16 }
 0x51e   :  { %v15641_v47 = vld.sshfl [vmem:[#allocation4 + $0x14] sm:$0x12 pattern:$0x76325410]  ;;  %v7300_v62 = vsel %vm20618_vm3, %v7295_v58, %v7299_v22  ;;  %v7427_v17 = vcombine.low %v20596_v9, %v7418_v12  ;;  %v8295_v29 = vrot.slane %v8293_v50, 6  ;;  %17006 = vmatpush3.bf16.msra.mxu1 %v17515_v21  ;;  %v15697_v51 = vrot.slane %v20719_v31, 9 }
 0x51f   :  { %15628 = vst.sshfl [vmem:[#allocation5 + $0x14] sm:$0x33 pattern:$0x76325410] %v7419_v11  ;;  %v7343_v43 = vcombine.low %v7300_v62, %v20716_v48  ;;  %v8298_v42 = vrot.slane %v8296_v57, 7  ;;  %v8174_v33 = vrot.slane %v8159_v59, 7  ;;  %17007 = vmatprep.subr.bf16.mxu1 %v17517_v18  ;;  %v8176_v3 = vcombine.low %v20652_v28, %v20656_v10 }
 0x520   :  { %15637 = vst.sshfl [vmem:[#allocation5 + $0x40] sm:$0x33 pattern:$0x76325410] %v7572_v5  ;;  %v7623_v19 = vcombine.high %v15641_v47, %v15641_v47  ;;  %v15645_v20 = vrot.slane %v15641_v47, 9  ;;  %v8304_v31 = vrot.slane %v8302_v6, 7  ;;  %v7640_v4 = vcombine.low %v7410_v46, %v20596_v9 }
 0x521   :  { %15629 = vst.sshfl [vmem:[#allocation5 + $0x38] sm:$0x33 pattern:$0x76325410] %v7427_v17  ;;  %v8299_v30 = vor.u32 %v8298_v42, %v8295_v29  ;;  %v8175_v35 = vsel %vm20492_vm0, %v15697_v51, %v8174_v33  ;;  %v17539_v40 = vld [vmem:[#allocation5 + $0x18] ss:$36 sps:$4 sm:$0xff]  }
 0x522   :  { %15618 = vst.sshfl [vmem:[#allocation5 + $0x10] sm:$0x33 pattern:$0x76325410] %v7343_v43  ;;  %v8184_v49 = vcombine.low %v20661_v23, %v8175_v35  ;;  %v7638_v48 = vrot.slane %v7623_v19, 7  ;;  %17008 = vmatpush3.bf16.msra.mxu1 %v17519_v0  ;;  %v17545_v16 = vld [vmem:[#allocation16 + $0x140] sm:$0xff]  }
 0x523   :  { %15698 = vst.sshfl [vmem:[#allocation5 + $0x5c] sm:$0x33 pattern:$0x76325410] %v8176_v3  ;;  %v8300_v8 = vrot.slane %v8299_v30, 2  ;;  %17009 = vmatprep.subr.bf16.mxu1 %v17521_v25  ;;  %v17547_v9 = vld [vmem:[#allocation16 + $0x100] sm:$0xff]  }
 0x524   :  { %15699 = vst.sshfl [vmem:[#allocation5 + $0x80] sm:$0x33 pattern:$0x76325410] %v8184_v49  ;;  %v7639_v28 = vsel %vm20492_vm0, %v15645_v20, %v7638_v48  ;;  %v17557_v22 = vld [vmem:[#allocation16 + $0x230] sm:$0xff]   ;;  %v17558_v34 = vld [vmem:[#allocation16 + $0x228] sm:$0xff]  }
 0x525   :  { %v8305_v10 = vsel %vm20618_vm3, %v8300_v8, %v8304_v31  ;;  %v7648_v7 = vcombine.low %v7418_v12, %v7639_v28  ;;  %v8404_v54 = vcombine.low %v8175_v35, %v7639_v28  ;;  %15646 = vst.sshfl [vmem:[#allocation5 + $0x20] sm:$0x33 pattern:$0x76325410] %v7640_v4  ;;  %v17552_v36 = vld [vmem:[#allocation5 + $0x60] ss:$36 sps:$4 sm:$0xff]  }
 0x526   :  { %v8328_v38 = vcombine.low %v8305_v10, %v7563_v53  ;;  %v8108_v13 = vcombine.low %v20699_v24, %v8305_v10  ;;  %17010 = vmatpush3.bf16.msra.mxu1 %v17523_v60  ;;  %v17561_v21 = vld [vmem:[#allocation16 + $0x220] sm:$0xff]   ;;  %v17562_v44 = vld [vmem:[#allocation16 + $0x218] sm:$0xff]   ;;  %v17563_v15 = vld [vmem:[#allocation16 + $0x210] sm:$0xff]   ;;  %vm9643_vm5 = vsmask.f32 1284 }
 0x527   :  { %v17541_v23 = vld [vmem:[#allocation5 + $0x1c] ss:$36 sps:$4 sm:$0xff]   ;;  %15647 = vst.sshfl [vmem:[#allocation5 + $0x44] sm:$0x33 pattern:$0x76325410] %v7648_v7  ;;  %17011 = vmatprep.subr.bf16.mxu1 %v17534_v14  ;;  %vm9644_vm6 = vmor %vm3031_vm4, %vm9643_vm5 }
 0x528   :  { %15717 = vst.sshfl [vmem:[#allocation5 + $0x8c] sm:$0x33 pattern:$0x76325410] %v8404_v54  ;;  %9290 = vmatprep.mubr.bf16.mxu0 %v17541_v23  ;;  %v17544_v32 = vld [vmem:[#allocation5 + $0x14] ss:$36 sps:$4 sm:$0xff]  }
 0x529   :  { %15707 = vst.sshfl [vmem:[#allocation5 + $0x88] sm:$0x33 pattern:$0x76325410] %v8328_v38  ;;  %9291 = vmatmul.mubr.bf16.vlgmr.msra.gmra.mxu0 %v17539_v40  ;;  %9241 = vmatprep.mubr.bf16.mxu1 %v17544_v32  ;;  %v17542_v52 = vld [vmem:[#allocation5 + $0x10] ss:$36 sps:$4 sm:$0xff]  }
 0x52a   :  { %15689 = vst.sshfl [vmem:[#allocation5 + $0x7c] sm:$0x33 pattern:$0x76325410] %v8108_v13  ;;  %17012 = vmatpush3.bf16.msra.mxu1 %v17537_v1  ;;  %v17564_v2 = vld [vmem:[#allocation16 + $0x208] sm:$0xff]   ;;  %v17565_v41 = vld [vmem:[#allocation16 + $0x200] sm:$0xff]  }
 0x52b   :  { %17013 = vmatprep.subr.bf16.mxu1 %v17545_v16  ;;  %v17555_v63 = vld [vmem:[#allocation5 + $0x5c] ss:$36 sps:$4 sm:$0xff]   ;;  %v17567_v46 = vld [vmem:[%s21948_s7 + $0x2e0] ss:$16 sps:$4 sm:$0xff]   ;;  %vm9647_vm0 = vsmask.f32 3340 }
 0x52c   :  { %v17569_v61 = vld [vmem:[%s21948_s7 + $0x2e4] ss:$16 sps:$4 sm:$0xff]   ;;  %v17570_v37 = vld [vmem:[%s21948_s7 + $0xe0] ss:$16 sps:$4 sm:$0xff]   ;;  %vm9587_vm4 = vsmask.f32 1282 }
 0x52d   :  { %v17572_v59 = vld [vmem:[%s21948_s7 + $0xe4] ss:$16 sps:$4 sm:$0xff]   ;;  %v17573_v58 = vld [vmem:[%s21948_s7 + $0x2c0] ss:$16 sps:$4 sm:$0xff]   ;;  %vm21070_vm14 = vmand %vm1268_vm1, %vm9587_vm4  ;;  %vm9653_vm3 = vsmask.f32 6424 }
 0x52e   :  { %17014 = vmatpush3.bf16.msra.mxu1 %v17547_v9  ;;  %v17560_v45 = vld [vmem:[#allocation5 + $0x20] ss:$36 sps:$4 sm:$0xff]   ;;  %v17575_v18 = vld [vmem:[%s21948_s7 + $0x2c4] ss:$16 sps:$4 sm:$0xff]   ;;  %12313 = vmatprep.subr.bf16.mxu0 %v17572_v59  ;;  %v17576_v11 = vld [vmem:[%s21948_s7 + $0xc0] ss:$16 sps:$4 sm:$0xff]  }
 0x52f   :  { %17209 = vmatprep.subr.bf16.mxu1 %v17549_v55  ;;  %v17566_v27 = vld [vmem:[#allocation5 + $0x68] ss:$36 sps:$4 sm:$0xff]   ;;  %12314 = vmatpush1.bf16.msra.mxu0 %v17570_v37 }
 0x530   :  { %v17554_v24 = vld [vmem:[#allocation5 + $0x64] ss:$36 sps:$4 sm:$0xff]   ;;  %v17578_v53 = vld [vmem:[%s21948_s7 + $0xc4] ss:$16 sps:$4 sm:$0xff]  }
 0x531   :  { %9298 = vmatprep.mubr.bf16.mxu0 %v17554_v24  ;;  %9242 = vmatmul.mubr.bf16.vlgmr.msra.gmra.mxu1 %v17542_v52  ;;  %v17559_v26 = vld [vmem:[#allocation5 + $0x58] ss:$36 sps:$4 sm:$0xff]  }
 0x532   :  { %9299 = vmatmul.mubr.bf16.gmra.mxu0 %v17552_v36  ;;  %17210 = vmatpush3.bf16.msra.mxu1 %v17549_v55  ;;  %v17581_v50 = vld [vmem:[%s21948_s7 + $0x2a4] ss:$16 sps:$4 sm:$0xff]   ;;  %v17579_v47 = vld [vmem:[%s21948_s7 + $0x2a0] ss:$16 sps:$4 sm:$0xff]  }
 0x533   :  { %9249 = vmatprep.mubr.bf16.mxu1 %v17555_v63  ;;  %17211 = vmatprep.subr.bf16.mxu1 %v17557_v22  ;;  %v17584_v12 = vld [vmem:[%s21948_s7 + $0xa4] ss:$16 sps:$4 sm:$0xff]   ;;  %v17582_v62 = vld [vmem:[%s21948_s7 + $0xa0] ss:$16 sps:$4 sm:$0xff]  }
 0x534   :  { %12315 = vmatprep.subr.bf16.mxu0 %v17578_v53  ;;  %v17587_v17 = vld [vmem:[%s21948_s7 + $0x284] ss:$16 sps:$4 sm:$0xff]   ;;  %v17585_v43 = vld [vmem:[%s21948_s7 + $0x280] ss:$16 sps:$4 sm:$0xff]  }
 0x535   :  { %12316 = vmatpush1.bf16.msra.mxu0 %v17576_v11  ;;  %v17590_v6 = vld [vmem:[%s21948_s7 + $0x84] ss:$16 sps:$4 sm:$0xff]   ;;  %v17588_v42 = vld [vmem:[%s21948_s7 + $0x80] ss:$16 sps:$4 sm:$0xff]  }
 0x536   :  { %17212 = vmatpush3.bf16.msra.mxu1 %v17557_v22  ;;  %12317 = vmatprep.subr.bf16.mxu0 %v17584_v12  ;;  %v17593_v51 = vld [vmem:[%s21948_s7 + $0x264] ss:$16 sps:$4 sm:$0xff]   ;;  %v17591_v19 = vld [vmem:[%s21948_s7 + $0x260] ss:$16 sps:$4 sm:$0xff]  }
 0x537   :  { %17213 = vmatprep.subr.bf16.mxu1 %v17558_v34  ;;  %v17596_v25 = vld [vmem:[%s21948_s7 + $0x64] ss:$16 sps:$4 sm:$0xff]   ;;  %v17594_v30 = vld [vmem:[%s21948_s7 + $0x60] ss:$16 sps:$4 sm:$0xff]  }
 0x538   :  { %v17599_v35 = vld [vmem:[%s21948_s7 + $0x244] ss:$16 sps:$4 sm:$0xff]   ;;  %v17597_v8 = vld [vmem:[%s21948_s7 + $0x240] ss:$16 sps:$4 sm:$0xff]  }
 0x539   :  { %9250 = vmatmul.mubr.bf16.gmra.mxu1 %v17559_v26  ;;  %12318 = vmatpush1.bf16.msra.mxu0 %v17582_v62  ;;  %v17602_v49 = vld [vmem:[%s21948_s7 + $0x44] ss:$16 sps:$4 sm:$0xff]   ;;  %v17600_v31 = vld [vmem:[%s21948_s7 + $0x40] ss:$16 sps:$4 sm:$0xff]  }
 0x53a   :  { %17214 = vmatpush3.bf16.msra.mxu1 %v17558_v34  ;;  %17225 = vmatprep.mubr.bf16.mxu1 %v17560_v45  ;;  %v17605_v14 = vld [vmem:[%s21948_s7 + $0x224] ss:$16 sps:$4 sm:$0xff]   ;;  %v17603_v7 = vld [vmem:[%s21948_s7 + $0x220] ss:$16 sps:$4 sm:$0xff]  }
 0x53b   :  { %17215 = vmatprep.subr.bf16.mxu1 %v17561_v21  ;;  %12319 = vmatprep.subr.bf16.mxu0 %v17590_v6  ;;  %v17608_v10 = vld [vmem:[%s21948_s7 + $0x24] ss:$16 sps:$4 sm:$0xff]   ;;  %v17606_v54 = vld [vmem:[%s21948_s7 + $0x20] ss:$16 sps:$4 sm:$0xff]  }
 0x53c   :  { %v17611_v23 = vld [vmem:[%s21948_s7 + $0x204] ss:$16 sps:$4 sm:$0xff]   ;;  %v17609_v40 = vld [vmem:[%s21948_s7 + $0x200] ss:$16 sps:$4 sm:$0xff]  }
 0x53d   :  { %12320 = vmatpush1.bf16.msra.mxu0 %v17588_v42  ;;  %v17614_v13 = vld [vmem:[%s21948_s7 + $0x4] ss:$16 sps:$4 sm:$0xff]   ;;  %v17612_v32 = vld [vmem:[%s21948_s7] ss:$16 sps:$4 sm:$0xff]  }
 0x53e   :  { %17216 = vmatpush3.bf16.msra.mxu1 %v17561_v21  ;;  %12321 = vmatprep.subr.bf16.mxu0 %v17596_v25  ;;  %v17617_v16 = vld [vmem:[%s21948_s7 + $0x3e4] ss:$16 sps:$4 sm:$0xff]   ;;  %v17615_v22 = vld [vmem:[%s21948_s7 + $0x3e0] ss:$16 sps:$4 sm:$0xff]  }
 0x53f   :  { %17217 = vmatprep.subr.bf16.mxu1 %v17562_v44  ;;  %v17620_v55 = vld [vmem:[%s21948_s7 + $0x1e4] ss:$16 sps:$4 sm:$0xff]   ;;  %v17618_v52 = vld [vmem:[%s21948_s7 + $0x1e0] ss:$16 sps:$4 sm:$0xff]  }
 0x540   :  { %v17623_v36 = vld [vmem:[%s21948_s7 + $0x3c4] ss:$16 sps:$4 sm:$0xff]   ;;  %v17621_v21 = vld [vmem:[%s21948_s7 + $0x3c0] ss:$16 sps:$4 sm:$0xff]  }
 0x541   :  { %12322 = vmatpush1.bf16.msra.mxu0 %v17594_v30  ;;  %v17626_v34 = vld [vmem:[%s21948_s7 + $0x1c4] ss:$16 sps:$4 sm:$0xff]   ;;  %v17624_v45 = vld [vmem:[%s21948_s7 + $0x1c0] ss:$16 sps:$4 sm:$0xff]  }
 0x542   :  { %17218 = vmatpush3.bf16.msra.mxu1 %v17562_v44  ;;  %12323 = vmatprep.subr.bf16.mxu0 %v17602_v49  ;;  %v17629_v44 = vld [vmem:[%s21948_s7 + $0x3a4] ss:$16 sps:$4 sm:$0xff]   ;;  %v17636_v11 = vld [vmem:[%s21948_s7 + $0x180] ss:$16 sps:$4 sm:$0xff]  }
 0x543   :  { %17219 = vmatprep.subr.bf16.mxu1 %v17563_v15  ;;  %v17635_v37 = vld [vmem:[%s21948_s7 + $0x384] ss:$16 sps:$4 sm:$0xff]   ;;  %v17642_v6 = vld [vmem:[%s21948_s7 + $0x160] ss:$16 sps:$4 sm:$0xff]  }
 0x544   :  { %v17653_v49 = vld [vmem:[%s21948_s7 + $0x324] ss:$16 sps:$4 sm:$0xff]  }
 0x545   :  { %12324 = vmatpush1.bf16.msra.mxu0 %v17600_v31  ;;  %v17656_v31 = vld [vmem:[%s21948_s7 + $0x124] ss:$16 sps:$4 sm:$0xff]  }
 0x546   :  { %17220 = vmatpush3.bf16.msra.mxu1 %v17563_v15  ;;  %12325 = vmatprep.subr.bf16.mxu0 %v17608_v10 }
 0x547   :  { %17221 = vmatprep.subr.bf16.mxu1 %v17564_v2 }
 0x549   :  { %12326 = vmatpush1.bf16.msra.mxu0 %v17606_v54 }
 0x54a   :  { %17222 = vmatpush3.bf16.msra.mxu1 %v17564_v2  ;;  %12327 = vmatprep.subr.bf16.mxu0 %v17614_v13  ;;  %v17662_v13 = vld [vmem:[%s21948_s7 + $0x104] ss:$16 sps:$4 sm:$0xff]  }
 0x54b   :  { %17223 = vmatprep.subr.bf16.mxu1 %v17565_v41 }
 0x54d   :  { %12328 = vmatpush1.bf16.msra.mxu0 %v17612_v32 }
 0x54e   :  { %17224 = vmatpush3.bf16.msra.mxu1 %v17565_v41  ;;  %12329 = vmatprep.subr.bf16.mxu0 %v17620_v55  ;;  %v17632_v41 = vld [vmem:[%s21948_s7 + $0x1a4] ss:$16 sps:$4 sm:$0xff]  }
 0x54f   :  { %12354 = vmatprep.subr.bf16.mxu1 %v17569_v61  ;;  %v17630_v61 = vld [vmem:[%s21948_s7 + $0x1a0] ss:$16 sps:$4 sm:$0xff]  }
 0x551   :  { %17226 = vmatmul.mubr.bf16.vlgmr.msra.gmra.mxu1 %v17566_v27  ;;  %12330 = vmatpush2.bf16.msra.mxu0 %v17618_v52 }
 0x552   :  { %12355 = vmatpush1.bf16.msra.mxu1 %v17567_v46  ;;  %12331 = vmatprep.subr.bf16.mxu0 %v17626_v34  ;;  %v17627_v46 = vld [vmem:[%s21948_s7 + $0x3a0] ss:$16 sps:$4 sm:$0xff]  }
 0x553   :  { %12356 = vmatprep.subr.bf16.mxu1 %v17575_v18  ;;  %v17638_v18 = vld [vmem:[%s21948_s7 + $0x184] ss:$16 sps:$4 sm:$0xff]  }
 0x555   :  { %12332 = vmatpush2.bf16.msra.mxu0 %v17624_v45 }
 0x556   :  { %12357 = vmatpush1.bf16.msra.mxu1 %v17573_v58  ;;  %12333 = vmatprep.subr.bf16.mxu0 %v17632_v41  ;;  %v17633_v58 = vld [vmem:[%s21948_s7 + $0x380] ss:$16 sps:$4 sm:$0xff]  }
 0x557   :  { %12358 = vmatprep.subr.bf16.mxu1 %v17581_v50  ;;  %v17641_v50 = vld [vmem:[%s21948_s7 + $0x364] ss:$16 sps:$4 sm:$0xff]  }
 0x559   :  { %12334 = vmatpush2.bf16.msra.mxu0 %v17630_v61 }
 0x55a   :  { %12359 = vmatpush1.bf16.msra.mxu1 %v17579_v47  ;;  %12335 = vmatprep.subr.bf16.mxu0 %v17638_v18  ;;  %v17644_v47 = vld [vmem:[%s21948_s7 + $0x164] ss:$16 sps:$4 sm:$0xff]  }
 0x55b   :  { %12360 = vmatprep.subr.bf16.mxu1 %v17587_v17  ;;  %v17639_v17 = vld [vmem:[%s21948_s7 + $0x360] ss:$16 sps:$4 sm:$0xff]  }
 0x55d   :  { %12336 = vmatpush2.bf16.msra.mxu0 %v17636_v11 }
 0x55e   :  { %12361 = vmatpush1.bf16.msra.mxu1 %v17585_v43  ;;  %v17647_v43 = vld [vmem:[%s21948_s7 + $0x344] ss:$16 sps:$4 sm:$0xff]   ;;  %12337 = vmatprep.subr.bf16.mxu0 %v17644_v47 }
 0x55f   :  { %12362 = vmatprep.subr.bf16.mxu1 %v17593_v51  ;;  %v17650_v51 = vld [vmem:[%s21948_s7 + $0x144] ss:$16 sps:$4 sm:$0xff]  }
 0x561   :  { %12338 = vmatpush2.bf16.msra.mxu0 %v17642_v6 }
 0x562   :  { %12363 = vmatpush1.bf16.msra.mxu1 %v17591_v19  ;;  %v17645_v19 = vld [vmem:[%s21948_s7 + $0x340] ss:$16 sps:$4 sm:$0xff]   ;;  %12339 = vmatprep.subr.bf16.mxu0 %v17650_v51 }
 0x563   :  { %12364 = vmatprep.subr.bf16.mxu1 %v17599_v35  ;;  %v17648_v35 = vld [vmem:[%s21948_s7 + $0x140] ss:$16 sps:$4 sm:$0xff]  }
 0x565   :  { %12340 = vmatpush2.bf16.msra.mxu0 %v17648_v35 }
 0x566   :  { %12365 = vmatpush1.bf16.msra.mxu1 %v17597_v8  ;;  %12341 = vmatprep.subr.bf16.mxu0 %v17656_v31 }
 0x567   :  { %12366 = vmatprep.subr.bf16.mxu1 %v17605_v14 }
 0x56a   :  { %12367 = vmatpush1.bf16.msra.mxu1 %v17603_v7 }
 0x56b   :  { %12368 = vmatprep.subr.bf16.mxu1 %v17611_v23  ;;  %v17654_v23 = vld [vmem:[%s21948_s7 + $0x120] ss:$16 sps:$4 sm:$0xff]  }
 0x56c   :  { %12342 = vmatpush2.bf16.msra.mxu0 %v17654_v23 }
 0x56d   :  { %12343 = vmatprep.subr.bf16.mxu0 %v17662_v13 }
 0x56e   :  { %12369 = vmatpush1.bf16.msra.mxu1 %v17609_v40 }
 0x56f   :  { %12370 = vmatprep.subr.bf16.mxu1 %v17617_v16 }
 0x572   :  { %12371 = vmatpush2.bf16.msra.mxu1 %v17615_v22  ;;  %v17657_v22 = vld [vmem:[%s21948_s7 + $0x300] ss:$16 sps:$4 sm:$0xff]  }
 0x573   :  { %12372 = vmatprep.subr.bf16.mxu1 %v17623_v36 }
 0x576   :  { %12373 = vmatpush2.bf16.msra.mxu1 %v17621_v21 }
 0x577   :  { %12374 = vmatprep.subr.bf16.mxu1 %v17629_v44 }
 0x57a   :  { %12375 = vmatpush2.bf16.msra.mxu1 %v17627_v46 }
 0x57b   :  { %12376 = vmatprep.subr.bf16.mxu1 %v17635_v37 }
 0x57e   :  { %12377 = vmatpush2.bf16.msra.mxu1 %v17633_v58 }
 0x57f   :  { %12378 = vmatprep.subr.bf16.mxu1 %v17641_v50 }
 0x582   :  { %12379 = vmatpush2.bf16.msra.mxu1 %v17639_v17 }
 0x583   :  { %12380 = vmatprep.subr.bf16.mxu1 %v17647_v43 }
 0x586   :  { %12381 = vmatpush2.bf16.msra.mxu1 %v17645_v19 }
 0x587   :  { %12382 = vmatprep.subr.bf16.mxu1 %v17653_v49 }
 0x5b7   :  { %v20793_v57 = vpop.f32.mrf.mxu0 }
 0x5b9   :  { %v20809_v0 = vpop.f32.mrf.mxu0 }
 0x5ba   :  { %v16989_v16 = vadd.f32 %v20809_v0, %v20793_v57  ;;  %v17660_v57 = vld [vmem:[%s21948_s7 + $0x100] ss:$16 sps:$4 sm:$0xff]   ;;  %v17669_v0 = vld [vmem:[%s21948_s7 + $0x6e4] ss:$16 sps:$4 sm:$0xff]  }
 0x5bb   :  { %v20825_v3 = vpop.f32.mrf.mxu0  ;;  %12344 = vmatpush2.bf16.msra.mxu0 %v17660_v57 }
 0x5bd   :  { %v20841_v48 = vpop.f32.mrf.mxu0 }
 0x5be   :  { %v16992_v46 = vadd.f32 %v20841_v48, %v20825_v3 }
 0x5d0   :  { %v20788_v5 = vpop.f32.mrf.mxu1 }
 0x5d2   :  { %v20804_v29 = vpop.f32.mrf.mxu1 }
 0x5d3   :  { %v16961_v14 = vadd.f32 %v20804_v29, %v20788_v5  ;;  %v17659_v5 = vld [vmem:[%s21948_s7 + $0x304] ss:$16 sps:$4 sm:$0xff]  }
 0x5d4   :  { %v20820_v33 = vpop.f32.mrf.mxu1 }
 0x5d5   :  { %v20854_v28 = vpop.f32.mrf.mxu0 }
 0x5d6   :  { %v20836_v20 = vpop.f32.mrf.mxu1 }
 0x5d7   :  { %v20870_v38 = vpop.f32.mrf.mxu0  ;;  %v16964_v55 = vadd.f32 %v20836_v20, %v20820_v33  ;;  %v17676_v20 = vld [vmem:[%s21948_s7 + $0x4e4] ss:$16 sps:$4 sm:$0xff]  }
 0x5d8   :  { %12395 = vmatprep.subr.bf16.mxu0 %v17676_v20 }
 0x5d9   :  { %v20886_v9 = vpop.f32.mrf.mxu0 }
 0x5db   :  { %v20902_v63 = vpop.f32.mrf.mxu0 }
 0x5dd   :  { %v20843_v60 = vpop.f32.mrf.mxu1 }
 0x5df   :  { %v20859_v4 = vpop.f32.mrf.mxu1 }
 0x5e0   :  { %v16967_v30 = vadd.f32 %v20859_v4, %v20843_v60  ;;  %v15718_v60 = vld [vmem:[#allocation17] ss:$0 sm:$0xff]  ;;  %v17651_v4 = vld [vmem:[%s21948_s7 + $0x320] ss:$16 sps:$4 sm:$0xff]  }
 0x5e1   :  { %v20875_v1 = vpop.f32.mrf.mxu1  ;;  %v9146_v40 = vadd.f32 %v16961_v14, %v15718_v60  ;;  %12383 = vmatpush2.bf16.msra.mxu1 %v17651_v4  ;;  %v9149_v45 = vadd.f32 %v16964_v55, %v15718_v60 }
 0x5e2   :  { %v9154_v7 = vadd.f32 %v16967_v30, %v15718_v60  ;;  %12384 = vmatprep.subr.bf16.mxu1 %v17659_v5 }
 0x5e3   :  { %v20891_v24 = vpop.f32.mrf.mxu1  ;;  %v9198_v58 = vadd.f32 %v16992_v46, %v9149_v45 }
 0x5e4   :  { %v16970_v54 = vadd.f32 %v20891_v24, %v20875_v1  ;;  %v16995_v1 = vadd.f32 %v20870_v38, %v20854_v28  ;;  %v16998_v28 = vadd.f32 %v20902_v63, %v20886_v9  ;;  %v9195_v38 = vadd.f32 %v16989_v16, %v9146_v40 }
 0x5e5   :  { %12385 = vmatpush2.bf16.msra.mxu1 %v17657_v22 }
 0x5e6   :  { %v9157_v52 = vadd.f32 %v16970_v54, %v15718_v60  ;;  %v9203_v34 = vadd.f32 %v16995_v1, %v9154_v7  ;;  %12436 = vmatprep.subr.bf16.mxu1 %v17669_v0 }
 0x5e8   :  { %v9206_v41 = vadd.f32 %v16998_v28, %v9157_v52 }
 0x5e9   :  { %v20918_v15 = vpop.f32.mrf.mxu0 }
 0x5eb   :  { %v20936_v59 = vpop.f32.mrf.mxu0 }
 0x5ec   :  { %v17045_v9 = vadd.f32 %v20936_v59, %v20918_v15 }
 0x5ed   :  { %v20952_v12 = vpop.f32.mrf.mxu0 }
 0x5ef   :  { %v20966_v42 = vpop.f32.mrf.mxu0 }
 0x5f0   :  { %v17048_v48 = vadd.f32 %v20966_v42, %v20952_v12 }
 0x5f1   :  { %v20907_v26 = vpop.f32.mrf.mxu1 }
 0x5f2   :  { %v17049_v8 = vpop.f32.mrf.mxu0 }
 0x5f3   :  { %v20920_v2 = vpop.f32.mrf.mxu1 }
 0x5f4   :  { %v17050_v29 = vpop.f32.mrf.mxu0  ;;  %v17017_v36 = vadd.f32 %v20920_v2, %v20907_v26 }
 0x5f5   :  { %v20925_v27 = vpop.f32.mrf.mxu1  ;;  %v17051_v2 = vadd.f32 %v17050_v29, %v17049_v8 }
 0x5f6   :  { %v17052_v33 = vpop.f32.mrf.mxu0  ;;  %v9244_v44 = vadd.f32 %v17017_v36, %v9195_v38 }
 0x5f7   :  { %v20941_v53 = vpop.f32.mrf.mxu1 }
 0x5f8   :  { %v17020_v61 = vadd.f32 %v20941_v53, %v20925_v27  ;;  %v17053_v37 = vpop.f32.mrf.mxu0 }
 0x5f9   :  { %v17021_v62 = vpop.f32.mrf.mxu1  ;;  %v17054_v50 = vadd.f32 %v17053_v37, %v17052_v33 }
 0x5fa   :  { %v9247_v17 = vadd.f32 %v17020_v61, %v9198_v58 }
 0x5fb   :  { %v17022_v25 = vpop.f32.mrf.mxu1 }
 0x5fc   :  { %v17023_v32 = vadd.f32 %v17022_v25, %v17021_v62  ;;  %v9293_v62 = vadd.f32 %v17045_v9, %v9244_v44  ;;  %v9296_v15 = vadd.f32 %v17048_v48, %v9247_v17 }
 0x5fd   :  { %v17024_v10 = vpop.f32.mrf.mxu1 }
 0x5fe   :  { %v9252_v26 = vadd.f32 %v17023_v32, %v9203_v34 }
 0x5ff   :  { %v17025_v24 = vpop.f32.mrf.mxu1 }
 0x600   :  { %v17026_v21 = vadd.f32 %v17025_v24, %v17024_v10  ;;  %v9301_v18 = vadd.f32 %v17051_v2, %v9252_v26 }
 0x602   :  { %v9255_v63 = vadd.f32 %v17026_v21, %v9206_v41 }
 0x604   :  { %v9304_v3 = vadd.f32 %v17054_v50, %v9255_v63 }
 0x611   :  { %v17227_v11 = vpop.f32.mrf.mxu1 }
 0x612   :  { %v9350_v47 = vadd.f32 %v17227_v11, %v9301_v18 }
 0x613   :  { %v9341_v6 = vpop.f32.mrf.mxu1 }
 0x614   :  { %v9358_v43 = vmax.f32 %v9350_v47, 0.0  ;;  %v9342_v51 = vadd.f32 %v9341_v6, %v9293_v62 }
 0x615   :  { %v17228_v27 = vpop.f32.mrf.mxu1 }
 0x616   :  { %v9429_v53 = vcombine.high %v9358_v43, %v9358_v43  ;;  %v9356_v25 = vmax.f32 %v9342_v51, 0.0  ;;  %v9353_v19 = vadd.f32 %v17228_v27, %v9304_v3  ;;  %v9433_v30 = vsel %vm3024_vm10, %v9358_v43, -inf }
 0x617   :  { %v9344_v59 = vpop.f32.mrf.mxu1 }
 0x618   :  { %v9434_v35 = vsel %vm3024_vm10, %v9429_v53, -inf  ;;  %v9362_v49 = vcombine.high %v9356_v25, %v9356_v25  ;;  %v9359_v8 = vmax.f32 %v9353_v19, 0.0  ;;  %v9345_v14 = vadd.f32 %v9344_v59, %v9296_v15 }
 0x619   :  { %v9435_v31 = vmax.f32 %v9433_v30, %v9434_v35  ;;  %v9367_v60 = vsel %vm3024_vm10, %v9356_v25, -inf }
 0x61a   :  { %v9368_v10 = vsel %vm3024_vm10, %v9362_v49, -inf  ;;  %v9430_v4 = vcombine.high %v9359_v8, %v9359_v8  ;;  %v9357_v7 = vmax.f32 %v9345_v14, 0.0  ;;  %v9436_v54 = vsel %vm3024_vm10, %v9359_v8, -inf }
 0x61b   :  { %v9447_v12 = vrot.slane %v9435_v31, %v19023_v56  ;;  %v9369_v42 = vmax.f32 %v9367_v60, %v9368_v10 }
 0x61c   :  { %v9437_v23 = vsel %vm3024_vm10, %v9430_v4, -inf  ;;  %v9363_v32 = vcombine.high %v9357_v7, %v9357_v7  ;;  %v9370_v16 = vsel %vm3024_vm10, %v9357_v7, -inf }
 0x61d   :  { %v9448_v5 = vcombine.high %v9447_v12, %v9447_v12  ;;  %v9461_v29 = vsel %vm1268_vm1, %v9447_v12, -inf  ;;  %v9381_v13 = vrot.slane %v9369_v42, %v19023_v56  ;;  %v9438_v40 = vmax.f32 %v9436_v54, %v9437_v23 }
 0x61e   :  { %v9462_v1 = vrot.slane %v9461_v29, 4  ;;  %v9371_v0 = vsel %vm3024_vm10, %v9363_v32, -inf  ;;  %vm9645_vm10 = vsmask.f32 2312 }
 0x61f   :  { %v9468_v55 = vsel %vm1268_vm1, %v9448_v5, -inf  ;;  %v9382_v24 = vcombine.high %v9381_v13, %v9381_v13  ;;  %v9395_v22 = vsel %vm1268_vm1, %v9381_v13, -inf  ;;  %v9455_v52 = vrot.slane %v9438_v40, %v19023_v56  ;;  %vm9646_vm9 = vmor %vm9644_vm6, %vm9645_vm10 }
 0x620   :  { %v9463_v36 = vmax.f32 %v9461_v29, %v9462_v1  ;;  %v9469_v34 = vrot.slane %v9468_v55, 4  ;;  %v9396_v57 = vrot.slane %v9395_v22, 4  ;;  %v9372_v38 = vmax.f32 %v9370_v16, %v9371_v0  ;;  %vm9648_vm8 = vmor %vm9646_vm9, %vm9647_vm0 }
 0x621   :  { %v9402_v33 = vsel %vm1268_vm1, %v9382_v24, -inf  ;;  %v9456_v20 = vcombine.high %v9455_v52, %v9455_v52  ;;  %v9475_v28 = vsel %vm1268_vm1, %v9455_v52, -inf  ;;  %vm9650_vm15 = vmor %vm9648_vm8, %vm9649_vm11  ;;  %vm9655_vm6 = vsmask.f32 7452 }
 0x622   :  { %v9464_v26 = vrot.slane %v9463_v36, 2  ;;  %v9470_v21 = vmax.f32 %v9468_v55, %v9469_v34  ;;  %v9397_v45 = vmax.f32 %v9395_v22, %v9396_v57  ;;  %v9403_v44 = vrot.slane %v9402_v33, 4  ;;  %vm9652_vm13 = vmor %vm9650_vm15, %vm9651_vm7 }
 0x623   :  { %v9476_v2 = vrot.slane %v9475_v28, 4  ;;  %v9482_v41 = vsel %vm1268_vm1, %v9456_v20, -inf  ;;  %v9389_v46 = vrot.slane %v9372_v38, %v19023_v56  ;;  %vm9654_vm5 = vmor %vm9652_vm13, %vm9653_vm3 }
 0x624   :  { %v9465_v61 = vmax.f32 %v9463_v36, %v9464_v26  ;;  %v9471_v37 = vrot.slane %v9470_v21, 2  ;;  %v9398_v9 = vrot.slane %v9397_v45, 2  ;;  %v9404_v63 = vmax.f32 %v9402_v33, %v9403_v44  ;;  %vm21088_vm10 = vmor %vm9654_vm5, %vm9655_vm6 }
 0x625   :  { %v9477_v18 = vmax.f32 %v9475_v28, %v9476_v2  ;;  %v9483_v58 = vrot.slane %v9482_v41, 4  ;;  %v9390_v11 = vcombine.high %v9389_v46, %v9389_v46  ;;  %v9409_v50 = vsel %vm1268_vm1, %v9389_v46, -inf }
 0x626   :  { %v9466_v47 = vrot.slane %v9465_v61, 1  ;;  %v9472_v62 = vmax.f32 %v9470_v21, %v9471_v37  ;;  %v9399_v17 = vmax.f32 %v9397_v45, %v9398_v9  ;;  %v9405_v6 = vrot.slane %v9404_v63, 2 }
 0x627   :  { %v9478_v43 = vrot.slane %v9477_v18, 2  ;;  %v9484_v51 = vmax.f32 %v9482_v41, %v9483_v58  ;;  %v9410_v3 = vrot.slane %v9409_v50, 4  ;;  %v9416_v48 = vsel %vm1268_vm1, %v9390_v11, -inf }
 0x628   :  { %v9467_v27 = vmax.f32 %v9465_v61, %v9466_v47  ;;  %v9473_v53 = vrot.slane %v9472_v62, 1  ;;  %v9400_v25 = vrot.slane %v9399_v17, 1  ;;  %v9406_v19 = vmax.f32 %v9404_v63, %v9405_v6 }
 0x629   :  { %v9479_v15 = vmax.f32 %v9477_v18, %v9478_v43  ;;  %v9485_v59 = vrot.slane %v9484_v51, 2  ;;  %v9411_v30 = vmax.f32 %v9409_v50, %v9410_v3  ;;  %v9417_v35 = vrot.slane %v9416_v48, 4 }
 0x62a   :  { %v9474_v49 = vmax.f32 %v9472_v62, %v9473_v53  ;;  %v9489_v8 = vpack.c.bf16 %v9467_v27, %v9467_v27  ;;  %v9401_v31 = vmax.f32 %v9399_v17, %v9400_v25  ;;  %v9407_v14 = vrot.slane %v9406_v19, 1 }
 0x62b   :  { %v9480_v60 = vrot.slane %v9479_v15, 1  ;;  %v9486_v10 = vmax.f32 %v9484_v51, %v9485_v59  ;;  %v9412_v4 = vrot.slane %v9411_v30, 2  ;;  %v9418_v12 = vmax.f32 %v9416_v48, %v9417_v35  ;;  %v9589_v51 = vld [vmem:[#allocation6 + $0x2] sm:$0x3] }
 0x62c   :  { %v9490_v42 = vpack.c.bf16 %v9474_v49, %v9474_v49  ;;  %v9408_v7 = vmax.f32 %v9406_v19, %v9407_v14  ;;  %v9423_v54 = vpack.c.bf16 %v9401_v31, %v9401_v31  ;;  %v10022_v16 = vrot.slane %v9489_v8, %v19023_v56 }
 0x62d   :  { %v9487_v23 = vrot.slane %v9486_v10, 1  ;;  %v9413_v5 = vmax.f32 %v9411_v30, %v9412_v4  ;;  %v9419_v29 = vrot.slane %v9418_v12, 2  ;;  %v9481_v32 = vmax.f32 %v9479_v15, %v9480_v60  ;;  %v15812_v30 = vld.sshfl [vmem:[#allocation6] sm:$0x11 pattern:$0x75316420] }
 0x62e   :  { %v10029_v13 = vrot.slane %v9490_v42, %v19023_v56  ;;  %v9424_v40 = vpack.c.bf16 %v9408_v7, %v9408_v7  ;;  %v9507_v1 = vrot.slane %v9423_v54, %v19023_v56  ;;  %v10050_v26 = vrot.slane %v10022_v16, %v19023_v56  ;;  %v15817_v54 = vld.sshfl [vmem:[#allocation6] sm:$0x10 pattern:$0x75316420] }
 0x62f   :  { %v9488_v55 = vmax.f32 %v9486_v10, %v9487_v23  ;;  %v9414_v24 = vrot.slane %v9413_v5, 1  ;;  %v9420_v22 = vmax.f32 %v9418_v12, %v9419_v29  ;;  %v9491_v38 = vpack.c.bf16 %v9481_v32, %v9481_v32  ;;  %v9592_v23 = vld [vmem:[#allocation6 + $0x4] sm:$0x3] }
 0x630   :  { %v9514_v52 = vrot.slane %v9424_v40, %v19023_v56  ;;  %v9535_v36 = vrot.slane %v9507_v1, %v19023_v56  ;;  %v10057_v34 = vrot.slane %v10029_v13, %v19023_v56  ;;  %v10072_v18 = vunpack.c.l.b16 %v10050_v26  ;;  %v15809_v13 = vld.sshfl [vmem:[#allocation6] sm:$0x1 pattern:$0x73625140] }
 0x631   :  { %v9492_v57 = vpack.c.bf16 %v9488_v55, %v9488_v55  ;;  %v9415_v0 = vmax.f32 %v9413_v5, %v9414_v24  ;;  %v9421_v33 = vrot.slane %v9420_v22, 1  ;;  %v10036_v63 = vrot.slane %v9491_v38, %v19023_v56  ;;  %v15835_v16 = vld.sshfl [vmem:[#allocation6 + $0x6] sm:$0x11 pattern:$0x75316420] }
 0x632   :  { %v9542_v20 = vrot.slane %v9514_v52, %v19023_v56  ;;  %v9557_v28 = vunpack.c.l.b16 %v9535_v36  ;;  %v10073_v41 = vunpack.c.l.b16 %v10057_v34  ;;  %v10076_v27 = vrot.slane %v10072_v18, 7  ;;  %v22026_v52 = vld [vmem:[#allocation37_spill] sm:$0xff]  ;;  %v17667_v34 = vld [vmem:[%s21948_s7 + $0x6e0] ss:$16 sps:$4 sm:$0xff]  }
 0x633   :  { %v9422_v21 = vmax.f32 %v9420_v22, %v9421_v33  ;;  %v9425_v45 = vpack.c.bf16 %v9415_v0, %v9415_v0  ;;  %v10043_v2 = vrot.slane %v9492_v57, %v19023_v56  ;;  %v10064_v3 = vrot.slane %v10036_v63, %v19023_v56 }
 0x634   :  { %v9558_v44 = vunpack.c.l.b16 %v9542_v20  ;;  %v9561_v37 = vrot.slane %v9557_v28, 7  ;;  %v10077_v62 = vrot.slane %v10073_v41, 6  ;;  %v18728_v15 = vmov 1935823168  }
 0x635   :  { %v9426_v46 = vpack.c.bf16 %v9422_v21, %v9422_v21  ;;  %v9521_v61 = vrot.slane %v9425_v45, %v19023_v56  ;;  %v10071_v50 = vrot.slane %v10043_v2, %v19023_v56  ;;  %v9676_v59 = vunpack.c.l.s4 %v18728_v15 }
 0x636   :  { %v9562_v9 = vrot.slane %v9558_v44, 6  ;;  %v10078_v35 = vsel %vm2937_vm2, %v10077_v62, %v10076_v27  ;;  %v10074_v14 = vunpack.c.l.b16 %v10064_v3  ;;  %v9634_v10 = vcombine.high %v15812_v30, %v15812_v30  ;;  %v15832_v62 = vld.sshfl [vmem:[#allocation6 + $0x6] sm:$0x1 pattern:$0x73625140] }
 0x637   :  { %v9528_v58 = vrot.slane %v9426_v46, %v19023_v56  ;;  %v9549_v47 = vrot.slane %v9521_v61, %v19023_v56  ;;  %v10075_v19 = vunpack.c.l.b16 %v10071_v50  ;;  %v10082_v4 = vpack.c.b16 %v10078_v35, %v10078_v35  ;;  %v15840_v46 = vld.sshfl [vmem:[#allocation6 + $0x6] sm:$0x10 pattern:$0x75316420] }
 0x638   :  { %v9563_v11 = vsel %vm2937_vm2, %v9562_v9, %v9561_v37  ;;  %v9677_v7 = vunpack.c.0.s8 %v9676_v59  ;;  %v10079_v5 = vrot.slane %v10074_v14, 7  ;;  %v9710_v40 = vcombine.high %v15817_v54, %v15817_v54 }
 0x639   :  { %v9567_v17 = vpack.c.b16 %v9563_v11, %v9563_v11  ;;  %v9556_v6 = vrot.slane %v9528_v58, %v19023_v56  ;;  %v9559_v48 = vunpack.c.l.b16 %v9549_v47  ;;  %v10080_v12 = vrot.slane %v10075_v19, 6  ;;  %v17670_v47 = vld [vmem:[#allocation6] ss:$0 sps:$4 sm:$0x11]  }
 0x63a   :  { %v9658_v1 = vshrl.u32 %v15812_v30, 16  ;;  %v9663_v32 = vshll.u32 %v9634_v10, 16  ;;  %v10090_v55 = vrot.slane %v10082_v4, %v19023_v56  ;;  %v21086_v36 = vsub.s32 %v9677_v7, %v22026_v52 }
 0x63b   :  { %v9575_v53 = vrot.slane %v9567_v17, %v19023_v56  ;;  %v9560_v25 = vunpack.c.l.b16 %v9556_v6  ;;  %v9564_v8 = vrot.slane %v9559_v48, 7  ;;  %v10081_v24 = vsel %vm2937_vm2, %v10080_v12, %v10079_v5 }
 0x63c   :  { %v9925_v38 = vcombine.high %v15835_v16, %v15835_v16  ;;  %v10083_v21 = vpack.c.b16 %v10081_v24, %v10081_v24  ;;  %v21096_v44 = vsel %vm21088_vm10, %v9658_v1, %v9663_v32  ;;  %v9725_v41 = vrot.slane %v9710_v40, %v21086_v36 }
 0x63d   :  { %v9590_v49 = vsel %vm21070_vm14, %v9575_v53, %v9589_v51  ;;  %v9565_v31 = vrot.slane %v9560_v25, 6  ;;  %v9681_v63 = vrot.slane %v21096_v44, %v21086_v36  ;;  %v9936_v18 = vshrl.u32 %v15835_v16, 16 }
 0x63e   :  { %9591 = vst [vmem:[#allocation6 + $0x2] sm:$0x3] %v9590_v49  ;;  %v9941_v58 = vshll.u32 %v9925_v38, 16  ;;  %v10097_v11 = vrot.slane %v10083_v21, %v19023_v56  ;;  %v9987_v17 = vcombine.high %v15840_v46, %v15840_v46  ;;  %v10118_v12 = vrot.slane %v17670_v47, %v21086_v36 }
 0x63f   :  { %v9566_v60 = vsel %vm2937_vm2, %v9565_v31, %v9564_v8  ;;  %v10174_v40 = vcombine.low %v21096_v44, %v21096_v44 }
 0x640   :  { %v9568_v42 = vpack.c.b16 %v9566_v60, %v9566_v60  ;;  %v9943_v30 = vsel %vm21088_vm10, %v9936_v18, %v9941_v58  ;;  %v10001_v31 = vrot.slane %v9987_v17, %v21086_v36 }
 0x642   :  { %v9582_v29 = vrot.slane %v9568_v42, %v19023_v56  ;;  %v9957_v42 = vrot.slane %v9943_v30, %v21086_v36 }
 0x644   :  { %v9593_v22 = vsel %vm21070_vm14, %v9582_v29, %v9592_v23 }
 0x645   :  { %v15810_v57 = vld.sshfl [vmem:[#allocation6 + $0x2] sm:$0x1 pattern:$0x73625140]  ;;  %9594 = vst [vmem:[#allocation6 + $0x4] sm:$0x3] %v9593_v22 }
 0x646   :  { %v10100_v0 = vld [vmem:[#allocation6 + $0x2] sm:$0x3]  ;;  %v9613_v28 = vcombine.low %v15809_v13, %v15810_v57 }
 0x647   :  { %v15813_v33 = vld.sshfl [vmem:[#allocation6 + $0x2] sm:$0x11 pattern:$0x75316420]  ;;  %v10101_v20 = vsel %vm21070_vm14, %v10090_v55, %v10100_v0 }
 0x648   :  { %v15828_v26 = vld.sshfl [vmem:[#allocation6 + $0x2] sm:$0x10 pattern:$0x75316420]  ;;  %v9642_v45 = vcombine.high %v15813_v33, %v15813_v33  ;;  %v9667_v61 = vshrl.u32 %v15813_v33, 16 }
 0x649   :  { %v9718_v2 = vcombine.high %v15828_v26, %v15828_v26  ;;  %10102 = vst [vmem:[#allocation6 + $0x2] sm:$0x3] %v10101_v20  ;;  %15811 = vst.sshfl [vmem:[#allocation7] sm:$0x11 pattern:$0x75316420] %v9613_v28  ;;  %v10182_v26 = vrot.slane %v10174_v40, %v21086_v36 }
 0x64a   :  { %v9672_v37 = vshll.u32 %v9642_v45, 16  ;;  %v17686_v20 = vld [vmem:[#allocation6 + $0x6] ss:$0 sps:$4 sm:$0x11]   ;;  %v10455_v45 = vcombine.low %v9943_v30, %v9943_v30  ;;  %v17695_v40 = vld [vmem:[%s21948_s7 + $0x680] ss:$16 sps:$4 sm:$0xff]  }
 0x64b   :  { %v9732_v9 = vrot.slane %v9718_v2, %v21086_v36 }
 0x64c   :  { %v9674_v50 = vsel %vm21088_vm10, %v9667_v61, %v9672_v37  ;;  %v15824_v6 = vld.sshfl [vmem:[#allocation6 + $0x4] sm:$0x11 pattern:$0x75316420] }
 0x64d   :  { %v10103_v51 = vld [vmem:[#allocation6 + $0x4] sm:$0x3]  ;;  %v9733_v3 = vcombine.low %v9725_v41, %v9732_v9  ;;  %v9688_v48 = vrot.slane %v9674_v50, %v21086_v36  ;;  %v9790_v25 = vcombine.high %v15824_v6, %v15824_v6  ;;  %v9801_v60 = vshrl.u32 %v15824_v6, 16 }
 0x64e   :  { %v15829_v27 = vld.sshfl [vmem:[#allocation6 + $0x4] sm:$0x10 pattern:$0x75316420]  ;;  %v10104_v53 = vsel %vm21070_vm14, %v10097_v11, %v10103_v51  ;;  %v10469_v51 = vrot.slane %v10455_v45, %v21086_v36  ;;  %v17724_v45 = vld [vmem:[%s21948_s7 + $0x404] ss:$16 sps:$4 sm:$0xff]  }
 0x64f   :  { %v15831_v19 = vld.sshfl [vmem:[#allocation6 + $0x4] sm:$0x1 pattern:$0x73625140]  ;;  %v9689_v15 = vcombine.low %v9681_v63, %v9688_v48  ;;  %v9852_v59 = vcombine.high %v15829_v27, %v15829_v27  ;;  %v9806_v10 = vshll.u32 %v9790_v25, 16  ;;  %v10405_v63 = vrot.slane %v17686_v20, %v21086_v36 }
 0x650   :  { %15819 = vst.sshfl [vmem:[#allocation7 + $0x8] sm:$0x11 pattern:$0x75316420] %v9733_v3  ;;  %v9761_v35 = vcombine.low %v15810_v57, %v15831_v19  ;;  %10105 = vst [vmem:[#allocation6 + $0x4] sm:$0x3] %v10104_v53  ;;  %v9896_v8 = vcombine.low %v15831_v19, %v15832_v62 }
 0x651   :  { %v15849_v49 = vld.sshfl [vmem:[#allocation6 + $0x2] sm:$0x10 pattern:$0x75316420]  ;;  %v9866_v43 = vrot.slane %v9852_v59, %v21086_v36  ;;  %v9808_v23 = vsel %vm21088_vm10, %v9801_v60, %v9806_v10  ;;  %v17677_v60 = vld [vmem:[%s21948_s7 + $0x6c0] ss:$16 sps:$4 sm:$0xff]  }
 0x652   :  { %v15851_v14 = vcombine.high %v15849_v49, %v15849_v49  ;;  %15816 = vst.sshfl [vmem:[#allocation7 + $0x4] sm:$0x11 pattern:$0x75316420] %v9689_v15  ;;  %v9822_v1 = vrot.slane %v9808_v23, %v21086_v36  ;;  %v17680_v10 = vld [vmem:[%s21948_s7 + $0x4c0] ss:$16 sps:$4 sm:$0xff]  }
 0x653   :  { %15822 = vst.sshfl [vmem:[#allocation7 + $0xc] sm:$0x11 pattern:$0x75316420] %v9761_v35  ;;  %v9867_v5 = vcombine.low %v9732_v9, %v9866_v43  ;;  %v10002_v24 = vcombine.low %v9866_v43, %v10001_v31  ;;  %v17674_v31 = vld [vmem:[%s21948_s7 + $0x4e0] ss:$16 sps:$4 sm:$0xff]  }
 0x654   :  { %v17671_v4 = vld [vmem:[#allocation6 + $0x2] ss:$0 sps:$4 sm:$0x11]   ;;  %v10235_v7 = vrot.slane %v15851_v14, %v21086_v36  ;;  %v9823_v0 = vcombine.low %v9688_v48, %v9822_v1  ;;  %v9958_v33 = vcombine.low %v9822_v1, %v9957_v42  ;;  %v17682_v14 = vld [vmem:[%s21948_s7 + $0x4c4] ss:$16 sps:$4 sm:$0xff]  }
 0x655   :  { %15833 = vst.sshfl [vmem:[#allocation7 + $0x18] sm:$0x11 pattern:$0x75316420] %v9896_v8  ;;  %v10125_v29 = vrot.slane %v17671_v4, %v21086_v36  ;;  %v17689_v23 = vld [vmem:[%s21948_s7 + $0x6a0] ss:$16 sps:$4 sm:$0xff]  }
 0x656   :  { %v15844_v54 = vld.sshfl [vmem:[#allocation6 + $0x2] sm:$0x11 pattern:$0x75316420]  ;;  %v10236_v32 = vcombine.low %v9725_v41, %v10235_v7  ;;  %v17703_v1 = vld [vmem:[%s21948_s7 + $0x664] ss:$16 sps:$4 sm:$0xff]  }
 0x657   :  { %v10155_v13 = vcombine.high %v15844_v54, %v15844_v54  ;;  %v17663_v16 = vld [vmem:[#allocation6 + $0x2] ss:$0 sps:$4 sm:$0x11]   ;;  %v10166_v55 = vshrl.u32 %v15844_v54, 16  ;;  %v10126_v22 = vcombine.low %v10118_v12, %v10125_v29  ;;  %v17691_v12 = vld [vmem:[%s21948_s7 + $0x6a4] ss:$16 sps:$4 sm:$0xff]  }
 0x658   :  { %15830 = vst.sshfl [vmem:[#allocation7 + $0x14] sm:$0x11 pattern:$0x75316420] %v9867_v5  ;;  %v10258_v44 = vrot.slane %v17663_v16, %v21086_v36  ;;  %v17694_v54 = vld [vmem:[%s21948_s7 + $0x4a4] ss:$16 sps:$4 sm:$0xff]  }
 0x659   :  { %v10171_v57 = vshll.u32 %v10155_v13, 16  ;;  %15852 = vst.sshfl [vmem:[#allocation7 + $0x8] sm:$0x22 pattern:$0x75316420] %v10236_v32 }
 0x65a   :  { %v17664_v28 = vld [vmem:[#allocation6 + $0x4] ss:$0 sps:$4 sm:$0x11]   ;;  %v17697_v5 = vld [vmem:[%s21948_s7 + $0x684] ss:$16 sps:$4 sm:$0xff]  }
 0x65b   :  { %15841 = vst.sshfl [vmem:[#allocation7 + $0x20] sm:$0x11 pattern:$0x75316420] %v10002_v24  ;;  %v10173_v38 = vsel %vm21088_vm10, %v10166_v55, %v10171_v57  ;;  %v10265_v2 = vrot.slane %v17664_v28, %v21086_v36  ;;  %v17692_v29 = vld [vmem:[%s21948_s7 + $0x4a0] ss:$16 sps:$4 sm:$0xff]  }
 0x65c   :  { %15842 = vst.sshfl [vmem:[#allocation7] sm:$0x22 pattern:$0x75316420] %v10126_v22  ;;  %v10175_v41 = vcombine.low %v10173_v38, %v10173_v38  ;;  %v17700_v13 = vld [vmem:[%s21948_s7 + $0x484] ss:$16 sps:$4 sm:$0xff]  }
 0x65d   :  { %15827 = vst.sshfl [vmem:[#allocation7 + $0x10] sm:$0x11 pattern:$0x75316420] %v9823_v0  ;;  %v10266_v18 = vcombine.low %v10258_v44, %v10265_v2  ;;  %v17698_v32 = vld [vmem:[%s21948_s7 + $0x480] ss:$16 sps:$4 sm:$0xff]  }
 0x65e   :  { %v15855_v21 = vld.sshfl [vmem:[#allocation6 + $0x4] sm:$0x11 pattern:$0x75316420]  ;;  %v10189_v58 = vrot.slane %v10175_v41, %v21086_v36  ;;  %v17706_v16 = vld [vmem:[%s21948_s7 + $0x464] ss:$16 sps:$4 sm:$0xff]  }
 0x65f   :  { %15838 = vst.sshfl [vmem:[#allocation7 + $0x1c] sm:$0x11 pattern:$0x75316420] %v9958_v33  ;;  %v10295_v46 = vcombine.high %v15855_v21, %v15855_v21  ;;  %v10306_v11 = vshrl.u32 %v15855_v21, 16 }
 0x660   :  { %v15860_v61 = vld.sshfl [vmem:[#allocation6 + $0x4] sm:$0x10 pattern:$0x75316420]  ;;  %v10190_v17 = vcombine.low %v10182_v26, %v10189_v58  ;;  %v17701_v55 = vld [vmem:[%s21948_s7 + $0x660] ss:$16 sps:$4 sm:$0xff]  }
 0x661   :  { %v15862_v37 = vcombine.high %v15860_v61, %v15860_v61  ;;  %v17685_v9 = vld [vmem:[#allocation6 + $0x4] ss:$0 sps:$4 sm:$0x11]   ;;  %v10311_v50 = vshll.u32 %v10295_v46, 16  ;;  %v17709_v24 = vld [vmem:[%s21948_s7 + $0x644] ss:$16 sps:$4 sm:$0xff]  }
 0x662   :  { %v10398_v62 = vrot.slane %v17685_v9, %v21086_v36  ;;  %15853 = vst.sshfl [vmem:[#allocation7 + $0xc] sm:$0x22 pattern:$0x75316420] %v10266_v18  ;;  %v17704_v22 = vld [vmem:[%s21948_s7 + $0x460] ss:$16 sps:$4 sm:$0xff]  }
 0x663   :  { %v10375_v47 = vrot.slane %v15862_v37, %v21086_v36  ;;  %v10313_v6 = vsel %vm21088_vm10, %v10306_v11, %v10311_v50  ;;  %15847 = vst.sshfl [vmem:[#allocation7 + $0x4] sm:$0x22 pattern:$0x75316420] %v10190_v17  ;;  %v17712_v57 = vld [vmem:[%s21948_s7 + $0x444] ss:$16 sps:$4 sm:$0xff]  }
 0x664   :  { %v10315_v3 = vcombine.low %v10313_v6, %v10313_v6  ;;  %v10406_v27 = vcombine.low %v10398_v62, %v10405_v63  ;;  %v17707_v0 = vld [vmem:[%s21948_s7 + $0x640] ss:$16 sps:$4 sm:$0xff]   ;;  %v17715_v33 = vld [vmem:[%s21948_s7 + $0x624] ss:$16 sps:$4 sm:$0xff]  }
 0x665   :  { %v10376_v48 = vcombine.low %v10235_v7, %v10375_v47  ;;  %v17710_v20 = vld [vmem:[%s21948_s7 + $0x440] ss:$16 sps:$4 sm:$0xff]   ;;  %v17718_v28 = vld [vmem:[%s21948_s7 + $0x424] ss:$16 sps:$4 sm:$0xff]  }
 0x666   :  { %v10329_v53 = vrot.slane %v10315_v3, %v21086_v36  ;;  %15864 = vst.sshfl [vmem:[#allocation7 + $0x18] sm:$0x22 pattern:$0x75316420] %v10406_v27  ;;  %v17679_v36 = vld [vmem:[%s21948_s7 + $0x6c4] ss:$16 sps:$4 sm:$0xff]  }
 0x667   :  { %15863 = vst.sshfl [vmem:[#allocation7 + $0x14] sm:$0x22 pattern:$0x75316420] %v10376_v48  ;;  %v17713_v38 = vld [vmem:[%s21948_s7 + $0x620] ss:$16 sps:$4 sm:$0xff]  }
 0x668   :  { %v10330_v25 = vcombine.low %v10189_v58, %v10329_v53  ;;  %v10470_v19 = vcombine.low %v10329_v53, %v10469_v51  ;;  %v17721_v26 = vld [vmem:[%s21948_s7 + $0x604] ss:$16 sps:$4 sm:$0xff]   ;;  %v17716_v21 = vld [vmem:[%s21948_s7 + $0x420] ss:$16 sps:$4 sm:$0xff]  }
 0x669   :  { %v10527_v15 = vld [vmem:[#allocation7 + $0x8] sm:$0xff]  ;;  %v17719_v44 = vld [vmem:[%s21948_s7 + $0x600] ss:$16 sps:$4 sm:$0xff]   ;;  %v17727_v2 = vld [vmem:[%s21948_s7 + $0x7e4] ss:$16 sps:$4 sm:$0xff]  }
 0x66a   :  { %15858 = vst.sshfl [vmem:[#allocation7 + $0x10] sm:$0x22 pattern:$0x75316420] %v10330_v25  ;;  %v21134_v59 = vcombine.low %v10527_v15, %v10527_v15  ;;  %v21136_v30 = vcombine.high %v10527_v15, %v10527_v15  ;;  %v10526_v35 = vld [vmem:[#allocation7] sm:$0xff] }
 0x66b   :  { %15869 = vst.sshfl [vmem:[#allocation7 + $0x1c] sm:$0x22 pattern:$0x75316420] %v10470_v19  ;;  %v21145_v49 = vcombine.low %v10526_v35, %v10526_v35  ;;  %v21147_v8 = vcombine.high %v10526_v35, %v10526_v35  ;;  %v17722_v41 = vld [vmem:[%s21948_s7 + $0x400] ss:$16 sps:$4 sm:$0xff]  }
 0x66c   :  { %12386 = vmatprep.mubr.bf16.mxu1 %v21136_v30  ;;  %v17730_v46 = vld [vmem:[%s21948_s7 + $0x5e4] ss:$16 sps:$4 sm:$0xff]   ;;  %v17725_v61 = vld [vmem:[%s21948_s7 + $0x7e0] ss:$16 sps:$4 sm:$0xff]  }
 0x66d   :  { %12387 = vmatmul.mubr.bf16.vlgmr.msra.gmra.mxu1 %v21134_v59  ;;  %12345 = vmatprep.mubr.bf16.mxu0 %v21147_v8  ;;  %v17733_v37 = vld [vmem:[%s21948_s7 + $0x7c4] ss:$16 sps:$4 sm:$0xff]   ;;  %v17728_v9 = vld [vmem:[%s21948_s7 + $0x5e0] ss:$16 sps:$4 sm:$0xff]  }
 0x66e   :  { %12437 = vmatpush1.bf16.msra.mxu1 %v17667_v34  ;;  %12346 = vmatmul.mubr.bf16.vlgmr.msra.gmra.mxu0 %v21145_v49  ;;  %v17736_v63 = vld [vmem:[%s21948_s7 + $0x5c4] ss:$16 sps:$4 sm:$0xff]   ;;  %v17731_v18 = vld [vmem:[%s21948_s7 + $0x7c0] ss:$16 sps:$4 sm:$0xff]  }
 0x66f   :  { %12438 = vmatprep.subr.bf16.mxu1 %v17679_v36  ;;  %12396 = vmatpush1.bf16.msra.mxu0 %v17674_v31  ;;  %v17739_v58 = vld [vmem:[%s21948_s7 + $0x7a4] ss:$16 sps:$4 sm:$0xff]   ;;  %v17734_v11 = vld [vmem:[%s21948_s7 + $0x5c0] ss:$16 sps:$4 sm:$0xff]  }
 0x670   :  { %12397 = vmatprep.subr.bf16.mxu0 %v17682_v14  ;;  %v17742_v50 = vld [vmem:[%s21948_s7 + $0x5a4] ss:$16 sps:$4 sm:$0xff]   ;;  %v17737_v47 = vld [vmem:[%s21948_s7 + $0x7a0] ss:$16 sps:$4 sm:$0xff]  }
 0x671   :  { %v21164_v43 = vld [vmem:[#allocation7 + $0x10] sm:$0xff] }
 0x672   :  { %v21166_v4 = vld [vmem:[#allocation7 + $0x18] sm:$0xff]  ;;  %v21173_v42 = vcombine.high %v21164_v43, %v21164_v43  ;;  %12439 = vmatpush1.bf16.msra.mxu1 %v17677_v60  ;;  %v17745_v62 = vld [vmem:[%s21948_s7 + $0x784] ss:$16 sps:$4 sm:$0xff]   ;;  %v17740_v17 = vld [vmem:[%s21948_s7 + $0x5a0] ss:$16 sps:$4 sm:$0xff]  }
 0x673   :  { %v21177_v7 = vcombine.high %v21166_v4, %v21166_v4  ;;  %12398 = vmatpush1.bf16.msra.mxu0 %v17680_v10  ;;  %12440 = vmatprep.subr.bf16.mxu1 %v17691_v12  ;;  %v17748_v6 = vld [vmem:[%s21948_s7 + $0x584] ss:$16 sps:$4 sm:$0xff]   ;;  %v17743_v51 = vld [vmem:[%s21948_s7 + $0x780] ss:$16 sps:$4 sm:$0xff]  }
 0x674   :  { %12427 = vmatprep.mubr.bf16.mxu0 %v21173_v42  ;;  %12399 = vmatprep.subr.bf16.mxu0 %v17694_v54  ;;  %v17751_v3 = vld [vmem:[%s21948_s7 + $0x764] ss:$16 sps:$4 sm:$0xff]   ;;  %v17746_v48 = vld [vmem:[%s21948_s7 + $0x580] ss:$16 sps:$4 sm:$0xff]  }
 0x675   :  { %12468 = vmatprep.mubr.bf16.mxu1 %v21177_v7  ;;  %v17754_v27 = vld [vmem:[%s21948_s7 + $0x564] ss:$16 sps:$4 sm:$0xff]   ;;  %v17749_v53 = vld [vmem:[%s21948_s7 + $0x760] ss:$16 sps:$4 sm:$0xff]  }
 0x676   :  { %12441 = vmatpush1.bf16.msra.mxu1 %v17689_v23  ;;  %v17757_v25 = vld [vmem:[%s21948_s7 + $0x744] ss:$16 sps:$4 sm:$0xff]   ;;  %v17752_v19 = vld [vmem:[%s21948_s7 + $0x560] ss:$16 sps:$4 sm:$0xff]   ;;  %v17775_v23 = vld [vmem:[%s21948_s7 + $0xec] ss:$16 sps:$4 sm:$0xff]  }
 0x677   :  { %12442 = vmatprep.subr.bf16.mxu1 %v17697_v5  ;;  %12400 = vmatpush1.bf16.msra.mxu0 %v17692_v29  ;;  %v17760_v15 = vld [vmem:[%s21948_s7 + $0x544] ss:$16 sps:$4 sm:$0xff]   ;;  %v17755_v34 = vld [vmem:[%s21948_s7 + $0x740] ss:$16 sps:$4 sm:$0xff]  }
 0x678   :  { %12401 = vmatprep.subr.bf16.mxu0 %v17700_v13  ;;  %v17763_v35 = vld [vmem:[%s21948_s7 + $0x724] ss:$16 sps:$4 sm:$0xff]   ;;  %v17758_v36 = vld [vmem:[%s21948_s7 + $0x540] ss:$16 sps:$4 sm:$0xff]   ;;  %v17773_v13 = vld [vmem:[%s21948_s7 + $0xe8] ss:$16 sps:$4 sm:$0xff]  }
 0x679   :  { %v17766_v31 = vld [vmem:[%s21948_s7 + $0x524] ss:$16 sps:$4 sm:$0xff]   ;;  %v17761_v14 = vld [vmem:[%s21948_s7 + $0x720] ss:$16 sps:$4 sm:$0xff]  }
 0x67a   :  { %12443 = vmatpush1.bf16.msra.mxu1 %v17695_v40  ;;  %v17769_v60 = vld [vmem:[%s21948_s7 + $0x704] ss:$16 sps:$4 sm:$0xff]   ;;  %v17764_v10 = vld [vmem:[%s21948_s7 + $0x520] ss:$16 sps:$4 sm:$0xff]   ;;  %v21357_v40 = vcombine.low %v21166_v4, %v21166_v4 }
 0x67b   :  { %12444 = vmatprep.subr.bf16.mxu1 %v17703_v1  ;;  %12402 = vmatpush1.bf16.msra.mxu0 %v17698_v32  ;;  %v17772_v12 = vld [vmem:[%s21948_s7 + $0x504] ss:$16 sps:$4 sm:$0xff]   ;;  %v17767_v54 = vld [vmem:[%s21948_s7 + $0x700] ss:$16 sps:$4 sm:$0xff]   ;;  %v17781_v1 = vld [vmem:[%s21948_s7 + $0xcc] ss:$16 sps:$4 sm:$0xff]  }
 0x67c   :  { %12403 = vmatprep.subr.bf16.mxu0 %v17706_v16  ;;  %v17770_v5 = vld [vmem:[%s21948_s7 + $0x500] ss:$16 sps:$4 sm:$0xff]   ;;  %v17778_v29 = vld [vmem:[%s21948_s7 + $0x8e4] ss:$16 sps:$4 sm:$0xff]   ;;  %v21367_v16 = vcombine.low %v21164_v43, %v21164_v43  ;;  %v17787_v43 = vld [vmem:[%s21948_s7 + $0xac] ss:$16 sps:$4 sm:$0xff]  }
 0x67d   :  { %v17776_v32 = vld [vmem:[%s21948_s7 + $0x8e0] ss:$16 sps:$4 sm:$0xff]   ;;  %v17784_v4 = vld [vmem:[%s21948_s7 + $0x8c4] ss:$16 sps:$4 sm:$0xff]  }
 0x67e   :  { %12445 = vmatpush1.bf16.msra.mxu1 %v17701_v55  ;;  %v17779_v55 = vld [vmem:[%s21948_s7 + $0xc8] ss:$16 sps:$4 sm:$0xff]  }
 0x67f   :  { %12446 = vmatprep.subr.bf16.mxu1 %v17709_v24  ;;  %12404 = vmatpush1.bf16.msra.mxu0 %v17704_v22  ;;  %v17782_v24 = vld [vmem:[%s21948_s7 + $0x8c0] ss:$16 sps:$4 sm:$0xff]   ;;  %v22029_v22 = vmov 0  }
 0x680   :  { %12405 = vmatprep.subr.bf16.mxu0 %v17712_v57  ;;  %v17785_v57 = vld [vmem:[%s21948_s7 + $0xa8] ss:$16 sps:$4 sm:$0xff]  }
 0x682   :  { %12447 = vmatpush1.bf16.msra.mxu1 %v17707_v0  ;;  %v17793_v0 = vld [vmem:[%s21948_s7 + $0x8c] ss:$16 sps:$4 sm:$0xff]  }
 0x683   :  { %12448 = vmatprep.subr.bf16.mxu1 %v17715_v33  ;;  %12406 = vmatpush1.bf16.msra.mxu0 %v17710_v20  ;;  %v17788_v33 = vld [vmem:[%s21948_s7 + $0x8a0] ss:$16 sps:$4 sm:$0xff]   ;;  %v17796_v20 = vld [vmem:[%s21948_s7 + $0x884] ss:$16 sps:$4 sm:$0xff]  }
 0x684   :  { %12407 = vmatprep.subr.bf16.mxu0 %v17718_v28  ;;  %v17791_v28 = vld [vmem:[%s21948_s7 + $0x88] ss:$16 sps:$4 sm:$0xff]  }
 0x686   :  { %12449 = vmatpush1.bf16.msra.mxu1 %v17713_v38  ;;  %v17799_v38 = vld [vmem:[%s21948_s7 + $0x6c] ss:$16 sps:$4 sm:$0xff]  }
 0x687   :  { %12450 = vmatprep.subr.bf16.mxu1 %v17721_v26  ;;  %12408 = vmatpush1.bf16.msra.mxu0 %v17716_v21  ;;  %v17794_v26 = vld [vmem:[%s21948_s7 + $0x880] ss:$16 sps:$4 sm:$0xff]   ;;  %v17802_v21 = vld [vmem:[%s21948_s7 + $0x864] ss:$16 sps:$4 sm:$0xff]  }
 0x688   :  { %12409 = vmatprep.subr.bf16.mxu0 %v17724_v45  ;;  %v17797_v45 = vld [vmem:[%s21948_s7 + $0x68] ss:$16 sps:$4 sm:$0xff]  }
 0x68a   :  { %12451 = vmatpush1.bf16.msra.mxu1 %v17719_v44  ;;  %v17805_v44 = vld [vmem:[%s21948_s7 + $0x4c] ss:$16 sps:$4 sm:$0xff]  }
 0x68b   :  { %12452 = vmatprep.subr.bf16.mxu1 %v17727_v2  ;;  %12410 = vmatpush1.bf16.msra.mxu0 %v17722_v41  ;;  %v17800_v2 = vld [vmem:[%s21948_s7 + $0x860] ss:$16 sps:$4 sm:$0xff]   ;;  %v17808_v41 = vld [vmem:[%s21948_s7 + $0x844] ss:$16 sps:$4 sm:$0xff]  }
 0x68c   :  { %12411 = vmatprep.subr.bf16.mxu0 %v17730_v46  ;;  %v17803_v46 = vld [vmem:[%s21948_s7 + $0x48] ss:$16 sps:$4 sm:$0xff]  }
 0x68e   :  { %12453 = vmatpush2.bf16.msra.mxu1 %v17725_v61  ;;  %v17811_v61 = vld [vmem:[%s21948_s7 + $0x2c] ss:$16 sps:$4 sm:$0xff]  }
 0x68f   :  { %12454 = vmatprep.subr.bf16.mxu1 %v17733_v37  ;;  %12412 = vmatpush2.bf16.msra.mxu0 %v17728_v9  ;;  %v17806_v37 = vld [vmem:[%s21948_s7 + $0x840] ss:$16 sps:$4 sm:$0xff]   ;;  %v17814_v9 = vld [vmem:[%s21948_s7 + $0x824] ss:$16 sps:$4 sm:$0xff]  }
 0x690   :  { %12413 = vmatprep.subr.bf16.mxu0 %v17736_v63  ;;  %v17809_v63 = vld [vmem:[%s21948_s7 + $0x28] ss:$16 sps:$4 sm:$0xff]  }
 0x692   :  { %12455 = vmatpush2.bf16.msra.mxu1 %v17731_v18  ;;  %v17817_v18 = vld [vmem:[%s21948_s7 + $0xc] ss:$16 sps:$4 sm:$0xff]  }
 0x693   :  { %12456 = vmatprep.subr.bf16.mxu1 %v17739_v58  ;;  %12414 = vmatpush2.bf16.msra.mxu0 %v17734_v11  ;;  %v17812_v58 = vld [vmem:[%s21948_s7 + $0x820] ss:$16 sps:$4 sm:$0xff]   ;;  %v17820_v11 = vld [vmem:[%s21948_s7 + $0x804] ss:$16 sps:$4 sm:$0xff]  }
 0x694   :  { %12415 = vmatprep.subr.bf16.mxu0 %v17742_v50  ;;  %v17815_v50 = vld [vmem:[%s21948_s7 + $0x8] ss:$16 sps:$4 sm:$0xff]  }
 0x696   :  { %12457 = vmatpush2.bf16.msra.mxu1 %v17737_v47  ;;  %v17823_v47 = vld [vmem:[%s21948_s7 + $0x1ec] ss:$16 sps:$4 sm:$0xff]  }
 0x697   :  { %12458 = vmatprep.subr.bf16.mxu1 %v17745_v62  ;;  %12416 = vmatpush2.bf16.msra.mxu0 %v17740_v17  ;;  %v17818_v62 = vld [vmem:[%s21948_s7 + $0x800] ss:$16 sps:$4 sm:$0xff]   ;;  %v17827_v17 = vld [vmem:[%s21948_s7 + $0x2ec] ss:$16 sps:$4 sm:$0xff]  }
 0x698   :  { %12417 = vmatprep.subr.bf16.mxu0 %v17748_v6  ;;  %v17821_v6 = vld [vmem:[%s21948_s7 + $0x1e8] ss:$16 sps:$4 sm:$0xff]  }
 0x69a   :  { %12459 = vmatpush2.bf16.msra.mxu1 %v17743_v51  ;;  %v17830_v51 = vld [vmem:[%s21948_s7 + $0x1cc] ss:$16 sps:$4 sm:$0xff]  }
 0x69b   :  { %12460 = vmatprep.subr.bf16.mxu1 %v17751_v3  ;;  %12418 = vmatpush2.bf16.msra.mxu0 %v17746_v48  ;;  %v17825_v3 = vld [vmem:[%s21948_s7 + $0x2e8] ss:$16 sps:$4 sm:$0xff]   ;;  %v21469_v48 = vld [vmem:[#allocation7 + $0x20] ss:$0 sps:$4 sm:$0xff]  }
 0x69c   :  { %12419 = vmatprep.subr.bf16.mxu0 %v17754_v27  ;;  %v17833_v27 = vld [vmem:[%s21948_s7 + $0x2cc] ss:$16 sps:$4 sm:$0xff]  }
 0x69e   :  { %12461 = vmatpush2.bf16.msra.mxu1 %v17749_v53  ;;  %v17828_v53 = vld [vmem:[%s21948_s7 + $0x1c8] ss:$16 sps:$4 sm:$0xff]  }
 0x69f   :  { %12462 = vmatprep.subr.bf16.mxu1 %v17757_v25  ;;  %12420 = vmatpush2.bf16.msra.mxu0 %v17752_v19  ;;  %v17836_v25 = vld [vmem:[%s21948_s7 + $0x1ac] ss:$16 sps:$4 sm:$0xff]   ;;  %v17831_v19 = vld [vmem:[%s21948_s7 + $0x2c8] ss:$16 sps:$4 sm:$0xff]  }
 0x6a0   :  { %12421 = vmatprep.subr.bf16.mxu0 %v17760_v15  ;;  %v17839_v15 = vld [vmem:[%s21948_s7 + $0x2ac] ss:$16 sps:$4 sm:$0xff]  }
 0x6a2   :  { %12463 = vmatpush2.bf16.msra.mxu1 %v17755_v34  ;;  %v17834_v34 = vld [vmem:[%s21948_s7 + $0x1a8] ss:$16 sps:$4 sm:$0xff]  }
 0x6a3   :  { %12464 = vmatprep.subr.bf16.mxu1 %v17763_v35  ;;  %12422 = vmatpush2.bf16.msra.mxu0 %v17758_v36  ;;  %v17842_v35 = vld [vmem:[%s21948_s7 + $0x18c] ss:$16 sps:$4 sm:$0xff]  }
 0x6a4   :  { %12423 = vmatprep.subr.bf16.mxu0 %v17766_v31  ;;  %v17845_v36 = vld [vmem:[%s21948_s7 + $0x28c] ss:$16 sps:$4 sm:$0xff]   ;;  %v17840_v31 = vld [vmem:[%s21948_s7 + $0x188] ss:$16 sps:$4 sm:$0xff]  }
 0x6a6   :  { %12465 = vmatpush2.bf16.msra.mxu1 %v17761_v14  ;;  %v17848_v14 = vld [vmem:[%s21948_s7 + $0x16c] ss:$16 sps:$4 sm:$0xff]  }
 0x6a7   :  { %12466 = vmatprep.subr.bf16.mxu1 %v17769_v60  ;;  %12424 = vmatpush2.bf16.msra.mxu0 %v17764_v10  ;;  %v17843_v60 = vld [vmem:[%s21948_s7 + $0x288] ss:$16 sps:$4 sm:$0xff]   ;;  %v17851_v10 = vld [vmem:[%s21948_s7 + $0x26c] ss:$16 sps:$4 sm:$0xff]  }
 0x6a8   :  { %12425 = vmatprep.subr.bf16.mxu0 %v17772_v12  ;;  %v17846_v12 = vld [vmem:[%s21948_s7 + $0x168] ss:$16 sps:$4 sm:$0xff]  }
 0x6aa   :  { %12467 = vmatpush2.bf16.msra.mxu1 %v17767_v54  ;;  %v17854_v54 = vld [vmem:[%s21948_s7 + $0x14c] ss:$16 sps:$4 sm:$0xff]  }
 0x6ab   :  { %12518 = vmatprep.subr.bf16.mxu1 %v17775_v23  ;;  %12426 = vmatpush2.bf16.msra.mxu0 %v17770_v5  ;;  %v17849_v23 = vld [vmem:[%s21948_s7 + $0x268] ss:$16 sps:$4 sm:$0xff]   ;;  %v17857_v5 = vld [vmem:[%s21948_s7 + $0x24c] ss:$16 sps:$4 sm:$0xff]  }
 0x6ac   :  { %12477 = vmatprep.subr.bf16.mxu0 %v17778_v29  ;;  %v17852_v29 = vld [vmem:[%s21948_s7 + $0x148] ss:$16 sps:$4 sm:$0xff]  }
 0x6ad   :  { %12469 = vmatmul.mubr.bf16.vlgmr.msra.gmra.mxu1 %v21357_v40 }
 0x6ae   :  { %12519 = vmatpush1.bf16.msra.mxu1 %v17773_v13  ;;  %12550 = vmatprep.mubr.bf16.mxu1 %v21147_v8  ;;  %v17790_v8 = vld [vmem:[%s21948_s7 + $0x8a4] ss:$16 sps:$4 sm:$0xff]   ;;  %v17860_v13 = vld [vmem:[%s21948_s7 + $0x12c] ss:$16 sps:$4 sm:$0xff]  }
 0x6af   :  { %12428 = vmatmul.mubr.bf16.vlgmr.msra.gmra.mxu0 %v21367_v16  ;;  %12520 = vmatprep.subr.bf16.mxu1 %v17781_v1  ;;  %v17855_v1 = vld [vmem:[%s21948_s7 + $0x248] ss:$16 sps:$4 sm:$0xff]  }
 0x6b0   :  { %12478 = vmatpush1.bf16.msra.mxu0 %v17776_v32  ;;  %12509 = vmatprep.mubr.bf16.mxu0 %v22029_v22  ;;  %v17863_v32 = vld [vmem:[%s21948_s7 + $0x22c] ss:$16 sps:$4 sm:$0xff]  }
 0x6b1   :  { %12479 = vmatprep.subr.bf16.mxu0 %v17784_v4  ;;  %v17858_v4 = vld [vmem:[%s21948_s7 + $0x128] ss:$16 sps:$4 sm:$0xff]  }
 0x6b2   :  { %12521 = vmatpush1.bf16.msra.mxu1 %v17779_v55  ;;  %v17866_v55 = vld [vmem:[%s21948_s7 + $0x10c] ss:$16 sps:$4 sm:$0xff]  }
 0x6b3   :  { %12522 = vmatprep.subr.bf16.mxu1 %v17787_v43  ;;  %v17861_v43 = vld [vmem:[%s21948_s7 + $0x228] ss:$16 sps:$4 sm:$0xff]  }
 0x6b4   :  { %12480 = vmatpush1.bf16.msra.mxu0 %v17782_v24  ;;  %v17869_v24 = vld [vmem:[%s21948_s7 + $0x20c] ss:$16 sps:$4 sm:$0xff]  }
 0x6b5   :  { %12481 = vmatprep.subr.bf16.mxu0 %v17790_v8  ;;  %v17864_v8 = vld [vmem:[%s21948_s7 + $0x108] ss:$16 sps:$4 sm:$0xff]  }
 0x6b6   :  { %12523 = vmatpush1.bf16.msra.mxu1 %v17785_v57  ;;  %v17872_v57 = vld [vmem:[%s21948_s7 + $0x4ec] ss:$16 sps:$4 sm:$0xff]  }
 0x6b7   :  { %12524 = vmatprep.subr.bf16.mxu1 %v17793_v0  ;;  %v17867_v0 = vld [vmem:[%s21948_s7 + $0x208] ss:$16 sps:$4 sm:$0xff]  }
 0x6b8   :  { %12482 = vmatpush1.bf16.msra.mxu0 %v17788_v33  ;;  %v17875_v33 = vld [vmem:[%s21948_s7 + $0x3ec] ss:$16 sps:$4 sm:$0xff]  }
 0x6b9   :  { %12483 = vmatprep.subr.bf16.mxu0 %v17796_v20  ;;  %v17870_v20 = vld [vmem:[%s21948_s7 + $0x4e8] ss:$16 sps:$4 sm:$0xff]  }
 0x6ba   :  { %12525 = vmatpush1.bf16.msra.mxu1 %v17791_v28  ;;  %v17878_v28 = vld [vmem:[%s21948_s7 + $0x4cc] ss:$16 sps:$4 sm:$0xff]  }
 0x6bb   :  { %12526 = vmatprep.subr.bf16.mxu1 %v17799_v38  ;;  %v17873_v38 = vld [vmem:[%s21948_s7 + $0x3e8] ss:$16 sps:$4 sm:$0xff]  }
 0x6bc   :  { %12484 = vmatpush1.bf16.msra.mxu0 %v17794_v26  ;;  %v17881_v26 = vld [vmem:[%s21948_s7 + $0x3cc] ss:$16 sps:$4 sm:$0xff]  }
 0x6bd   :  { %12485 = vmatprep.subr.bf16.mxu0 %v17802_v21  ;;  %v17876_v21 = vld [vmem:[%s21948_s7 + $0x4c8] ss:$16 sps:$4 sm:$0xff]  }
 0x6be   :  { %12527 = vmatpush1.bf16.msra.mxu1 %v17797_v45  ;;  %v17884_v45 = vld [vmem:[%s21948_s7 + $0x4ac] ss:$16 sps:$4 sm:$0xff]  }
 0x6bf   :  { %12528 = vmatprep.subr.bf16.mxu1 %v17805_v44  ;;  %v17887_v44 = vld [vmem:[%s21948_s7 + $0x3ac] ss:$16 sps:$4 sm:$0xff]  }
 0x6c0   :  { %12486 = vmatpush1.bf16.msra.mxu0 %v17800_v2  ;;  %v17890_v2 = vld [vmem:[%s21948_s7 + $0x48c] ss:$16 sps:$4 sm:$0xff]  }
 0x6c1   :  { %12487 = vmatprep.subr.bf16.mxu0 %v17808_v41  ;;  %v17885_v41 = vld [vmem:[%s21948_s7 + $0x3a8] ss:$16 sps:$4 sm:$0xff]  }
 0x6c2   :  { %12529 = vmatpush1.bf16.msra.mxu1 %v17803_v46  ;;  %v17893_v46 = vld [vmem:[%s21948_s7 + $0x38c] ss:$16 sps:$4 sm:$0xff]  }
 0x6c3   :  { %12530 = vmatprep.subr.bf16.mxu1 %v17811_v61  ;;  %v17888_v61 = vld [vmem:[%s21948_s7 + $0x488] ss:$16 sps:$4 sm:$0xff]  }
 0x6c4   :  { %12488 = vmatpush1.bf16.msra.mxu0 %v17806_v37  ;;  %v17896_v37 = vld [vmem:[%s21948_s7 + $0x46c] ss:$16 sps:$4 sm:$0xff]  }
 0x6c5   :  { %12489 = vmatprep.subr.bf16.mxu0 %v17814_v9  ;;  %v17891_v9 = vld [vmem:[%s21948_s7 + $0x388] ss:$16 sps:$4 sm:$0xff]  }
 0x6c6   :  { %12531 = vmatpush1.bf16.msra.mxu1 %v17809_v63  ;;  %v17899_v63 = vld [vmem:[%s21948_s7 + $0x36c] ss:$16 sps:$4 sm:$0xff]  }
 0x6c7   :  { %12532 = vmatprep.subr.bf16.mxu1 %v17817_v18  ;;  %v17894_v18 = vld [vmem:[%s21948_s7 + $0x468] ss:$16 sps:$4 sm:$0xff]  }
 0x6c8   :  { %12490 = vmatpush1.bf16.msra.mxu0 %v17812_v58  ;;  %v17902_v58 = vld [vmem:[%s21948_s7 + $0x44c] ss:$16 sps:$4 sm:$0xff]  }
 0x6c9   :  { %12491 = vmatprep.subr.bf16.mxu0 %v17820_v11  ;;  %v17897_v11 = vld [vmem:[%s21948_s7 + $0x368] ss:$16 sps:$4 sm:$0xff]  }
 0x6ca   :  { %12533 = vmatpush1.bf16.msra.mxu1 %v17815_v50  ;;  %v17905_v50 = vld [vmem:[%s21948_s7 + $0x34c] ss:$16 sps:$4 sm:$0xff]  }
 0x6cb   :  { %12534 = vmatprep.subr.bf16.mxu1 %v17823_v47  ;;  %v17900_v47 = vld [vmem:[%s21948_s7 + $0x448] ss:$16 sps:$4 sm:$0xff]  }
 0x6cc   :  { %12492 = vmatpush1.bf16.msra.mxu0 %v17818_v62  ;;  %v17908_v62 = vld [vmem:[%s21948_s7 + $0x42c] ss:$16 sps:$4 sm:$0xff]  }
 0x6cd   :  { %12559 = vmatprep.subr.bf16.mxu0 %v17827_v17  ;;  %v17903_v17 = vld [vmem:[%s21948_s7 + $0x348] ss:$16 sps:$4 sm:$0xff]  }
 0x6ce   :  { %12535 = vmatpush2.bf16.msra.mxu1 %v17821_v6  ;;  %v17911_v6 = vld [vmem:[%s21948_s7 + $0x32c] ss:$16 sps:$4 sm:$0xff]  }
 0x6cf   :  { %12510 = vmatmul.mubr.bf16.vlgmr.msra.gmra.mxu0 %v21469_v48  ;;  %12536 = vmatprep.subr.bf16.mxu1 %v17830_v51  ;;  %v17906_v51 = vld [vmem:[%s21948_s7 + $0x428] ss:$16 sps:$4 sm:$0xff]  }
 0x6d0   :  { %12560 = vmatpush1.bf16.msra.mxu0 %v17825_v3  ;;  %12591 = vmatprep.mubr.bf16.mxu0 %v21136_v30  ;;  %v17837_v30 = vld [vmem:[%s21948_s7 + $0x2a8] ss:$16 sps:$4 sm:$0xff]   ;;  %v17914_v3 = vld [vmem:[%s21948_s7 + $0x40c] ss:$16 sps:$4 sm:$0xff]  }
 0x6d1   :  { %12561 = vmatprep.subr.bf16.mxu0 %v17833_v27  ;;  %v17909_v27 = vld [vmem:[%s21948_s7 + $0x328] ss:$16 sps:$4 sm:$0xff]  }
 0x6d2   :  { %12537 = vmatpush2.bf16.msra.mxu1 %v17828_v53  ;;  %v17917_v53 = vld [vmem:[%s21948_s7 + $0x30c] ss:$16 sps:$4 sm:$0xff]  }
 0x6d3   :  { %12538 = vmatprep.subr.bf16.mxu1 %v17836_v25  ;;  %v17912_v25 = vld [vmem:[%s21948_s7 + $0x408] ss:$16 sps:$4 sm:$0xff]  }
 0x6d4   :  { %12562 = vmatpush1.bf16.msra.mxu0 %v17831_v19  ;;  %v17920_v19 = vld [vmem:[%s21948_s7 + $0x5ec] ss:$16 sps:$4 sm:$0xff]  }
 0x6d5   :  { %12563 = vmatprep.subr.bf16.mxu0 %v17839_v15  ;;  %v17915_v15 = vld [vmem:[%s21948_s7 + $0x308] ss:$16 sps:$4 sm:$0xff]  }
 0x6d6   :  { %12539 = vmatpush2.bf16.msra.mxu1 %v17834_v34  ;;  %v17923_v34 = vld [vmem:[%s21948_s7 + $0x6ec] ss:$16 sps:$4 sm:$0xff]  }
 0x6d7   :  { %12540 = vmatprep.subr.bf16.mxu1 %v17842_v35  ;;  %v17918_v35 = vld [vmem:[%s21948_s7 + $0x5e8] ss:$16 sps:$4 sm:$0xff]  }
 0x6d8   :  { %12564 = vmatpush1.bf16.msra.mxu0 %v17837_v30  ;;  %v17926_v30 = vld [vmem:[%s21948_s7 + $0x5cc] ss:$16 sps:$4 sm:$0xff]  }
 0x6d9   :  { %12565 = vmatprep.subr.bf16.mxu0 %v17845_v36  ;;  %v17921_v36 = vld [vmem:[%s21948_s7 + $0x6e8] ss:$16 sps:$4 sm:$0xff]  }
 0x6da   :  { %12541 = vmatpush2.bf16.msra.mxu1 %v17840_v31  ;;  %v17929_v31 = vld [vmem:[%s21948_s7 + $0x6cc] ss:$16 sps:$4 sm:$0xff]  }
 0x6db   :  { %12542 = vmatprep.subr.bf16.mxu1 %v17848_v14  ;;  %v17924_v14 = vld [vmem:[%s21948_s7 + $0x5c8] ss:$16 sps:$4 sm:$0xff]  }
 0x6dc   :  { %12566 = vmatpush1.bf16.msra.mxu0 %v17843_v60  ;;  %v17932_v60 = vld [vmem:[%s21948_s7 + $0x5ac] ss:$16 sps:$4 sm:$0xff]  }
 0x6dd   :  { %12567 = vmatprep.subr.bf16.mxu0 %v17851_v10  ;;  %v17927_v10 = vld [vmem:[%s21948_s7 + $0x6c8] ss:$16 sps:$4 sm:$0xff]  }
 0x6de   :  { %12543 = vmatpush2.bf16.msra.mxu1 %v17846_v12  ;;  %v17935_v12 = vld [vmem:[%s21948_s7 + $0x6ac] ss:$16 sps:$4 sm:$0xff]  }
 0x6df   :  { %12544 = vmatprep.subr.bf16.mxu1 %v17854_v54  ;;  %v17938_v54 = vld [vmem:[%s21948_s7 + $0x58c] ss:$16 sps:$4 sm:$0xff]  }
 0x6e0   :  { %12568 = vmatpush1.bf16.msra.mxu0 %v17849_v23  ;;  %v17941_v23 = vld [vmem:[%s21948_s7 + $0x68c] ss:$16 sps:$4 sm:$0xff]  }
 0x6e1   :  { %12569 = vmatprep.subr.bf16.mxu0 %v17857_v5  ;;  %v17936_v5 = vld [vmem:[%s21948_s7 + $0x588] ss:$16 sps:$4 sm:$0xff]  }
 0x6e2   :  { %12545 = vmatpush2.bf16.msra.mxu1 %v17852_v29  ;;  %v17944_v29 = vld [vmem:[%s21948_s7 + $0x56c] ss:$16 sps:$4 sm:$0xff]  }
 0x6e3   :  { %12546 = vmatprep.subr.bf16.mxu1 %v17860_v13  ;;  %v17939_v13 = vld [vmem:[%s21948_s7 + $0x688] ss:$16 sps:$4 sm:$0xff]  }
 0x6e4   :  { %12570 = vmatpush1.bf16.msra.mxu0 %v17855_v1  ;;  %v17947_v1 = vld [vmem:[%s21948_s7 + $0x66c] ss:$16 sps:$4 sm:$0xff]  }
 0x6e5   :  { %12571 = vmatprep.subr.bf16.mxu0 %v17863_v32  ;;  %v17942_v32 = vld [vmem:[%s21948_s7 + $0x568] ss:$16 sps:$4 sm:$0xff]  }
 0x6e6   :  { %12547 = vmatpush2.bf16.msra.mxu1 %v17858_v4  ;;  %v17950_v4 = vld [vmem:[%s21948_s7 + $0x54c] ss:$16 sps:$4 sm:$0xff]  }
 0x6e7   :  { %12548 = vmatprep.subr.bf16.mxu1 %v17866_v55  ;;  %v17945_v55 = vld [vmem:[%s21948_s7 + $0x668] ss:$16 sps:$4 sm:$0xff]  }
 0x6e8   :  { %12572 = vmatpush1.bf16.msra.mxu0 %v17861_v43  ;;  %v17953_v43 = vld [vmem:[%s21948_s7 + $0x64c] ss:$16 sps:$4 sm:$0xff]  }
 0x6e9   :  { %12573 = vmatprep.subr.bf16.mxu0 %v17869_v24  ;;  %v17948_v24 = vld [vmem:[%s21948_s7 + $0x548] ss:$16 sps:$4 sm:$0xff]  }
 0x6ea   :  { %12549 = vmatpush2.bf16.msra.mxu1 %v17864_v8  ;;  %v17956_v8 = vld [vmem:[%s21948_s7 + $0x52c] ss:$16 sps:$4 sm:$0xff]  }
 0x6eb   :  { %12600 = vmatprep.subr.bf16.mxu1 %v17872_v57  ;;  %v17951_v57 = vld [vmem:[%s21948_s7 + $0x648] ss:$16 sps:$4 sm:$0xff]  }
 0x6ec   :  { %12574 = vmatpush1.bf16.msra.mxu0 %v17867_v0  ;;  %v17959_v0 = vld [vmem:[%s21948_s7 + $0x62c] ss:$16 sps:$4 sm:$0xff]  }
 0x6ed   :  { %12551 = vmatmul.mubr.bf16.vlgmr.msra.gmra.mxu1 %v21145_v49  ;;  %12575 = vmatprep.subr.bf16.mxu0 %v17875_v33  ;;  %v17879_v49 = vld [vmem:[%s21948_s7 + $0x3c8] ss:$16 sps:$4 sm:$0xff]  }
 0x6ee   :  { %12601 = vmatpush1.bf16.msra.mxu1 %v17870_v20  ;;  %12632 = vmatprep.mubr.bf16.mxu1 %v21173_v42  ;;  %v17882_v42 = vld [vmem:[%s21948_s7 + $0x4a8] ss:$16 sps:$4 sm:$0xff]   ;;  %v17962_v20 = vld [vmem:[%s21948_s7 + $0x50c] ss:$16 sps:$4 sm:$0xff]  }
 0x6ef   :  { %12602 = vmatprep.subr.bf16.mxu1 %v17878_v28  ;;  %v17954_v33 = vld [vmem:[%s21948_s7 + $0x528] ss:$16 sps:$4 sm:$0xff]  }
 0x6f0   :  { %12576 = vmatpush2.bf16.msra.mxu0 %v17873_v38  ;;  %v17957_v28 = vld [vmem:[%s21948_s7 + $0x628] ss:$16 sps:$4 sm:$0xff]   ;;  %v17965_v38 = vld [vmem:[%s21948_s7 + $0x60c] ss:$16 sps:$4 sm:$0xff]  }
 0x6f1   :  { %12577 = vmatprep.subr.bf16.mxu0 %v17881_v26  ;;  %v17960_v26 = vld [vmem:[%s21948_s7 + $0x508] ss:$16 sps:$4 sm:$0xff]  }
 0x6f2   :  { %12603 = vmatpush1.bf16.msra.mxu1 %v17876_v21  ;;  %v17968_v21 = vld [vmem:[%s21948_s7 + $0x8ec] ss:$16 sps:$4 sm:$0xff]  }
 0x6f3   :  { %12604 = vmatprep.subr.bf16.mxu1 %v17884_v45  ;;  %v17963_v45 = vld [vmem:[%s21948_s7 + $0x608] ss:$16 sps:$4 sm:$0xff]  }
 0x6f4   :  { %12578 = vmatpush2.bf16.msra.mxu0 %v17879_v49  ;;  %v21754_v49 = vsub.s32 0, %v22026_v52 }
 0x6f5   :  { %12579 = vmatprep.subr.bf16.mxu0 %v17887_v44  ;;  %v17971_v44 = vld [vmem:[%s21948_s7 + $0x7ec] ss:$16 sps:$4 sm:$0xff]  }
 0x6f6   :  { %12605 = vmatpush1.bf16.msra.mxu1 %v17882_v42  ;;  %v21762_v42 = vld [vmem:[%s21949_s8] sm:$0xf] }
 0x6f7   :  { %12606 = vmatprep.subr.bf16.mxu1 %v17890_v2  ;;  %v17966_v2 = vld [vmem:[%s21948_s7 + $0x8e8] ss:$16 sps:$4 sm:$0xff]  }
 0x6f8   :  { %12580 = vmatpush2.bf16.msra.mxu0 %v17885_v41  ;;  %v21768_v41 = vsub.s32 1, %v22026_v52 }
 0x6f9   :  { %12581 = vmatprep.subr.bf16.mxu0 %v17893_v46  ;;  %v17974_v46 = vld [vmem:[%s21948_s7 + $0x8cc] ss:$16 sps:$4 sm:$0xff]  }
 0x6fa   :  { %12607 = vmatpush1.bf16.msra.mxu1 %v17888_v61  ;;  %v17969_v61 = vld [vmem:[%s21948_s7 + $0x7e8] ss:$16 sps:$4 sm:$0xff]  }
 0x6fb   :  { %12608 = vmatprep.subr.bf16.mxu1 %v17896_v37  ;;  %v10824_v37 = vrot.slane %v21762_v42, %v21754_v49 }
 0x6fc   :  { %12582 = vmatpush2.bf16.msra.mxu0 %v17891_v9 }
 0x6fd   :  { %12583 = vmatprep.subr.bf16.mxu0 %v17899_v63  ;;  %v17977_v63 = vld [vmem:[%s21948_s7 + $0x7cc] ss:$16 sps:$4 sm:$0xff]  }
 0x6fe   :  { %12609 = vmatpush1.bf16.msra.mxu1 %v17894_v18  ;;  %v10828_v18 = vrot.slane %v21762_v42, %v21768_v41 }
 0x6ff   :  { %12610 = vmatprep.subr.bf16.mxu1 %v17902_v58  ;;  %v17972_v58 = vld [vmem:[%s21948_s7 + $0x8c8] ss:$16 sps:$4 sm:$0xff]  }
 0x700   :  { %12584 = vmatpush2.bf16.msra.mxu0 %v17897_v11 }
 0x701   :  { %12585 = vmatprep.subr.bf16.mxu0 %v17905_v50 }
 0x702   :  { %12611 = vmatpush1.bf16.msra.mxu1 %v17900_v47 }
 0x703   :  { %12612 = vmatprep.subr.bf16.mxu1 %v17908_v62  ;;  %v17975_v62 = vld [vmem:[%s21948_s7 + $0x7c8] ss:$16 sps:$4 sm:$0xff]  }
 0x704   :  { %12586 = vmatpush2.bf16.msra.mxu0 %v17903_v17 }
 0x705   :  { %12587 = vmatprep.subr.bf16.mxu0 %v17911_v6 }
 0x706   :  { %12613 = vmatpush1.bf16.msra.mxu1 %v17906_v51 }
 0x707   :  { %12614 = vmatprep.subr.bf16.mxu1 %v17914_v3  ;;  %v17978_v3 = vld [vmem:[%s21948_s7 + $0x8a8] ss:$16 sps:$4 sm:$0xff]  }
 0x708   :  { %12588 = vmatpush2.bf16.msra.mxu0 %v17909_v27 }
 0x709   :  { %12589 = vmatprep.subr.bf16.mxu0 %v17917_v53 }
 0x70a   :  { %12615 = vmatpush1.bf16.msra.mxu1 %v17912_v25 }
 0x70b   :  { %12616 = vmatprep.subr.bf16.mxu1 %v17920_v19  ;;  %v17986_v19 = vld [vmem:[%s21948_s7 + $0x88c] ss:$16 sps:$4 sm:$0xff]  }
 0x70c   :  { %12590 = vmatpush2.bf16.msra.mxu0 %v17915_v15  ;;  %v17981_v15 = vld [vmem:[%s21948_s7 + $0x7a8] ss:$16 sps:$4 sm:$0xff]  }
 0x70d   :  { %12641 = vmatprep.subr.bf16.mxu0 %v17923_v34 }
 0x70e   :  { %12617 = vmatpush2.bf16.msra.mxu1 %v17918_v35 }
 0x70f   :  { %12592 = vmatmul.mubr.bf16.vlgmr.msra.gmra.mxu0 %v21134_v59  ;;  %12618 = vmatprep.subr.bf16.mxu1 %v17926_v30  ;;  %v17930_v59 = vld [vmem:[%s21948_s7 + $0x5a8] ss:$16 sps:$4 sm:$0xff]   ;;  %v17989_v30 = vld [vmem:[%s21948_s7 + $0x78c] ss:$16 sps:$4 sm:$0xff]  }
 0x710   :  { %12642 = vmatpush1.bf16.msra.mxu0 %v17921_v36  ;;  %12673 = vmatprep.mubr.bf16.mxu0 %v21177_v7  ;;  %v17933_v7 = vld [vmem:[%s21948_s7 + $0x6a8] ss:$16 sps:$4 sm:$0xff]  }
 0x711   :  { %12643 = vmatprep.subr.bf16.mxu0 %v17929_v31  ;;  %v17984_v36 = vld [vmem:[%s21948_s7 + $0x888] ss:$16 sps:$4 sm:$0xff]   ;;  %v17992_v31 = vld [vmem:[%s21948_s7 + $0x86c] ss:$16 sps:$4 sm:$0xff]  }
 0x712   :  { %12619 = vmatpush2.bf16.msra.mxu1 %v17924_v14  ;;  %v17987_v14 = vld [vmem:[%s21948_s7 + $0x788] ss:$16 sps:$4 sm:$0xff]  }
 0x713   :  { %12620 = vmatprep.subr.bf16.mxu1 %v17932_v60  ;;  %v17995_v60 = vld [vmem:[%s21948_s7 + $0x76c] ss:$16 sps:$4 sm:$0xff]  }
 0x714   :  { %12644 = vmatpush1.bf16.msra.mxu0 %v17927_v10  ;;  %v17990_v10 = vld [vmem:[%s21948_s7 + $0x868] ss:$16 sps:$4 sm:$0xff]  }
 0x715   :  { %12645 = vmatprep.subr.bf16.mxu0 %v17935_v12  ;;  %v17998_v12 = vld [vmem:[%s21948_s7 + $0x84c] ss:$16 sps:$4 sm:$0xff]  }
 0x716   :  { %12621 = vmatpush2.bf16.msra.mxu1 %v17930_v59  ;;  %v17993_v59 = vld [vmem:[%s21948_s7 + $0x768] ss:$16 sps:$4 sm:$0xff]  }
 0x717   :  { %12622 = vmatprep.subr.bf16.mxu1 %v17938_v54  ;;  %v18001_v54 = vld [vmem:[%s21948_s7 + $0x74c] ss:$16 sps:$4 sm:$0xff]  }
 0x718   :  { %12646 = vmatpush1.bf16.msra.mxu0 %v17933_v7  ;;  %v17996_v7 = vld [vmem:[%s21948_s7 + $0x848] ss:$16 sps:$4 sm:$0xff]  }
 0x719   :  { %12647 = vmatprep.subr.bf16.mxu0 %v17941_v23  ;;  %v18004_v23 = vld [vmem:[%s21948_s7 + $0x82c] ss:$16 sps:$4 sm:$0xff]  }
 0x71a   :  { %12623 = vmatpush2.bf16.msra.mxu1 %v17936_v5  ;;  %v17999_v5 = vld [vmem:[%s21948_s7 + $0x748] ss:$16 sps:$4 sm:$0xff]  }
 0x71b   :  { %12624 = vmatprep.subr.bf16.mxu1 %v17944_v29  ;;  %v18007_v29 = vld [vmem:[%s21948_s7 + $0x72c] ss:$16 sps:$4 sm:$0xff]  }
 0x71c   :  { %12648 = vmatpush1.bf16.msra.mxu0 %v17939_v13  ;;  %v18002_v13 = vld [vmem:[%s21948_s7 + $0x828] ss:$16 sps:$4 sm:$0xff]  }
 0x71d   :  { %12649 = vmatprep.subr.bf16.mxu0 %v17947_v1  ;;  %v18010_v1 = vld [vmem:[%s21948_s7 + $0x80c] ss:$16 sps:$4 sm:$0xff]  }
 0x71e   :  { %12625 = vmatpush2.bf16.msra.mxu1 %v17942_v32  ;;  %v18005_v32 = vld [vmem:[%s21948_s7 + $0x728] ss:$16 sps:$4 sm:$0xff]  }
 0x71f   :  { %12626 = vmatprep.subr.bf16.mxu1 %v17950_v4  ;;  %v18013_v4 = vld [vmem:[%s21948_s7 + $0x70c] ss:$16 sps:$4 sm:$0xff]  }
 0x720   :  { %12650 = vmatpush1.bf16.msra.mxu0 %v17945_v55  ;;  %v18008_v55 = vld [vmem:[%s21948_s7 + $0x808] ss:$16 sps:$4 sm:$0xff]  }
 0x721   :  { %12651 = vmatprep.subr.bf16.mxu0 %v17953_v43  ;;  %v18011_v43 = vld [vmem:[%s21948_s7 + $0x708] ss:$16 sps:$4 sm:$0xff]  }
 0x722   :  { %12627 = vmatpush2.bf16.msra.mxu1 %v17948_v24 }
 0x723   :  { %12628 = vmatprep.subr.bf16.mxu1 %v17956_v8 }
 0x724   :  { %12652 = vmatpush1.bf16.msra.mxu0 %v17951_v57 }
 0x725   :  { %12653 = vmatprep.subr.bf16.mxu0 %v17959_v0 }
 0x726   :  { %12629 = vmatpush2.bf16.msra.mxu1 %v17954_v33 }
 0x727   :  { %12630 = vmatprep.subr.bf16.mxu1 %v17962_v20 }
 0x728   :  { %12654 = vmatpush1.bf16.msra.mxu0 %v17957_v28 }
 0x729   :  { %12655 = vmatprep.subr.bf16.mxu0 %v17965_v38 }
 0x72a   :  { %12631 = vmatpush2.bf16.msra.mxu1 %v17960_v26 }
 0x72b   :  { %12682 = vmatprep.subr.bf16.mxu1 %v17968_v21 }
 0x72c   :  { %12656 = vmatpush1.bf16.msra.mxu0 %v17963_v45  ;;  %v18014_v45 = vld [vmem:[#allocation19 + $0xe0] ss:$16 sps:$4 sm:$0xff]  }
 0x72d   :  { %12633 = vmatmul.mubr.bf16.vlgmr.msra.gmra.mxu1 %v21367_v16  ;;  %v12388_v9 = vpop.f32.mrf.mxu1  ;;  %12657 = vmatprep.subr.bf16.mxu0 %v17971_v44  ;;  %v17980_v16 = vld [vmem:[%s21948_s7 + $0x8ac] ss:$16 sps:$4 sm:$0xff]  }
 0x72e   :  { %12683 = vmatpush1.bf16.msra.mxu1 %v17966_v2  ;;  %12714 = vmatprep.mubr.bf16.mxu1 %v22029_v22  ;;  %v12347_v11 = vpop.f32.mrf.mxu0  ;;  %v17983_v22 = vld [vmem:[%s21948_s7 + $0x7ac] ss:$16 sps:$4 sm:$0xff]   ;;  %s18729_s7 = smov [#allocation28]  }
 0x72f   :  { %v12390_v50 = vpop.f32.mrf.mxu1  ;;  %12684 = vmatprep.subr.bf16.mxu1 %v17974_v46  ;;  %v12348_v47 = vadd.f32 %v12347_v11, %v10824_v37  ;;  %v18016_v44 = vld [vmem:[#allocation19 + $0xe4] ss:$16 sps:$4 sm:$0xff]   ;;  %v18017_v2 = vld [vmem:[#allocation19 + $0x2e0] ss:$16 sps:$4 sm:$0xff]   ;;  %s15159_s21 = sshll.u32 %s18729_s7, 4  ;;  %s15160_s21 = int_to_ptr.vmem [resolvable:$true] %s15159_s21 }
 0x730   :  { %12658 = vmatpush2.bf16.msra.mxu0 %v17969_v61  ;;  %v12349_v17 = vpop.f32.mrf.mxu0  ;;  %v18019_v61 = vld [vmem:[#allocation19 + $0x2e4] ss:$16 sps:$4 sm:$0xff]   ;;  %v18026_v11 = vld [vmem:[#allocation19 + $0xa0] ss:$16 sps:$4 sm:$0xff]   ;;  %s18674_s24 = scalar_lea.vmem %s15160_s21, 32  ;;  %p18679_p5 = scmp.lt.s32.totalorder %s15160_s21, %s15160_s21 }
 0x731   :  { %v12392_v6 = vpop.f32.mrf.mxu1  ;;  %12659 = vmatprep.subr.bf16.mxu0 %v17977_v63  ;;  %v12350_v51 = vadd.f32 %v12349_v17, %v10828_v18  ;;  %v12389_v27 = vadd.f32 %v12388_v9, %v12348_v47  ;;  %v18022_v37 = vld [vmem:[#allocation19 + $0xc4] ss:$16 sps:$4 sm:$0xff]   ;;  %v18023_v63 = vld [vmem:[#allocation19 + $0x2c0] ss:$16 sps:$4 sm:$0xff]   ;;  %p18675_p4 = scmp.ne.s32.totalorder %s15160_s21, %s18674_s24  ;;  %p18680_p6 = scmp.lt.s32.totalorder %s18674_s24, %s18674_s24 }
 0x732   :  { %12685 = vmatpush1.bf16.msra.mxu1 %v17972_v58  ;;  %v12351_v53 = vpop.f32.mrf.mxu0  ;;  %v18028_v18 = vld [vmem:[#allocation19 + $0xa4] ss:$16 sps:$4 sm:$0xff]   ;;  %v18035_v17 = vld [vmem:[#allocation19 + $0x280] ss:$16 sps:$4 sm:$0xff]  }
 0x733   :  { %v12393_v25 = vpop.f32.mrf.mxu1  ;;  %12686 = vmatprep.subr.bf16.mxu1 %v17980_v16  ;;  %v12391_v34 = vadd.f32 %v12390_v50, %v12350_v51  ;;  %v18031_v58 = vld [vmem:[#allocation19 + $0x2a4] ss:$16 sps:$4 sm:$0xff]   ;;  %v18029_v50 = vld [vmem:[#allocation19 + $0x2a0] ss:$16 sps:$4 sm:$0xff]   ;;  %p18681_p7 = por %p18680_p6, %p18679_p5 }
 0x734   :  { %12660 = vmatpush2.bf16.msra.mxu0 %v17975_v62  ;;  %v12352_v35 = vpop.f32.mrf.mxu0  ;;  %v18034_v16 = vld [vmem:[#allocation19 + $0x84] ss:$16 sps:$4 sm:$0xff]   ;;  %v18032_v62 = vld [vmem:[#allocation19 + $0x80] ss:$16 sps:$4 sm:$0xff]  }
 0x735   :  { %12661 = vmatprep.subr.bf16.mxu0 %v17983_v22  ;;  %v18037_v47 = vld [vmem:[#allocation19 + $0x284] ss:$16 sps:$4 sm:$0xff]   ;;  %v18038_v51 = vld [vmem:[#allocation19 + $0x60] ss:$16 sps:$4 sm:$0xff]   ;;  %p18682_p8 = pnand %p18681_p7, %p18675_p4 }
 0x736   :  { %12687 = vmatpush1.bf16.msra.mxu1 %v17978_v3  ;;  %v18040_v6 = vld [vmem:[#allocation19 + $0x64] ss:$16 sps:$4 sm:$0xff]   ;;  %v18041_v3 = vld [vmem:[#allocation19 + $0x260] ss:$16 sps:$4 sm:$0xff]  }
 0x737   :  { %12688 = vmatprep.subr.bf16.mxu1 %v17986_v19  ;;  %v18043_v22 = vld [vmem:[#allocation19 + $0x264] ss:$16 sps:$4 sm:$0xff]   ;;  %v18044_v25 = vld [vmem:[#allocation19 + $0x40] ss:$16 sps:$4 sm:$0xff]  }
 0x738   :  { %12662 = vmatpush2.bf16.msra.mxu0 %v17981_v15  ;;  %v18049_v53 = vld [vmem:[#allocation19 + $0x244] ss:$16 sps:$4 sm:$0xff]   ;;  %v18047_v19 = vld [vmem:[#allocation19 + $0x240] ss:$16 sps:$4 sm:$0xff]  }
 0x739   :  { %12663 = vmatprep.subr.bf16.mxu0 %v17989_v30  ;;  %v18052_v15 = vld [vmem:[#allocation19 + $0x24] ss:$16 sps:$4 sm:$0xff]   ;;  %v18053_v35 = vld [vmem:[#allocation19 + $0x220] ss:$16 sps:$4 sm:$0xff]  }
 0x73a   :  { %12689 = vmatpush1.bf16.msra.mxu1 %v17984_v36  ;;  %v18055_v30 = vld [vmem:[#allocation19 + $0x224] ss:$16 sps:$4 sm:$0xff]  }
 0x73b   :  { %12690 = vmatprep.subr.bf16.mxu1 %v17992_v31 }
 0x73c   :  { %12664 = vmatpush2.bf16.msra.mxu0 %v17987_v14 }
 0x73d   :  { %12665 = vmatprep.subr.bf16.mxu0 %v17995_v60 }
 0x73e   :  { %12691 = vmatpush1.bf16.msra.mxu1 %v17990_v10 }
 0x73f   :  { %12692 = vmatprep.subr.bf16.mxu1 %v17998_v12 }
 0x740   :  { %12666 = vmatpush2.bf16.msra.mxu0 %v17993_v59 }
 0x741   :  { %12667 = vmatprep.subr.bf16.mxu0 %v18001_v54  ;;  %v18056_v54 = vld [vmem:[#allocation19] ss:$16 sps:$4 sm:$0xff]  }
 0x742   :  { %12693 = vmatpush1.bf16.msra.mxu1 %v17996_v7  ;;  %v18058_v7 = vld [vmem:[#allocation19 + $0x4] ss:$16 sps:$4 sm:$0xff]  }
 0x743   :  { %12694 = vmatprep.subr.bf16.mxu1 %v18004_v23 }
 0x744   :  { %12668 = vmatpush2.bf16.msra.mxu0 %v17999_v5 }
 0x745   :  { %12669 = vmatprep.subr.bf16.mxu0 %v18007_v29 }
 0x746   :  { %12695 = vmatpush1.bf16.msra.mxu1 %v18002_v13  ;;  %v18059_v13 = vld [vmem:[#allocation19 + $0x200] ss:$16 sps:$4 sm:$0xff]  }
 0x747   :  { %12696 = vmatprep.subr.bf16.mxu1 %v18010_v1  ;;  %v18061_v1 = vld [vmem:[#allocation19 + $0x204] ss:$16 sps:$4 sm:$0xff]  }
 0x748   :  { %12670 = vmatpush2.bf16.msra.mxu0 %v18005_v32  ;;  %v18062_v32 = vld [vmem:[#allocation19 + $0x1e0] ss:$16 sps:$4 sm:$0xff]  }
 0x749   :  { %12671 = vmatprep.subr.bf16.mxu0 %v18013_v4  ;;  %v18064_v4 = vld [vmem:[#allocation19 + $0x1e4] ss:$16 sps:$4 sm:$0xff]  }
 0x74a   :  { %12697 = vmatpush1.bf16.msra.mxu1 %v18008_v55  ;;  %v18067_v55 = vld [vmem:[#allocation19 + $0x3e4] ss:$16 sps:$4 sm:$0xff]  }
 0x74b   :  { %13716 = vmatprep.subr.bf16.mxu1 %v18019_v61 }
 0x74c   :  { %12672 = vmatpush2.bf16.msra.mxu0 %v18011_v43  ;;  %v18070_v43 = vld [vmem:[#allocation19 + $0x1c4] ss:$16 sps:$4 sm:$0xff]  }
 0x74d   :  { %12715 = vmatmul.mubr.bf16.vlgmr.msra.gmra.mxu1 %v21469_v48  ;;  %13675 = vmatprep.subr.bf16.mxu0 %v18016_v44  ;;  %v18025_v48 = vld [vmem:[#allocation19 + $0x2c4] ss:$16 sps:$4 sm:$0xff]   ;;  %v18080_v44 = vld [vmem:[#allocation19 + $0x180] ss:$16 sps:$4 sm:$0xff]  }
 0x74e   :  { %13717 = vmatpush1.bf16.msra.mxu1 %v18017_v2  ;;  %v18085_v2 = vld [vmem:[#allocation19 + $0x384] ss:$16 sps:$4 sm:$0xff]  }
 0x74f   :  { %12674 = vmatmul.mubr.bf16.vlgmr.msra.gmra.mxu0 %v21357_v40  ;;  %v18020_v40 = vld [vmem:[#allocation19 + $0xc0] ss:$16 sps:$4 sm:$0xff]   ;;  %13718 = vmatprep.subr.bf16.mxu1 %v18025_v48 }
 0x750   :  { %13676 = vmatpush1.bf16.msra.mxu0 %v18014_v45  ;;  %v18086_v48 = vld [vmem:[#allocation19 + $0x160] ss:$16 sps:$4 sm:$0xff]  }
 0x751   :  { %13677 = vmatprep.subr.bf16.mxu0 %v18022_v37  ;;  %v18083_v37 = vld [vmem:[#allocation19 + $0x380] ss:$16 sps:$4 sm:$0xff]  }
 0x752   :  { %13719 = vmatpush1.bf16.msra.mxu1 %v18023_v63  ;;  %v18094_v63 = vld [vmem:[#allocation19 + $0x144] ss:$16 sps:$4 sm:$0xff]  }
 0x753   :  { %13720 = vmatprep.subr.bf16.mxu1 %v18031_v58  ;;  %v18092_v58 = vld [vmem:[#allocation19 + $0x140] ss:$16 sps:$4 sm:$0xff]  }
 0x754   :  { %13678 = vmatpush1.bf16.msra.mxu0 %v18020_v40  ;;  %v18091_v40 = vld [vmem:[#allocation19 + $0x364] ss:$16 sps:$4 sm:$0xff]  }
 0x755   :  { %13679 = vmatprep.subr.bf16.mxu0 %v18028_v18  ;;  %v18089_v18 = vld [vmem:[#allocation19 + $0x360] ss:$16 sps:$4 sm:$0xff]  }
 0x756   :  { %13721 = vmatpush1.bf16.msra.mxu1 %v18029_v50  ;;  %v18100_v50 = vld [vmem:[#allocation19 + $0x124] ss:$16 sps:$4 sm:$0xff]  }
 0x757   :  { %13722 = vmatprep.subr.bf16.mxu1 %v18037_v47  ;;  %v18098_v47 = vld [vmem:[#allocation19 + $0x120] ss:$16 sps:$4 sm:$0xff]  }
 0x758   :  { %13680 = vmatpush1.bf16.msra.mxu0 %v18026_v11  ;;  %v18097_v11 = vld [vmem:[#allocation19 + $0x344] ss:$16 sps:$4 sm:$0xff]  }
 0x759   :  { %13681 = vmatprep.subr.bf16.mxu0 %v18034_v16  ;;  %v18095_v16 = vld [vmem:[#allocation19 + $0x340] ss:$16 sps:$4 sm:$0xff]  }
 0x75a   :  { %13723 = vmatpush1.bf16.msra.mxu1 %v18035_v17  ;;  %v18106_v17 = vld [vmem:[#allocation19 + $0x104] ss:$16 sps:$4 sm:$0xff]  }
 0x75b   :  { %13724 = vmatprep.subr.bf16.mxu1 %v18043_v22  ;;  %v18104_v22 = vld [vmem:[#allocation19 + $0x100] ss:$16 sps:$4 sm:$0xff]  }
 0x75c   :  { %13682 = vmatpush1.bf16.msra.mxu0 %v18032_v62  ;;  %v18103_v62 = vld [vmem:[#allocation19 + $0x324] ss:$16 sps:$4 sm:$0xff]  }
 0x75d   :  { %13683 = vmatprep.subr.bf16.mxu0 %v18040_v6  ;;  %v18101_v6 = vld [vmem:[#allocation19 + $0x320] ss:$16 sps:$4 sm:$0xff]  }
 0x75e   :  { %13725 = vmatpush1.bf16.msra.mxu1 %v18041_v3  ;;  %v18112_v3 = vld [vmem:[#allocation19 + $0xec] ss:$16 sps:$4 sm:$0xff]  }
 0x75f   :  { %13726 = vmatprep.subr.bf16.mxu1 %v18049_v53  ;;  %v18115_v53 = vld [vmem:[#allocation19 + $0x2ec] ss:$16 sps:$4 sm:$0xff]  }
 0x760   :  { %13684 = vmatpush1.bf16.msra.mxu0 %v18038_v51  ;;  %v18109_v51 = vld [vmem:[#allocation19 + $0x304] ss:$16 sps:$4 sm:$0xff]  }
 0x762   :  { %13727 = vmatpush1.bf16.msra.mxu1 %v18047_v19 }
 0x763   :  { %13728 = vmatprep.subr.bf16.mxu1 %v18055_v30 }
 0x766   :  { %13729 = vmatpush1.bf16.msra.mxu1 %v18053_v35 }
 0x767   :  { %13730 = vmatprep.subr.bf16.mxu1 %v18061_v1 }
 0x76a   :  { %13731 = vmatpush1.bf16.msra.mxu1 %v18059_v13 }
 0x76b   :  { %13732 = vmatprep.subr.bf16.mxu1 %v18067_v55 }
 0x76d   :  { %v12470_v24 = vpop.f32.mrf.mxu1 }
 0x76f   :  { %v12429_v8 = vpop.f32.mrf.mxu0  ;;  %v12472_v57 = vpop.f32.mrf.mxu1 }
 0x770   :  { %v12430_v0 = vadd.f32 %v12429_v8, %v12389_v27  ;;  %v18046_v27 = vld [vmem:[#allocation19 + $0x44] ss:$16 sps:$4 sm:$0xff]   ;;  %v18068_v8 = vld [vmem:[#allocation19 + $0x1c0] ss:$16 sps:$4 sm:$0xff]  }
 0x771   :  { %v12431_v33 = vpop.f32.mrf.mxu0  ;;  %v12474_v20 = vpop.f32.mrf.mxu1  ;;  %13685 = vmatprep.subr.bf16.mxu0 %v18046_v27  ;;  %v18107_v27 = vld [vmem:[#allocation19 + $0x300] ss:$16 sps:$4 sm:$0xff]  }
 0x772   :  { %v12432_v28 = vadd.f32 %v12431_v33, %v12391_v34  ;;  %v12471_v38 = vadd.f32 %v12470_v24, %v12430_v0  ;;  %13686 = vmatpush1.bf16.msra.mxu0 %v18044_v25  ;;  %v18050_v34 = vld [vmem:[#allocation19 + $0x20] ss:$16 sps:$4 sm:$0xff]   ;;  %v18076_v0 = vld [vmem:[#allocation19 + $0x1a4] ss:$16 sps:$4 sm:$0xff]  }
 0x773   :  { %v12433_v26 = vpop.f32.mrf.mxu0  ;;  %v12475_v21 = vpop.f32.mrf.mxu1  ;;  %13687 = vmatprep.subr.bf16.mxu0 %v18052_v15  ;;  %v18065_v24 = vld [vmem:[#allocation19 + $0x3e0] ss:$16 sps:$4 sm:$0xff]  }
 0x774   :  { %v12473_v46 = vadd.f32 %v12472_v57, %v12432_v28  ;;  %v18073_v57 = vld [vmem:[#allocation19 + $0x3c4] ss:$16 sps:$4 sm:$0xff]   ;;  %13733 = vmatpush2.bf16.msra.mxu1 %v18065_v24  ;;  %v18071_v33 = vld [vmem:[#allocation19 + $0x3c0] ss:$16 sps:$4 sm:$0xff]  }
 0x775   :  { %v12434_v9 = vpop.f32.mrf.mxu0  ;;  %13734 = vmatprep.subr.bf16.mxu1 %v18073_v57  ;;  %v18074_v20 = vld [vmem:[#allocation19 + $0x1a0] ss:$16 sps:$4 sm:$0xff]   ;;  %v18079_v28 = vld [vmem:[#allocation19 + $0x3a4] ss:$16 sps:$4 sm:$0xff]  }
 0x776   :  { %13688 = vmatpush1.bf16.msra.mxu0 %v18050_v34  ;;  %v18077_v21 = vld [vmem:[#allocation19 + $0x3a0] ss:$16 sps:$4 sm:$0xff]  }
 0x777   :  { %13689 = vmatprep.subr.bf16.mxu0 %v18058_v7 }
 0x778   :  { %13735 = vmatpush2.bf16.msra.mxu1 %v18071_v33 }
 0x779   :  { %13736 = vmatprep.subr.bf16.mxu1 %v18079_v28 }
 0x77a   :  { %13690 = vmatpush1.bf16.msra.mxu0 %v18056_v54 }
 0x77b   :  { %13691 = vmatprep.subr.bf16.mxu0 %v18064_v4 }
 0x77c   :  { %13737 = vmatpush2.bf16.msra.mxu1 %v18077_v21 }
 0x77d   :  { %13738 = vmatprep.subr.bf16.mxu1 %v18085_v2 }
 0x77e   :  { %13692 = vmatpush2.bf16.msra.mxu0 %v18062_v32 }
 0x77f   :  { %13693 = vmatprep.subr.bf16.mxu0 %v18070_v43 }
 0x780   :  { %13739 = vmatpush2.bf16.msra.mxu1 %v18083_v37 }
 0x781   :  { %13740 = vmatprep.subr.bf16.mxu1 %v18091_v40 }
 0x782   :  { %13694 = vmatpush2.bf16.msra.mxu0 %v18068_v8 }
 0x783   :  { %13695 = vmatprep.subr.bf16.mxu0 %v18076_v0 }
 0x784   :  { %13741 = vmatpush2.bf16.msra.mxu1 %v18089_v18 }
 0x785   :  { %13742 = vmatprep.subr.bf16.mxu1 %v18097_v11 }
 0x786   :  { %13696 = vmatpush2.bf16.msra.mxu0 %v18074_v20 }
 0x788   :  { %13743 = vmatpush2.bf16.msra.mxu1 %v18095_v16 }
 0x789   :  { %13744 = vmatprep.subr.bf16.mxu1 %v18103_v62 }
 0x78c   :  { %13745 = vmatpush2.bf16.msra.mxu1 %v18101_v6 }
 0x78d   :  { %13746 = vmatprep.subr.bf16.mxu1 %v18109_v51 }
 0x78f   :  { %v12511_v36 = vpop.f32.mrf.mxu0 }
 0x790   :  { %v12512_v31 = vadd.f32 %v12511_v36, %v12471_v38  ;;  %v18082_v38 = vld [vmem:[#allocation19 + $0x184] ss:$16 sps:$4 sm:$0xff]   ;;  %13747 = vmatpush2.bf16.msra.mxu1 %v18107_v27 }
 0x791   :  { %v12513_v14 = vpop.f32.mrf.mxu0  ;;  %13697 = vmatprep.subr.bf16.mxu0 %v18082_v38  ;;  %13798 = vmatprep.subr.bf16.mxu1 %v18115_v53 }
 0x792   :  { %v12514_v60 = vadd.f32 %v12513_v14, %v12473_v46  ;;  %v12723_v12 = vmax.f32 %v12512_v31, 0.0  ;;  %v18088_v46 = vld [vmem:[#allocation19 + $0x164] ss:$16 sps:$4 sm:$0xff]   ;;  %13698 = vmatpush2.bf16.msra.mxu0 %v18080_v44  ;;  %v21872_v14 = vsub.s32 2, %v22026_v52 }
 0x793   :  { %v12515_v10 = vpop.f32.mrf.mxu0  ;;  %13699 = vmatprep.subr.bf16.mxu0 %v18088_v46 }
 0x794   :  { %v12724_v59 = vmax.f32 %v12514_v60, 0.0  ;;  %v21875_v60 = vsub.s32 3, %v22026_v52  ;;  %v10832_v10 = vrot.slane %v21762_v42, %v21872_v14 }
 0x795   :  { %v12516_v23 = vpop.f32.mrf.mxu0 }
 0x796   :  { %v21865_v5 = vcombine.low %v12723_v12, %v12724_v59  ;;  %v21867_v29 = vcombine.high %v12723_v12, %v12724_v59  ;;  %13700 = vmatpush2.bf16.msra.mxu0 %v18086_v48  ;;  %v10836_v12 = vrot.slane %v21762_v42, %v21875_v60 }
 0x797   :  { %13701 = vmatprep.subr.bf16.mxu0 %v18094_v63 }
 0x798   :  { %v12814_v44 = vrot.slane %v21867_v29, %v19023_v56 }
 0x79a   :  { %13702 = vmatpush2.bf16.msra.mxu0 %v18092_v58 }
 0x79b   :  { %13703 = vmatprep.subr.bf16.mxu0 %v18100_v50 }
 0x79e   :  { %13704 = vmatpush2.bf16.msra.mxu0 %v18098_v47 }
 0x79f   :  { %13705 = vmatprep.subr.bf16.mxu0 %v18106_v17 }
 0x7a2   :  { %13706 = vmatpush2.bf16.msra.mxu0 %v18104_v22 }
 0x7a3   :  { %13757 = vmatprep.subr.bf16.mxu0 %v18112_v3 }
 0x7ad   :  { %v21869_v26 = vpop.f32.mrf.mxu1 }
 0x7ae   :  { %v12553_v59 = vadd.f32 %v21869_v26, %v10832_v10 }
 0x7af   :  { %v12554_v45 = vpop.f32.mrf.mxu1 }
 0x7b0   :  { %v12555_v54 = vadd.f32 %v12554_v45, %v10836_v12  ;;  %v12739_v45 = vrot.slane %v21865_v5, %v19023_v56 }
 0x7b1   :  { %v12556_v61 = vpop.f32.mrf.mxu1 }
 0x7b3   :  { %v12557_v9 = vpop.f32.mrf.mxu1 }
 0x7cf   :  { %v12593_v25 = vpop.f32.mrf.mxu0 }
 0x7d0   :  { %v12594_v7 = vadd.f32 %v12593_v25, %v12553_v59 }
 0x7d1   :  { %v12595_v19 = vpop.f32.mrf.mxu0 }
 0x7d2   :  { %v12596_v13 = vadd.f32 %v12595_v19, %v12555_v54 }
 0x7d3   :  { %v12597_v15 = vpop.f32.mrf.mxu0 }
 0x7d5   :  { %v12598_v34 = vpop.f32.mrf.mxu0 }
 0x7ed   :  { %v12634_v35 = vpop.f32.mrf.mxu1 }
 0x7ee   :  { %v12635_v1 = vadd.f32 %v12634_v35, %v12594_v7 }
 0x7ef   :  { %v12636_v30 = vpop.f32.mrf.mxu1 }
 0x7f0   :  { %v12637_v55 = vadd.f32 %v12636_v30, %v12596_v13 }
 0x7f1   :  { %v12638_v36 = vpop.f32.mrf.mxu1 }
 0x7f3   :  { %v12639_v31 = vpop.f32.mrf.mxu1 }
 0x80d   :  { %v12716_v23 = vpop.f32.mrf.mxu1 }
 0x80f   :  { %v12675_v32 = vpop.f32.mrf.mxu0  ;;  %v12718_v4 = vpop.f32.mrf.mxu1 }
 0x810   :  { %v12676_v43 = vadd.f32 %v12675_v32, %v12635_v1 }
 0x811   :  { %v12677_v24 = vpop.f32.mrf.mxu0  ;;  %v12720_v52 = vpop.f32.mrf.mxu1 }
 0x812   :  { %v12717_v8 = vadd.f32 %v12716_v23, %v12676_v43  ;;  %v12678_v57 = vadd.f32 %v12677_v24, %v12637_v55 }
 0x813   :  { %v12679_v0 = vpop.f32.mrf.mxu0  ;;  %v12721_v33 = vpop.f32.mrf.mxu1 }
 0x814   :  { %v12719_v20 = vadd.f32 %v12718_v4, %v12678_v57  ;;  %v12725_v42 = vmax.f32 %v12717_v8, 0.0 }
 0x815   :  { %v12680_v28 = vpop.f32.mrf.mxu0 }
 0x816   :  { %v12726_v38 = vmax.f32 %v12719_v20, 0.0 }
 0x818   :  { %v12732_v26 = vcombine.low %v12725_v42, %v12726_v38  ;;  %v12807_v21 = vcombine.high %v12725_v42, %v12726_v38 }
 0x81a   :  { %v12746_v2 = vrot.slane %v12732_v26, %v19023_v56  ;;  %v12821_v46 = vrot.slane %v12807_v21, %v19023_v56 }
 0x81c   :  { %v12747_v61 = vcombine.low %v12739_v45, %v12746_v2  ;;  %v12748_v37 = vcombine.high %v12739_v45, %v12746_v2  ;;  %v12822_v9 = vcombine.low %v12814_v44, %v12821_v46  ;;  %v12823_v48 = vcombine.high %v12814_v44, %v12821_v46 }
 0x81e   :  { %v12751_v40 = vmax.f32 %v12747_v61, %v12748_v37  ;;  %v12826_v63 = vmax.f32 %v12822_v9, %v12823_v48 }
 0x820   :  { %v12753_v18 = vcombine.high %v12751_v40, %v12751_v40  ;;  %v12760_v58 = vrot.slane %v12751_v40, %v19023_v56  ;;  %v12828_v11 = vcombine.high %v12826_v63, %v12826_v63  ;;  %v12835_v50 = vrot.slane %v12826_v63, %v19023_v56 }
 0x822   :  { %v12767_v5 = vrot.slane %v12753_v18, %v19023_v56  ;;  %v12774_v29 = vsel %vm1268_vm1, %v12760_v58, -inf  ;;  %v12842_v16 = vrot.slane %v12828_v11, %v19023_v56  ;;  %v12849_v47 = vsel %vm1268_vm1, %v12835_v50, -inf }
 0x823   :  { %v12775_v62 = vrot.slane %v12774_v29, 4  ;;  %v12850_v17 = vrot.slane %v12849_v47, 4  ;;  %v12768_v6 = vcombine.high %v12760_v58, %v12760_v58  ;;  %v12843_v22 = vcombine.high %v12835_v50, %v12835_v50 }
 0x824   :  { %v12769_v51 = vcombine.high %v12767_v5, %v12767_v5  ;;  %v12844_v3 = vcombine.high %v12842_v16, %v12842_v16  ;;  %v12788_v27 = vsel %vm1268_vm1, %v12767_v5, -inf  ;;  %v12863_v53 = vsel %vm1268_vm1, %v12842_v16, -inf }
 0x825   :  { %v12781_v25 = vsel %vm1268_vm1, %v12768_v6, -inf  ;;  %v12856_v19 = vsel %vm1268_vm1, %v12843_v22, -inf  ;;  %v12776_v15 = vmax.f32 %v12774_v29, %v12775_v62  ;;  %v12851_v34 = vmax.f32 %v12849_v47, %v12850_v17 }
 0x826   :  { %v12782_v35 = vrot.slane %v12781_v25, 4  ;;  %v12857_v56 = vrot.slane %v12856_v19, 4  ;;  %v12795_v30 = vsel %vm1268_vm1, %v12769_v51, -inf  ;;  %v12870_v36 = vsel %vm1268_vm1, %v12844_v3, -inf  ;;  %v18110_v51 = vld [vmem:[#allocation19 + $0xe8] ss:$16 sps:$4 sm:$0xff]  }
 0x827   :  { %v12777_v31 = vrot.slane %v12776_v15, 2  ;;  %v12852_v10 = vrot.slane %v12851_v34, 2  ;;  %v12796_v12 = vrot.slane %v12795_v30, 4  ;;  %v12871_v59 = vrot.slane %v12870_v36, 4 }
 0x828   :  { %v12783_v54 = vmax.f32 %v12781_v25, %v12782_v35  ;;  %v12858_v7 = vmax.f32 %v12856_v19, %v12857_v56  ;;  %v12789_v23 = vrot.slane %v12788_v27, 4  ;;  %v12864_v13 = vrot.slane %v12863_v53, 4  ;;  %v18113_v35 = vld [vmem:[#allocation19 + $0x2e8] ss:$16 sps:$4 sm:$0xff]  }
 0x829   :  { %v12778_v1 = vmax.f32 %v12776_v15, %v12777_v31  ;;  %v12853_v32 = vmax.f32 %v12851_v34, %v12852_v10  ;;  %v12797_v4 = vmax.f32 %v12795_v30, %v12796_v12  ;;  %v12872_v55 = vmax.f32 %v12870_v36, %v12871_v59  ;;  %v18118_v15 = vld [vmem:[#allocation19 + $0xcc] ss:$16 sps:$4 sm:$0xff]   ;;  %v18116_v36 = vld [vmem:[#allocation19 + $0xc8] ss:$16 sps:$4 sm:$0xff]  }
 0x82a   :  { %v12784_v43 = vrot.slane %v12783_v54, 2  ;;  %v12859_v24 = vrot.slane %v12858_v7, 2  ;;  %v12790_v52 = vmax.f32 %v12788_v27, %v12789_v23  ;;  %v12865_v8 = vmax.f32 %v12863_v53, %v12864_v13  ;;  %v18121_v30 = vld [vmem:[#allocation19 + $0x2cc] ss:$16 sps:$4 sm:$0xff]   ;;  %v18119_v10 = vld [vmem:[#allocation19 + $0x2c8] ss:$16 sps:$4 sm:$0xff]  }
 0x82b   :  { %v12779_v57 = vrot.slane %v12778_v1, 1  ;;  %v12854_v0 = vrot.slane %v12853_v32, 1  ;;  %v12798_v33 = vrot.slane %v12797_v4, 2  ;;  %v12873_v20 = vrot.slane %v12872_v55, 2  ;;  %v18124_v31 = vld [vmem:[#allocation19 + $0xac] ss:$16 sps:$4 sm:$0xff]  }
 0x82c   :  { %v12785_v28 = vmax.f32 %v12783_v54, %v12784_v43  ;;  %v12860_v42 = vmax.f32 %v12858_v7, %v12859_v24  ;;  %v12791_v38 = vrot.slane %v12790_v52, 2  ;;  %v12866_v26 = vrot.slane %v12865_v8, 2  ;;  %v18127_v12 = vld [vmem:[#allocation19 + $0x2ac] ss:$16 sps:$4 sm:$0xff]   ;;  %v18122_v59 = vld [vmem:[#allocation19 + $0xa8] ss:$16 sps:$4 sm:$0xff]  }
 0x82d   :  { %v12780_v21 = vmax.f32 %v12778_v1, %v12779_v57  ;;  %v12855_v45 = vmax.f32 %v12853_v32, %v12854_v0  ;;  %v12799_v44 = vmax.f32 %v12797_v4, %v12798_v33  ;;  %v12874_v2 = vmax.f32 %v12872_v55, %v12873_v20  ;;  %v18130_v54 = vld [vmem:[#allocation19 + $0x8c] ss:$16 sps:$4 sm:$0xff]   ;;  %v18128_v23 = vld [vmem:[#allocation19 + $0x88] ss:$16 sps:$4 sm:$0xff]  }
 0x82e   :  { %v12786_v46 = vrot.slane %v12785_v28, 1  ;;  %v12861_v61 = vrot.slane %v12860_v42, 1  ;;  %v12792_v37 = vmax.f32 %v12790_v52, %v12791_v38  ;;  %v12867_v9 = vmax.f32 %v12865_v8, %v12866_v26  ;;  %v18133_v7 = vld [vmem:[#allocation19 + $0x28c] ss:$16 sps:$4 sm:$0xff]   ;;  %v18131_v1 = vld [vmem:[#allocation19 + $0x288] ss:$16 sps:$4 sm:$0xff]  }
 0x82f   :  { %v12802_v48 = vpack.c.bf16 %v12780_v21, %v12780_v21  ;;  %v12877_v40 = vpack.c.bf16 %v12855_v45, %v12855_v45  ;;  %v12800_v63 = vrot.slane %v12799_v44, 1  ;;  %v12875_v18 = vrot.slane %v12874_v2, 1  ;;  %v18136_v13 = vld [vmem:[#allocation19 + $0x6c] ss:$16 sps:$4 sm:$0xff]   ;;  %v18134_v4 = vld [vmem:[#allocation19 + $0x68] ss:$16 sps:$4 sm:$0xff]  }
 0x830   :  { %v12787_v58 = vmax.f32 %v12785_v28, %v12786_v46  ;;  %v12862_v11 = vmax.f32 %v12860_v42, %v12861_v61  ;;  %v12793_v50 = vrot.slane %v12792_v37, 1  ;;  %v12868_v5 = vrot.slane %v12867_v9, 1  ;;  %v18139_v32 = vld [vmem:[#allocation19 + $0x26c] ss:$16 sps:$4 sm:$0xff]   ;;  %v18137_v43 = vld [vmem:[#allocation19 + $0x268] ss:$16 sps:$4 sm:$0xff]  }
 0x831   :  { %v21902_v29 = vsel %vm19063_vm12, %v12802_v48, %v12877_v40  ;;  %v12801_v16 = vmax.f32 %v12799_v44, %v12800_v63  ;;  %v12876_v47 = vmax.f32 %v12874_v2, %v12875_v18  ;;  %v18142_v55 = vld [vmem:[#allocation19 + $0x4c] ss:$16 sps:$4 sm:$0xff]   ;;  %v18140_v52 = vld [vmem:[#allocation19 + $0x48] ss:$16 sps:$4 sm:$0xff]  }
 0x832   :  { %v12803_v62 = vpack.c.bf16 %v12787_v58, %v12787_v58  ;;  %v12878_v17 = vpack.c.bf16 %v12862_v11, %v12862_v11  ;;  %v12794_v6 = vmax.f32 %v12792_v37, %v12793_v50  ;;  %v12869_v22 = vmax.f32 %v12867_v9, %v12868_v5  ;;  %v18145_v24 = vld [vmem:[#allocation19 + $0x24c] ss:$16 sps:$4 sm:$0xff]   ;;  %v18143_v57 = vld [vmem:[#allocation19 + $0x248] ss:$16 sps:$4 sm:$0xff]  }
 0x833   :  { %v12805_v3 = vpack.c.bf16 %v12801_v16, %v12801_v16  ;;  %v12880_v27 = vpack.c.bf16 %v12876_v47, %v12876_v47  ;;  %v18148_v8 = vld [vmem:[#allocation19 + $0x2c] ss:$16 sps:$4 sm:$0xff]   ;;  %v18146_v33 = vld [vmem:[#allocation19 + $0x28] ss:$16 sps:$4 sm:$0xff]  }
 0x834   :  { %v12882_v53 = vsel %vm19063_vm12, %v12803_v62, %v12878_v17  ;;  %v12804_v25 = vpack.c.bf16 %v12794_v6, %v12794_v6  ;;  %v12879_v19 = vpack.c.bf16 %v12869_v22, %v12869_v22  ;;  %v18151_v0 = vld [vmem:[#allocation19 + $0x22c] ss:$16 sps:$4 sm:$0xff]   ;;  %v18149_v28 = vld [vmem:[#allocation19 + $0x228] ss:$16 sps:$4 sm:$0xff]  }
 0x835   :  { %13707 = vmatprep.mubr.bf16.mxu0 %v12882_v53  ;;  %v12884_v34 = vsel %vm19063_vm12, %v12805_v3, %v12880_v27  ;;  %v18154_v20 = vld [vmem:[#allocation19 + $0xc] ss:$16 sps:$4 sm:$0xff]   ;;  %v18152_v38 = vld [vmem:[#allocation19 + $0x8] ss:$16 sps:$4 sm:$0xff]  }
 0x836   :  { %13708 = vmatmul.mubr.bf16.vlgmr.msra.gmra.mxu0 %v21902_v29  ;;  %13748 = vmatprep.mubr.bf16.mxu1 %v12884_v34  ;;  %v21911_v56 = vsel %vm19063_vm12, %v12804_v25, %v12879_v19  ;;  %v18157_v42 = vld [vmem:[#allocation19 + $0x20c] ss:$16 sps:$4 sm:$0xff]   ;;  %v18155_v21 = vld [vmem:[#allocation19 + $0x208] ss:$16 sps:$4 sm:$0xff]  }
 0x837   :  { %13758 = vmatpush1.bf16.msra.mxu0 %v18110_v51  ;;  %13789 = vmatprep.mubr.bf16.mxu0 %v12882_v53  ;;  %v18160_v26 = vld [vmem:[#allocation19 + $0x1ec] ss:$16 sps:$4 sm:$0xff]   ;;  %v18158_v44 = vld [vmem:[#allocation19 + $0x1e8] ss:$16 sps:$4 sm:$0xff]  }
 0x838   :  { %13749 = vmatmul.mubr.bf16.vlgmr.msra.gmra.mxu1 %v21911_v56  ;;  %13759 = vmatprep.subr.bf16.mxu0 %v18118_v15  ;;  %v18163_v45 = vld [vmem:[#allocation19 + $0x3ec] ss:$16 sps:$4 sm:$0xff]   ;;  %v18161_v46 = vld [vmem:[#allocation19 + $0x3e8] ss:$16 sps:$4 sm:$0xff]  }
 0x839   :  { %13799 = vmatpush1.bf16.msra.mxu1 %v18113_v35  ;;  %13830 = vmatprep.mubr.bf16.mxu1 %v12884_v34  ;;  %v18166_v2 = vld [vmem:[#allocation19 + $0x1cc] ss:$16 sps:$4 sm:$0xff]   ;;  %v18164_v37 = vld [vmem:[#allocation19 + $0x1c8] ss:$16 sps:$4 sm:$0xff]  }
 0x83a   :  { %13800 = vmatprep.subr.bf16.mxu1 %v18121_v30  ;;  %v18169_v61 = vld [vmem:[#allocation19 + $0x3cc] ss:$16 sps:$4 sm:$0xff]   ;;  %v18167_v48 = vld [vmem:[#allocation19 + $0x3c8] ss:$16 sps:$4 sm:$0xff]  }
 0x83b   :  { %13760 = vmatpush1.bf16.msra.mxu0 %v18116_v36  ;;  %v18172_v9 = vld [vmem:[#allocation19 + $0x1ac] ss:$16 sps:$4 sm:$0xff]   ;;  %v18170_v63 = vld [vmem:[#allocation19 + $0x1a8] ss:$16 sps:$4 sm:$0xff]  }
 0x83c   :  { %13761 = vmatprep.subr.bf16.mxu0 %v18124_v31  ;;  %v18175_v40 = vld [vmem:[#allocation19 + $0x3ac] ss:$16 sps:$4 sm:$0xff]   ;;  %v18173_v58 = vld [vmem:[#allocation19 + $0x3a8] ss:$16 sps:$4 sm:$0xff]   ;;  %v18206_v31 = vld [vmem:[#allocation22 + $0xe0] ss:$16 sps:$4 sm:$0xff]  }
 0x83d   :  { %13801 = vmatpush1.bf16.msra.mxu1 %v18119_v10  ;;  %v18178_v18 = vld [vmem:[#allocation19 + $0x18c] ss:$16 sps:$4 sm:$0xff]   ;;  %v18176_v50 = vld [vmem:[#allocation19 + $0x188] ss:$16 sps:$4 sm:$0xff]  }
 0x83e   :  { %13802 = vmatprep.subr.bf16.mxu1 %v18127_v12  ;;  %v18181_v11 = vld [vmem:[#allocation19 + $0x38c] ss:$16 sps:$4 sm:$0xff]   ;;  %v18179_v16 = vld [vmem:[#allocation19 + $0x388] ss:$16 sps:$4 sm:$0xff]   ;;  %v18209_v12 = vld [vmem:[#allocation22 + $0xc0] ss:$16 sps:$4 sm:$0xff]  }
 0x83f   :  { %13762 = vmatpush1.bf16.msra.mxu0 %v18122_v59  ;;  %v18184_v5 = vld [vmem:[#allocation19 + $0x16c] ss:$16 sps:$4 sm:$0xff]   ;;  %v18182_v62 = vld [vmem:[#allocation19 + $0x168] ss:$16 sps:$4 sm:$0xff]  }
 0x840   :  { %13763 = vmatprep.subr.bf16.mxu0 %v18130_v54  ;;  %v18187_v47 = vld [vmem:[#allocation19 + $0x36c] ss:$16 sps:$4 sm:$0xff]   ;;  %v18185_v6 = vld [vmem:[#allocation19 + $0x368] ss:$16 sps:$4 sm:$0xff]   ;;  %v18212_v54 = vld [vmem:[#allocation22 + $0xa0] ss:$16 sps:$4 sm:$0xff]  }
 0x841   :  { %13803 = vmatpush1.bf16.msra.mxu1 %v18125_v39  ;;  %v18190_v17 = vld [vmem:[#allocation19 + $0x14c] ss:$16 sps:$4 sm:$0xff]   ;;  %v18188_v51 = vld [vmem:[#allocation19 + $0x148] ss:$16 sps:$4 sm:$0xff]  }
 0x842   :  { %13804 = vmatprep.subr.bf16.mxu1 %v18133_v7  ;;  %v18193_v22 = vld [vmem:[#allocation19 + $0x34c] ss:$16 sps:$4 sm:$0xff]   ;;  %v18191_v27 = vld [vmem:[#allocation19 + $0x348] ss:$16 sps:$4 sm:$0xff]   ;;  %v18215_v7 = vld [vmem:[#allocation22 + $0x80] ss:$16 sps:$4 sm:$0xff]  }
 0x843   :  { %13764 = vmatpush1.bf16.msra.mxu0 %v18128_v23  ;;  %v18196_v3 = vld [vmem:[#allocation19 + $0x12c] ss:$16 sps:$4 sm:$0xff]   ;;  %v18194_v25 = vld [vmem:[#allocation19 + $0x128] ss:$16 sps:$4 sm:$0xff]   ;;  %v18254_v23 = vld [vmem:[#allocation22 + $0x2e0] ss:$16 sps:$4 sm:$0xff]  }
 0x844   :  { %13765 = vmatprep.subr.bf16.mxu0 %v18136_v13  ;;  %v18199_v53 = vld [vmem:[#allocation19 + $0x32c] ss:$16 sps:$4 sm:$0xff]   ;;  %v18197_v15 = vld [vmem:[#allocation19 + $0x328] ss:$16 sps:$4 sm:$0xff]  }
 0x845   :  { %13805 = vmatpush1.bf16.msra.mxu1 %v18131_v1  ;;  %v18202_v19 = vld [vmem:[#allocation19 + $0x10c] ss:$16 sps:$4 sm:$0xff]   ;;  %v18200_v35 = vld [vmem:[#allocation19 + $0x108] ss:$16 sps:$4 sm:$0xff]  }
 0x846   :  { %13806 = vmatprep.subr.bf16.mxu1 %v18139_v32  ;;  %v18205_v34 = vld [vmem:[#allocation19 + $0x30c] ss:$16 sps:$4 sm:$0xff]   ;;  %v18208_v30 = vld [vmem:[#allocation22 + $0xe4] ss:$16 sps:$4 sm:$0xff]   ;;  %v18218_v32 = vld [vmem:[#allocation22 + $0x60] ss:$16 sps:$4 sm:$0xff]  }
 0x847   :  { %13766 = vmatpush1.bf16.msra.mxu0 %v18134_v4  ;;  %v18203_v36 = vld [vmem:[#allocation19 + $0x308] ss:$16 sps:$4 sm:$0xff]  }
 0x848   :  { %13767 = vmatprep.subr.bf16.mxu0 %v18142_v55  ;;  %v18211_v10 = vld [vmem:[#allocation22 + $0xc4] ss:$16 sps:$4 sm:$0xff]   ;;  %v18221_v55 = vld [vmem:[#allocation22 + $0x40] ss:$16 sps:$4 sm:$0xff]  }
 0x849   :  { %13807 = vmatpush1.bf16.msra.mxu1 %v18137_v43  ;;  %v18214_v59 = vld [vmem:[#allocation22 + $0xa4] ss:$16 sps:$4 sm:$0xff]   ;;  %v18266_v43 = vld [vmem:[#allocation22 + $0x2a0] ss:$16 sps:$4 sm:$0xff]  }
 0x84a   :  { %13808 = vmatprep.subr.bf16.mxu1 %v18145_v24  ;;  %v18217_v39 = vld [vmem:[#allocation22 + $0x84] ss:$16 sps:$4 sm:$0xff]  }
 0x84b   :  { %13768 = vmatpush1.bf16.msra.mxu0 %v18140_v52  ;;  %v18220_v13 = vld [vmem:[#allocation22 + $0x64] ss:$16 sps:$4 sm:$0xff]  }
 0x84c   :  { %13769 = vmatprep.subr.bf16.mxu0 %v18148_v8  ;;  %v18256_v1 = vld [vmem:[#allocation22 + $0x2e4] ss:$16 sps:$4 sm:$0xff]   ;;  %v18224_v8 = vld [vmem:[#allocation22 + $0x20] ss:$16 sps:$4 sm:$0xff]  }
 0x84d   :  { %13809 = vmatpush1.bf16.msra.mxu1 %v18143_v57  ;;  %v18262_v4 = vld [vmem:[#allocation22 + $0x2c4] ss:$16 sps:$4 sm:$0xff]   ;;  %v18272_v57 = vld [vmem:[#allocation22 + $0x280] ss:$16 sps:$4 sm:$0xff]  }
 0x84e   :  { %13810 = vmatprep.subr.bf16.mxu1 %v18151_v0  ;;  %v18268_v24 = vld [vmem:[#allocation22 + $0x2a4] ss:$16 sps:$4 sm:$0xff]  }
 0x84f   :  { %13770 = vmatpush1.bf16.msra.mxu0 %v18146_v33  ;;  %v18226_v52 = vld [vmem:[#allocation22 + $0x24] ss:$16 sps:$4 sm:$0xff]  }
 0x850   :  { %13771 = vmatprep.subr.bf16.mxu0 %v18154_v20  ;;  %v18274_v0 = vld [vmem:[#allocation22 + $0x284] ss:$16 sps:$4 sm:$0xff]   ;;  %v18227_v20 = vld [vmem:[#allocation22] ss:$16 sps:$4 sm:$0xff]  }
 0x851   :  { %13811 = vmatpush1.bf16.msra.mxu1 %v18149_v28  ;;  %v18229_v33 = vld [vmem:[#allocation22 + $0x4] ss:$16 sps:$4 sm:$0xff]   ;;  %v18278_v28 = vld [vmem:[#allocation22 + $0x260] ss:$16 sps:$4 sm:$0xff]  }
 0x852   :  { %13812 = vmatprep.subr.bf16.mxu1 %v18157_v42  ;;  %v18280_v42 = vld [vmem:[#allocation22 + $0x264] ss:$16 sps:$4 sm:$0xff]  }
 0x853   :  { %13772 = vmatpush1.bf16.msra.mxu0 %v18152_v38  ;;  %v18232_v38 = vld [vmem:[#allocation22 + $0x1e4] ss:$16 sps:$4 sm:$0xff]  }
 0x854   :  { %13773 = vmatprep.subr.bf16.mxu0 %v18160_v26  ;;  %v18230_v26 = vld [vmem:[#allocation22 + $0x1e0] ss:$16 sps:$4 sm:$0xff]  }
 0x855   :  { %13813 = vmatpush1.bf16.msra.mxu1 %v18155_v21  ;;  %v18284_v21 = vld [vmem:[#allocation22 + $0x240] ss:$16 sps:$4 sm:$0xff]  }
 0x856   :  { %13814 = vmatprep.subr.bf16.mxu1 %v18163_v45  ;;  %v18286_v45 = vld [vmem:[#allocation22 + $0x244] ss:$16 sps:$4 sm:$0xff]  }
 0x857   :  { %13774 = vmatpush2.bf16.msra.mxu0 %v18158_v44  ;;  %v18235_v44 = vld [vmem:[#allocation22 + $0x1c4] ss:$16 sps:$4 sm:$0xff]  }
 0x858   :  { %13775 = vmatprep.subr.bf16.mxu0 %v18166_v2  ;;  %v18233_v2 = vld [vmem:[#allocation22 + $0x1c0] ss:$16 sps:$4 sm:$0xff]  }
 0x859   :  { %13815 = vmatpush2.bf16.msra.mxu1 %v18161_v46  ;;  %v18290_v46 = vld [vmem:[#allocation22 + $0x220] ss:$16 sps:$4 sm:$0xff]  }
 0x85a   :  { %13816 = vmatprep.subr.bf16.mxu1 %v18169_v61  ;;  %v18292_v61 = vld [vmem:[#allocation22 + $0x224] ss:$16 sps:$4 sm:$0xff]  }
 0x85b   :  { %13776 = vmatpush2.bf16.msra.mxu0 %v18164_v37  ;;  %v18238_v37 = vld [vmem:[#allocation22 + $0x1a4] ss:$16 sps:$4 sm:$0xff]  }
 0x85c   :  { %13777 = vmatprep.subr.bf16.mxu0 %v18172_v9  ;;  %v18236_v9 = vld [vmem:[#allocation22 + $0x1a0] ss:$16 sps:$4 sm:$0xff]  }
 0x85d   :  { %13817 = vmatpush2.bf16.msra.mxu1 %v18167_v48  ;;  %v18296_v48 = vld [vmem:[#allocation22 + $0x200] ss:$16 sps:$4 sm:$0xff]  }
 0x85e   :  { %13818 = vmatprep.subr.bf16.mxu1 %v18175_v40  ;;  %v18298_v40 = vld [vmem:[#allocation22 + $0x204] ss:$16 sps:$4 sm:$0xff]  }
 0x85f   :  { %13778 = vmatpush2.bf16.msra.mxu0 %v18170_v63  ;;  %v18241_v63 = vld [vmem:[#allocation22 + $0x184] ss:$16 sps:$4 sm:$0xff]  }
 0x860   :  { %13779 = vmatprep.subr.bf16.mxu0 %v18178_v18  ;;  %v18239_v18 = vld [vmem:[#allocation22 + $0x180] ss:$16 sps:$4 sm:$0xff]  }
 0x861   :  { %13819 = vmatpush2.bf16.msra.mxu1 %v18173_v58  ;;  %v18302_v58 = vld [vmem:[#allocation22 + $0x3e0] ss:$16 sps:$4 sm:$0xff]  }
 0x862   :  { %13820 = vmatprep.subr.bf16.mxu1 %v18181_v11  ;;  %v18304_v11 = vld [vmem:[#allocation22 + $0x3e4] ss:$16 sps:$4 sm:$0xff]  }
 0x863   :  { %13780 = vmatpush2.bf16.msra.mxu0 %v18176_v50  ;;  %v18244_v50 = vld [vmem:[#allocation22 + $0x164] ss:$16 sps:$4 sm:$0xff]  }
 0x864   :  { %13781 = vmatprep.subr.bf16.mxu0 %v18184_v5  ;;  %v18242_v5 = vld [vmem:[#allocation22 + $0x160] ss:$16 sps:$4 sm:$0xff]  }
 0x865   :  { %13821 = vmatpush2.bf16.msra.mxu1 %v18179_v16  ;;  %v18308_v16 = vld [vmem:[#allocation22 + $0x3c0] ss:$16 sps:$4 sm:$0xff]  }
 0x866   :  { %13822 = vmatprep.subr.bf16.mxu1 %v18187_v47  ;;  %v18310_v47 = vld [vmem:[#allocation22 + $0x3c4] ss:$16 sps:$4 sm:$0xff]  }
 0x867   :  { %13782 = vmatpush2.bf16.msra.mxu0 %v18182_v62  ;;  %v18247_v62 = vld [vmem:[#allocation22 + $0x144] ss:$16 sps:$4 sm:$0xff]  }
 0x868   :  { %13783 = vmatprep.subr.bf16.mxu0 %v18190_v17  ;;  %v18245_v17 = vld [vmem:[#allocation22 + $0x140] ss:$16 sps:$4 sm:$0xff]  }
 0x869   :  { %13823 = vmatpush2.bf16.msra.mxu1 %v18185_v6  ;;  %v18314_v6 = vld [vmem:[#allocation22 + $0x3a0] ss:$16 sps:$4 sm:$0xff]  }
 0x86a   :  { %13824 = vmatprep.subr.bf16.mxu1 %v18193_v22  ;;  %v18316_v22 = vld [vmem:[#allocation22 + $0x3a4] ss:$16 sps:$4 sm:$0xff]  }
 0x86b   :  { %13784 = vmatpush2.bf16.msra.mxu0 %v18188_v51  ;;  %v18250_v51 = vld [vmem:[#allocation22 + $0x124] ss:$16 sps:$4 sm:$0xff]  }
 0x86c   :  { %13785 = vmatprep.subr.bf16.mxu0 %v18196_v3  ;;  %v18248_v3 = vld [vmem:[#allocation22 + $0x120] ss:$16 sps:$4 sm:$0xff]  }
 0x86d   :  { %13825 = vmatpush2.bf16.msra.mxu1 %v18191_v27  ;;  %v18320_v27 = vld [vmem:[#allocation22 + $0x380] ss:$16 sps:$4 sm:$0xff]  }
 0x86e   :  { %13826 = vmatprep.subr.bf16.mxu1 %v18199_v53  ;;  %v18322_v53 = vld [vmem:[#allocation22 + $0x384] ss:$16 sps:$4 sm:$0xff]  }
 0x86f   :  { %13786 = vmatpush2.bf16.msra.mxu0 %v18194_v25  ;;  %v18253_v25 = vld [vmem:[#allocation22 + $0x104] ss:$16 sps:$4 sm:$0xff]  }
 0x870   :  { %13787 = vmatprep.subr.bf16.mxu0 %v18202_v19  ;;  %v18251_v19 = vld [vmem:[#allocation22 + $0x100] ss:$16 sps:$4 sm:$0xff]  }
 0x871   :  { %13827 = vmatpush2.bf16.msra.mxu1 %v18197_v15  ;;  %v18326_v15 = vld [vmem:[#allocation22 + $0x360] ss:$16 sps:$4 sm:$0xff]  }
 0x872   :  { %13828 = vmatprep.subr.bf16.mxu1 %v18205_v34  ;;  %v18328_v34 = vld [vmem:[#allocation22 + $0x364] ss:$16 sps:$4 sm:$0xff]  }
 0x873   :  { %13788 = vmatpush2.bf16.msra.mxu0 %v18200_v35  ;;  %v18259_v35 = vld [vmem:[#allocation22 + $0xec] ss:$16 sps:$4 sm:$0xff]  }
 0x874   :  { %14637 = vmatprep.subr.bf16.mxu0 %v18208_v30  ;;  %v18332_v30 = vld [vmem:[#allocation22 + $0x340] ss:$16 sps:$4 sm:$0xff]  }
 0x875   :  { %13829 = vmatpush2.bf16.msra.mxu1 %v18203_v36  ;;  %v18334_v36 = vld [vmem:[#allocation22 + $0x344] ss:$16 sps:$4 sm:$0xff]  }
 0x876   :  { %13790 = vmatmul.mubr.bf16.vlgmr.msra.gmra.mxu0 %v21902_v29  ;;  %14678 = vmatprep.subr.bf16.mxu1 %v18256_v1  ;;  %v18260_v29 = vld [vmem:[#allocation22 + $0x2c0] ss:$16 sps:$4 sm:$0xff]  }
 0x877   :  { %14638 = vmatpush1.bf16.msra.mxu0 %v18206_v31  ;;  %v18338_v31 = vld [vmem:[#allocation22 + $0x320] ss:$16 sps:$4 sm:$0xff]  }
 0x878   :  { %13831 = vmatmul.mubr.bf16.vlgmr.msra.gmra.mxu1 %v21911_v56  ;;  %14639 = vmatprep.subr.bf16.mxu0 %v18211_v10  ;;  %v18223_v56 = vld [vmem:[#allocation22 + $0x44] ss:$16 sps:$4 sm:$0xff]  }
 0x879   :  { %14679 = vmatpush1.bf16.msra.mxu1 %v18254_v23  ;;  %v18340_v10 = vld [vmem:[#allocation22 + $0x324] ss:$16 sps:$4 sm:$0xff]  }
 0x87a   :  { %14680 = vmatprep.subr.bf16.mxu1 %v18262_v4 }
 0x87b   :  { %14640 = vmatpush1.bf16.msra.mxu0 %v18209_v12  ;;  %v18344_v12 = vld [vmem:[#allocation22 + $0x300] ss:$16 sps:$4 sm:$0xff]  }
 0x87c   :  { %14641 = vmatprep.subr.bf16.mxu0 %v18214_v59  ;;  %v18346_v59 = vld [vmem:[#allocation22 + $0x304] ss:$16 sps:$4 sm:$0xff]  }
 0x87d   :  { %14681 = vmatpush1.bf16.msra.mxu1 %v18260_v29 }
 0x87e   :  { %14682 = vmatprep.subr.bf16.mxu1 %v18268_v24 }
 0x87f   :  { %14642 = vmatpush1.bf16.msra.mxu0 %v18212_v54  ;;  %v18352_v54 = vld [vmem:[#allocation22 + $0x2ec] ss:$16 sps:$4 sm:$0xff]  }
 0x880   :  { %14643 = vmatprep.subr.bf16.mxu0 %v18217_v39  ;;  %v21916_v39 = vld [vmem:[#allocation20] sm:$0xf] }
 0x881   :  { %14683 = vmatpush1.bf16.msra.mxu1 %v18266_v43  ;;  %v13022_v23 = vrot.slane %v21916_v39, %v21768_v41 }
 0x882   :  { %14684 = vmatprep.subr.bf16.mxu1 %v18274_v0 }
 0x883   :  { %14644 = vmatpush1.bf16.msra.mxu0 %v18215_v7  ;;  %v13018_v7 = vrot.slane %v21916_v39, %v21754_v49 }
 0x884   :  { %14645 = vmatprep.subr.bf16.mxu0 %v18220_v13 }
 0x885   :  { %14685 = vmatpush1.bf16.msra.mxu1 %v18272_v57 }
 0x886   :  { %14686 = vmatprep.subr.bf16.mxu1 %v18280_v42 }
 0x887   :  { %14646 = vmatpush1.bf16.msra.mxu0 %v18218_v32 }
 0x888   :  { %14647 = vmatprep.subr.bf16.mxu0 %v18223_v56 }
 0x889   :  { %14687 = vmatpush1.bf16.msra.mxu1 %v18278_v28  ;;  %v18257_v28 = vld [vmem:[#allocation22 + $0xe8] ss:$16 sps:$4 sm:$0xff]  }
 0x88a   :  { %14688 = vmatprep.subr.bf16.mxu1 %v18286_v45  ;;  %v18269_v45 = vld [vmem:[#allocation22 + $0xa8] ss:$16 sps:$4 sm:$0xff]  }
 0x88b   :  { %14648 = vmatpush1.bf16.msra.mxu0 %v18221_v55 }
 0x88c   :  { %14649 = vmatprep.subr.bf16.mxu0 %v18226_v52 }
 0x88d   :  { %14689 = vmatpush1.bf16.msra.mxu1 %v18284_v21  ;;  %v18271_v21 = vld [vmem:[#allocation22 + $0xac] ss:$16 sps:$4 sm:$0xff]  }
 0x88e   :  { %14690 = vmatprep.subr.bf16.mxu1 %v18292_v61  ;;  %v18281_v61 = vld [vmem:[#allocation22 + $0x68] ss:$16 sps:$4 sm:$0xff]  }
 0x88f   :  { %14650 = vmatpush1.bf16.msra.mxu0 %v18224_v8 }
 0x890   :  { %14651 = vmatprep.subr.bf16.mxu0 %v18229_v33 }
 0x891   :  { %14691 = vmatpush1.bf16.msra.mxu1 %v18290_v46  ;;  %v18283_v46 = vld [vmem:[#allocation22 + $0x6c] ss:$16 sps:$4 sm:$0xff]  }
 0x892   :  { %14692 = vmatprep.subr.bf16.mxu1 %v18298_v40  ;;  %v18293_v40 = vld [vmem:[#allocation22 + $0x28] ss:$16 sps:$4 sm:$0xff]  }
 0x893   :  { %14652 = vmatpush1.bf16.msra.mxu0 %v18227_v20 }
 0x894   :  { %14653 = vmatprep.subr.bf16.mxu0 %v18232_v38  ;;  %v18265_v38 = vld [vmem:[#allocation22 + $0xcc] ss:$16 sps:$4 sm:$0xff]  }
 0x895   :  { %14693 = vmatpush1.bf16.msra.mxu1 %v18296_v48  ;;  %v18295_v48 = vld [vmem:[#allocation22 + $0x2c] ss:$16 sps:$4 sm:$0xff]  }
 0x896   :  { %14694 = vmatprep.subr.bf16.mxu1 %v18304_v11  ;;  %v18305_v11 = vld [vmem:[#allocation22 + $0x1e8] ss:$16 sps:$4 sm:$0xff]  }
 0x897   :  { %14654 = vmatpush2.bf16.msra.mxu0 %v18230_v26  ;;  %v18263_v26 = vld [vmem:[#allocation22 + $0xc8] ss:$16 sps:$4 sm:$0xff]  }
 0x898   :  { %14655 = vmatprep.subr.bf16.mxu0 %v18235_v44  ;;  %v18277_v44 = vld [vmem:[#allocation22 + $0x8c] ss:$16 sps:$4 sm:$0xff]  }
 0x899   :  { %14695 = vmatpush2.bf16.msra.mxu1 %v18302_v58  ;;  %v18307_v58 = vld [vmem:[#allocation22 + $0x1ec] ss:$16 sps:$4 sm:$0xff]  }
 0x89a   :  { %14696 = vmatprep.subr.bf16.mxu1 %v18310_v47  ;;  %v18317_v47 = vld [vmem:[#allocation22 + $0x1a8] ss:$16 sps:$4 sm:$0xff]  }
 0x89b   :  { %14656 = vmatpush2.bf16.msra.mxu0 %v18233_v2  ;;  %v18275_v2 = vld [vmem:[#allocation22 + $0x88] ss:$16 sps:$4 sm:$0xff]  }
 0x89c   :  { %14657 = vmatprep.subr.bf16.mxu0 %v18238_v37  ;;  %v18289_v37 = vld [vmem:[#allocation22 + $0x4c] ss:$16 sps:$4 sm:$0xff]  }
 0x89d   :  { %14697 = vmatpush2.bf16.msra.mxu1 %v18308_v16  ;;  %v18319_v16 = vld [vmem:[#allocation22 + $0x1ac] ss:$16 sps:$4 sm:$0xff]  }
 0x89e   :  { %14698 = vmatprep.subr.bf16.mxu1 %v18316_v22  ;;  %v18329_v22 = vld [vmem:[#allocation22 + $0x168] ss:$16 sps:$4 sm:$0xff]  }
 0x89f   :  { %14658 = vmatpush2.bf16.msra.mxu0 %v18236_v9  ;;  %v18287_v9 = vld [vmem:[#allocation22 + $0x48] ss:$16 sps:$4 sm:$0xff]  }
 0x8a0   :  { %14659 = vmatprep.subr.bf16.mxu0 %v18241_v63  ;;  %v18301_v63 = vld [vmem:[#allocation22 + $0xc] ss:$16 sps:$4 sm:$0xff]  }
 0x8a1   :  { %14699 = vmatpush2.bf16.msra.mxu1 %v18314_v6  ;;  %v18331_v6 = vld [vmem:[#allocation22 + $0x16c] ss:$16 sps:$4 sm:$0xff]  }
 0x8a2   :  { %14700 = vmatprep.subr.bf16.mxu1 %v18322_v53  ;;  %v18343_v53 = vld [vmem:[#allocation22 + $0x12c] ss:$16 sps:$4 sm:$0xff]  }
 0x8a3   :  { %14660 = vmatpush2.bf16.msra.mxu0 %v18239_v18  ;;  %v18299_v18 = vld [vmem:[#allocation22 + $0x8] ss:$16 sps:$4 sm:$0xff]  }
 0x8a4   :  { %14661 = vmatprep.subr.bf16.mxu0 %v18244_v50  ;;  %v18313_v50 = vld [vmem:[#allocation22 + $0x1cc] ss:$16 sps:$4 sm:$0xff]  }
 0x8a5   :  { %14701 = vmatpush2.bf16.msra.mxu1 %v18320_v27  ;;  %v18335_v27 = vld [vmem:[#allocation22 + $0x148] ss:$16 sps:$4 sm:$0xff]  }
 0x8a6   :  { %14702 = vmatprep.subr.bf16.mxu1 %v18328_v34  ;;  %v18341_v34 = vld [vmem:[#allocation22 + $0x128] ss:$16 sps:$4 sm:$0xff]  }
 0x8a7   :  { %14662 = vmatpush2.bf16.msra.mxu0 %v18242_v5  ;;  %v18311_v5 = vld [vmem:[#allocation22 + $0x1c8] ss:$16 sps:$4 sm:$0xff]  }
 0x8a8   :  { %14663 = vmatprep.subr.bf16.mxu0 %v18247_v62  ;;  %v18325_v62 = vld [vmem:[#allocation22 + $0x18c] ss:$16 sps:$4 sm:$0xff]  }
 0x8a9   :  { %14703 = vmatpush2.bf16.msra.mxu1 %v18326_v15 }
 0x8aa   :  { %14704 = vmatprep.subr.bf16.mxu1 %v18334_v36  ;;  %v18349_v36 = vld [vmem:[#allocation22 + $0x10c] ss:$16 sps:$4 sm:$0xff]  }
 0x8ab   :  { %14664 = vmatpush2.bf16.msra.mxu0 %v18245_v17  ;;  %v18323_v17 = vld [vmem:[#allocation22 + $0x188] ss:$16 sps:$4 sm:$0xff]  }
 0x8ac   :  { %14665 = vmatprep.subr.bf16.mxu0 %v18250_v51  ;;  %v18337_v51 = vld [vmem:[#allocation22 + $0x14c] ss:$16 sps:$4 sm:$0xff]  }
 0x8ad   :  { %14705 = vmatpush2.bf16.msra.mxu1 %v18332_v30 }
 0x8ae   :  { %14706 = vmatprep.subr.bf16.mxu1 %v18340_v10 }
 0x8af   :  { %14666 = vmatpush2.bf16.msra.mxu0 %v18248_v3  ;;  %v13026_v3 = vrot.slane %v21916_v39, %v21872_v14 }
 0x8b0   :  { %14667 = vmatprep.subr.bf16.mxu0 %v18253_v25  ;;  %v13030_v25 = vrot.slane %v21916_v39, %v21875_v60 }
 0x8b1   :  { %14707 = vmatpush2.bf16.msra.mxu1 %v18338_v31 }
 0x8b2   :  { %14708 = vmatprep.subr.bf16.mxu1 %v18346_v59 }
 0x8b3   :  { %14668 = vmatpush2.bf16.msra.mxu0 %v18251_v19 }
 0x8b4   :  { %14719 = vmatprep.subr.bf16.mxu0 %v18259_v35 }
 0x8b5   :  { %14709 = vmatpush2.bf16.msra.mxu1 %v18344_v12 }
 0x8b6   :  { %14760 = vmatprep.subr.bf16.mxu1 %v18352_v54 }
 0x8f6   :  { %v13709_v13 = vpop.f32.mrf.mxu0 }
 0x8f7   :  { %v13710_v1 = vadd.f32 %v13709_v13, %v13018_v7  ;;  %v18347_v7 = vld [vmem:[#allocation22 + $0x108] ss:$16 sps:$4 sm:$0xff]  }
 0x8f8   :  { %v13711_v32 = vpop.f32.mrf.mxu0  ;;  %v13750_v29 = vpop.f32.mrf.mxu1 }
 0x8f9   :  { %v13712_v4 = vadd.f32 %v13711_v32, %v13022_v23  ;;  %v13751_v56 = vadd.f32 %v13750_v29, %v13710_v1 }
 0x8fa   :  { %v13713_v55 = vpop.f32.mrf.mxu0  ;;  %v13752_v43 = vpop.f32.mrf.mxu1 }
 0x8fb   :  { %v13753_v24 = vadd.f32 %v13752_v43, %v13712_v4  ;;  %v13839_v52 = vmax.f32 %v13751_v56, 0.0  ;;  %v18350_v4 = vld [vmem:[#allocation22 + $0x2e8] ss:$16 sps:$4 sm:$0xff]   ;;  %v18355_v55 = vld [vmem:[#allocation22 + $0x2cc] ss:$16 sps:$4 sm:$0xff]  }
 0x8fc   :  { %v13714_v8 = vpop.f32.mrf.mxu0  ;;  %v13754_v57 = vpop.f32.mrf.mxu1  ;;  %v18353_v43 = vld [vmem:[#allocation22 + $0x2c8] ss:$16 sps:$4 sm:$0xff]  }
 0x8fd   :  { %v13840_v0 = vmax.f32 %v13753_v24, 0.0  ;;  %v21922_v42 = vpack.c.bf16 %v13839_v52, %v13839_v52  ;;  %v18358_v24 = vld [vmem:[#allocation22 + $0x2ac] ss:$16 sps:$4 sm:$0xff]   ;;  %v18356_v52 = vld [vmem:[#allocation22 + $0x2a8] ss:$16 sps:$4 sm:$0xff]  }
 0x8fe   :  { %v13755_v33 = vpop.f32.mrf.mxu1  ;;  %v18361_v8 = vld [vmem:[#allocation22 + $0x28c] ss:$16 sps:$4 sm:$0xff]  }
 0x8ff   :  { %v13844_v20 = vpack.c.bf16 %v13840_v0, %v13840_v0  ;;  %v18398_v57 = vld [vmem:[#allocation25 + $0x78] sm:$0xff]   ;;  %v18400_v33 = vld [vmem:[#allocation25 + $0x70] sm:$0xff]  }
 0x900   :  { %v18399_v0 = vld [vmem:[#allocation25 + $0x38] sm:$0xff]  }
 0x901   :  { %14669 = vmatprep.mubr.bf16.mxu0 %v13844_v20 }
 0x902   :  { %14670 = vmatmul.mubr.bf16.vlgmr.msra.gmra.mxu0 %v21922_v42 }
 0x903   :  { %14720 = vmatpush1.bf16.msra.mxu0 %v18257_v28  ;;  %14751 = vmatprep.mubr.bf16.mxu0 %v13844_v20  ;;  %v18359_v20 = vld [vmem:[#allocation22 + $0x288] ss:$16 sps:$4 sm:$0xff]  }
 0x904   :  { %14721 = vmatprep.subr.bf16.mxu0 %v18265_v38  ;;  %v18401_v28 = vld [vmem:[#allocation25 + $0x30] sm:$0xff]   ;;  %v18364_v38 = vld [vmem:[#allocation22 + $0x26c] ss:$16 sps:$4 sm:$0xff]  }
 0x907   :  { %14722 = vmatpush1.bf16.msra.mxu0 %v18263_v26  ;;  %v18362_v26 = vld [vmem:[#allocation22 + $0x268] ss:$16 sps:$4 sm:$0xff]  }
 0x908   :  { %14723 = vmatprep.subr.bf16.mxu0 %v18271_v21  ;;  %v18403_v21 = vld [vmem:[#allocation25 + $0x28] sm:$0xff]  }
 0x90b   :  { %14724 = vmatpush1.bf16.msra.mxu0 %v18269_v45  ;;  %v18367_v45 = vld [vmem:[#allocation22 + $0x24c] ss:$16 sps:$4 sm:$0xff]  }
 0x90c   :  { %14725 = vmatprep.subr.bf16.mxu0 %v18277_v44  ;;  %v18404_v44 = vld [vmem:[#allocation25 + $0x60] sm:$0xff]  }
 0x90f   :  { %14726 = vmatpush1.bf16.msra.mxu0 %v18275_v2  ;;  %v18365_v2 = vld [vmem:[#allocation22 + $0x248] ss:$16 sps:$4 sm:$0xff]  }
 0x910   :  { %14727 = vmatprep.subr.bf16.mxu0 %v18283_v46  ;;  %v18405_v46 = vld [vmem:[#allocation25 + $0x20] sm:$0xff]  }
 0x913   :  { %14728 = vmatpush1.bf16.msra.mxu0 %v18281_v61  ;;  %v18370_v61 = vld [vmem:[#allocation22 + $0x22c] ss:$16 sps:$4 sm:$0xff]  }
 0x914   :  { %14729 = vmatprep.subr.bf16.mxu0 %v18289_v37  ;;  %v18406_v37 = vld [vmem:[#allocation25 + $0x58] sm:$0xff]  }
 0x917   :  { %14730 = vmatpush1.bf16.msra.mxu0 %v18287_v9  ;;  %v18368_v9 = vld [vmem:[#allocation22 + $0x228] ss:$16 sps:$4 sm:$0xff]  }
 0x918   :  { %14731 = vmatprep.subr.bf16.mxu0 %v18295_v48  ;;  %v18407_v48 = vld [vmem:[#allocation25 + $0x18] sm:$0xff]  }
 0x91b   :  { %14732 = vmatpush1.bf16.msra.mxu0 %v18293_v40  ;;  %v18373_v40 = vld [vmem:[#allocation22 + $0x20c] ss:$16 sps:$4 sm:$0xff]  }
 0x91c   :  { %14733 = vmatprep.subr.bf16.mxu0 %v18301_v63  ;;  %v18408_v63 = vld [vmem:[#allocation25 + $0x50] sm:$0xff]  }
 0x91f   :  { %14734 = vmatpush1.bf16.msra.mxu0 %v18299_v18  ;;  %v18371_v18 = vld [vmem:[#allocation22 + $0x208] ss:$16 sps:$4 sm:$0xff]  }
 0x920   :  { %14735 = vmatprep.subr.bf16.mxu0 %v18307_v58  ;;  %v18409_v58 = vld [vmem:[#allocation25 + $0x10] sm:$0xff]  }
 0x923   :  { %14736 = vmatpush2.bf16.msra.mxu0 %v18305_v11  ;;  %v18376_v11 = vld [vmem:[#allocation22 + $0x3ec] ss:$16 sps:$4 sm:$0xff]  }
 0x924   :  { %14737 = vmatprep.subr.bf16.mxu0 %v18313_v50  ;;  %v18374_v50 = vld [vmem:[#allocation22 + $0x3e8] ss:$16 sps:$4 sm:$0xff]  }
 0x927   :  { %14738 = vmatpush2.bf16.msra.mxu0 %v18311_v5  ;;  %v18379_v5 = vld [vmem:[#allocation22 + $0x3cc] ss:$16 sps:$4 sm:$0xff]  }
 0x928   :  { %14739 = vmatprep.subr.bf16.mxu0 %v18319_v16  ;;  %v18377_v16 = vld [vmem:[#allocation22 + $0x3c8] ss:$16 sps:$4 sm:$0xff]  }
 0x92b   :  { %14740 = vmatpush2.bf16.msra.mxu0 %v18317_v47  ;;  %v18382_v47 = vld [vmem:[#allocation22 + $0x3ac] ss:$16 sps:$4 sm:$0xff]  }
 0x92c   :  { %14741 = vmatprep.subr.bf16.mxu0 %v18325_v62  ;;  %v18380_v62 = vld [vmem:[#allocation22 + $0x3a8] ss:$16 sps:$4 sm:$0xff]  }
 0x92f   :  { %14742 = vmatpush2.bf16.msra.mxu0 %v18323_v17  ;;  %v18385_v17 = vld [vmem:[#allocation22 + $0x38c] ss:$16 sps:$4 sm:$0xff]  }
 0x930   :  { %14743 = vmatprep.subr.bf16.mxu0 %v18331_v6  ;;  %v18383_v6 = vld [vmem:[#allocation22 + $0x388] ss:$16 sps:$4 sm:$0xff]  }
 0x933   :  { %14744 = vmatpush2.bf16.msra.mxu0 %v18329_v22  ;;  %v18388_v22 = vld [vmem:[#allocation22 + $0x36c] ss:$16 sps:$4 sm:$0xff]  }
 0x934   :  { %14745 = vmatprep.subr.bf16.mxu0 %v18337_v51  ;;  %v18386_v51 = vld [vmem:[#allocation22 + $0x368] ss:$16 sps:$4 sm:$0xff]  }
 0x936   :  { %v13791_v19 = vpop.f32.mrf.mxu0 }
 0x937   :  { %v13792_v15 = vadd.f32 %v13791_v19, %v13026_v3  ;;  %14746 = vmatpush2.bf16.msra.mxu0 %v18335_v27  ;;  %v18391_v3 = vld [vmem:[#allocation22 + $0x34c] ss:$16 sps:$4 sm:$0xff]   ;;  %v18389_v27 = vld [vmem:[#allocation22 + $0x348] ss:$16 sps:$4 sm:$0xff]  }
 0x938   :  { %v13793_v35 = vpop.f32.mrf.mxu0  ;;  %v13832_v30 = vpop.f32.mrf.mxu1  ;;  %14747 = vmatprep.subr.bf16.mxu0 %v18343_v53  ;;  %v18394_v53 = vld [vmem:[#allocation22 + $0x32c] ss:$16 sps:$4 sm:$0xff]  }
 0x939   :  { %v13794_v31 = vadd.f32 %v13793_v35, %v13030_v25  ;;  %v13833_v10 = vadd.f32 %v13832_v30, %v13792_v15  ;;  %v18392_v25 = vld [vmem:[#allocation22 + $0x328] ss:$16 sps:$4 sm:$0xff]   ;;  %v18397_v19 = vld [vmem:[#allocation22 + $0x30c] ss:$16 sps:$4 sm:$0xff]  }
 0x93a   :  { %v13795_v12 = vpop.f32.mrf.mxu0  ;;  %v13834_v59 = vpop.f32.mrf.mxu1  ;;  %v18395_v15 = vld [vmem:[#allocation22 + $0x308] ss:$16 sps:$4 sm:$0xff]   ;;  %v18411_v35 = vld [vmem:[#allocation25 + $0x8] sm:$0xff]  }
 0x93b   :  { %v13835_v54 = vadd.f32 %v13834_v59, %v13794_v31  ;;  %14748 = vmatpush2.bf16.msra.mxu0 %v18341_v34  ;;  %v13841_v23 = vmax.f32 %v13833_v10, 0.0  ;;  %v18410_v34 = vld [vmem:[#allocation25 + $0x48] sm:$0xff]   ;;  %v18412_v30 = vld [vmem:[#allocation25 + $0x40] sm:$0xff]   ;;  %v18414_v31 = vld [vmem:[#allocation25 + $0xf8] sm:$0xff]  }
 0x93c   :  { %v13796_v13 = vpop.f32.mrf.mxu0  ;;  %v13836_v1 = vpop.f32.mrf.mxu1  ;;  %14749 = vmatprep.subr.bf16.mxu0 %v18349_v36  ;;  %v18413_v36 = vld [vmem:[#allocation25] sm:$0xff]   ;;  %v18415_v10 = vld [vmem:[#allocation25 + $0xb8] sm:$0xff]   ;;  %v18416_v12 = vld [vmem:[#allocation25 + $0xf0] sm:$0xff]  }
 0x93d   :  { %v13842_v39 = vmax.f32 %v13835_v54, 0.0  ;;  %v21929_v56 = vpack.c.bf16 %v13841_v23, %v13841_v23  ;;  %v18417_v59 = vld [vmem:[#allocation25 + $0xb0] sm:$0xff]   ;;  %v18418_v54 = vld [vmem:[#allocation25 + $0xe8] sm:$0xff]   ;;  %v18420_v23 = vld [vmem:[#allocation25 + $0xe0] sm:$0xff]  }
 0x93e   :  { %v13837_v32 = vpop.f32.mrf.mxu1  ;;  %v18421_v13 = vld [vmem:[#allocation25 + $0xa0] sm:$0xff]   ;;  %v18422_v1 = vld [vmem:[#allocation25 + $0xd8] sm:$0xff]  }
 0x93f   :  { %v13846_v29 = vpack.c.bf16 %v13842_v39, %v13842_v39  ;;  %14750 = vmatpush2.bf16.msra.mxu0 %v18347_v7  ;;  %v18419_v7 = vld [vmem:[#allocation25 + $0xa8] sm:$0xff]   ;;  %v18423_v39 = vld [vmem:[#allocation25 + $0x98] sm:$0xff]   ;;  %v18424_v32 = vld [vmem:[#allocation25 + $0xd0] sm:$0xff]  }
 0x940   :  { %17065 = vmatprep.subr.bf16.mxu0 %v18398_v57  ;;  %v18429_v57 = vld [vmem:[#allocation25 + $0x80] sm:$0xff]  }
 0x941   :  { %14710 = vmatprep.mubr.bf16.mxu1 %v13846_v29 }
 0x942   :  { %14711 = vmatmul.mubr.bf16.vlgmr.msra.gmra.mxu1 %v21929_v56  ;;  %14752 = vmatmul.mubr.bf16.vlgmr.msra.gmra.mxu0 %v21922_v42  ;;  %v18402_v42 = vld [vmem:[#allocation25 + $0x68] sm:$0xff]  }
 0x943   :  { %14761 = vmatpush1.bf16.msra.mxu1 %v18350_v4  ;;  %14792 = vmatprep.mubr.bf16.mxu1 %v13846_v29  ;;  %v18425_v29 = vld [vmem:[#allocation25 + $0x90] sm:$0xff]  }
 0x944   :  { %14762 = vmatprep.subr.bf16.mxu1 %v18355_v55  ;;  %17066 = vmatpush3.bf16.msra.mxu0 %v18399_v0  ;;  %v13975_v0 = vld [vmem:[#allocation23] sm:$0xf] }
 0x945   :  { %17067 = vmatprep.subr.bf16.mxu0 %v18400_v33  ;;  %v13980_v33 = vrot.slane %v13975_v0, %v21754_v49  ;;  %v13988_v49 = vrot.slane %v13975_v0, %v21872_v14 }
 0x947   :  { %14763 = vmatpush1.bf16.msra.mxu1 %v18353_v43 }
 0x948   :  { %14764 = vmatprep.subr.bf16.mxu1 %v18358_v24  ;;  %17068 = vmatpush3.bf16.msra.mxu0 %v18401_v28  ;;  %v18426_v24 = vld [vmem:[#allocation25 + $0xc8] sm:$0xff]  }
 0x949   :  { %17069 = vmatprep.subr.bf16.mxu0 %v18402_v42 }
 0x94b   :  { %14765 = vmatpush1.bf16.msra.mxu1 %v18356_v52  ;;  %v18427_v52 = vld [vmem:[#allocation25 + $0x88] sm:$0xff]  }
 0x94c   :  { %14766 = vmatprep.subr.bf16.mxu1 %v18361_v8  ;;  %17070 = vmatpush3.bf16.msra.mxu0 %v18403_v21  ;;  %v18428_v8 = vld [vmem:[#allocation25 + $0xc0] sm:$0xff]  }
 0x94d   :  { %17071 = vmatprep.subr.bf16.mxu0 %v18404_v44 }
 0x94f   :  { %14767 = vmatpush1.bf16.msra.mxu1 %v18359_v20  ;;  %v13984_v20 = vrot.slane %v13975_v0, %v21768_v41  ;;  %v13992_v41 = vrot.slane %v13975_v0, %v21875_v60  ;;  %v16428_v60 = vld [vmem:[#allocation26] ss:$0 sm:$0xff] }
 0x950   :  { %14768 = vmatprep.subr.bf16.mxu1 %v18364_v38  ;;  %17072 = vmatpush3.bf16.msra.mxu0 %v18405_v46 }
 0x951   :  { %17073 = vmatprep.subr.bf16.mxu0 %v18406_v37 }
 0x953   :  { %14769 = vmatpush1.bf16.msra.mxu1 %v18362_v26 }
 0x954   :  { %14770 = vmatprep.subr.bf16.mxu1 %v18367_v45  ;;  %17074 = vmatpush3.bf16.msra.mxu0 %v18407_v48 }
 0x955   :  { %17075 = vmatprep.subr.bf16.mxu0 %v18408_v63 }
 0x957   :  { %14771 = vmatpush1.bf16.msra.mxu1 %v18365_v2 }
 0x958   :  { %14772 = vmatprep.subr.bf16.mxu1 %v18370_v61  ;;  %17076 = vmatpush3.bf16.msra.mxu0 %v18409_v58 }
 0x959   :  { %17077 = vmatprep.subr.bf16.mxu0 %v18410_v34 }
 0x95b   :  { %14773 = vmatpush1.bf16.msra.mxu1 %v18368_v9 }
 0x95c   :  { %14774 = vmatprep.subr.bf16.mxu1 %v18373_v40  ;;  %17078 = vmatpush3.bf16.msra.mxu0 %v18411_v35 }
 0x95d   :  { %17079 = vmatprep.subr.bf16.mxu0 %v18412_v30 }
 0x95f   :  { %14775 = vmatpush1.bf16.msra.mxu1 %v18371_v18 }
 0x960   :  { %14776 = vmatprep.subr.bf16.mxu1 %v18376_v11  ;;  %17080 = vmatpush3.bf16.msra.mxu0 %v18413_v36 }
 0x963   :  { %14777 = vmatpush2.bf16.msra.mxu1 %v18374_v50 }
 0x964   :  { %14778 = vmatprep.subr.bf16.mxu1 %v18379_v5 }
 0x967   :  { %14779 = vmatpush2.bf16.msra.mxu1 %v18377_v16 }
 0x968   :  { %14780 = vmatprep.subr.bf16.mxu1 %v18382_v47 }
 0x96b   :  { %14781 = vmatpush2.bf16.msra.mxu1 %v18380_v62 }
 0x96c   :  { %14782 = vmatprep.subr.bf16.mxu1 %v18385_v17 }
 0x96f   :  { %14783 = vmatpush2.bf16.msra.mxu1 %v18383_v6 }
 0x970   :  { %14784 = vmatprep.subr.bf16.mxu1 %v18388_v22 }
 0x973   :  { %14785 = vmatpush2.bf16.msra.mxu1 %v18386_v51 }
 0x974   :  { %14786 = vmatprep.subr.bf16.mxu1 %v18391_v3 }
 0x977   :  { %14787 = vmatpush2.bf16.msra.mxu1 %v18389_v27 }
 0x978   :  { %14788 = vmatprep.subr.bf16.mxu1 %v18394_v53 }
 0x97b   :  { %14789 = vmatpush2.bf16.msra.mxu1 %v18392_v25 }
 0x97c   :  { %14790 = vmatprep.subr.bf16.mxu1 %v18397_v19 }
 0x97f   :  { %14791 = vmatpush2.bf16.msra.mxu1 %v18395_v15 }
 0x980   :  { %17087 = vmatprep.subr.bf16.mxu1 %v18414_v31 }
 0x982   :  { %14793 = vmatmul.mubr.bf16.vlgmr.msra.gmra.mxu1 %v21929_v56 }
 0x983   :  { %17088 = vmatpush3.bf16.msra.mxu1 %v18415_v10 }
 0x984   :  { %17089 = vmatprep.subr.bf16.mxu1 %v18416_v12 }
 0x987   :  { %17090 = vmatpush3.bf16.msra.mxu1 %v18417_v59 }
 0x988   :  { %17091 = vmatprep.subr.bf16.mxu1 %v18418_v54 }
 0x98b   :  { %17092 = vmatpush3.bf16.msra.mxu1 %v18419_v7 }
 0x98c   :  { %17093 = vmatprep.subr.bf16.mxu1 %v18420_v23 }
 0x98f   :  { %17094 = vmatpush3.bf16.msra.mxu1 %v18421_v13 }
 0x990   :  { %17095 = vmatprep.subr.bf16.mxu1 %v18422_v1 }
 0x993   :  { %17096 = vmatpush3.bf16.msra.mxu1 %v18423_v39 }
 0x994   :  { %17097 = vmatprep.subr.bf16.mxu1 %v18424_v32 }
 0x997   :  { %17098 = vmatpush3.bf16.msra.mxu1 %v18425_v29 }
 0x998   :  { %17099 = vmatprep.subr.bf16.mxu1 %v18426_v24 }
 0x99b   :  { %17100 = vmatpush3.bf16.msra.mxu1 %v18427_v52 }
 0x99c   :  { %17101 = vmatprep.subr.bf16.mxu1 %v18428_v8 }
 0x99f   :  { %17102 = vmatpush3.bf16.msra.mxu1 %v18429_v57 }
 0x9c2   :  { %v14671_v4 = vpop.f32.mrf.mxu0 }
 0x9c3   :  { %v14672_v28 = vadd.f32 %v14671_v4, %v13980_v33 }
 0x9c4   :  { %v14673_v56 = vpop.f32.mrf.mxu0 }
 0x9c5   :  { %v14674_v26 = vadd.f32 %v14673_v56, %v13984_v20 }
 0x9c6   :  { %v14675_v55 = vpop.f32.mrf.mxu0 }
 0x9c8   :  { %v14676_v43 = vpop.f32.mrf.mxu0 }
 0xa02   :  { %v14712_v38 = vpop.f32.mrf.mxu1  ;;  %v14753_v42 = vpop.f32.mrf.mxu0 }
 0xa03   :  { %v14713_v21 = vadd.f32 %v14712_v38, %v14672_v28  ;;  %v14754_v58 = vadd.f32 %v14753_v42, %v13988_v49 }
 0xa04   :  { %v14714_v45 = vpop.f32.mrf.mxu1  ;;  %v14755_v44 = vpop.f32.mrf.mxu0 }
 0xa05   :  { %v14715_v2 = vadd.f32 %v14714_v45, %v14674_v26  ;;  %v14801_v46 = vmax.f32 %v14713_v21, 0.0  ;;  %v14756_v50 = vadd.f32 %v14755_v44, %v13992_v41 }
 0xa06   :  { %v14716_v61 = vpop.f32.mrf.mxu1  ;;  %v14757_v37 = vpop.f32.mrf.mxu0 }
 0xa07   :  { %v14802_v9 = vmax.f32 %v14715_v2, 0.0  ;;  %v14805_v18 = vpack.c.bf16 %v14801_v46, %v14801_v46 }
 0xa08   :  { %v14717_v48 = vpop.f32.mrf.mxu1  ;;  %v14758_v40 = vpop.f32.mrf.mxu0 }
 0xa09   :  { %v14806_v63 = vpack.c.bf16 %v14802_v9, %v14802_v9 }
 0xa0b   :  { %15104 = vmatprep.mubr.bf16.mxu0 %v14806_v63 }
 0xa0c   :  { %15105 = vmatmul.mubr.bf16.vlgmr.msra.gmra.mxu0 %v14805_v18 }
 0xa42   :  { %v14794_v11 = vpop.f32.mrf.mxu1 }
 0xa43   :  { %v14795_v5 = vadd.f32 %v14794_v11, %v14754_v58 }
 0xa44   :  { %v14796_v16 = vpop.f32.mrf.mxu1 }
 0xa45   :  { %v14797_v47 = vadd.f32 %v14796_v16, %v14756_v50  ;;  %v14803_v62 = vmax.f32 %v14795_v5, 0.0 }
 0xa46   :  { %v14798_v17 = vpop.f32.mrf.mxu1 }
 0xa47   :  { %v14804_v6 = vmax.f32 %v14797_v47, 0.0  ;;  %v14807_v3 = vpack.c.bf16 %v14803_v62, %v14803_v62 }
 0xa48   :  { %v14799_v22 = vpop.f32.mrf.mxu1 }
 0xa49   :  { %v14808_v51 = vpack.c.bf16 %v14804_v6, %v14804_v6 }
 0xa4b   :  { %15144 = vmatprep.mubr.bf16.mxu1 %v14808_v51 }
 0xa4c   :  { %15145 = vmatmul.mubr.bf16.vlgmr.msra.gmra.mxu1 %v14807_v3 }
 0xacc   :  { %v17081_v27 = vpop.f32.mrf.mxu0 }
 0xace   :  { %v17082_v53 = vpop.f32.mrf.mxu0 }
 0xacf   :  { %v17083_v19 = vadd.f32 %v17082_v53, %v17081_v27 }
 0xad0   :  { %v17084_v25 = vpop.f32.mrf.mxu0 }
 0xad1   :  { %v15107_v35 = vadd.f32 %v17083_v19, %v16428_v60 }
 0xad2   :  { %v17085_v14 = vpop.f32.mrf.mxu0 }
 0xb0c   :  { %v17103_v15 = vpop.f32.mrf.mxu1 }
 0xb0e   :  { %v17104_v34 = vpop.f32.mrf.mxu1 }
 0xb0f   :  { %v17105_v30 = vadd.f32 %v17104_v34, %v17103_v15 }
 0xb10   :  { %v17106_v36 = vpop.f32.mrf.mxu1 }
 0xb11   :  { %v15147_v31 = vadd.f32 %v17105_v30, %v15107_v35 }
 0xb12   :  { %v17107_v10 = vpop.f32.mrf.mxu1 }
 0xb13   :  { %15152 = vst [vmem:[#allocation28] sm:$0x3] %v15147_v31 }
 0xb14   :  { %18685 = shalt.err (!%p18682_p8)
}
 0xb15   :  { %15162 = dma.vmem_to_hbm [thread:$0]  %s15160_s21, 32, %s21956_s15, [#allocation10]  }
 0xb16   :  { %18708 = dma.done.wait [#allocation10], 32  }
 0xb17   :  { %18709 = vsyncadd [#allocation10], 4294967264 }
 0xb18   :  { %15166 = vsyncpa [#allocation9], 1 }
 0xb19   :  { %15167 = vsyncpa [#allocation12], 1 }
 0xb1a   :  { %15168 = vsyncpa [#allocation15], 1 }
 0xb1b   :  { %15169 = vsyncpa [#allocation18], 1 }
 0xb1c   :  { %15170 = vsyncpa [#allocation21], 1 }
 0xb1d   :  { %15171 = vsyncpa [#allocation24], 1 }
 0xb1e   :  { %15172 = vsyncpa [#allocation27], 1 }
 0xb1f   :  { %15173 = vsyncpa [#allocation10], 1 }

</bundles_post_ra>
